<compile_context>
chip_gen: v7x
topology: tpu7x:2x2x1
jax: 0.10.0
libtpu: 0.0.40
codegen_flags: <defaults>
</compile_context>

<pallas_src>
import jax
import jax.numpy as jnp
from jax import lax
from jax.experimental import pallas as pl
from jax.experimental.pallas import tpu as pltpu

BN_EPS = 1e-5

# ---------------------------------------------------------------------------
# Static architecture description: node3_conv(in_channels=2, out_channels=2).
# Linear(7, 10) + the (3,2)/(3,1)/(1,2)-dilated kernels imply input (B, 2, 3, 10).
# ---------------------------------------------------------------------------
IN_CHANNELS = 2
OUT_CHANNELS = 2
H_JOINTS = 3
W_FRAMES = 10
LIN_IN, LIN_OUT = 7, 10

BRANCH_NAMES = ("b1", "b2", "b3")
# per block: (cin, cout, (kh, kw), dilation)
BRANCH_SPECS = {
    # conv3_1_1, conv3_1_2, conv3_1_3
    "b1": ((IN_CHANNELS, 2, (1, 2), 1), (2, 2, (3, 2), 1), (IN_CHANNELS, 2, (1, 2), 1)),
    # conv3_2_1, conv3_2_2
    "b2": ((IN_CHANNELS, 2, (1, 2), 2), (2, OUT_CHANNELS, (3, 2), 1)),
    # conv3_3_1, conv3_3_2
    "b3": ((IN_CHANNELS, 2, (1, 2), 3), (2, OUT_CHANNELS, (3, 1), 1)),
}


def _compute_layout():
    """Static offsets of every scalar parameter inside the flat SMEM vector."""
    conv_lay, off = {}, 0
    for bname in BRANCH_NAMES:
        for i, (cin, cout, (kh, kw), _d) in enumerate(BRANCH_SPECS[bname]):
            conv_lay[(bname, i)] = dict(
                s1=off,                                   # (cin,)  BN1 eval scale
                t1=off + cin,                             # (cin,)  BN1 eval shift
                w=off + 2 * cin,                          # (cout*cin*kh*kw,) folded conv w
                b=off + 2 * cin + cout * cin * kh * kw,   # (cout,) folded conv bias
            )
            off += 2 * cin + cout * cin * kh * kw + cout
    lin_lay = {}
    for bname in BRANCH_NAMES:                            # Linear weights, row-major (k, o)
        lin_lay[bname] = off
        off += LIN_IN * LIN_OUT
    return conv_lay, lin_lay, off


CONV_LAYOUT, LIN_LAYOUT, N_FLAT = _compute_layout()


# ---------------------------------------------------------------------------
# The single fused Pallas kernel (one grid step = one batch tile on the lanes).
# ---------------------------------------------------------------------------
def _node3_kernel(p_ref, x_ref, o_ref):
    # p_ref : (N_FLAT,)                         SMEM  all scalars (BN1, folded conv, linear W)
    # x_ref : (IN_CHANNELS, H, W, B_TILE)       VMEM  batch on lanes
    # o_ref : (OUT_CHANNELS, LIN_OUT, B_TILE)   VMEM  lane-dense output
    x = x_ref[...]

    def conv_block(act, lay, spec):
        """act: [ci][h] -> (w_in, B) tiles.  Returns [co][ho] -> (w_out, B) tiles."""
        cin, cout, (kh, kw), dil = spec
        h_in = len(act[0])
        w_in = act[0][0].shape[0]
        h_out = h_in - (kh - 1) * dil
        w_out = w_in - (kw - 1) * dil
        # Hoist every SMEM scalar read for this block (one sld + splat each).
        s1 = [p_ref[lay["s1"] + ci] for ci in range(cin)]
        t1 = [p_ref[lay["t1"] + ci] for ci in range(cin)]
        wgt = [[[[p_ref[lay["w"] + ((co * cin + ci) * kh + i) * kw + j]
                  for j in range(kw)] for i in range(kh)]
                for ci in range(cin)] for co in range(cout)]
        bia = [p_ref[lay["b"] + co] for co in range(cout)]
        # Eval BatchNorm2d(cin) + Sigmoid, computed once per input row (EUP).
        pre = [[jax.nn.sigmoid(act[ci][h] * s1[ci] + t1[ci]) for h in range(h_in)]
               for ci in range(cin)]
        # Hoist the kw distinct frame-shifted (sublane) views of each pre row.
        sh = [[[pre[ci][h][j * dil:j * dil + w_out, :] for j in range(kw)]
               for h in range(h_in)] for ci in range(cin)]
        out = []
        for co in range(cout):
            rows = []
            for ho in range(h_out):
                acc = None
                for ci in range(cin):
                    for i in range(kh):
                        for j in range(kw):
                            term = sh[ci][ho + i * dil][j] * wgt[co][ci][i][j]
                            acc = term if acc is None else acc + term
                # conv bias (BatchNorm2d(cout) folded in) + Sigmoid; Dropout = identity.
                rows.append(jax.nn.sigmoid(acc + bia[co]))
            out.append(rows)
        return out

    # Input activations: [ci][h] -> (W_FRAMES, B)
    x_rows = [[x[ci, h] for ci2 in (0,) for h in range(H_JOINTS)] for ci in range(IN_CHANNELS)]

    # Run the three branches; each ends with h_out == 1, w_out == LIN_IN per channel.
    branch_v = []
    for bname in BRANCH_NAMES:
        act = x_rows
        for blk_i, spec in enumerate(BRANCH_SPECS[bname]):
            act = conv_block(act, CONV_LAYOUT[(bname, blk_i)], spec)
        branch_v.append([act[co][0] for co in range(OUT_CHANNELS)])   # (LIN_IN, B) each

    # Hoist the Linear weight scalars (shared across channels within a branch).
    lin_w = {bname: [[p_ref[LIN_LAYOUT[bname] + k * LIN_OUT + o] for o in range(LIN_OUT)]
                     for k in range(LIN_IN)]
             for bname in BRANCH_NAMES}

    # Linear(7, 10, bias=False) per branch as scalar FMAs on (1, B) rows, fused with the
    # residual x[:, :, 0, :]; output written lane-dense as (C, LIN_OUT, B).
    for co in range(OUT_CHANNELS):
        vrows = [[branch_v[bi][co][k:k + 1, :] for k in range(LIN_IN)]
                 for bi in range(len(BRANCH_NAMES))]
        out_rows = []
        for o in range(LIN_OUT):
            acc = None
            for bi, bname in enumerate(BRANCH_NAMES):
                wcol = lin_w[bname]
                for k in range(LIN_IN):
                    term = vrows[bi][k] * wcol[k][o]
                    acc = term if acc is None else acc + term
            out_rows.append(acc)
        o_ref[co, :, :] = x[co, 0] + jnp.concatenate(out_rows, axis=0)


# ---------------------------------------------------------------------------
# Host-side wrapper.
# ---------------------------------------------------------------------------
def _round_up(n, m):
    return ((n + m - 1) // m) * m


def flatten_params(params):
    parts = []
    for bname in BRANCH_NAMES:
        for blk in params["conv"][bname]:
            parts += [blk["s1"], blk["t1"], blk["w"].reshape(-1), blk["b"]]
    for bi in range(len(BRANCH_NAMES)):
        parts.append(params["wlin"][bi].reshape(-1))      # (LIN_IN*LIN_OUT,), idx k*LIN_OUT+o
    return jnp.concatenate(parts).astype(jnp.float32)


def node3_forward(params, x, *, b_tile=None):
    """x: (B, 2, 3, 10) NCHW, like the PyTorch module.  Returns (B, 2, 1, 10)."""
    B = x.shape[0]
    assert x.shape[1:] == (IN_CHANNELS, H_JOINTS, W_FRAMES)
    if b_tile is None:
        b_tile = min(512, _round_up(B, 128))              # lanes per grid step
    b_pad = _round_up(B, b_tile)

    # Batch on lanes: (C, H, W, B); pad B up to a multiple of the tile (padded lanes
    # compute harmless garbage that is sliced off below — never written back to real rows).
    x_k = jnp.transpose(x, (1, 2, 3, 0)).astype(jnp.float32)
    if b_pad != B:
        x_k = jnp.pad(x_k, ((0, 0), (0, 0), (0, 0), (0, b_pad - B)))

    flat = flatten_params(params)

    out = pl.pallas_call(
        _node3_kernel,
        out_shape=jax.ShapeDtypeStruct((OUT_CHANNELS, LIN_OUT, b_pad), jnp.float32),
        grid=(b_pad // b_tile,),
        in_specs=[
            # All scalar parameters resident in SMEM (constant block across the grid).
            pl.BlockSpec((N_FLAT,), lambda i: (0,),
                         memory_space=pltpu.MemorySpace.SMEM),
            # Batch-tiled input, lane axis last -> double-buffered across grid steps.
            pl.BlockSpec((IN_CHANNELS, H_JOINTS, W_FRAMES, b_tile),
                         lambda i: (0, 0, 0, i)),
        ],
        out_specs=pl.BlockSpec((OUT_CHANNELS, LIN_OUT, b_tile), lambda i: (0, 0, i)),
        compiler_params=pltpu.CompilerParams(
            dimension_semantics=("parallel",)),            # v7x megacore; no-op on v5e/v6e
    )(flat, x_k)

    out = out[:, :, :B]                                    # (C, LIN_OUT, B)
    return jnp.transpose(out, (2, 0, 1))[:, :, None, :]    # (B, C, 1, LIN_OUT)


# ---------------------------------------------------------------------------
# Deterministic synthetic parameters (no checkpoint load).
# ---------------------------------------------------------------------------
def init_params(key):
    bn_scale = 1.0 / (1.0 + BN_EPS) ** 0.5        # eval BN with default running stats
    n_blocks = sum(len(v) for v in BRANCH_SPECS.values())
    keys = jax.random.split(key, 2 * n_blocks + len(BRANCH_NAMES))
    ki = 0
    conv = {}
    for bname in BRANCH_NAMES:
        blocks = []
        for (cin, cout, (kh, kw), _d) in BRANCH_SPECS[bname]:
            bound = 1.0 / float(cin * kh * kw) ** 0.5
            w = jax.random.uniform(keys[ki], (cout, cin, kh, kw), jnp.float32, -bound, bound)
            b = jax.random.uniform(keys[ki + 1], (cout,), jnp.float32, -bound, bound)
            ki += 2
            blocks.append(dict(
                s1=jnp.full((cin,), bn_scale, jnp.float32),   # BN1 (eval) scale
                t1=jnp.zeros((cin,), jnp.float32),            # BN1 (eval) shift
                w=w * bn_scale,                               # post-conv BN folded into conv
                b=b * bn_scale,
            ))
        conv[bname] = blocks
    bound = 1.0 / float(LIN_IN) ** 0.5
    wlin = []
    for _ in BRANCH_NAMES:
        wl = jax.random.uniform(keys[ki], (LIN_OUT, LIN_IN), jnp.float32, -bound, bound)
        ki += 1
        wlin.append(wl.T)                                     # (LIN_IN, LIN_OUT); bias=False
    return dict(conv=conv, wlin=jnp.stack(wlin))


# ---------------------------------------------------------------------------
# Pure-JAX reference (lax.conv_general_dilated) for the correctness check.
# ---------------------------------------------------------------------------
def node3_ref(params, x):
    def conv_block(h, blk, dil):
        h = jax.nn.sigmoid(h * blk["s1"][None, :, None, None] + blk["t1"][None, :, None, None])
        h = lax.conv_general_dilated(h, blk["w"], (1, 1), "VALID",
                                     rhs_dilation=(dil, dil),
                                     dimension_numbers=("NCHW", "OIHW", "NCHW"),
                                     precision=lax.Precision.HIGHEST)
        return jax.nn.sigmoid(h + blk["b"][None, :, None, None])

    outs = []
    for bi, bname in enumerate(BRANCH_NAMES):
        h = x
        for blk, (_ci, _co, _k, dil) in zip(params["conv"][bname], BRANCH_SPECS[bname]):
            h = conv_block(h, blk, dil)
        outs.append(jnp.einsum("bchw,wo->bcho", h, params["wlin"][bi],
                               precision=lax.Precision.HIGHEST))
    return x[:, :, 0:1, :] + outs[0] + outs[1] + outs[2]


if __name__ == "__main__":
    batch = 2
    key = jax.random.PRNGKey(0)
    k_param, k_data = jax.random.split(key)
    params = init_params(k_param)
    x = jax.random.normal(k_data, (batch, IN_CHANNELS, H_JOINTS, W_FRAMES), jnp.float32)

    fwd = jax.jit(node3_forward)
    out = fwd(params, x)
    jax.block_until_ready(out)
    assert out.shape == (batch, OUT_CHANNELS, 1, LIN_OUT)

    ref = node3_ref(params, x)
    err = float(jnp.max(jnp.abs(out - ref)))
    assert err < 1e-4, f"mismatch vs pure-JAX reference: {err}"
    print("KERNEL_OK")
</pallas_src>

<mosaic_0001>
module attributes {stable_mosaic.version = 11 : i64} {
  func.func @_node3_kernel(%arg0: i32, %arg1: memref<344xf32, #tpu.memory_space<smem>>, %arg2: memref<2x3x10x128xf32, #tpu.memory_space<vmem>>, %arg3: memref<2x10x128xf32, #tpu.memory_space<vmem>>) attributes {dimension_semantics = [#tpu.dimension_semantics<parallel>], iteration_bounds = array<i64: 1>, scalar_prefetch = 0 : i64, scratch_operands = 0 : i64, tpu.core_type = #tpu.core_type<tc>, window_params = [{transform_indices = @transform_0, window_bounds = array<i64: 344>}, {transform_indices = @transform_1, window_bounds = array<i64: 2, 3, 10, 128>}, {transform_indices = @transform_2, window_bounds = array<i64: 2, 10, 128>}]} {
    %c0 = arith.constant 0 : index
    %c0_0 = arith.constant 0 : index
    %c0_1 = arith.constant 0 : index
    %c0_2 = arith.constant 0 : index
    %0 = vector.load %arg2[%c0, %c0_0, %c0_1, %c0_2] : memref<2x3x10x128xf32, #tpu.memory_space<vmem>>, vector<2x3x10x128xf32>
    %1 = vector.extract_strided_slice %0 {offsets = [0, 0, 0, 0], sizes = [1, 1, 10, 128], strides = [1, 1, 1, 1]} : vector<2x3x10x128xf32> to vector<1x1x10x128xf32>
    %2 = vector.shape_cast %1 : vector<1x1x10x128xf32> to vector<10x128xf32>
    %3 = vector.extract_strided_slice %0 {offsets = [0, 1, 0, 0], sizes = [1, 1, 10, 128], strides = [1, 1, 1, 1]} : vector<2x3x10x128xf32> to vector<1x1x10x128xf32>
    %4 = vector.shape_cast %3 : vector<1x1x10x128xf32> to vector<10x128xf32>
    %5 = vector.extract_strided_slice %0 {offsets = [0, 2, 0, 0], sizes = [1, 1, 10, 128], strides = [1, 1, 1, 1]} : vector<2x3x10x128xf32> to vector<1x1x10x128xf32>
    %6 = vector.shape_cast %5 : vector<1x1x10x128xf32> to vector<10x128xf32>
    %7 = vector.extract_strided_slice %0 {offsets = [1, 0, 0, 0], sizes = [1, 1, 10, 128], strides = [1, 1, 1, 1]} : vector<2x3x10x128xf32> to vector<1x1x10x128xf32>
    %8 = vector.shape_cast %7 : vector<1x1x10x128xf32> to vector<10x128xf32>
    %9 = vector.extract_strided_slice %0 {offsets = [1, 1, 0, 0], sizes = [1, 1, 10, 128], strides = [1, 1, 1, 1]} : vector<2x3x10x128xf32> to vector<1x1x10x128xf32>
    %10 = vector.shape_cast %9 : vector<1x1x10x128xf32> to vector<10x128xf32>
    %11 = vector.extract_strided_slice %0 {offsets = [1, 2, 0, 0], sizes = [1, 1, 10, 128], strides = [1, 1, 1, 1]} : vector<2x3x10x128xf32> to vector<1x1x10x128xf32>
    %12 = vector.shape_cast %11 : vector<1x1x10x128xf32> to vector<10x128xf32>
    %c0_3 = arith.constant 0 : index
    %13 = memref.load %arg1[%c0_3] : memref<344xf32, #tpu.memory_space<smem>>
    %c1 = arith.constant 1 : index
    %14 = memref.load %arg1[%c1] : memref<344xf32, #tpu.memory_space<smem>>
    %c2 = arith.constant 2 : index
    %15 = memref.load %arg1[%c2] : memref<344xf32, #tpu.memory_space<smem>>
    %c3 = arith.constant 3 : index
    %16 = memref.load %arg1[%c3] : memref<344xf32, #tpu.memory_space<smem>>
    %c4 = arith.constant 4 : index
    %17 = memref.load %arg1[%c4] : memref<344xf32, #tpu.memory_space<smem>>
    %c5 = arith.constant 5 : index
    %18 = memref.load %arg1[%c5] : memref<344xf32, #tpu.memory_space<smem>>
    %c6 = arith.constant 6 : index
    %19 = memref.load %arg1[%c6] : memref<344xf32, #tpu.memory_space<smem>>
    %c7 = arith.constant 7 : index
    %20 = memref.load %arg1[%c7] : memref<344xf32, #tpu.memory_space<smem>>
    %c8 = arith.constant 8 : index
    %21 = memref.load %arg1[%c8] : memref<344xf32, #tpu.memory_space<smem>>
    %c9 = arith.constant 9 : index
    %22 = memref.load %arg1[%c9] : memref<344xf32, #tpu.memory_space<smem>>
    %c10 = arith.constant 10 : index
    %23 = memref.load %arg1[%c10] : memref<344xf32, #tpu.memory_space<smem>>
    %c11 = arith.constant 11 : index
    %24 = memref.load %arg1[%c11] : memref<344xf32, #tpu.memory_space<smem>>
    %c12 = arith.constant 12 : index
    %25 = memref.load %arg1[%c12] : memref<344xf32, #tpu.memory_space<smem>>
    %c13 = arith.constant 13 : index
    %26 = memref.load %arg1[%c13] : memref<344xf32, #tpu.memory_space<smem>>
    %27 = vector.broadcast %13 : f32 to vector<10x128xf32>
    %28 = arith.mulf %2, %27 : vector<10x128xf32>
    %29 = vector.broadcast %15 : f32 to vector<10x128xf32>
    %30 = arith.addf %28, %29 : vector<10x128xf32>
    %31 = arith.negf %30 : vector<10x128xf32>
    %32 = math.exp %31 : vector<10x128xf32>
    %cst = arith.constant 1.000000e+00 : f32
    %33 = vector.broadcast %cst : f32 to vector<10x128xf32>
    %34 = arith.addf %33, %32 : vector<10x128xf32>
    %35 = arith.divf %33, %34 : vector<10x128xf32>
    %36 = vector.broadcast %13 : f32 to vector<10x128xf32>
    %37 = arith.mulf %4, %36 : vector<10x128xf32>
    %38 = vector.broadcast %15 : f32 to vector<10x128xf32>
    %39 = arith.addf %37, %38 : vector<10x128xf32>
    %40 = arith.negf %39 : vector<10x128xf32>
    %41 = math.exp %40 : vector<10x128xf32>
    %cst_4 = arith.constant 1.000000e+00 : f32
    %42 = vector.broadcast %cst_4 : f32 to vector<10x128xf32>
    %43 = arith.addf %42, %41 : vector<10x128xf32>
    %44 = arith.divf %42, %43 : vector<10x128xf32>
    %45 = vector.broadcast %13 : f32 to vector<10x128xf32>
    %46 = arith.mulf %6, %45 : vector<10x128xf32>
    %47 = vector.broadcast %15 : f32 to vector<10x128xf32>
    %48 = arith.addf %46, %47 : vector<10x128xf32>
    %49 = arith.negf %48 : vector<10x128xf32>
    %50 = math.exp %49 : vector<10x128xf32>
    %cst_5 = arith.constant 1.000000e+00 : f32
    %51 = vector.broadcast %cst_5 : f32 to vector<10x128xf32>
    %52 = arith.addf %51, %50 : vector<10x128xf32>
    %53 = arith.divf %51, %52 : vector<10x128xf32>
    %54 = vector.broadcast %14 : f32 to vector<10x128xf32>
    %55 = arith.mulf %8, %54 : vector<10x128xf32>
    %56 = vector.broadcast %16 : f32 to vector<10x128xf32>
    %57 = arith.addf %55, %56 : vector<10x128xf32>
    %58 = arith.negf %57 : vector<10x128xf32>
    %59 = math.exp %58 : vector<10x128xf32>
    %cst_6 = arith.constant 1.000000e+00 : f32
    %60 = vector.broadcast %cst_6 : f32 to vector<10x128xf32>
    %61 = arith.addf %60, %59 : vector<10x128xf32>
    %62 = arith.divf %60, %61 : vector<10x128xf32>
    %63 = vector.broadcast %14 : f32 to vector<10x128xf32>
    %64 = arith.mulf %10, %63 : vector<10x128xf32>
    %65 = vector.broadcast %16 : f32 to vector<10x128xf32>
    %66 = arith.addf %64, %65 : vector<10x128xf32>
    %67 = arith.negf %66 : vector<10x128xf32>
    %68 = math.exp %67 : vector<10x128xf32>
    %cst_7 = arith.constant 1.000000e+00 : f32
    %69 = vector.broadcast %cst_7 : f32 to vector<10x128xf32>
    %70 = arith.addf %69, %68 : vector<10x128xf32>
    %71 = arith.divf %69, %70 : vector<10x128xf32>
    %72 = vector.broadcast %14 : f32 to vector<10x128xf32>
    %73 = arith.mulf %12, %72 : vector<10x128xf32>
    %74 = vector.broadcast %16 : f32 to vector<10x128xf32>
    %75 = arith.addf %73, %74 : vector<10x128xf32>
    %76 = arith.negf %75 : vector<10x128xf32>
    %77 = math.exp %76 : vector<10x128xf32>
    %cst_8 = arith.constant 1.000000e+00 : f32
    %78 = vector.broadcast %cst_8 : f32 to vector<10x128xf32>
    %79 = arith.addf %78, %77 : vector<10x128xf32>
    %80 = arith.divf %78, %79 : vector<10x128xf32>
    %81 = vector.extract_strided_slice %35 {offsets = [0, 0], sizes = [9, 128], strides = [1, 1]} : vector<10x128xf32> to vector<9x128xf32>
    %82 = vector.extract_strided_slice %35 {offsets = [1, 0], sizes = [9, 128], strides = [1, 1]} : vector<10x128xf32> to vector<9x128xf32>
    %83 = vector.extract_strided_slice %44 {offsets = [0, 0], sizes = [9, 128], strides = [1, 1]} : vector<10x128xf32> to vector<9x128xf32>
    %84 = vector.extract_strided_slice %44 {offsets = [1, 0], sizes = [9, 128], strides = [1, 1]} : vector<10x128xf32> to vector<9x128xf32>
    %85 = vector.extract_strided_slice %53 {offsets = [0, 0], sizes = [9, 128], strides = [1, 1]} : vector<10x128xf32> to vector<9x128xf32>
    %86 = vector.extract_strided_slice %53 {offsets = [1, 0], sizes = [9, 128], strides = [1, 1]} : vector<10x128xf32> to vector<9x128xf32>
    %87 = vector.extract_strided_slice %62 {offsets = [0, 0], sizes = [9, 128], strides = [1, 1]} : vector<10x128xf32> to vector<9x128xf32>
    %88 = vector.extract_strided_slice %62 {offsets = [1, 0], sizes = [9, 128], strides = [1, 1]} : vector<10x128xf32> to vector<9x128xf32>
    %89 = vector.extract_strided_slice %71 {offsets = [0, 0], sizes = [9, 128], strides = [1, 1]} : vector<10x128xf32> to vector<9x128xf32>
    %90 = vector.extract_strided_slice %71 {offsets = [1, 0], sizes = [9, 128], strides = [1, 1]} : vector<10x128xf32> to vector<9x128xf32>
    %91 = vector.extract_strided_slice %80 {offsets = [0, 0], sizes = [9, 128], strides = [1, 1]} : vector<10x128xf32> to vector<9x128xf32>
    %92 = vector.extract_strided_slice %80 {offsets = [1, 0], sizes = [9, 128], strides = [1, 1]} : vector<10x128xf32> to vector<9x128xf32>
    %93 = vector.broadcast %17 : f32 to vector<9x128xf32>
    %94 = arith.mulf %81, %93 : vector<9x128xf32>
    %95 = vector.broadcast %18 : f32 to vector<9x128xf32>
    %96 = arith.mulf %82, %95 : vector<9x128xf32>
    %97 = arith.addf %94, %96 : vector<9x128xf32>
    %98 = vector.broadcast %19 : f32 to vector<9x128xf32>
    %99 = arith.mulf %87, %98 : vector<9x128xf32>
    %100 = arith.addf %97, %99 : vector<9x128xf32>
    %101 = vector.broadcast %20 : f32 to vector<9x128xf32>
    %102 = arith.mulf %88, %101 : vector<9x128xf32>
    %103 = arith.addf %100, %102 : vector<9x128xf32>
    %104 = vector.broadcast %25 : f32 to vector<9x128xf32>
    %105 = arith.addf %103, %104 : vector<9x128xf32>
    %106 = arith.negf %105 : vector<9x128xf32>
    %107 = math.exp %106 : vector<9x128xf32>
    %cst_9 = arith.constant 1.000000e+00 : f32
    %108 = vector.broadcast %cst_9 : f32 to vector<9x128xf32>
    %109 = arith.addf %108, %107 : vector<9x128xf32>
    %110 = arith.divf %108, %109 : vector<9x128xf32>
    %111 = vector.broadcast %17 : f32 to vector<9x128xf32>
    %112 = arith.mulf %83, %111 : vector<9x128xf32>
    %113 = vector.broadcast %18 : f32 to vector<9x128xf32>
    %114 = arith.mulf %84, %113 : vector<9x128xf32>
    %115 = arith.addf %112, %114 : vector<9x128xf32>
    %116 = vector.broadcast %19 : f32 to vector<9x128xf32>
    %117 = arith.mulf %89, %116 : vector<9x128xf32>
    %118 = arith.addf %115, %117 : vector<9x128xf32>
    %119 = vector.broadcast %20 : f32 to vector<9x128xf32>
    %120 = arith.mulf %90, %119 : vector<9x128xf32>
    %121 = arith.addf %118, %120 : vector<9x128xf32>
    %122 = vector.broadcast %25 : f32 to vector<9x128xf32>
    %123 = arith.addf %121, %122 : vector<9x128xf32>
    %124 = arith.negf %123 : vector<9x128xf32>
    %125 = math.exp %124 : vector<9x128xf32>
    %cst_10 = arith.constant 1.000000e+00 : f32
    %126 = vector.broadcast %cst_10 : f32 to vector<9x128xf32>
    %127 = arith.addf %126, %125 : vector<9x128xf32>
    %128 = arith.divf %126, %127 : vector<9x128xf32>
    %129 = vector.broadcast %17 : f32 to vector<9x128xf32>
    %130 = arith.mulf %85, %129 : vector<9x128xf32>
    %131 = vector.broadcast %18 : f32 to vector<9x128xf32>
    %132 = arith.mulf %86, %131 : vector<9x128xf32>
    %133 = arith.addf %130, %132 : vector<9x128xf32>
    %134 = vector.broadcast %19 : f32 to vector<9x128xf32>
    %135 = arith.mulf %91, %134 : vector<9x128xf32>
    %136 = arith.addf %133, %135 : vector<9x128xf32>
    %137 = vector.broadcast %20 : f32 to vector<9x128xf32>
    %138 = arith.mulf %92, %137 : vector<9x128xf32>
    %139 = arith.addf %136, %138 : vector<9x128xf32>
    %140 = vector.broadcast %25 : f32 to vector<9x128xf32>
    %141 = arith.addf %139, %140 : vector<9x128xf32>
    %142 = arith.negf %141 : vector<9x128xf32>
    %143 = math.exp %142 : vector<9x128xf32>
    %cst_11 = arith.constant 1.000000e+00 : f32
    %144 = vector.broadcast %cst_11 : f32 to vector<9x128xf32>
    %145 = arith.addf %144, %143 : vector<9x128xf32>
    %146 = arith.divf %144, %145 : vector<9x128xf32>
    %147 = vector.broadcast %21 : f32 to vector<9x128xf32>
    %148 = arith.mulf %81, %147 : vector<9x128xf32>
    %149 = vector.broadcast %22 : f32 to vector<9x128xf32>
    %150 = arith.mulf %82, %149 : vector<9x128xf32>
    %151 = arith.addf %148, %150 : vector<9x128xf32>
    %152 = vector.broadcast %23 : f32 to vector<9x128xf32>
    %153 = arith.mulf %87, %152 : vector<9x128xf32>
    %154 = arith.addf %151, %153 : vector<9x128xf32>
    %155 = vector.broadcast %24 : f32 to vector<9x128xf32>
    %156 = arith.mulf %88, %155 : vector<9x128xf32>
    %157 = arith.addf %154, %156 : vector<9x128xf32>
    %158 = vector.broadcast %26 : f32 to vector<9x128xf32>
    %159 = arith.addf %157, %158 : vector<9x128xf32>
    %160 = arith.negf %159 : vector<9x128xf32>
    %161 = math.exp %160 : vector<9x128xf32>
    %cst_12 = arith.constant 1.000000e+00 : f32
    %162 = vector.broadcast %cst_12 : f32 to vector<9x128xf32>
    %163 = arith.addf %162, %161 : vector<9x128xf32>
    %164 = arith.divf %162, %163 : vector<9x128xf32>
    %165 = vector.broadcast %21 : f32 to vector<9x128xf32>
    %166 = arith.mulf %83, %165 : vector<9x128xf32>
    %167 = vector.broadcast %22 : f32 to vector<9x128xf32>
    %168 = arith.mulf %84, %167 : vector<9x128xf32>
    %169 = arith.addf %166, %168 : vector<9x128xf32>
    %170 = vector.broadcast %23 : f32 to vector<9x128xf32>
    %171 = arith.mulf %89, %170 : vector<9x128xf32>
    %172 = arith.addf %169, %171 : vector<9x128xf32>
    %173 = vector.broadcast %24 : f32 to vector<9x128xf32>
    %174 = arith.mulf %90, %173 : vector<9x128xf32>
    %175 = arith.addf %172, %174 : vector<9x128xf32>
    %176 = vector.broadcast %26 : f32 to vector<9x128xf32>
    %177 = arith.addf %175, %176 : vector<9x128xf32>
    %178 = arith.negf %177 : vector<9x128xf32>
    %179 = math.exp %178 : vector<9x128xf32>
    %cst_13 = arith.constant 1.000000e+00 : f32
    %180 = vector.broadcast %cst_13 : f32 to vector<9x128xf32>
    %181 = arith.addf %180, %179 : vector<9x128xf32>
    %182 = arith.divf %180, %181 : vector<9x128xf32>
    %183 = vector.broadcast %21 : f32 to vector<9x128xf32>
    %184 = arith.mulf %85, %183 : vector<9x128xf32>
    %185 = vector.broadcast %22 : f32 to vector<9x128xf32>
    %186 = arith.mulf %86, %185 : vector<9x128xf32>
    %187 = arith.addf %184, %186 : vector<9x128xf32>
    %188 = vector.broadcast %23 : f32 to vector<9x128xf32>
    %189 = arith.mulf %91, %188 : vector<9x128xf32>
    %190 = arith.addf %187, %189 : vector<9x128xf32>
    %191 = vector.broadcast %24 : f32 to vector<9x128xf32>
    %192 = arith.mulf %92, %191 : vector<9x128xf32>
    %193 = arith.addf %190, %192 : vector<9x128xf32>
    %194 = vector.broadcast %26 : f32 to vector<9x128xf32>
    %195 = arith.addf %193, %194 : vector<9x128xf32>
    %196 = arith.negf %195 : vector<9x128xf32>
    %197 = math.exp %196 : vector<9x128xf32>
    %cst_14 = arith.constant 1.000000e+00 : f32
    %198 = vector.broadcast %cst_14 : f32 to vector<9x128xf32>
    %199 = arith.addf %198, %197 : vector<9x128xf32>
    %200 = arith.divf %198, %199 : vector<9x128xf32>
    %c14 = arith.constant 14 : index
    %201 = memref.load %arg1[%c14] : memref<344xf32, #tpu.memory_space<smem>>
    %c15 = arith.constant 15 : index
    %202 = memref.load %arg1[%c15] : memref<344xf32, #tpu.memory_space<smem>>
    %c16 = arith.constant 16 : index
    %203 = memref.load %arg1[%c16] : memref<344xf32, #tpu.memory_space<smem>>
    %c17 = arith.constant 17 : index
    %204 = memref.load %arg1[%c17] : memref<344xf32, #tpu.memory_space<smem>>
    %c18 = arith.constant 18 : index
    %205 = memref.load %arg1[%c18] : memref<344xf32, #tpu.memory_space<smem>>
    %c19 = arith.constant 19 : index
    %206 = memref.load %arg1[%c19] : memref<344xf32, #tpu.memory_space<smem>>
    %c20 = arith.constant 20 : index
    %207 = memref.load %arg1[%c20] : memref<344xf32, #tpu.memory_space<smem>>
    %c21 = arith.constant 21 : index
    %208 = memref.load %arg1[%c21] : memref<344xf32, #tpu.memory_space<smem>>
    %c22 = arith.constant 22 : index
    %209 = memref.load %arg1[%c22] : memref<344xf32, #tpu.memory_space<smem>>
    %c23 = arith.constant 23 : index
    %210 = memref.load %arg1[%c23] : memref<344xf32, #tpu.memory_space<smem>>
    %c24 = arith.constant 24 : index
    %211 = memref.load %arg1[%c24] : memref<344xf32, #tpu.memory_space<smem>>
    %c25 = arith.constant 25 : index
    %212 = memref.load %arg1[%c25] : memref<344xf32, #tpu.memory_space<smem>>
    %c26 = arith.constant 26 : index
    %213 = memref.load %arg1[%c26] : memref<344xf32, #tpu.memory_space<smem>>
    %c27 = arith.constant 27 : index
    %214 = memref.load %arg1[%c27] : memref<344xf32, #tpu.memory_space<smem>>
    %c28 = arith.constant 28 : index
    %215 = memref.load %arg1[%c28] : memref<344xf32, #tpu.memory_space<smem>>
    %c29 = arith.constant 29 : index
    %216 = memref.load %arg1[%c29] : memref<344xf32, #tpu.memory_space<smem>>
    %c30 = arith.constant 30 : index
    %217 = memref.load %arg1[%c30] : memref<344xf32, #tpu.memory_space<smem>>
    %c31 = arith.constant 31 : index
    %218 = memref.load %arg1[%c31] : memref<344xf32, #tpu.memory_space<smem>>
    %c32 = arith.constant 32 : index
    %219 = memref.load %arg1[%c32] : memref<344xf32, #tpu.memory_space<smem>>
    %c33 = arith.constant 33 : index
    %220 = memref.load %arg1[%c33] : memref<344xf32, #tpu.memory_space<smem>>
    %c34 = arith.constant 34 : index
    %221 = memref.load %arg1[%c34] : memref<344xf32, #tpu.memory_space<smem>>
    %c35 = arith.constant 35 : index
    %222 = memref.load %arg1[%c35] : memref<344xf32, #tpu.memory_space<smem>>
    %c36 = arith.constant 36 : index
    %223 = memref.load %arg1[%c36] : memref<344xf32, #tpu.memory_space<smem>>
    %c37 = arith.constant 37 : index
    %224 = memref.load %arg1[%c37] : memref<344xf32, #tpu.memory_space<smem>>
    %c38 = arith.constant 38 : index
    %225 = memref.load %arg1[%c38] : memref<344xf32, #tpu.memory_space<smem>>
    %c39 = arith.constant 39 : index
    %226 = memref.load %arg1[%c39] : memref<344xf32, #tpu.memory_space<smem>>
    %c40 = arith.constant 40 : index
    %227 = memref.load %arg1[%c40] : memref<344xf32, #tpu.memory_space<smem>>
    %c41 = arith.constant 41 : index
    %228 = memref.load %arg1[%c41] : memref<344xf32, #tpu.memory_space<smem>>
    %c42 = arith.constant 42 : index
    %229 = memref.load %arg1[%c42] : memref<344xf32, #tpu.memory_space<smem>>
    %c43 = arith.constant 43 : index
    %230 = memref.load %arg1[%c43] : memref<344xf32, #tpu.memory_space<smem>>
    %231 = vector.broadcast %201 : f32 to vector<9x128xf32>
    %232 = arith.mulf %110, %231 : vector<9x128xf32>
    %233 = vector.broadcast %203 : f32 to vector<9x128xf32>
    %234 = arith.addf %232, %233 : vector<9x128xf32>
    %235 = arith.negf %234 : vector<9x128xf32>
    %236 = math.exp %235 : vector<9x128xf32>
    %cst_15 = arith.constant 1.000000e+00 : f32
    %237 = vector.broadcast %cst_15 : f32 to vector<9x128xf32>
    %238 = arith.addf %237, %236 : vector<9x128xf32>
    %239 = arith.divf %237, %238 : vector<9x128xf32>
    %240 = vector.broadcast %201 : f32 to vector<9x128xf32>
    %241 = arith.mulf %128, %240 : vector<9x128xf32>
    %242 = vector.broadcast %203 : f32 to vector<9x128xf32>
    %243 = arith.addf %241, %242 : vector<9x128xf32>
    %244 = arith.negf %243 : vector<9x128xf32>
    %245 = math.exp %244 : vector<9x128xf32>
    %cst_16 = arith.constant 1.000000e+00 : f32
    %246 = vector.broadcast %cst_16 : f32 to vector<9x128xf32>
    %247 = arith.addf %246, %245 : vector<9x128xf32>
    %248 = arith.divf %246, %247 : vector<9x128xf32>
    %249 = vector.broadcast %201 : f32 to vector<9x128xf32>
    %250 = arith.mulf %146, %249 : vector<9x128xf32>
    %251 = vector.broadcast %203 : f32 to vector<9x128xf32>
    %252 = arith.addf %250, %251 : vector<9x128xf32>
    %253 = arith.negf %252 : vector<9x128xf32>
    %254 = math.exp %253 : vector<9x128xf32>
    %cst_17 = arith.constant 1.000000e+00 : f32
    %255 = vector.broadcast %cst_17 : f32 to vector<9x128xf32>
    %256 = arith.addf %255, %254 : vector<9x128xf32>
    %257 = arith.divf %255, %256 : vector<9x128xf32>
    %258 = vector.broadcast %202 : f32 to vector<9x128xf32>
    %259 = arith.mulf %164, %258 : vector<9x128xf32>
    %260 = vector.broadcast %204 : f32 to vector<9x128xf32>
    %261 = arith.addf %259, %260 : vector<9x128xf32>
    %262 = arith.negf %261 : vector<9x128xf32>
    %263 = math.exp %262 : vector<9x128xf32>
    %cst_18 = arith.constant 1.000000e+00 : f32
    %264 = vector.broadcast %cst_18 : f32 to vector<9x128xf32>
    %265 = arith.addf %264, %263 : vector<9x128xf32>
    %266 = arith.divf %264, %265 : vector<9x128xf32>
    %267 = vector.broadcast %202 : f32 to vector<9x128xf32>
    %268 = arith.mulf %182, %267 : vector<9x128xf32>
    %269 = vector.broadcast %204 : f32 to vector<9x128xf32>
    %270 = arith.addf %268, %269 : vector<9x128xf32>
    %271 = arith.negf %270 : vector<9x128xf32>
    %272 = math.exp %271 : vector<9x128xf32>
    %cst_19 = arith.constant 1.000000e+00 : f32
    %273 = vector.broadcast %cst_19 : f32 to vector<9x128xf32>
    %274 = arith.addf %273, %272 : vector<9x128xf32>
    %275 = arith.divf %273, %274 : vector<9x128xf32>
    %276 = vector.broadcast %202 : f32 to vector<9x128xf32>
    %277 = arith.mulf %200, %276 : vector<9x128xf32>
    %278 = vector.broadcast %204 : f32 to vector<9x128xf32>
    %279 = arith.addf %277, %278 : vector<9x128xf32>
    %280 = arith.negf %279 : vector<9x128xf32>
    %281 = math.exp %280 : vector<9x128xf32>
    %cst_20 = arith.constant 1.000000e+00 : f32
    %282 = vector.broadcast %cst_20 : f32 to vector<9x128xf32>
    %283 = arith.addf %282, %281 : vector<9x128xf32>
    %284 = arith.divf %282, %283 : vector<9x128xf32>
    %285 = vector.extract_strided_slice %239 {offsets = [0, 0], sizes = [8, 128], strides = [1, 1]} : vector<9x128xf32> to vector<8x128xf32>
    %286 = vector.extract_strided_slice %239 {offsets = [1, 0], sizes = [8, 128], strides = [1, 1]} : vector<9x128xf32> to vector<8x128xf32>
    %287 = vector.extract_strided_slice %248 {offsets = [0, 0], sizes = [8, 128], strides = [1, 1]} : vector<9x128xf32> to vector<8x128xf32>
    %288 = vector.extract_strided_slice %248 {offsets = [1, 0], sizes = [8, 128], strides = [1, 1]} : vector<9x128xf32> to vector<8x128xf32>
    %289 = vector.extract_strided_slice %257 {offsets = [0, 0], sizes = [8, 128], strides = [1, 1]} : vector<9x128xf32> to vector<8x128xf32>
    %290 = vector.extract_strided_slice %257 {offsets = [1, 0], sizes = [8, 128], strides = [1, 1]} : vector<9x128xf32> to vector<8x128xf32>
    %291 = vector.extract_strided_slice %266 {offsets = [0, 0], sizes = [8, 128], strides = [1, 1]} : vector<9x128xf32> to vector<8x128xf32>
    %292 = vector.extract_strided_slice %266 {offsets = [1, 0], sizes = [8, 128], strides = [1, 1]} : vector<9x128xf32> to vector<8x128xf32>
    %293 = vector.extract_strided_slice %275 {offsets = [0, 0], sizes = [8, 128], strides = [1, 1]} : vector<9x128xf32> to vector<8x128xf32>
    %294 = vector.extract_strided_slice %275 {offsets = [1, 0], sizes = [8, 128], strides = [1, 1]} : vector<9x128xf32> to vector<8x128xf32>
    %295 = vector.extract_strided_slice %284 {offsets = [0, 0], sizes = [8, 128], strides = [1, 1]} : vector<9x128xf32> to vector<8x128xf32>
    %296 = vector.extract_strided_slice %284 {offsets = [1, 0], sizes = [8, 128], strides = [1, 1]} : vector<9x128xf32> to vector<8x128xf32>
    %297 = vector.broadcast %205 : f32 to vector<8x128xf32>
    %298 = arith.mulf %285, %297 : vector<8x128xf32>
    %299 = vector.broadcast %206 : f32 to vector<8x128xf32>
    %300 = arith.mulf %286, %299 : vector<8x128xf32>
    %301 = arith.addf %298, %300 : vector<8x128xf32>
    %302 = vector.broadcast %207 : f32 to vector<8x128xf32>
    %303 = arith.mulf %287, %302 : vector<8x128xf32>
    %304 = arith.addf %301, %303 : vector<8x128xf32>
    %305 = vector.broadcast %208 : f32 to vector<8x128xf32>
    %306 = arith.mulf %288, %305 : vector<8x128xf32>
    %307 = arith.addf %304, %306 : vector<8x128xf32>
    %308 = vector.broadcast %209 : f32 to vector<8x128xf32>
    %309 = arith.mulf %289, %308 : vector<8x128xf32>
    %310 = arith.addf %307, %309 : vector<8x128xf32>
    %311 = vector.broadcast %210 : f32 to vector<8x128xf32>
    %312 = arith.mulf %290, %311 : vector<8x128xf32>
    %313 = arith.addf %310, %312 : vector<8x128xf32>
    %314 = vector.broadcast %211 : f32 to vector<8x128xf32>
    %315 = arith.mulf %291, %314 : vector<8x128xf32>
    %316 = arith.addf %313, %315 : vector<8x128xf32>
    %317 = vector.broadcast %212 : f32 to vector<8x128xf32>
    %318 = arith.mulf %292, %317 : vector<8x128xf32>
    %319 = arith.addf %316, %318 : vector<8x128xf32>
    %320 = vector.broadcast %213 : f32 to vector<8x128xf32>
    %321 = arith.mulf %293, %320 : vector<8x128xf32>
    %322 = arith.addf %319, %321 : vector<8x128xf32>
    %323 = vector.broadcast %214 : f32 to vector<8x128xf32>
    %324 = arith.mulf %294, %323 : vector<8x128xf32>
    %325 = arith.addf %322, %324 : vector<8x128xf32>
    %326 = vector.broadcast %215 : f32 to vector<8x128xf32>
    %327 = arith.mulf %295, %326 : vector<8x128xf32>
    %328 = arith.addf %325, %327 : vector<8x128xf32>
    %329 = vector.broadcast %216 : f32 to vector<8x128xf32>
    %330 = arith.mulf %296, %329 : vector<8x128xf32>
    %331 = arith.addf %328, %330 : vector<8x128xf32>
    %332 = vector.broadcast %229 : f32 to vector<8x128xf32>
    %333 = arith.addf %331, %332 : vector<8x128xf32>
    %334 = arith.negf %333 : vector<8x128xf32>
    %335 = math.exp %334 : vector<8x128xf32>
    %cst_21 = arith.constant 1.000000e+00 : f32
    %336 = vector.broadcast %cst_21 : f32 to vector<8x128xf32>
    %337 = arith.addf %336, %335 : vector<8x128xf32>
    %338 = arith.divf %336, %337 : vector<8x128xf32>
    %339 = vector.broadcast %217 : f32 to vector<8x128xf32>
    %340 = arith.mulf %285, %339 : vector<8x128xf32>
    %341 = vector.broadcast %218 : f32 to vector<8x128xf32>
    %342 = arith.mulf %286, %341 : vector<8x128xf32>
    %343 = arith.addf %340, %342 : vector<8x128xf32>
    %344 = vector.broadcast %219 : f32 to vector<8x128xf32>
    %345 = arith.mulf %287, %344 : vector<8x128xf32>
    %346 = arith.addf %343, %345 : vector<8x128xf32>
    %347 = vector.broadcast %220 : f32 to vector<8x128xf32>
    %348 = arith.mulf %288, %347 : vector<8x128xf32>
    %349 = arith.addf %346, %348 : vector<8x128xf32>
    %350 = vector.broadcast %221 : f32 to vector<8x128xf32>
    %351 = arith.mulf %289, %350 : vector<8x128xf32>
    %352 = arith.addf %349, %351 : vector<8x128xf32>
    %353 = vector.broadcast %222 : f32 to vector<8x128xf32>
    %354 = arith.mulf %290, %353 : vector<8x128xf32>
    %355 = arith.addf %352, %354 : vector<8x128xf32>
    %356 = vector.broadcast %223 : f32 to vector<8x128xf32>
    %357 = arith.mulf %291, %356 : vector<8x128xf32>
    %358 = arith.addf %355, %357 : vector<8x128xf32>
    %359 = vector.broadcast %224 : f32 to vector<8x128xf32>
    %360 = arith.mulf %292, %359 : vector<8x128xf32>
    %361 = arith.addf %358, %360 : vector<8x128xf32>
    %362 = vector.broadcast %225 : f32 to vector<8x128xf32>
    %363 = arith.mulf %293, %362 : vector<8x128xf32>
    %364 = arith.addf %361, %363 : vector<8x128xf32>
    %365 = vector.broadcast %226 : f32 to vector<8x128xf32>
    %366 = arith.mulf %294, %365 : vector<8x128xf32>
    %367 = arith.addf %364, %366 : vector<8x128xf32>
    %368 = vector.broadcast %227 : f32 to vector<8x128xf32>
    %369 = arith.mulf %295, %368 : vector<8x128xf32>
    %370 = arith.addf %367, %369 : vector<8x128xf32>
    %371 = vector.broadcast %228 : f32 to vector<8x128xf32>
    %372 = arith.mulf %296, %371 : vector<8x128xf32>
    %373 = arith.addf %370, %372 : vector<8x128xf32>
    %374 = vector.broadcast %230 : f32 to vector<8x128xf32>
    %375 = arith.addf %373, %374 : vector<8x128xf32>
    %376 = arith.negf %375 : vector<8x128xf32>
    %377 = math.exp %376 : vector<8x128xf32>
    %cst_22 = arith.constant 1.000000e+00 : f32
    %378 = vector.broadcast %cst_22 : f32 to vector<8x128xf32>
    %379 = arith.addf %378, %377 : vector<8x128xf32>
    %380 = arith.divf %378, %379 : vector<8x128xf32>
    %c44 = arith.constant 44 : index
    %381 = memref.load %arg1[%c44] : memref<344xf32, #tpu.memory_space<smem>>
    %c45 = arith.constant 45 : index
    %382 = memref.load %arg1[%c45] : memref<344xf32, #tpu.memory_space<smem>>
    %c46 = arith.constant 46 : index
    %383 = memref.load %arg1[%c46] : memref<344xf32, #tpu.memory_space<smem>>
    %c47 = arith.constant 47 : index
    %384 = memref.load %arg1[%c47] : memref<344xf32, #tpu.memory_space<smem>>
    %c48 = arith.constant 48 : index
    %385 = memref.load %arg1[%c48] : memref<344xf32, #tpu.memory_space<smem>>
    %c49 = arith.constant 49 : index
    %386 = memref.load %arg1[%c49] : memref<344xf32, #tpu.memory_space<smem>>
    %c50 = arith.constant 50 : index
    %387 = memref.load %arg1[%c50] : memref<344xf32, #tpu.memory_space<smem>>
    %c51 = arith.constant 51 : index
    %388 = memref.load %arg1[%c51] : memref<344xf32, #tpu.memory_space<smem>>
    %c52 = arith.constant 52 : index
    %389 = memref.load %arg1[%c52] : memref<344xf32, #tpu.memory_space<smem>>
    %c53 = arith.constant 53 : index
    %390 = memref.load %arg1[%c53] : memref<344xf32, #tpu.memory_space<smem>>
    %c54 = arith.constant 54 : index
    %391 = memref.load %arg1[%c54] : memref<344xf32, #tpu.memory_space<smem>>
    %c55 = arith.constant 55 : index
    %392 = memref.load %arg1[%c55] : memref<344xf32, #tpu.memory_space<smem>>
    %c56 = arith.constant 56 : index
    %393 = memref.load %arg1[%c56] : memref<344xf32, #tpu.memory_space<smem>>
    %c57 = arith.constant 57 : index
    %394 = memref.load %arg1[%c57] : memref<344xf32, #tpu.memory_space<smem>>
    %395 = vector.broadcast %381 : f32 to vector<8x128xf32>
    %396 = arith.mulf %338, %395 : vector<8x128xf32>
    %397 = vector.broadcast %383 : f32 to vector<8x128xf32>
    %398 = arith.addf %396, %397 : vector<8x128xf32>
    %399 = arith.negf %398 : vector<8x128xf32>
    %400 = math.exp %399 : vector<8x128xf32>
    %cst_23 = arith.constant 1.000000e+00 : f32
    %401 = vector.broadcast %cst_23 : f32 to vector<8x128xf32>
    %402 = arith.addf %401, %400 : vector<8x128xf32>
    %403 = arith.divf %401, %402 : vector<8x128xf32>
    %404 = vector.broadcast %382 : f32 to vector<8x128xf32>
    %405 = arith.mulf %380, %404 : vector<8x128xf32>
    %406 = vector.broadcast %384 : f32 to vector<8x128xf32>
    %407 = arith.addf %405, %406 : vector<8x128xf32>
    %408 = arith.negf %407 : vector<8x128xf32>
    %409 = math.exp %408 : vector<8x128xf32>
    %cst_24 = arith.constant 1.000000e+00 : f32
    %410 = vector.broadcast %cst_24 : f32 to vector<8x128xf32>
    %411 = arith.addf %410, %409 : vector<8x128xf32>
    %412 = arith.divf %410, %411 : vector<8x128xf32>
    %413 = vector.extract_strided_slice %403 {offsets = [0, 0], sizes = [7, 128], strides = [1, 1]} : vector<8x128xf32> to vector<7x128xf32>
    %414 = vector.extract_strided_slice %403 {offsets = [1, 0], sizes = [7, 128], strides = [1, 1]} : vector<8x128xf32> to vector<7x128xf32>
    %415 = vector.extract_strided_slice %412 {offsets = [0, 0], sizes = [7, 128], strides = [1, 1]} : vector<8x128xf32> to vector<7x128xf32>
    %416 = vector.extract_strided_slice %412 {offsets = [1, 0], sizes = [7, 128], strides = [1, 1]} : vector<8x128xf32> to vector<7x128xf32>
    %417 = vector.broadcast %385 : f32 to vector<7x128xf32>
    %418 = arith.mulf %413, %417 : vector<7x128xf32>
    %419 = vector.broadcast %386 : f32 to vector<7x128xf32>
    %420 = arith.mulf %414, %419 : vector<7x128xf32>
    %421 = arith.addf %418, %420 : vector<7x128xf32>
    %422 = vector.broadcast %387 : f32 to vector<7x128xf32>
    %423 = arith.mulf %415, %422 : vector<7x128xf32>
    %424 = arith.addf %421, %423 : vector<7x128xf32>
    %425 = vector.broadcast %388 : f32 to vector<7x128xf32>
    %426 = arith.mulf %416, %425 : vector<7x128xf32>
    %427 = arith.addf %424, %426 : vector<7x128xf32>
    %428 = vector.broadcast %393 : f32 to vector<7x128xf32>
    %429 = arith.addf %427, %428 : vector<7x128xf32>
    %430 = arith.negf %429 : vector<7x128xf32>
    %431 = math.exp %430 : vector<7x128xf32>
    %cst_25 = arith.constant 1.000000e+00 : f32
    %432 = vector.broadcast %cst_25 : f32 to vector<7x128xf32>
    %433 = arith.addf %432, %431 : vector<7x128xf32>
    %434 = arith.divf %432, %433 : vector<7x128xf32>
    %435 = vector.broadcast %389 : f32 to vector<7x128xf32>
    %436 = arith.mulf %413, %435 : vector<7x128xf32>
    %437 = vector.broadcast %390 : f32 to vector<7x128xf32>
    %438 = arith.mulf %414, %437 : vector<7x128xf32>
    %439 = arith.addf %436, %438 : vector<7x128xf32>
    %440 = vector.broadcast %391 : f32 to vector<7x128xf32>
    %441 = arith.mulf %415, %440 : vector<7x128xf32>
    %442 = arith.addf %439, %441 : vector<7x128xf32>
    %443 = vector.broadcast %392 : f32 to vector<7x128xf32>
    %444 = arith.mulf %416, %443 : vector<7x128xf32>
    %445 = arith.addf %442, %444 : vector<7x128xf32>
    %446 = vector.broadcast %394 : f32 to vector<7x128xf32>
    %447 = arith.addf %445, %446 : vector<7x128xf32>
    %448 = arith.negf %447 : vector<7x128xf32>
    %449 = math.exp %448 : vector<7x128xf32>
    %cst_26 = arith.constant 1.000000e+00 : f32
    %450 = vector.broadcast %cst_26 : f32 to vector<7x128xf32>
    %451 = arith.addf %450, %449 : vector<7x128xf32>
    %452 = arith.divf %450, %451 : vector<7x128xf32>
    %c58 = arith.constant 58 : index
    %453 = memref.load %arg1[%c58] : memref<344xf32, #tpu.memory_space<smem>>
    %c59 = arith.constant 59 : index
    %454 = memref.load %arg1[%c59] : memref<344xf32, #tpu.memory_space<smem>>
    %c60 = arith.constant 60 : index
    %455 = memref.load %arg1[%c60] : memref<344xf32, #tpu.memory_space<smem>>
    %c61 = arith.constant 61 : index
    %456 = memref.load %arg1[%c61] : memref<344xf32, #tpu.memory_space<smem>>
    %c62 = arith.constant 62 : index
    %457 = memref.load %arg1[%c62] : memref<344xf32, #tpu.memory_space<smem>>
    %c63 = arith.constant 63 : index
    %458 = memref.load %arg1[%c63] : memref<344xf32, #tpu.memory_space<smem>>
    %c64 = arith.constant 64 : index
    %459 = memref.load %arg1[%c64] : memref<344xf32, #tpu.memory_space<smem>>
    %c65 = arith.constant 65 : index
    %460 = memref.load %arg1[%c65] : memref<344xf32, #tpu.memory_space<smem>>
    %c66 = arith.constant 66 : index
    %461 = memref.load %arg1[%c66] : memref<344xf32, #tpu.memory_space<smem>>
    %c67 = arith.constant 67 : index
    %462 = memref.load %arg1[%c67] : memref<344xf32, #tpu.memory_space<smem>>
    %c68 = arith.constant 68 : index
    %463 = memref.load %arg1[%c68] : memref<344xf32, #tpu.memory_space<smem>>
    %c69 = arith.constant 69 : index
    %464 = memref.load %arg1[%c69] : memref<344xf32, #tpu.memory_space<smem>>
    %c70 = arith.constant 70 : index
    %465 = memref.load %arg1[%c70] : memref<344xf32, #tpu.memory_space<smem>>
    %c71 = arith.constant 71 : index
    %466 = memref.load %arg1[%c71] : memref<344xf32, #tpu.memory_space<smem>>
    %467 = vector.broadcast %453 : f32 to vector<10x128xf32>
    %468 = arith.mulf %2, %467 : vector<10x128xf32>
    %469 = vector.broadcast %455 : f32 to vector<10x128xf32>
    %470 = arith.addf %468, %469 : vector<10x128xf32>
    %471 = arith.negf %470 : vector<10x128xf32>
    %472 = math.exp %471 : vector<10x128xf32>
    %cst_27 = arith.constant 1.000000e+00 : f32
    %473 = vector.broadcast %cst_27 : f32 to vector<10x128xf32>
    %474 = arith.addf %473, %472 : vector<10x128xf32>
    %475 = arith.divf %473, %474 : vector<10x128xf32>
    %476 = vector.broadcast %453 : f32 to vector<10x128xf32>
    %477 = arith.mulf %4, %476 : vector<10x128xf32>
    %478 = vector.broadcast %455 : f32 to vector<10x128xf32>
    %479 = arith.addf %477, %478 : vector<10x128xf32>
    %480 = arith.negf %479 : vector<10x128xf32>
    %481 = math.exp %480 : vector<10x128xf32>
    %cst_28 = arith.constant 1.000000e+00 : f32
    %482 = vector.broadcast %cst_28 : f32 to vector<10x128xf32>
    %483 = arith.addf %482, %481 : vector<10x128xf32>
    %484 = arith.divf %482, %483 : vector<10x128xf32>
    %485 = vector.broadcast %453 : f32 to vector<10x128xf32>
    %486 = arith.mulf %6, %485 : vector<10x128xf32>
    %487 = vector.broadcast %455 : f32 to vector<10x128xf32>
    %488 = arith.addf %486, %487 : vector<10x128xf32>
    %489 = arith.negf %488 : vector<10x128xf32>
    %490 = math.exp %489 : vector<10x128xf32>
    %cst_29 = arith.constant 1.000000e+00 : f32
    %491 = vector.broadcast %cst_29 : f32 to vector<10x128xf32>
    %492 = arith.addf %491, %490 : vector<10x128xf32>
    %493 = arith.divf %491, %492 : vector<10x128xf32>
    %494 = vector.broadcast %454 : f32 to vector<10x128xf32>
    %495 = arith.mulf %8, %494 : vector<10x128xf32>
    %496 = vector.broadcast %456 : f32 to vector<10x128xf32>
    %497 = arith.addf %495, %496 : vector<10x128xf32>
    %498 = arith.negf %497 : vector<10x128xf32>
    %499 = math.exp %498 : vector<10x128xf32>
    %cst_30 = arith.constant 1.000000e+00 : f32
    %500 = vector.broadcast %cst_30 : f32 to vector<10x128xf32>
    %501 = arith.addf %500, %499 : vector<10x128xf32>
    %502 = arith.divf %500, %501 : vector<10x128xf32>
    %503 = vector.broadcast %454 : f32 to vector<10x128xf32>
    %504 = arith.mulf %10, %503 : vector<10x128xf32>
    %505 = vector.broadcast %456 : f32 to vector<10x128xf32>
    %506 = arith.addf %504, %505 : vector<10x128xf32>
    %507 = arith.negf %506 : vector<10x128xf32>
    %508 = math.exp %507 : vector<10x128xf32>
    %cst_31 = arith.constant 1.000000e+00 : f32
    %509 = vector.broadcast %cst_31 : f32 to vector<10x128xf32>
    %510 = arith.addf %509, %508 : vector<10x128xf32>
    %511 = arith.divf %509, %510 : vector<10x128xf32>
    %512 = vector.broadcast %454 : f32 to vector<10x128xf32>
    %513 = arith.mulf %12, %512 : vector<10x128xf32>
    %514 = vector.broadcast %456 : f32 to vector<10x128xf32>
    %515 = arith.addf %513, %514 : vector<10x128xf32>
    %516 = arith.negf %515 : vector<10x128xf32>
    %517 = math.exp %516 : vector<10x128xf32>
    %cst_32 = arith.constant 1.000000e+00 : f32
    %518 = vector.broadcast %cst_32 : f32 to vector<10x128xf32>
    %519 = arith.addf %518, %517 : vector<10x128xf32>
    %520 = arith.divf %518, %519 : vector<10x128xf32>
    %521 = vector.extract_strided_slice %475 {offsets = [0, 0], sizes = [8, 128], strides = [1, 1]} : vector<10x128xf32> to vector<8x128xf32>
    %522 = vector.extract_strided_slice %475 {offsets = [2, 0], sizes = [8, 128], strides = [1, 1]} : vector<10x128xf32> to vector<8x128xf32>
    %523 = vector.extract_strided_slice %484 {offsets = [0, 0], sizes = [8, 128], strides = [1, 1]} : vector<10x128xf32> to vector<8x128xf32>
    %524 = vector.extract_strided_slice %484 {offsets = [2, 0], sizes = [8, 128], strides = [1, 1]} : vector<10x128xf32> to vector<8x128xf32>
    %525 = vector.extract_strided_slice %493 {offsets = [0, 0], sizes = [8, 128], strides = [1, 1]} : vector<10x128xf32> to vector<8x128xf32>
    %526 = vector.extract_strided_slice %493 {offsets = [2, 0], sizes = [8, 128], strides = [1, 1]} : vector<10x128xf32> to vector<8x128xf32>
    %527 = vector.extract_strided_slice %502 {offsets = [0, 0], sizes = [8, 128], strides = [1, 1]} : vector<10x128xf32> to vector<8x128xf32>
    %528 = vector.extract_strided_slice %502 {offsets = [2, 0], sizes = [8, 128], strides = [1, 1]} : vector<10x128xf32> to vector<8x128xf32>
    %529 = vector.extract_strided_slice %511 {offsets = [0, 0], sizes = [8, 128], strides = [1, 1]} : vector<10x128xf32> to vector<8x128xf32>
    %530 = vector.extract_strided_slice %511 {offsets = [2, 0], sizes = [8, 128], strides = [1, 1]} : vector<10x128xf32> to vector<8x128xf32>
    %531 = vector.extract_strided_slice %520 {offsets = [0, 0], sizes = [8, 128], strides = [1, 1]} : vector<10x128xf32> to vector<8x128xf32>
    %532 = vector.extract_strided_slice %520 {offsets = [2, 0], sizes = [8, 128], strides = [1, 1]} : vector<10x128xf32> to vector<8x128xf32>
    %533 = vector.broadcast %457 : f32 to vector<8x128xf32>
    %534 = arith.mulf %521, %533 : vector<8x128xf32>
    %535 = vector.broadcast %458 : f32 to vector<8x128xf32>
    %536 = arith.mulf %522, %535 : vector<8x128xf32>
    %537 = arith.addf %534, %536 : vector<8x128xf32>
    %538 = vector.broadcast %459 : f32 to vector<8x128xf32>
    %539 = arith.mulf %527, %538 : vector<8x128xf32>
    %540 = arith.addf %537, %539 : vector<8x128xf32>
    %541 = vector.broadcast %460 : f32 to vector<8x128xf32>
    %542 = arith.mulf %528, %541 : vector<8x128xf32>
    %543 = arith.addf %540, %542 : vector<8x128xf32>
    %544 = vector.broadcast %465 : f32 to vector<8x128xf32>
    %545 = arith.addf %543, %544 : vector<8x128xf32>
    %546 = arith.negf %545 : vector<8x128xf32>
    %547 = math.exp %546 : vector<8x128xf32>
    %cst_33 = arith.constant 1.000000e+00 : f32
    %548 = vector.broadcast %cst_33 : f32 to vector<8x128xf32>
    %549 = arith.addf %548, %547 : vector<8x128xf32>
    %550 = arith.divf %548, %549 : vector<8x128xf32>
    %551 = vector.broadcast %457 : f32 to vector<8x128xf32>
    %552 = arith.mulf %523, %551 : vector<8x128xf32>
    %553 = vector.broadcast %458 : f32 to vector<8x128xf32>
    %554 = arith.mulf %524, %553 : vector<8x128xf32>
    %555 = arith.addf %552, %554 : vector<8x128xf32>
    %556 = vector.broadcast %459 : f32 to vector<8x128xf32>
    %557 = arith.mulf %529, %556 : vector<8x128xf32>
    %558 = arith.addf %555, %557 : vector<8x128xf32>
    %559 = vector.broadcast %460 : f32 to vector<8x128xf32>
    %560 = arith.mulf %530, %559 : vector<8x128xf32>
    %561 = arith.addf %558, %560 : vector<8x128xf32>
    %562 = vector.broadcast %465 : f32 to vector<8x128xf32>
    %563 = arith.addf %561, %562 : vector<8x128xf32>
    %564 = arith.negf %563 : vector<8x128xf32>
    %565 = math.exp %564 : vector<8x128xf32>
    %cst_34 = arith.constant 1.000000e+00 : f32
    %566 = vector.broadcast %cst_34 : f32 to vector<8x128xf32>
    %567 = arith.addf %566, %565 : vector<8x128xf32>
    %568 = arith.divf %566, %567 : vector<8x128xf32>
    %569 = vector.broadcast %457 : f32 to vector<8x128xf32>
    %570 = arith.mulf %525, %569 : vector<8x128xf32>
    %571 = vector.broadcast %458 : f32 to vector<8x128xf32>
    %572 = arith.mulf %526, %571 : vector<8x128xf32>
    %573 = arith.addf %570, %572 : vector<8x128xf32>
    %574 = vector.broadcast %459 : f32 to vector<8x128xf32>
    %575 = arith.mulf %531, %574 : vector<8x128xf32>
    %576 = arith.addf %573, %575 : vector<8x128xf32>
    %577 = vector.broadcast %460 : f32 to vector<8x128xf32>
    %578 = arith.mulf %532, %577 : vector<8x128xf32>
    %579 = arith.addf %576, %578 : vector<8x128xf32>
    %580 = vector.broadcast %465 : f32 to vector<8x128xf32>
    %581 = arith.addf %579, %580 : vector<8x128xf32>
    %582 = arith.negf %581 : vector<8x128xf32>
    %583 = math.exp %582 : vector<8x128xf32>
    %cst_35 = arith.constant 1.000000e+00 : f32
    %584 = vector.broadcast %cst_35 : f32 to vector<8x128xf32>
    %585 = arith.addf %584, %583 : vector<8x128xf32>
    %586 = arith.divf %584, %585 : vector<8x128xf32>
    %587 = vector.broadcast %461 : f32 to vector<8x128xf32>
    %588 = arith.mulf %521, %587 : vector<8x128xf32>
    %589 = vector.broadcast %462 : f32 to vector<8x128xf32>
    %590 = arith.mulf %522, %589 : vector<8x128xf32>
    %591 = arith.addf %588, %590 : vector<8x128xf32>
    %592 = vector.broadcast %463 : f32 to vector<8x128xf32>
    %593 = arith.mulf %527, %592 : vector<8x128xf32>
    %594 = arith.addf %591, %593 : vector<8x128xf32>
    %595 = vector.broadcast %464 : f32 to vector<8x128xf32>
    %596 = arith.mulf %528, %595 : vector<8x128xf32>
    %597 = arith.addf %594, %596 : vector<8x128xf32>
    %598 = vector.broadcast %466 : f32 to vector<8x128xf32>
    %599 = arith.addf %597, %598 : vector<8x128xf32>
    %600 = arith.negf %599 : vector<8x128xf32>
    %601 = math.exp %600 : vector<8x128xf32>
    %cst_36 = arith.constant 1.000000e+00 : f32
    %602 = vector.broadcast %cst_36 : f32 to vector<8x128xf32>
    %603 = arith.addf %602, %601 : vector<8x128xf32>
    %604 = arith.divf %602, %603 : vector<8x128xf32>
    %605 = vector.broadcast %461 : f32 to vector<8x128xf32>
    %606 = arith.mulf %523, %605 : vector<8x128xf32>
    %607 = vector.broadcast %462 : f32 to vector<8x128xf32>
    %608 = arith.mulf %524, %607 : vector<8x128xf32>
    %609 = arith.addf %606, %608 : vector<8x128xf32>
    %610 = vector.broadcast %463 : f32 to vector<8x128xf32>
    %611 = arith.mulf %529, %610 : vector<8x128xf32>
    %612 = arith.addf %609, %611 : vector<8x128xf32>
    %613 = vector.broadcast %464 : f32 to vector<8x128xf32>
    %614 = arith.mulf %530, %613 : vector<8x128xf32>
    %615 = arith.addf %612, %614 : vector<8x128xf32>
    %616 = vector.broadcast %466 : f32 to vector<8x128xf32>
    %617 = arith.addf %615, %616 : vector<8x128xf32>
    %618 = arith.negf %617 : vector<8x128xf32>
    %619 = math.exp %618 : vector<8x128xf32>
    %cst_37 = arith.constant 1.000000e+00 : f32
    %620 = vector.broadcast %cst_37 : f32 to vector<8x128xf32>
    %621 = arith.addf %620, %619 : vector<8x128xf32>
    %622 = arith.divf %620, %621 : vector<8x128xf32>
    %623 = vector.broadcast %461 : f32 to vector<8x128xf32>
    %624 = arith.mulf %525, %623 : vector<8x128xf32>
    %625 = vector.broadcast %462 : f32 to vector<8x128xf32>
    %626 = arith.mulf %526, %625 : vector<8x128xf32>
    %627 = arith.addf %624, %626 : vector<8x128xf32>
    %628 = vector.broadcast %463 : f32 to vector<8x128xf32>
    %629 = arith.mulf %531, %628 : vector<8x128xf32>
    %630 = arith.addf %627, %629 : vector<8x128xf32>
    %631 = vector.broadcast %464 : f32 to vector<8x128xf32>
    %632 = arith.mulf %532, %631 : vector<8x128xf32>
    %633 = arith.addf %630, %632 : vector<8x128xf32>
    %634 = vector.broadcast %466 : f32 to vector<8x128xf32>
    %635 = arith.addf %633, %634 : vector<8x128xf32>
    %636 = arith.negf %635 : vector<8x128xf32>
    %637 = math.exp %636 : vector<8x128xf32>
    %cst_38 = arith.constant 1.000000e+00 : f32
    %638 = vector.broadcast %cst_38 : f32 to vector<8x128xf32>
    %639 = arith.addf %638, %637 : vector<8x128xf32>
    %640 = arith.divf %638, %639 : vector<8x128xf32>
    %c72 = arith.constant 72 : index
    %641 = memref.load %arg1[%c72] : memref<344xf32, #tpu.memory_space<smem>>
    %c73 = arith.constant 73 : index
    %642 = memref.load %arg1[%c73] : memref<344xf32, #tpu.memory_space<smem>>
    %c74 = arith.constant 74 : index
    %643 = memref.load %arg1[%c74] : memref<344xf32, #tpu.memory_space<smem>>
    %c75 = arith.constant 75 : index
    %644 = memref.load %arg1[%c75] : memref<344xf32, #tpu.memory_space<smem>>
    %c76 = arith.constant 76 : index
    %645 = memref.load %arg1[%c76] : memref<344xf32, #tpu.memory_space<smem>>
    %c77 = arith.constant 77 : index
    %646 = memref.load %arg1[%c77] : memref<344xf32, #tpu.memory_space<smem>>
    %c78 = arith.constant 78 : index
    %647 = memref.load %arg1[%c78] : memref<344xf32, #tpu.memory_space<smem>>
    %c79 = arith.constant 79 : index
    %648 = memref.load %arg1[%c79] : memref<344xf32, #tpu.memory_space<smem>>
    %c80 = arith.constant 80 : index
    %649 = memref.load %arg1[%c80] : memref<344xf32, #tpu.memory_space<smem>>
    %c81 = arith.constant 81 : index
    %650 = memref.load %arg1[%c81] : memref<344xf32, #tpu.memory_space<smem>>
    %c82 = arith.constant 82 : index
    %651 = memref.load %arg1[%c82] : memref<344xf32, #tpu.memory_space<smem>>
    %c83 = arith.constant 83 : index
    %652 = memref.load %arg1[%c83] : memref<344xf32, #tpu.memory_space<smem>>
    %c84 = arith.constant 84 : index
    %653 = memref.load %arg1[%c84] : memref<344xf32, #tpu.memory_space<smem>>
    %c85 = arith.constant 85 : index
    %654 = memref.load %arg1[%c85] : memref<344xf32, #tpu.memory_space<smem>>
    %c86 = arith.constant 86 : index
    %655 = memref.load %arg1[%c86] : memref<344xf32, #tpu.memory_space<smem>>
    %c87 = arith.constant 87 : index
    %656 = memref.load %arg1[%c87] : memref<344xf32, #tpu.memory_space<smem>>
    %c88 = arith.constant 88 : index
    %657 = memref.load %arg1[%c88] : memref<344xf32, #tpu.memory_space<smem>>
    %c89 = arith.constant 89 : index
    %658 = memref.load %arg1[%c89] : memref<344xf32, #tpu.memory_space<smem>>
    %c90 = arith.constant 90 : index
    %659 = memref.load %arg1[%c90] : memref<344xf32, #tpu.memory_space<smem>>
    %c91 = arith.constant 91 : index
    %660 = memref.load %arg1[%c91] : memref<344xf32, #tpu.memory_space<smem>>
    %c92 = arith.constant 92 : index
    %661 = memref.load %arg1[%c92] : memref<344xf32, #tpu.memory_space<smem>>
    %c93 = arith.constant 93 : index
    %662 = memref.load %arg1[%c93] : memref<344xf32, #tpu.memory_space<smem>>
    %c94 = arith.constant 94 : index
    %663 = memref.load %arg1[%c94] : memref<344xf32, #tpu.memory_space<smem>>
    %c95 = arith.constant 95 : index
    %664 = memref.load %arg1[%c95] : memref<344xf32, #tpu.memory_space<smem>>
    %c96 = arith.constant 96 : index
    %665 = memref.load %arg1[%c96] : memref<344xf32, #tpu.memory_space<smem>>
    %c97 = arith.constant 97 : index
    %666 = memref.load %arg1[%c97] : memref<344xf32, #tpu.memory_space<smem>>
    %c98 = arith.constant 98 : index
    %667 = memref.load %arg1[%c98] : memref<344xf32, #tpu.memory_space<smem>>
    %c99 = arith.constant 99 : index
    %668 = memref.load %arg1[%c99] : memref<344xf32, #tpu.memory_space<smem>>
    %c100 = arith.constant 100 : index
    %669 = memref.load %arg1[%c100] : memref<344xf32, #tpu.memory_space<smem>>
    %c101 = arith.constant 101 : index
    %670 = memref.load %arg1[%c101] : memref<344xf32, #tpu.memory_space<smem>>
    %671 = vector.broadcast %641 : f32 to vector<8x128xf32>
    %672 = arith.mulf %550, %671 : vector<8x128xf32>
    %673 = vector.broadcast %643 : f32 to vector<8x128xf32>
    %674 = arith.addf %672, %673 : vector<8x128xf32>
    %675 = arith.negf %674 : vector<8x128xf32>
    %676 = math.exp %675 : vector<8x128xf32>
    %cst_39 = arith.constant 1.000000e+00 : f32
    %677 = vector.broadcast %cst_39 : f32 to vector<8x128xf32>
    %678 = arith.addf %677, %676 : vector<8x128xf32>
    %679 = arith.divf %677, %678 : vector<8x128xf32>
    %680 = vector.broadcast %641 : f32 to vector<8x128xf32>
    %681 = arith.mulf %568, %680 : vector<8x128xf32>
    %682 = vector.broadcast %643 : f32 to vector<8x128xf32>
    %683 = arith.addf %681, %682 : vector<8x128xf32>
    %684 = arith.negf %683 : vector<8x128xf32>
    %685 = math.exp %684 : vector<8x128xf32>
    %cst_40 = arith.constant 1.000000e+00 : f32
    %686 = vector.broadcast %cst_40 : f32 to vector<8x128xf32>
    %687 = arith.addf %686, %685 : vector<8x128xf32>
    %688 = arith.divf %686, %687 : vector<8x128xf32>
    %689 = vector.broadcast %641 : f32 to vector<8x128xf32>
    %690 = arith.mulf %586, %689 : vector<8x128xf32>
    %691 = vector.broadcast %643 : f32 to vector<8x128xf32>
    %692 = arith.addf %690, %691 : vector<8x128xf32>
    %693 = arith.negf %692 : vector<8x128xf32>
    %694 = math.exp %693 : vector<8x128xf32>
    %cst_41 = arith.constant 1.000000e+00 : f32
    %695 = vector.broadcast %cst_41 : f32 to vector<8x128xf32>
    %696 = arith.addf %695, %694 : vector<8x128xf32>
    %697 = arith.divf %695, %696 : vector<8x128xf32>
    %698 = vector.broadcast %642 : f32 to vector<8x128xf32>
    %699 = arith.mulf %604, %698 : vector<8x128xf32>
    %700 = vector.broadcast %644 : f32 to vector<8x128xf32>
    %701 = arith.addf %699, %700 : vector<8x128xf32>
    %702 = arith.negf %701 : vector<8x128xf32>
    %703 = math.exp %702 : vector<8x128xf32>
    %cst_42 = arith.constant 1.000000e+00 : f32
    %704 = vector.broadcast %cst_42 : f32 to vector<8x128xf32>
    %705 = arith.addf %704, %703 : vector<8x128xf32>
    %706 = arith.divf %704, %705 : vector<8x128xf32>
    %707 = vector.broadcast %642 : f32 to vector<8x128xf32>
    %708 = arith.mulf %622, %707 : vector<8x128xf32>
    %709 = vector.broadcast %644 : f32 to vector<8x128xf32>
    %710 = arith.addf %708, %709 : vector<8x128xf32>
    %711 = arith.negf %710 : vector<8x128xf32>
    %712 = math.exp %711 : vector<8x128xf32>
    %cst_43 = arith.constant 1.000000e+00 : f32
    %713 = vector.broadcast %cst_43 : f32 to vector<8x128xf32>
    %714 = arith.addf %713, %712 : vector<8x128xf32>
    %715 = arith.divf %713, %714 : vector<8x128xf32>
    %716 = vector.broadcast %642 : f32 to vector<8x128xf32>
    %717 = arith.mulf %640, %716 : vector<8x128xf32>
    %718 = vector.broadcast %644 : f32 to vector<8x128xf32>
    %719 = arith.addf %717, %718 : vector<8x128xf32>
    %720 = arith.negf %719 : vector<8x128xf32>
    %721 = math.exp %720 : vector<8x128xf32>
    %cst_44 = arith.constant 1.000000e+00 : f32
    %722 = vector.broadcast %cst_44 : f32 to vector<8x128xf32>
    %723 = arith.addf %722, %721 : vector<8x128xf32>
    %724 = arith.divf %722, %723 : vector<8x128xf32>
    %725 = vector.extract_strided_slice %679 {offsets = [0, 0], sizes = [7, 128], strides = [1, 1]} : vector<8x128xf32> to vector<7x128xf32>
    %726 = vector.extract_strided_slice %679 {offsets = [1, 0], sizes = [7, 128], strides = [1, 1]} : vector<8x128xf32> to vector<7x128xf32>
    %727 = vector.extract_strided_slice %688 {offsets = [0, 0], sizes = [7, 128], strides = [1, 1]} : vector<8x128xf32> to vector<7x128xf32>
    %728 = vector.extract_strided_slice %688 {offsets = [1, 0], sizes = [7, 128], strides = [1, 1]} : vector<8x128xf32> to vector<7x128xf32>
    %729 = vector.extract_strided_slice %697 {offsets = [0, 0], sizes = [7, 128], strides = [1, 1]} : vector<8x128xf32> to vector<7x128xf32>
    %730 = vector.extract_strided_slice %697 {offsets = [1, 0], sizes = [7, 128], strides = [1, 1]} : vector<8x128xf32> to vector<7x128xf32>
    %731 = vector.extract_strided_slice %706 {offsets = [0, 0], sizes = [7, 128], strides = [1, 1]} : vector<8x128xf32> to vector<7x128xf32>
    %732 = vector.extract_strided_slice %706 {offsets = [1, 0], sizes = [7, 128], strides = [1, 1]} : vector<8x128xf32> to vector<7x128xf32>
    %733 = vector.extract_strided_slice %715 {offsets = [0, 0], sizes = [7, 128], strides = [1, 1]} : vector<8x128xf32> to vector<7x128xf32>
    %734 = vector.extract_strided_slice %715 {offsets = [1, 0], sizes = [7, 128], strides = [1, 1]} : vector<8x128xf32> to vector<7x128xf32>
    %735 = vector.extract_strided_slice %724 {offsets = [0, 0], sizes = [7, 128], strides = [1, 1]} : vector<8x128xf32> to vector<7x128xf32>
    %736 = vector.extract_strided_slice %724 {offsets = [1, 0], sizes = [7, 128], strides = [1, 1]} : vector<8x128xf32> to vector<7x128xf32>
    %737 = vector.broadcast %645 : f32 to vector<7x128xf32>
    %738 = arith.mulf %725, %737 : vector<7x128xf32>
    %739 = vector.broadcast %646 : f32 to vector<7x128xf32>
    %740 = arith.mulf %726, %739 : vector<7x128xf32>
    %741 = arith.addf %738, %740 : vector<7x128xf32>
    %742 = vector.broadcast %647 : f32 to vector<7x128xf32>
    %743 = arith.mulf %727, %742 : vector<7x128xf32>
    %744 = arith.addf %741, %743 : vector<7x128xf32>
    %745 = vector.broadcast %648 : f32 to vector<7x128xf32>
    %746 = arith.mulf %728, %745 : vector<7x128xf32>
    %747 = arith.addf %744, %746 : vector<7x128xf32>
    %748 = vector.broadcast %649 : f32 to vector<7x128xf32>
    %749 = arith.mulf %729, %748 : vector<7x128xf32>
    %750 = arith.addf %747, %749 : vector<7x128xf32>
    %751 = vector.broadcast %650 : f32 to vector<7x128xf32>
    %752 = arith.mulf %730, %751 : vector<7x128xf32>
    %753 = arith.addf %750, %752 : vector<7x128xf32>
    %754 = vector.broadcast %651 : f32 to vector<7x128xf32>
    %755 = arith.mulf %731, %754 : vector<7x128xf32>
    %756 = arith.addf %753, %755 : vector<7x128xf32>
    %757 = vector.broadcast %652 : f32 to vector<7x128xf32>
    %758 = arith.mulf %732, %757 : vector<7x128xf32>
    %759 = arith.addf %756, %758 : vector<7x128xf32>
    %760 = vector.broadcast %653 : f32 to vector<7x128xf32>
    %761 = arith.mulf %733, %760 : vector<7x128xf32>
    %762 = arith.addf %759, %761 : vector<7x128xf32>
    %763 = vector.broadcast %654 : f32 to vector<7x128xf32>
    %764 = arith.mulf %734, %763 : vector<7x128xf32>
    %765 = arith.addf %762, %764 : vector<7x128xf32>
    %766 = vector.broadcast %655 : f32 to vector<7x128xf32>
    %767 = arith.mulf %735, %766 : vector<7x128xf32>
    %768 = arith.addf %765, %767 : vector<7x128xf32>
    %769 = vector.broadcast %656 : f32 to vector<7x128xf32>
    %770 = arith.mulf %736, %769 : vector<7x128xf32>
    %771 = arith.addf %768, %770 : vector<7x128xf32>
    %772 = vector.broadcast %669 : f32 to vector<7x128xf32>
    %773 = arith.addf %771, %772 : vector<7x128xf32>
    %774 = arith.negf %773 : vector<7x128xf32>
    %775 = math.exp %774 : vector<7x128xf32>
    %cst_45 = arith.constant 1.000000e+00 : f32
    %776 = vector.broadcast %cst_45 : f32 to vector<7x128xf32>
    %777 = arith.addf %776, %775 : vector<7x128xf32>
    %778 = arith.divf %776, %777 : vector<7x128xf32>
    %779 = vector.broadcast %657 : f32 to vector<7x128xf32>
    %780 = arith.mulf %725, %779 : vector<7x128xf32>
    %781 = vector.broadcast %658 : f32 to vector<7x128xf32>
    %782 = arith.mulf %726, %781 : vector<7x128xf32>
    %783 = arith.addf %780, %782 : vector<7x128xf32>
    %784 = vector.broadcast %659 : f32 to vector<7x128xf32>
    %785 = arith.mulf %727, %784 : vector<7x128xf32>
    %786 = arith.addf %783, %785 : vector<7x128xf32>
    %787 = vector.broadcast %660 : f32 to vector<7x128xf32>
    %788 = arith.mulf %728, %787 : vector<7x128xf32>
    %789 = arith.addf %786, %788 : vector<7x128xf32>
    %790 = vector.broadcast %661 : f32 to vector<7x128xf32>
    %791 = arith.mulf %729, %790 : vector<7x128xf32>
    %792 = arith.addf %789, %791 : vector<7x128xf32>
    %793 = vector.broadcast %662 : f32 to vector<7x128xf32>
    %794 = arith.mulf %730, %793 : vector<7x128xf32>
    %795 = arith.addf %792, %794 : vector<7x128xf32>
    %796 = vector.broadcast %663 : f32 to vector<7x128xf32>
    %797 = arith.mulf %731, %796 : vector<7x128xf32>
    %798 = arith.addf %795, %797 : vector<7x128xf32>
    %799 = vector.broadcast %664 : f32 to vector<7x128xf32>
    %800 = arith.mulf %732, %799 : vector<7x128xf32>
    %801 = arith.addf %798, %800 : vector<7x128xf32>
    %802 = vector.broadcast %665 : f32 to vector<7x128xf32>
    %803 = arith.mulf %733, %802 : vector<7x128xf32>
    %804 = arith.addf %801, %803 : vector<7x128xf32>
    %805 = vector.broadcast %666 : f32 to vector<7x128xf32>
    %806 = arith.mulf %734, %805 : vector<7x128xf32>
    %807 = arith.addf %804, %806 : vector<7x128xf32>
    %808 = vector.broadcast %667 : f32 to vector<7x128xf32>
    %809 = arith.mulf %735, %808 : vector<7x128xf32>
    %810 = arith.addf %807, %809 : vector<7x128xf32>
    %811 = vector.broadcast %668 : f32 to vector<7x128xf32>
    %812 = arith.mulf %736, %811 : vector<7x128xf32>
    %813 = arith.addf %810, %812 : vector<7x128xf32>
    %814 = vector.broadcast %670 : f32 to vector<7x128xf32>
    %815 = arith.addf %813, %814 : vector<7x128xf32>
    %816 = arith.negf %815 : vector<7x128xf32>
    %817 = math.exp %816 : vector<7x128xf32>
    %cst_46 = arith.constant 1.000000e+00 : f32
    %818 = vector.broadcast %cst_46 : f32 to vector<7x128xf32>
    %819 = arith.addf %818, %817 : vector<7x128xf32>
    %820 = arith.divf %818, %819 : vector<7x128xf32>
    %c102 = arith.constant 102 : index
    %821 = memref.load %arg1[%c102] : memref<344xf32, #tpu.memory_space<smem>>
    %c103 = arith.constant 103 : index
    %822 = memref.load %arg1[%c103] : memref<344xf32, #tpu.memory_space<smem>>
    %c104 = arith.constant 104 : index
    %823 = memref.load %arg1[%c104] : memref<344xf32, #tpu.memory_space<smem>>
    %c105 = arith.constant 105 : index
    %824 = memref.load %arg1[%c105] : memref<344xf32, #tpu.memory_space<smem>>
    %c106 = arith.constant 106 : index
    %825 = memref.load %arg1[%c106] : memref<344xf32, #tpu.memory_space<smem>>
    %c107 = arith.constant 107 : index
    %826 = memref.load %arg1[%c107] : memref<344xf32, #tpu.memory_space<smem>>
    %c108 = arith.constant 108 : index
    %827 = memref.load %arg1[%c108] : memref<344xf32, #tpu.memory_space<smem>>
    %c109 = arith.constant 109 : index
    %828 = memref.load %arg1[%c109] : memref<344xf32, #tpu.memory_space<smem>>
    %c110 = arith.constant 110 : index
    %829 = memref.load %arg1[%c110] : memref<344xf32, #tpu.memory_space<smem>>
    %c111 = arith.constant 111 : index
    %830 = memref.load %arg1[%c111] : memref<344xf32, #tpu.memory_space<smem>>
    %c112 = arith.constant 112 : index
    %831 = memref.load %arg1[%c112] : memref<344xf32, #tpu.memory_space<smem>>
    %c113 = arith.constant 113 : index
    %832 = memref.load %arg1[%c113] : memref<344xf32, #tpu.memory_space<smem>>
    %c114 = arith.constant 114 : index
    %833 = memref.load %arg1[%c114] : memref<344xf32, #tpu.memory_space<smem>>
    %c115 = arith.constant 115 : index
    %834 = memref.load %arg1[%c115] : memref<344xf32, #tpu.memory_space<smem>>
    %835 = vector.broadcast %821 : f32 to vector<10x128xf32>
    %836 = arith.mulf %2, %835 : vector<10x128xf32>
    %837 = vector.broadcast %823 : f32 to vector<10x128xf32>
    %838 = arith.addf %836, %837 : vector<10x128xf32>
    %839 = arith.negf %838 : vector<10x128xf32>
    %840 = math.exp %839 : vector<10x128xf32>
    %cst_47 = arith.constant 1.000000e+00 : f32
    %841 = vector.broadcast %cst_47 : f32 to vector<10x128xf32>
    %842 = arith.addf %841, %840 : vector<10x128xf32>
    %843 = arith.divf %841, %842 : vector<10x128xf32>
    %844 = vector.broadcast %821 : f32 to vector<10x128xf32>
    %845 = arith.mulf %4, %844 : vector<10x128xf32>
    %846 = vector.broadcast %823 : f32 to vector<10x128xf32>
    %847 = arith.addf %845, %846 : vector<10x128xf32>
    %848 = arith.negf %847 : vector<10x128xf32>
    %849 = math.exp %848 : vector<10x128xf32>
    %cst_48 = arith.constant 1.000000e+00 : f32
    %850 = vector.broadcast %cst_48 : f32 to vector<10x128xf32>
    %851 = arith.addf %850, %849 : vector<10x128xf32>
    %852 = arith.divf %850, %851 : vector<10x128xf32>
    %853 = vector.broadcast %821 : f32 to vector<10x128xf32>
    %854 = arith.mulf %6, %853 : vector<10x128xf32>
    %855 = vector.broadcast %823 : f32 to vector<10x128xf32>
    %856 = arith.addf %854, %855 : vector<10x128xf32>
    %857 = arith.negf %856 : vector<10x128xf32>
    %858 = math.exp %857 : vector<10x128xf32>
    %cst_49 = arith.constant 1.000000e+00 : f32
    %859 = vector.broadcast %cst_49 : f32 to vector<10x128xf32>
    %860 = arith.addf %859, %858 : vector<10x128xf32>
    %861 = arith.divf %859, %860 : vector<10x128xf32>
    %862 = vector.broadcast %822 : f32 to vector<10x128xf32>
    %863 = arith.mulf %8, %862 : vector<10x128xf32>
    %864 = vector.broadcast %824 : f32 to vector<10x128xf32>
    %865 = arith.addf %863, %864 : vector<10x128xf32>
    %866 = arith.negf %865 : vector<10x128xf32>
    %867 = math.exp %866 : vector<10x128xf32>
    %cst_50 = arith.constant 1.000000e+00 : f32
    %868 = vector.broadcast %cst_50 : f32 to vector<10x128xf32>
    %869 = arith.addf %868, %867 : vector<10x128xf32>
    %870 = arith.divf %868, %869 : vector<10x128xf32>
    %871 = vector.broadcast %822 : f32 to vector<10x128xf32>
    %872 = arith.mulf %10, %871 : vector<10x128xf32>
    %873 = vector.broadcast %824 : f32 to vector<10x128xf32>
    %874 = arith.addf %872, %873 : vector<10x128xf32>
    %875 = arith.negf %874 : vector<10x128xf32>
    %876 = math.exp %875 : vector<10x128xf32>
    %cst_51 = arith.constant 1.000000e+00 : f32
    %877 = vector.broadcast %cst_51 : f32 to vector<10x128xf32>
    %878 = arith.addf %877, %876 : vector<10x128xf32>
    %879 = arith.divf %877, %878 : vector<10x128xf32>
    %880 = vector.broadcast %822 : f32 to vector<10x128xf32>
    %881 = arith.mulf %12, %880 : vector<10x128xf32>
    %882 = vector.broadcast %824 : f32 to vector<10x128xf32>
    %883 = arith.addf %881, %882 : vector<10x128xf32>
    %884 = arith.negf %883 : vector<10x128xf32>
    %885 = math.exp %884 : vector<10x128xf32>
    %cst_52 = arith.constant 1.000000e+00 : f32
    %886 = vector.broadcast %cst_52 : f32 to vector<10x128xf32>
    %887 = arith.addf %886, %885 : vector<10x128xf32>
    %888 = arith.divf %886, %887 : vector<10x128xf32>
    %889 = vector.extract_strided_slice %843 {offsets = [0, 0], sizes = [7, 128], strides = [1, 1]} : vector<10x128xf32> to vector<7x128xf32>
    %890 = vector.extract_strided_slice %843 {offsets = [3, 0], sizes = [7, 128], strides = [1, 1]} : vector<10x128xf32> to vector<7x128xf32>
    %891 = vector.extract_strided_slice %852 {offsets = [0, 0], sizes = [7, 128], strides = [1, 1]} : vector<10x128xf32> to vector<7x128xf32>
    %892 = vector.extract_strided_slice %852 {offsets = [3, 0], sizes = [7, 128], strides = [1, 1]} : vector<10x128xf32> to vector<7x128xf32>
    %893 = vector.extract_strided_slice %861 {offsets = [0, 0], sizes = [7, 128], strides = [1, 1]} : vector<10x128xf32> to vector<7x128xf32>
    %894 = vector.extract_strided_slice %861 {offsets = [3, 0], sizes = [7, 128], strides = [1, 1]} : vector<10x128xf32> to vector<7x128xf32>
    %895 = vector.extract_strided_slice %870 {offsets = [0, 0], sizes = [7, 128], strides = [1, 1]} : vector<10x128xf32> to vector<7x128xf32>
    %896 = vector.extract_strided_slice %870 {offsets = [3, 0], sizes = [7, 128], strides = [1, 1]} : vector<10x128xf32> to vector<7x128xf32>
    %897 = vector.extract_strided_slice %879 {offsets = [0, 0], sizes = [7, 128], strides = [1, 1]} : vector<10x128xf32> to vector<7x128xf32>
    %898 = vector.extract_strided_slice %879 {offsets = [3, 0], sizes = [7, 128], strides = [1, 1]} : vector<10x128xf32> to vector<7x128xf32>
    %899 = vector.extract_strided_slice %888 {offsets = [0, 0], sizes = [7, 128], strides = [1, 1]} : vector<10x128xf32> to vector<7x128xf32>
    %900 = vector.extract_strided_slice %888 {offsets = [3, 0], sizes = [7, 128], strides = [1, 1]} : vector<10x128xf32> to vector<7x128xf32>
    %901 = vector.broadcast %825 : f32 to vector<7x128xf32>
    %902 = arith.mulf %889, %901 : vector<7x128xf32>
    %903 = vector.broadcast %826 : f32 to vector<7x128xf32>
    %904 = arith.mulf %890, %903 : vector<7x128xf32>
    %905 = arith.addf %902, %904 : vector<7x128xf32>
    %906 = vector.broadcast %827 : f32 to vector<7x128xf32>
    %907 = arith.mulf %895, %906 : vector<7x128xf32>
    %908 = arith.addf %905, %907 : vector<7x128xf32>
    %909 = vector.broadcast %828 : f32 to vector<7x128xf32>
    %910 = arith.mulf %896, %909 : vector<7x128xf32>
    %911 = arith.addf %908, %910 : vector<7x128xf32>
    %912 = vector.broadcast %833 : f32 to vector<7x128xf32>
    %913 = arith.addf %911, %912 : vector<7x128xf32>
    %914 = arith.negf %913 : vector<7x128xf32>
    %915 = math.exp %914 : vector<7x128xf32>
    %cst_53 = arith.constant 1.000000e+00 : f32
    %916 = vector.broadcast %cst_53 : f32 to vector<7x128xf32>
    %917 = arith.addf %916, %915 : vector<7x128xf32>
    %918 = arith.divf %916, %917 : vector<7x128xf32>
    %919 = vector.broadcast %825 : f32 to vector<7x128xf32>
    %920 = arith.mulf %891, %919 : vector<7x128xf32>
    %921 = vector.broadcast %826 : f32 to vector<7x128xf32>
    %922 = arith.mulf %892, %921 : vector<7x128xf32>
    %923 = arith.addf %920, %922 : vector<7x128xf32>
    %924 = vector.broadcast %827 : f32 to vector<7x128xf32>
    %925 = arith.mulf %897, %924 : vector<7x128xf32>
    %926 = arith.addf %923, %925 : vector<7x128xf32>
    %927 = vector.broadcast %828 : f32 to vector<7x128xf32>
    %928 = arith.mulf %898, %927 : vector<7x128xf32>
    %929 = arith.addf %926, %928 : vector<7x128xf32>
    %930 = vector.broadcast %833 : f32 to vector<7x128xf32>
    %931 = arith.addf %929, %930 : vector<7x128xf32>
    %932 = arith.negf %931 : vector<7x128xf32>
    %933 = math.exp %932 : vector<7x128xf32>
    %cst_54 = arith.constant 1.000000e+00 : f32
    %934 = vector.broadcast %cst_54 : f32 to vector<7x128xf32>
    %935 = arith.addf %934, %933 : vector<7x128xf32>
    %936 = arith.divf %934, %935 : vector<7x128xf32>
    %937 = vector.broadcast %825 : f32 to vector<7x128xf32>
    %938 = arith.mulf %893, %937 : vector<7x128xf32>
    %939 = vector.broadcast %826 : f32 to vector<7x128xf32>
    %940 = arith.mulf %894, %939 : vector<7x128xf32>
    %941 = arith.addf %938, %940 : vector<7x128xf32>
    %942 = vector.broadcast %827 : f32 to vector<7x128xf32>
    %943 = arith.mulf %899, %942 : vector<7x128xf32>
    %944 = arith.addf %941, %943 : vector<7x128xf32>
    %945 = vector.broadcast %828 : f32 to vector<7x128xf32>
    %946 = arith.mulf %900, %945 : vector<7x128xf32>
    %947 = arith.addf %944, %946 : vector<7x128xf32>
    %948 = vector.broadcast %833 : f32 to vector<7x128xf32>
    %949 = arith.addf %947, %948 : vector<7x128xf32>
    %950 = arith.negf %949 : vector<7x128xf32>
    %951 = math.exp %950 : vector<7x128xf32>
    %cst_55 = arith.constant 1.000000e+00 : f32
    %952 = vector.broadcast %cst_55 : f32 to vector<7x128xf32>
    %953 = arith.addf %952, %951 : vector<7x128xf32>
    %954 = arith.divf %952, %953 : vector<7x128xf32>
    %955 = vector.broadcast %829 : f32 to vector<7x128xf32>
    %956 = arith.mulf %889, %955 : vector<7x128xf32>
    %957 = vector.broadcast %830 : f32 to vector<7x128xf32>
    %958 = arith.mulf %890, %957 : vector<7x128xf32>
    %959 = arith.addf %956, %958 : vector<7x128xf32>
    %960 = vector.broadcast %831 : f32 to vector<7x128xf32>
    %961 = arith.mulf %895, %960 : vector<7x128xf32>
    %962 = arith.addf %959, %961 : vector<7x128xf32>
    %963 = vector.broadcast %832 : f32 to vector<7x128xf32>
    %964 = arith.mulf %896, %963 : vector<7x128xf32>
    %965 = arith.addf %962, %964 : vector<7x128xf32>
    %966 = vector.broadcast %834 : f32 to vector<7x128xf32>
    %967 = arith.addf %965, %966 : vector<7x128xf32>
    %968 = arith.negf %967 : vector<7x128xf32>
    %969 = math.exp %968 : vector<7x128xf32>
    %cst_56 = arith.constant 1.000000e+00 : f32
    %970 = vector.broadcast %cst_56 : f32 to vector<7x128xf32>
    %971 = arith.addf %970, %969 : vector<7x128xf32>
    %972 = arith.divf %970, %971 : vector<7x128xf32>
    %973 = vector.broadcast %829 : f32 to vector<7x128xf32>
    %974 = arith.mulf %891, %973 : vector<7x128xf32>
    %975 = vector.broadcast %830 : f32 to vector<7x128xf32>
    %976 = arith.mulf %892, %975 : vector<7x128xf32>
    %977 = arith.addf %974, %976 : vector<7x128xf32>
    %978 = vector.broadcast %831 : f32 to vector<7x128xf32>
    %979 = arith.mulf %897, %978 : vector<7x128xf32>
    %980 = arith.addf %977, %979 : vector<7x128xf32>
    %981 = vector.broadcast %832 : f32 to vector<7x128xf32>
    %982 = arith.mulf %898, %981 : vector<7x128xf32>
    %983 = arith.addf %980, %982 : vector<7x128xf32>
    %984 = vector.broadcast %834 : f32 to vector<7x128xf32>
    %985 = arith.addf %983, %984 : vector<7x128xf32>
    %986 = arith.negf %985 : vector<7x128xf32>
    %987 = math.exp %986 : vector<7x128xf32>
    %cst_57 = arith.constant 1.000000e+00 : f32
    %988 = vector.broadcast %cst_57 : f32 to vector<7x128xf32>
    %989 = arith.addf %988, %987 : vector<7x128xf32>
    %990 = arith.divf %988, %989 : vector<7x128xf32>
    %991 = vector.broadcast %829 : f32 to vector<7x128xf32>
    %992 = arith.mulf %893, %991 : vector<7x128xf32>
    %993 = vector.broadcast %830 : f32 to vector<7x128xf32>
    %994 = arith.mulf %894, %993 : vector<7x128xf32>
    %995 = arith.addf %992, %994 : vector<7x128xf32>
    %996 = vector.broadcast %831 : f32 to vector<7x128xf32>
    %997 = arith.mulf %899, %996 : vector<7x128xf32>
    %998 = arith.addf %995, %997 : vector<7x128xf32>
    %999 = vector.broadcast %832 : f32 to vector<7x128xf32>
    %1000 = arith.mulf %900, %999 : vector<7x128xf32>
    %1001 = arith.addf %998, %1000 : vector<7x128xf32>
    %1002 = vector.broadcast %834 : f32 to vector<7x128xf32>
    %1003 = arith.addf %1001, %1002 : vector<7x128xf32>
    %1004 = arith.negf %1003 : vector<7x128xf32>
    %1005 = math.exp %1004 : vector<7x128xf32>
    %cst_58 = arith.constant 1.000000e+00 : f32
    %1006 = vector.broadcast %cst_58 : f32 to vector<7x128xf32>
    %1007 = arith.addf %1006, %1005 : vector<7x128xf32>
    %1008 = arith.divf %1006, %1007 : vector<7x128xf32>
    %c116 = arith.constant 116 : index
    %1009 = memref.load %arg1[%c116] : memref<344xf32, #tpu.memory_space<smem>>
    %c117 = arith.constant 117 : index
    %1010 = memref.load %arg1[%c117] : memref<344xf32, #tpu.memory_space<smem>>
    %c118 = arith.constant 118 : index
    %1011 = memref.load %arg1[%c118] : memref<344xf32, #tpu.memory_space<smem>>
    %c119 = arith.constant 119 : index
    %1012 = memref.load %arg1[%c119] : memref<344xf32, #tpu.memory_space<smem>>
    %c120 = arith.constant 120 : index
    %1013 = memref.load %arg1[%c120] : memref<344xf32, #tpu.memory_space<smem>>
    %c121 = arith.constant 121 : index
    %1014 = memref.load %arg1[%c121] : memref<344xf32, #tpu.memory_space<smem>>
    %c122 = arith.constant 122 : index
    %1015 = memref.load %arg1[%c122] : memref<344xf32, #tpu.memory_space<smem>>
    %c123 = arith.constant 123 : index
    %1016 = memref.load %arg1[%c123] : memref<344xf32, #tpu.memory_space<smem>>
    %c124 = arith.constant 124 : index
    %1017 = memref.load %arg1[%c124] : memref<344xf32, #tpu.memory_space<smem>>
    %c125 = arith.constant 125 : index
    %1018 = memref.load %arg1[%c125] : memref<344xf32, #tpu.memory_space<smem>>
    %c126 = arith.constant 126 : index
    %1019 = memref.load %arg1[%c126] : memref<344xf32, #tpu.memory_space<smem>>
    %c127 = arith.constant 127 : index
    %1020 = memref.load %arg1[%c127] : memref<344xf32, #tpu.memory_space<smem>>
    %c128 = arith.constant 128 : index
    %1021 = memref.load %arg1[%c128] : memref<344xf32, #tpu.memory_space<smem>>
    %c129 = arith.constant 129 : index
    %1022 = memref.load %arg1[%c129] : memref<344xf32, #tpu.memory_space<smem>>
    %c130 = arith.constant 130 : index
    %1023 = memref.load %arg1[%c130] : memref<344xf32, #tpu.memory_space<smem>>
    %c131 = arith.constant 131 : index
    %1024 = memref.load %arg1[%c131] : memref<344xf32, #tpu.memory_space<smem>>
    %c132 = arith.constant 132 : index
    %1025 = memref.load %arg1[%c132] : memref<344xf32, #tpu.memory_space<smem>>
    %c133 = arith.constant 133 : index
    %1026 = memref.load %arg1[%c133] : memref<344xf32, #tpu.memory_space<smem>>
    %1027 = vector.broadcast %1009 : f32 to vector<7x128xf32>
    %1028 = arith.mulf %918, %1027 : vector<7x128xf32>
    %1029 = vector.broadcast %1011 : f32 to vector<7x128xf32>
    %1030 = arith.addf %1028, %1029 : vector<7x128xf32>
    %1031 = arith.negf %1030 : vector<7x128xf32>
    %1032 = math.exp %1031 : vector<7x128xf32>
    %cst_59 = arith.constant 1.000000e+00 : f32
    %1033 = vector.broadcast %cst_59 : f32 to vector<7x128xf32>
    %1034 = arith.addf %1033, %1032 : vector<7x128xf32>
    %1035 = arith.divf %1033, %1034 : vector<7x128xf32>
    %1036 = vector.broadcast %1009 : f32 to vector<7x128xf32>
    %1037 = arith.mulf %936, %1036 : vector<7x128xf32>
    %1038 = vector.broadcast %1011 : f32 to vector<7x128xf32>
    %1039 = arith.addf %1037, %1038 : vector<7x128xf32>
    %1040 = arith.negf %1039 : vector<7x128xf32>
    %1041 = math.exp %1040 : vector<7x128xf32>
    %cst_60 = arith.constant 1.000000e+00 : f32
    %1042 = vector.broadcast %cst_60 : f32 to vector<7x128xf32>
    %1043 = arith.addf %1042, %1041 : vector<7x128xf32>
    %1044 = arith.divf %1042, %1043 : vector<7x128xf32>
    %1045 = vector.broadcast %1009 : f32 to vector<7x128xf32>
    %1046 = arith.mulf %954, %1045 : vector<7x128xf32>
    %1047 = vector.broadcast %1011 : f32 to vector<7x128xf32>
    %1048 = arith.addf %1046, %1047 : vector<7x128xf32>
    %1049 = arith.negf %1048 : vector<7x128xf32>
    %1050 = math.exp %1049 : vector<7x128xf32>
    %cst_61 = arith.constant 1.000000e+00 : f32
    %1051 = vector.broadcast %cst_61 : f32 to vector<7x128xf32>
    %1052 = arith.addf %1051, %1050 : vector<7x128xf32>
    %1053 = arith.divf %1051, %1052 : vector<7x128xf32>
    %1054 = vector.broadcast %1010 : f32 to vector<7x128xf32>
    %1055 = arith.mulf %972, %1054 : vector<7x128xf32>
    %1056 = vector.broadcast %1012 : f32 to vector<7x128xf32>
    %1057 = arith.addf %1055, %1056 : vector<7x128xf32>
    %1058 = arith.negf %1057 : vector<7x128xf32>
    %1059 = math.exp %1058 : vector<7x128xf32>
    %cst_62 = arith.constant 1.000000e+00 : f32
    %1060 = vector.broadcast %cst_62 : f32 to vector<7x128xf32>
    %1061 = arith.addf %1060, %1059 : vector<7x128xf32>
    %1062 = arith.divf %1060, %1061 : vector<7x128xf32>
    %1063 = vector.broadcast %1010 : f32 to vector<7x128xf32>
    %1064 = arith.mulf %990, %1063 : vector<7x128xf32>
    %1065 = vector.broadcast %1012 : f32 to vector<7x128xf32>
    %1066 = arith.addf %1064, %1065 : vector<7x128xf32>
    %1067 = arith.negf %1066 : vector<7x128xf32>
    %1068 = math.exp %1067 : vector<7x128xf32>
    %cst_63 = arith.constant 1.000000e+00 : f32
    %1069 = vector.broadcast %cst_63 : f32 to vector<7x128xf32>
    %1070 = arith.addf %1069, %1068 : vector<7x128xf32>
    %1071 = arith.divf %1069, %1070 : vector<7x128xf32>
    %1072 = vector.broadcast %1010 : f32 to vector<7x128xf32>
    %1073 = arith.mulf %1008, %1072 : vector<7x128xf32>
    %1074 = vector.broadcast %1012 : f32 to vector<7x128xf32>
    %1075 = arith.addf %1073, %1074 : vector<7x128xf32>
    %1076 = arith.negf %1075 : vector<7x128xf32>
    %1077 = math.exp %1076 : vector<7x128xf32>
    %cst_64 = arith.constant 1.000000e+00 : f32
    %1078 = vector.broadcast %cst_64 : f32 to vector<7x128xf32>
    %1079 = arith.addf %1078, %1077 : vector<7x128xf32>
    %1080 = arith.divf %1078, %1079 : vector<7x128xf32>
    %1081 = vector.broadcast %1013 : f32 to vector<7x128xf32>
    %1082 = arith.mulf %1035, %1081 : vector<7x128xf32>
    %1083 = vector.broadcast %1014 : f32 to vector<7x128xf32>
    %1084 = arith.mulf %1044, %1083 : vector<7x128xf32>
    %1085 = arith.addf %1082, %1084 : vector<7x128xf32>
    %1086 = vector.broadcast %1015 : f32 to vector<7x128xf32>
    %1087 = arith.mulf %1053, %1086 : vector<7x128xf32>
    %1088 = arith.addf %1085, %1087 : vector<7x128xf32>
    %1089 = vector.broadcast %1016 : f32 to vector<7x128xf32>
    %1090 = arith.mulf %1062, %1089 : vector<7x128xf32>
    %1091 = arith.addf %1088, %1090 : vector<7x128xf32>
    %1092 = vector.broadcast %1017 : f32 to vector<7x128xf32>
    %1093 = arith.mulf %1071, %1092 : vector<7x128xf32>
    %1094 = arith.addf %1091, %1093 : vector<7x128xf32>
    %1095 = vector.broadcast %1018 : f32 to vector<7x128xf32>
    %1096 = arith.mulf %1080, %1095 : vector<7x128xf32>
    %1097 = arith.addf %1094, %1096 : vector<7x128xf32>
    %1098 = vector.broadcast %1025 : f32 to vector<7x128xf32>
    %1099 = arith.addf %1097, %1098 : vector<7x128xf32>
    %1100 = arith.negf %1099 : vector<7x128xf32>
    %1101 = math.exp %1100 : vector<7x128xf32>
    %cst_65 = arith.constant 1.000000e+00 : f32
    %1102 = vector.broadcast %cst_65 : f32 to vector<7x128xf32>
    %1103 = arith.addf %1102, %1101 : vector<7x128xf32>
    %1104 = arith.divf %1102, %1103 : vector<7x128xf32>
    %1105 = vector.broadcast %1019 : f32 to vector<7x128xf32>
    %1106 = arith.mulf %1035, %1105 : vector<7x128xf32>
    %1107 = vector.broadcast %1020 : f32 to vector<7x128xf32>
    %1108 = arith.mulf %1044, %1107 : vector<7x128xf32>
    %1109 = arith.addf %1106, %1108 : vector<7x128xf32>
    %1110 = vector.broadcast %1021 : f32 to vector<7x128xf32>
    %1111 = arith.mulf %1053, %1110 : vector<7x128xf32>
    %1112 = arith.addf %1109, %1111 : vector<7x128xf32>
    %1113 = vector.broadcast %1022 : f32 to vector<7x128xf32>
    %1114 = arith.mulf %1062, %1113 : vector<7x128xf32>
    %1115 = arith.addf %1112, %1114 : vector<7x128xf32>
    %1116 = vector.broadcast %1023 : f32 to vector<7x128xf32>
    %1117 = arith.mulf %1071, %1116 : vector<7x128xf32>
    %1118 = arith.addf %1115, %1117 : vector<7x128xf32>
    %1119 = vector.broadcast %1024 : f32 to vector<7x128xf32>
    %1120 = arith.mulf %1080, %1119 : vector<7x128xf32>
    %1121 = arith.addf %1118, %1120 : vector<7x128xf32>
    %1122 = vector.broadcast %1026 : f32 to vector<7x128xf32>
    %1123 = arith.addf %1121, %1122 : vector<7x128xf32>
    %1124 = arith.negf %1123 : vector<7x128xf32>
    %1125 = math.exp %1124 : vector<7x128xf32>
    %cst_66 = arith.constant 1.000000e+00 : f32
    %1126 = vector.broadcast %cst_66 : f32 to vector<7x128xf32>
    %1127 = arith.addf %1126, %1125 : vector<7x128xf32>
    %1128 = arith.divf %1126, %1127 : vector<7x128xf32>
    %c134 = arith.constant 134 : index
    %1129 = memref.load %arg1[%c134] : memref<344xf32, #tpu.memory_space<smem>>
    %c135 = arith.constant 135 : index
    %1130 = memref.load %arg1[%c135] : memref<344xf32, #tpu.memory_space<smem>>
    %c136 = arith.constant 136 : index
    %1131 = memref.load %arg1[%c136] : memref<344xf32, #tpu.memory_space<smem>>
    %c137 = arith.constant 137 : index
    %1132 = memref.load %arg1[%c137] : memref<344xf32, #tpu.memory_space<smem>>
    %c138 = arith.constant 138 : index
    %1133 = memref.load %arg1[%c138] : memref<344xf32, #tpu.memory_space<smem>>
    %c139 = arith.constant 139 : index
    %1134 = memref.load %arg1[%c139] : memref<344xf32, #tpu.memory_space<smem>>
    %c140 = arith.constant 140 : index
    %1135 = memref.load %arg1[%c140] : memref<344xf32, #tpu.memory_space<smem>>
    %c141 = arith.constant 141 : index
    %1136 = memref.load %arg1[%c141] : memref<344xf32, #tpu.memory_space<smem>>
    %c142 = arith.constant 142 : index
    %1137 = memref.load %arg1[%c142] : memref<344xf32, #tpu.memory_space<smem>>
    %c143 = arith.constant 143 : index
    %1138 = memref.load %arg1[%c143] : memref<344xf32, #tpu.memory_space<smem>>
    %c144 = arith.constant 144 : index
    %1139 = memref.load %arg1[%c144] : memref<344xf32, #tpu.memory_space<smem>>
    %c145 = arith.constant 145 : index
    %1140 = memref.load %arg1[%c145] : memref<344xf32, #tpu.memory_space<smem>>
    %c146 = arith.constant 146 : index
    %1141 = memref.load %arg1[%c146] : memref<344xf32, #tpu.memory_space<smem>>
    %c147 = arith.constant 147 : index
    %1142 = memref.load %arg1[%c147] : memref<344xf32, #tpu.memory_space<smem>>
    %c148 = arith.constant 148 : index
    %1143 = memref.load %arg1[%c148] : memref<344xf32, #tpu.memory_space<smem>>
    %c149 = arith.constant 149 : index
    %1144 = memref.load %arg1[%c149] : memref<344xf32, #tpu.memory_space<smem>>
    %c150 = arith.constant 150 : index
    %1145 = memref.load %arg1[%c150] : memref<344xf32, #tpu.memory_space<smem>>
    %c151 = arith.constant 151 : index
    %1146 = memref.load %arg1[%c151] : memref<344xf32, #tpu.memory_space<smem>>
    %c152 = arith.constant 152 : index
    %1147 = memref.load %arg1[%c152] : memref<344xf32, #tpu.memory_space<smem>>
    %c153 = arith.constant 153 : index
    %1148 = memref.load %arg1[%c153] : memref<344xf32, #tpu.memory_space<smem>>
    %c154 = arith.constant 154 : index
    %1149 = memref.load %arg1[%c154] : memref<344xf32, #tpu.memory_space<smem>>
    %c155 = arith.constant 155 : index
    %1150 = memref.load %arg1[%c155] : memref<344xf32, #tpu.memory_space<smem>>
    %c156 = arith.constant 156 : index
    %1151 = memref.load %arg1[%c156] : memref<344xf32, #tpu.memory_space<smem>>
    %c157 = arith.constant 157 : index
    %1152 = memref.load %arg1[%c157] : memref<344xf32, #tpu.memory_space<smem>>
    %c158 = arith.constant 158 : index
    %1153 = memref.load %arg1[%c158] : memref<344xf32, #tpu.memory_space<smem>>
    %c159 = arith.constant 159 : index
    %1154 = memref.load %arg1[%c159] : memref<344xf32, #tpu.memory_space<smem>>
    %c160 = arith.constant 160 : index
    %1155 = memref.load %arg1[%c160] : memref<344xf32, #tpu.memory_space<smem>>
    %c161 = arith.constant 161 : index
    %1156 = memref.load %arg1[%c161] : memref<344xf32, #tpu.memory_space<smem>>
    %c162 = arith.constant 162 : index
    %1157 = memref.load %arg1[%c162] : memref<344xf32, #tpu.memory_space<smem>>
    %c163 = arith.constant 163 : index
    %1158 = memref.load %arg1[%c163] : memref<344xf32, #tpu.memory_space<smem>>
    %c164 = arith.constant 164 : index
    %1159 = memref.load %arg1[%c164] : memref<344xf32, #tpu.memory_space<smem>>
    %c165 = arith.constant 165 : index
    %1160 = memref.load %arg1[%c165] : memref<344xf32, #tpu.memory_space<smem>>
    %c166 = arith.constant 166 : index
    %1161 = memref.load %arg1[%c166] : memref<344xf32, #tpu.memory_space<smem>>
    %c167 = arith.constant 167 : index
    %1162 = memref.load %arg1[%c167] : memref<344xf32, #tpu.memory_space<smem>>
    %c168 = arith.constant 168 : index
    %1163 = memref.load %arg1[%c168] : memref<344xf32, #tpu.memory_space<smem>>
    %c169 = arith.constant 169 : index
    %1164 = memref.load %arg1[%c169] : memref<344xf32, #tpu.memory_space<smem>>
    %c170 = arith.constant 170 : index
    %1165 = memref.load %arg1[%c170] : memref<344xf32, #tpu.memory_space<smem>>
    %c171 = arith.constant 171 : index
    %1166 = memref.load %arg1[%c171] : memref<344xf32, #tpu.memory_space<smem>>
    %c172 = arith.constant 172 : index
    %1167 = memref.load %arg1[%c172] : memref<344xf32, #tpu.memory_space<smem>>
    %c173 = arith.constant 173 : index
    %1168 = memref.load %arg1[%c173] : memref<344xf32, #tpu.memory_space<smem>>
    %c174 = arith.constant 174 : index
    %1169 = memref.load %arg1[%c174] : memref<344xf32, #tpu.memory_space<smem>>
    %c175 = arith.constant 175 : index
    %1170 = memref.load %arg1[%c175] : memref<344xf32, #tpu.memory_space<smem>>
    %c176 = arith.constant 176 : index
    %1171 = memref.load %arg1[%c176] : memref<344xf32, #tpu.memory_space<smem>>
    %c177 = arith.constant 177 : index
    %1172 = memref.load %arg1[%c177] : memref<344xf32, #tpu.memory_space<smem>>
    %c178 = arith.constant 178 : index
    %1173 = memref.load %arg1[%c178] : memref<344xf32, #tpu.memory_space<smem>>
    %c179 = arith.constant 179 : index
    %1174 = memref.load %arg1[%c179] : memref<344xf32, #tpu.memory_space<smem>>
    %c180 = arith.constant 180 : index
    %1175 = memref.load %arg1[%c180] : memref<344xf32, #tpu.memory_space<smem>>
    %c181 = arith.constant 181 : index
    %1176 = memref.load %arg1[%c181] : memref<344xf32, #tpu.memory_space<smem>>
    %c182 = arith.constant 182 : index
    %1177 = memref.load %arg1[%c182] : memref<344xf32, #tpu.memory_space<smem>>
    %c183 = arith.constant 183 : index
    %1178 = memref.load %arg1[%c183] : memref<344xf32, #tpu.memory_space<smem>>
    %c184 = arith.constant 184 : index
    %1179 = memref.load %arg1[%c184] : memref<344xf32, #tpu.memory_space<smem>>
    %c185 = arith.constant 185 : index
    %1180 = memref.load %arg1[%c185] : memref<344xf32, #tpu.memory_space<smem>>
    %c186 = arith.constant 186 : index
    %1181 = memref.load %arg1[%c186] : memref<344xf32, #tpu.memory_space<smem>>
    %c187 = arith.constant 187 : index
    %1182 = memref.load %arg1[%c187] : memref<344xf32, #tpu.memory_space<smem>>
    %c188 = arith.constant 188 : index
    %1183 = memref.load %arg1[%c188] : memref<344xf32, #tpu.memory_space<smem>>
    %c189 = arith.constant 189 : index
    %1184 = memref.load %arg1[%c189] : memref<344xf32, #tpu.memory_space<smem>>
    %c190 = arith.constant 190 : index
    %1185 = memref.load %arg1[%c190] : memref<344xf32, #tpu.memory_space<smem>>
    %c191 = arith.constant 191 : index
    %1186 = memref.load %arg1[%c191] : memref<344xf32, #tpu.memory_space<smem>>
    %c192 = arith.constant 192 : index
    %1187 = memref.load %arg1[%c192] : memref<344xf32, #tpu.memory_space<smem>>
    %c193 = arith.constant 193 : index
    %1188 = memref.load %arg1[%c193] : memref<344xf32, #tpu.memory_space<smem>>
    %c194 = arith.constant 194 : index
    %1189 = memref.load %arg1[%c194] : memref<344xf32, #tpu.memory_space<smem>>
    %c195 = arith.constant 195 : index
    %1190 = memref.load %arg1[%c195] : memref<344xf32, #tpu.memory_space<smem>>
    %c196 = arith.constant 196 : index
    %1191 = memref.load %arg1[%c196] : memref<344xf32, #tpu.memory_space<smem>>
    %c197 = arith.constant 197 : index
    %1192 = memref.load %arg1[%c197] : memref<344xf32, #tpu.memory_space<smem>>
    %c198 = arith.constant 198 : index
    %1193 = memref.load %arg1[%c198] : memref<344xf32, #tpu.memory_space<smem>>
    %c199 = arith.constant 199 : index
    %1194 = memref.load %arg1[%c199] : memref<344xf32, #tpu.memory_space<smem>>
    %c200 = arith.constant 200 : index
    %1195 = memref.load %arg1[%c200] : memref<344xf32, #tpu.memory_space<smem>>
    %c201 = arith.constant 201 : index
    %1196 = memref.load %arg1[%c201] : memref<344xf32, #tpu.memory_space<smem>>
    %c202 = arith.constant 202 : index
    %1197 = memref.load %arg1[%c202] : memref<344xf32, #tpu.memory_space<smem>>
    %c203 = arith.constant 203 : index
    %1198 = memref.load %arg1[%c203] : memref<344xf32, #tpu.memory_space<smem>>
    %c204 = arith.constant 204 : index
    %1199 = memref.load %arg1[%c204] : memref<344xf32, #tpu.memory_space<smem>>
    %c205 = arith.constant 205 : index
    %1200 = memref.load %arg1[%c205] : memref<344xf32, #tpu.memory_space<smem>>
    %c206 = arith.constant 206 : index
    %1201 = memref.load %arg1[%c206] : memref<344xf32, #tpu.memory_space<smem>>
    %c207 = arith.constant 207 : index
    %1202 = memref.load %arg1[%c207] : memref<344xf32, #tpu.memory_space<smem>>
    %c208 = arith.constant 208 : index
    %1203 = memref.load %arg1[%c208] : memref<344xf32, #tpu.memory_space<smem>>
    %c209 = arith.constant 209 : index
    %1204 = memref.load %arg1[%c209] : memref<344xf32, #tpu.memory_space<smem>>
    %c210 = arith.constant 210 : index
    %1205 = memref.load %arg1[%c210] : memref<344xf32, #tpu.memory_space<smem>>
    %c211 = arith.constant 211 : index
    %1206 = memref.load %arg1[%c211] : memref<344xf32, #tpu.memory_space<smem>>
    %c212 = arith.constant 212 : index
    %1207 = memref.load %arg1[%c212] : memref<344xf32, #tpu.memory_space<smem>>
    %c213 = arith.constant 213 : index
    %1208 = memref.load %arg1[%c213] : memref<344xf32, #tpu.memory_space<smem>>
    %c214 = arith.constant 214 : index
    %1209 = memref.load %arg1[%c214] : memref<344xf32, #tpu.memory_space<smem>>
    %c215 = arith.constant 215 : index
    %1210 = memref.load %arg1[%c215] : memref<344xf32, #tpu.memory_space<smem>>
    %c216 = arith.constant 216 : index
    %1211 = memref.load %arg1[%c216] : memref<344xf32, #tpu.memory_space<smem>>
    %c217 = arith.constant 217 : index
    %1212 = memref.load %arg1[%c217] : memref<344xf32, #tpu.memory_space<smem>>
    %c218 = arith.constant 218 : index
    %1213 = memref.load %arg1[%c218] : memref<344xf32, #tpu.memory_space<smem>>
    %c219 = arith.constant 219 : index
    %1214 = memref.load %arg1[%c219] : memref<344xf32, #tpu.memory_space<smem>>
    %c220 = arith.constant 220 : index
    %1215 = memref.load %arg1[%c220] : memref<344xf32, #tpu.memory_space<smem>>
    %c221 = arith.constant 221 : index
    %1216 = memref.load %arg1[%c221] : memref<344xf32, #tpu.memory_space<smem>>
    %c222 = arith.constant 222 : index
    %1217 = memref.load %arg1[%c222] : memref<344xf32, #tpu.memory_space<smem>>
    %c223 = arith.constant 223 : index
    %1218 = memref.load %arg1[%c223] : memref<344xf32, #tpu.memory_space<smem>>
    %c224 = arith.constant 224 : index
    %1219 = memref.load %arg1[%c224] : memref<344xf32, #tpu.memory_space<smem>>
    %c225 = arith.constant 225 : index
    %1220 = memref.load %arg1[%c225] : memref<344xf32, #tpu.memory_space<smem>>
    %c226 = arith.constant 226 : index
    %1221 = memref.load %arg1[%c226] : memref<344xf32, #tpu.memory_space<smem>>
    %c227 = arith.constant 227 : index
    %1222 = memref.load %arg1[%c227] : memref<344xf32, #tpu.memory_space<smem>>
    %c228 = arith.constant 228 : index
    %1223 = memref.load %arg1[%c228] : memref<344xf32, #tpu.memory_space<smem>>
    %c229 = arith.constant 229 : index
    %1224 = memref.load %arg1[%c229] : memref<344xf32, #tpu.memory_space<smem>>
    %c230 = arith.constant 230 : index
    %1225 = memref.load %arg1[%c230] : memref<344xf32, #tpu.memory_space<smem>>
    %c231 = arith.constant 231 : index
    %1226 = memref.load %arg1[%c231] : memref<344xf32, #tpu.memory_space<smem>>
    %c232 = arith.constant 232 : index
    %1227 = memref.load %arg1[%c232] : memref<344xf32, #tpu.memory_space<smem>>
    %c233 = arith.constant 233 : index
    %1228 = memref.load %arg1[%c233] : memref<344xf32, #tpu.memory_space<smem>>
    %c234 = arith.constant 234 : index
    %1229 = memref.load %arg1[%c234] : memref<344xf32, #tpu.memory_space<smem>>
    %c235 = arith.constant 235 : index
    %1230 = memref.load %arg1[%c235] : memref<344xf32, #tpu.memory_space<smem>>
    %c236 = arith.constant 236 : index
    %1231 = memref.load %arg1[%c236] : memref<344xf32, #tpu.memory_space<smem>>
    %c237 = arith.constant 237 : index
    %1232 = memref.load %arg1[%c237] : memref<344xf32, #tpu.memory_space<smem>>
    %c238 = arith.constant 238 : index
    %1233 = memref.load %arg1[%c238] : memref<344xf32, #tpu.memory_space<smem>>
    %c239 = arith.constant 239 : index
    %1234 = memref.load %arg1[%c239] : memref<344xf32, #tpu.memory_space<smem>>
    %c240 = arith.constant 240 : index
    %1235 = memref.load %arg1[%c240] : memref<344xf32, #tpu.memory_space<smem>>
    %c241 = arith.constant 241 : index
    %1236 = memref.load %arg1[%c241] : memref<344xf32, #tpu.memory_space<smem>>
    %c242 = arith.constant 242 : index
    %1237 = memref.load %arg1[%c242] : memref<344xf32, #tpu.memory_space<smem>>
    %c243 = arith.constant 243 : index
    %1238 = memref.load %arg1[%c243] : memref<344xf32, #tpu.memory_space<smem>>
    %c244 = arith.constant 244 : index
    %1239 = memref.load %arg1[%c244] : memref<344xf32, #tpu.memory_space<smem>>
    %c245 = arith.constant 245 : index
    %1240 = memref.load %arg1[%c245] : memref<344xf32, #tpu.memory_space<smem>>
    %c246 = arith.constant 246 : index
    %1241 = memref.load %arg1[%c246] : memref<344xf32, #tpu.memory_space<smem>>
    %c247 = arith.constant 247 : index
    %1242 = memref.load %arg1[%c247] : memref<344xf32, #tpu.memory_space<smem>>
    %c248 = arith.constant 248 : index
    %1243 = memref.load %arg1[%c248] : memref<344xf32, #tpu.memory_space<smem>>
    %c249 = arith.constant 249 : index
    %1244 = memref.load %arg1[%c249] : memref<344xf32, #tpu.memory_space<smem>>
    %c250 = arith.constant 250 : index
    %1245 = memref.load %arg1[%c250] : memref<344xf32, #tpu.memory_space<smem>>
    %c251 = arith.constant 251 : index
    %1246 = memref.load %arg1[%c251] : memref<344xf32, #tpu.memory_space<smem>>
    %c252 = arith.constant 252 : index
    %1247 = memref.load %arg1[%c252] : memref<344xf32, #tpu.memory_space<smem>>
    %c253 = arith.constant 253 : index
    %1248 = memref.load %arg1[%c253] : memref<344xf32, #tpu.memory_space<smem>>
    %c254 = arith.constant 254 : index
    %1249 = memref.load %arg1[%c254] : memref<344xf32, #tpu.memory_space<smem>>
    %c255 = arith.constant 255 : index
    %1250 = memref.load %arg1[%c255] : memref<344xf32, #tpu.memory_space<smem>>
    %c256 = arith.constant 256 : index
    %1251 = memref.load %arg1[%c256] : memref<344xf32, #tpu.memory_space<smem>>
    %c257 = arith.constant 257 : index
    %1252 = memref.load %arg1[%c257] : memref<344xf32, #tpu.memory_space<smem>>
    %c258 = arith.constant 258 : index
    %1253 = memref.load %arg1[%c258] : memref<344xf32, #tpu.memory_space<smem>>
    %c259 = arith.constant 259 : index
    %1254 = memref.load %arg1[%c259] : memref<344xf32, #tpu.memory_space<smem>>
    %c260 = arith.constant 260 : index
    %1255 = memref.load %arg1[%c260] : memref<344xf32, #tpu.memory_space<smem>>
    %c261 = arith.constant 261 : index
    %1256 = memref.load %arg1[%c261] : memref<344xf32, #tpu.memory_space<smem>>
    %c262 = arith.constant 262 : index
    %1257 = memref.load %arg1[%c262] : memref<344xf32, #tpu.memory_space<smem>>
    %c263 = arith.constant 263 : index
    %1258 = memref.load %arg1[%c263] : memref<344xf32, #tpu.memory_space<smem>>
    %c264 = arith.constant 264 : index
    %1259 = memref.load %arg1[%c264] : memref<344xf32, #tpu.memory_space<smem>>
    %c265 = arith.constant 265 : index
    %1260 = memref.load %arg1[%c265] : memref<344xf32, #tpu.memory_space<smem>>
    %c266 = arith.constant 266 : index
    %1261 = memref.load %arg1[%c266] : memref<344xf32, #tpu.memory_space<smem>>
    %c267 = arith.constant 267 : index
    %1262 = memref.load %arg1[%c267] : memref<344xf32, #tpu.memory_space<smem>>
    %c268 = arith.constant 268 : index
    %1263 = memref.load %arg1[%c268] : memref<344xf32, #tpu.memory_space<smem>>
    %c269 = arith.constant 269 : index
    %1264 = memref.load %arg1[%c269] : memref<344xf32, #tpu.memory_space<smem>>
    %c270 = arith.constant 270 : index
    %1265 = memref.load %arg1[%c270] : memref<344xf32, #tpu.memory_space<smem>>
    %c271 = arith.constant 271 : index
    %1266 = memref.load %arg1[%c271] : memref<344xf32, #tpu.memory_space<smem>>
    %c272 = arith.constant 272 : index
    %1267 = memref.load %arg1[%c272] : memref<344xf32, #tpu.memory_space<smem>>
    %c273 = arith.constant 273 : index
    %1268 = memref.load %arg1[%c273] : memref<344xf32, #tpu.memory_space<smem>>
    %c274 = arith.constant 274 : index
    %1269 = memref.load %arg1[%c274] : memref<344xf32, #tpu.memory_space<smem>>
    %c275 = arith.constant 275 : index
    %1270 = memref.load %arg1[%c275] : memref<344xf32, #tpu.memory_space<smem>>
    %c276 = arith.constant 276 : index
    %1271 = memref.load %arg1[%c276] : memref<344xf32, #tpu.memory_space<smem>>
    %c277 = arith.constant 277 : index
    %1272 = memref.load %arg1[%c277] : memref<344xf32, #tpu.memory_space<smem>>
    %c278 = arith.constant 278 : index
    %1273 = memref.load %arg1[%c278] : memref<344xf32, #tpu.memory_space<smem>>
    %c279 = arith.constant 279 : index
    %1274 = memref.load %arg1[%c279] : memref<344xf32, #tpu.memory_space<smem>>
    %c280 = arith.constant 280 : index
    %1275 = memref.load %arg1[%c280] : memref<344xf32, #tpu.memory_space<smem>>
    %c281 = arith.constant 281 : index
    %1276 = memref.load %arg1[%c281] : memref<344xf32, #tpu.memory_space<smem>>
    %c282 = arith.constant 282 : index
    %1277 = memref.load %arg1[%c282] : memref<344xf32, #tpu.memory_space<smem>>
    %c283 = arith.constant 283 : index
    %1278 = memref.load %arg1[%c283] : memref<344xf32, #tpu.memory_space<smem>>
    %c284 = arith.constant 284 : index
    %1279 = memref.load %arg1[%c284] : memref<344xf32, #tpu.memory_space<smem>>
    %c285 = arith.constant 285 : index
    %1280 = memref.load %arg1[%c285] : memref<344xf32, #tpu.memory_space<smem>>
    %c286 = arith.constant 286 : index
    %1281 = memref.load %arg1[%c286] : memref<344xf32, #tpu.memory_space<smem>>
    %c287 = arith.constant 287 : index
    %1282 = memref.load %arg1[%c287] : memref<344xf32, #tpu.memory_space<smem>>
    %c288 = arith.constant 288 : index
    %1283 = memref.load %arg1[%c288] : memref<344xf32, #tpu.memory_space<smem>>
    %c289 = arith.constant 289 : index
    %1284 = memref.load %arg1[%c289] : memref<344xf32, #tpu.memory_space<smem>>
    %c290 = arith.constant 290 : index
    %1285 = memref.load %arg1[%c290] : memref<344xf32, #tpu.memory_space<smem>>
    %c291 = arith.constant 291 : index
    %1286 = memref.load %arg1[%c291] : memref<344xf32, #tpu.memory_space<smem>>
    %c292 = arith.constant 292 : index
    %1287 = memref.load %arg1[%c292] : memref<344xf32, #tpu.memory_space<smem>>
    %c293 = arith.constant 293 : index
    %1288 = memref.load %arg1[%c293] : memref<344xf32, #tpu.memory_space<smem>>
    %c294 = arith.constant 294 : index
    %1289 = memref.load %arg1[%c294] : memref<344xf32, #tpu.memory_space<smem>>
    %c295 = arith.constant 295 : index
    %1290 = memref.load %arg1[%c295] : memref<344xf32, #tpu.memory_space<smem>>
    %c296 = arith.constant 296 : index
    %1291 = memref.load %arg1[%c296] : memref<344xf32, #tpu.memory_space<smem>>
    %c297 = arith.constant 297 : index
    %1292 = memref.load %arg1[%c297] : memref<344xf32, #tpu.memory_space<smem>>
    %c298 = arith.constant 298 : index
    %1293 = memref.load %arg1[%c298] : memref<344xf32, #tpu.memory_space<smem>>
    %c299 = arith.constant 299 : index
    %1294 = memref.load %arg1[%c299] : memref<344xf32, #tpu.memory_space<smem>>
    %c300 = arith.constant 300 : index
    %1295 = memref.load %arg1[%c300] : memref<344xf32, #tpu.memory_space<smem>>
    %c301 = arith.constant 301 : index
    %1296 = memref.load %arg1[%c301] : memref<344xf32, #tpu.memory_space<smem>>
    %c302 = arith.constant 302 : index
    %1297 = memref.load %arg1[%c302] : memref<344xf32, #tpu.memory_space<smem>>
    %c303 = arith.constant 303 : index
    %1298 = memref.load %arg1[%c303] : memref<344xf32, #tpu.memory_space<smem>>
    %c304 = arith.constant 304 : index
    %1299 = memref.load %arg1[%c304] : memref<344xf32, #tpu.memory_space<smem>>
    %c305 = arith.constant 305 : index
    %1300 = memref.load %arg1[%c305] : memref<344xf32, #tpu.memory_space<smem>>
    %c306 = arith.constant 306 : index
    %1301 = memref.load %arg1[%c306] : memref<344xf32, #tpu.memory_space<smem>>
    %c307 = arith.constant 307 : index
    %1302 = memref.load %arg1[%c307] : memref<344xf32, #tpu.memory_space<smem>>
    %c308 = arith.constant 308 : index
    %1303 = memref.load %arg1[%c308] : memref<344xf32, #tpu.memory_space<smem>>
    %c309 = arith.constant 309 : index
    %1304 = memref.load %arg1[%c309] : memref<344xf32, #tpu.memory_space<smem>>
    %c310 = arith.constant 310 : index
    %1305 = memref.load %arg1[%c310] : memref<344xf32, #tpu.memory_space<smem>>
    %c311 = arith.constant 311 : index
    %1306 = memref.load %arg1[%c311] : memref<344xf32, #tpu.memory_space<smem>>
    %c312 = arith.constant 312 : index
    %1307 = memref.load %arg1[%c312] : memref<344xf32, #tpu.memory_space<smem>>
    %c313 = arith.constant 313 : index
    %1308 = memref.load %arg1[%c313] : memref<344xf32, #tpu.memory_space<smem>>
    %c314 = arith.constant 314 : index
    %1309 = memref.load %arg1[%c314] : memref<344xf32, #tpu.memory_space<smem>>
    %c315 = arith.constant 315 : index
    %1310 = memref.load %arg1[%c315] : memref<344xf32, #tpu.memory_space<smem>>
    %c316 = arith.constant 316 : index
    %1311 = memref.load %arg1[%c316] : memref<344xf32, #tpu.memory_space<smem>>
    %c317 = arith.constant 317 : index
    %1312 = memref.load %arg1[%c317] : memref<344xf32, #tpu.memory_space<smem>>
    %c318 = arith.constant 318 : index
    %1313 = memref.load %arg1[%c318] : memref<344xf32, #tpu.memory_space<smem>>
    %c319 = arith.constant 319 : index
    %1314 = memref.load %arg1[%c319] : memref<344xf32, #tpu.memory_space<smem>>
    %c320 = arith.constant 320 : index
    %1315 = memref.load %arg1[%c320] : memref<344xf32, #tpu.memory_space<smem>>
    %c321 = arith.constant 321 : index
    %1316 = memref.load %arg1[%c321] : memref<344xf32, #tpu.memory_space<smem>>
    %c322 = arith.constant 322 : index
    %1317 = memref.load %arg1[%c322] : memref<344xf32, #tpu.memory_space<smem>>
    %c323 = arith.constant 323 : index
    %1318 = memref.load %arg1[%c323] : memref<344xf32, #tpu.memory_space<smem>>
    %c324 = arith.constant 324 : index
    %1319 = memref.load %arg1[%c324] : memref<344xf32, #tpu.memory_space<smem>>
    %c325 = arith.constant 325 : index
    %1320 = memref.load %arg1[%c325] : memref<344xf32, #tpu.memory_space<smem>>
    %c326 = arith.constant 326 : index
    %1321 = memref.load %arg1[%c326] : memref<344xf32, #tpu.memory_space<smem>>
    %c327 = arith.constant 327 : index
    %1322 = memref.load %arg1[%c327] : memref<344xf32, #tpu.memory_space<smem>>
    %c328 = arith.constant 328 : index
    %1323 = memref.load %arg1[%c328] : memref<344xf32, #tpu.memory_space<smem>>
    %c329 = arith.constant 329 : index
    %1324 = memref.load %arg1[%c329] : memref<344xf32, #tpu.memory_space<smem>>
    %c330 = arith.constant 330 : index
    %1325 = memref.load %arg1[%c330] : memref<344xf32, #tpu.memory_space<smem>>
    %c331 = arith.constant 331 : index
    %1326 = memref.load %arg1[%c331] : memref<344xf32, #tpu.memory_space<smem>>
    %c332 = arith.constant 332 : index
    %1327 = memref.load %arg1[%c332] : memref<344xf32, #tpu.memory_space<smem>>
    %c333 = arith.constant 333 : index
    %1328 = memref.load %arg1[%c333] : memref<344xf32, #tpu.memory_space<smem>>
    %c334 = arith.constant 334 : index
    %1329 = memref.load %arg1[%c334] : memref<344xf32, #tpu.memory_space<smem>>
    %c335 = arith.constant 335 : index
    %1330 = memref.load %arg1[%c335] : memref<344xf32, #tpu.memory_space<smem>>
    %c336 = arith.constant 336 : index
    %1331 = memref.load %arg1[%c336] : memref<344xf32, #tpu.memory_space<smem>>
    %c337 = arith.constant 337 : index
    %1332 = memref.load %arg1[%c337] : memref<344xf32, #tpu.memory_space<smem>>
    %c338 = arith.constant 338 : index
    %1333 = memref.load %arg1[%c338] : memref<344xf32, #tpu.memory_space<smem>>
    %c339 = arith.constant 339 : index
    %1334 = memref.load %arg1[%c339] : memref<344xf32, #tpu.memory_space<smem>>
    %c340 = arith.constant 340 : index
    %1335 = memref.load %arg1[%c340] : memref<344xf32, #tpu.memory_space<smem>>
    %c341 = arith.constant 341 : index
    %1336 = memref.load %arg1[%c341] : memref<344xf32, #tpu.memory_space<smem>>
    %c342 = arith.constant 342 : index
    %1337 = memref.load %arg1[%c342] : memref<344xf32, #tpu.memory_space<smem>>
    %c343 = arith.constant 343 : index
    %1338 = memref.load %arg1[%c343] : memref<344xf32, #tpu.memory_space<smem>>
    %1339 = vector.extract_strided_slice %434 {offsets = [0, 0], sizes = [1, 128], strides = [1, 1]} : vector<7x128xf32> to vector<1x128xf32>
    %1340 = vector.extract_strided_slice %434 {offsets = [1, 0], sizes = [1, 128], strides = [1, 1]} : vector<7x128xf32> to vector<1x128xf32>
    %1341 = vector.extract_strided_slice %434 {offsets = [2, 0], sizes = [1, 128], strides = [1, 1]} : vector<7x128xf32> to vector<1x128xf32>
    %1342 = vector.extract_strided_slice %434 {offsets = [3, 0], sizes = [1, 128], strides = [1, 1]} : vector<7x128xf32> to vector<1x128xf32>
    %1343 = vector.extract_strided_slice %434 {offsets = [4, 0], sizes = [1, 128], strides = [1, 1]} : vector<7x128xf32> to vector<1x128xf32>
    %1344 = vector.extract_strided_slice %434 {offsets = [5, 0], sizes = [1, 128], strides = [1, 1]} : vector<7x128xf32> to vector<1x128xf32>
    %1345 = vector.extract_strided_slice %434 {offsets = [6, 0], sizes = [1, 128], strides = [1, 1]} : vector<7x128xf32> to vector<1x128xf32>
    %1346 = vector.extract_strided_slice %778 {offsets = [0, 0], sizes = [1, 128], strides = [1, 1]} : vector<7x128xf32> to vector<1x128xf32>
    %1347 = vector.extract_strided_slice %778 {offsets = [1, 0], sizes = [1, 128], strides = [1, 1]} : vector<7x128xf32> to vector<1x128xf32>
    %1348 = vector.extract_strided_slice %778 {offsets = [2, 0], sizes = [1, 128], strides = [1, 1]} : vector<7x128xf32> to vector<1x128xf32>
    %1349 = vector.extract_strided_slice %778 {offsets = [3, 0], sizes = [1, 128], strides = [1, 1]} : vector<7x128xf32> to vector<1x128xf32>
    %1350 = vector.extract_strided_slice %778 {offsets = [4, 0], sizes = [1, 128], strides = [1, 1]} : vector<7x128xf32> to vector<1x128xf32>
    %1351 = vector.extract_strided_slice %778 {offsets = [5, 0], sizes = [1, 128], strides = [1, 1]} : vector<7x128xf32> to vector<1x128xf32>
    %1352 = vector.extract_strided_slice %778 {offsets = [6, 0], sizes = [1, 128], strides = [1, 1]} : vector<7x128xf32> to vector<1x128xf32>
    %1353 = vector.extract_strided_slice %1104 {offsets = [0, 0], sizes = [1, 128], strides = [1, 1]} : vector<7x128xf32> to vector<1x128xf32>
    %1354 = vector.extract_strided_slice %1104 {offsets = [1, 0], sizes = [1, 128], strides = [1, 1]} : vector<7x128xf32> to vector<1x128xf32>
    %1355 = vector.extract_strided_slice %1104 {offsets = [2, 0], sizes = [1, 128], strides = [1, 1]} : vector<7x128xf32> to vector<1x128xf32>
    %1356 = vector.extract_strided_slice %1104 {offsets = [3, 0], sizes = [1, 128], strides = [1, 1]} : vector<7x128xf32> to vector<1x128xf32>
    %1357 = vector.extract_strided_slice %1104 {offsets = [4, 0], sizes = [1, 128], strides = [1, 1]} : vector<7x128xf32> to vector<1x128xf32>
    %1358 = vector.extract_strided_slice %1104 {offsets = [5, 0], sizes = [1, 128], strides = [1, 1]} : vector<7x128xf32> to vector<1x128xf32>
    %1359 = vector.extract_strided_slice %1104 {offsets = [6, 0], sizes = [1, 128], strides = [1, 1]} : vector<7x128xf32> to vector<1x128xf32>
    %1360 = vector.broadcast %1129 : f32 to vector<1x128xf32>
    %1361 = arith.mulf %1339, %1360 : vector<1x128xf32>
    %1362 = vector.broadcast %1139 : f32 to vector<1x128xf32>
    %1363 = arith.mulf %1340, %1362 : vector<1x128xf32>
    %1364 = arith.addf %1361, %1363 : vector<1x128xf32>
    %1365 = vector.broadcast %1149 : f32 to vector<1x128xf32>
    %1366 = arith.mulf %1341, %1365 : vector<1x128xf32>
    %1367 = arith.addf %1364, %1366 : vector<1x128xf32>
    %1368 = vector.broadcast %1159 : f32 to vector<1x128xf32>
    %1369 = arith.mulf %1342, %1368 : vector<1x128xf32>
    %1370 = arith.addf %1367, %1369 : vector<1x128xf32>
    %1371 = vector.broadcast %1169 : f32 to vector<1x128xf32>
    %1372 = arith.mulf %1343, %1371 : vector<1x128xf32>
    %1373 = arith.addf %1370, %1372 : vector<1x128xf32>
    %1374 = vector.broadcast %1179 : f32 to vector<1x128xf32>
    %1375 = arith.mulf %1344, %1374 : vector<1x128xf32>
    %1376 = arith.addf %1373, %1375 : vector<1x128xf32>
    %1377 = vector.broadcast %1189 : f32 to vector<1x128xf32>
    %1378 = arith.mulf %1345, %1377 : vector<1x128xf32>
    %1379 = arith.addf %1376, %1378 : vector<1x128xf32>
    %1380 = vector.broadcast %1199 : f32 to vector<1x128xf32>
    %1381 = arith.mulf %1346, %1380 : vector<1x128xf32>
    %1382 = arith.addf %1379, %1381 : vector<1x128xf32>
    %1383 = vector.broadcast %1209 : f32 to vector<1x128xf32>
    %1384 = arith.mulf %1347, %1383 : vector<1x128xf32>
    %1385 = arith.addf %1382, %1384 : vector<1x128xf32>
    %1386 = vector.broadcast %1219 : f32 to vector<1x128xf32>
    %1387 = arith.mulf %1348, %1386 : vector<1x128xf32>
    %1388 = arith.addf %1385, %1387 : vector<1x128xf32>
    %1389 = vector.broadcast %1229 : f32 to vector<1x128xf32>
    %1390 = arith.mulf %1349, %1389 : vector<1x128xf32>
    %1391 = arith.addf %1388, %1390 : vector<1x128xf32>
    %1392 = vector.broadcast %1239 : f32 to vector<1x128xf32>
    %1393 = arith.mulf %1350, %1392 : vector<1x128xf32>
    %1394 = arith.addf %1391, %1393 : vector<1x128xf32>
    %1395 = vector.broadcast %1249 : f32 to vector<1x128xf32>
    %1396 = arith.mulf %1351, %1395 : vector<1x128xf32>
    %1397 = arith.addf %1394, %1396 : vector<1x128xf32>
    %1398 = vector.broadcast %1259 : f32 to vector<1x128xf32>
    %1399 = arith.mulf %1352, %1398 : vector<1x128xf32>
    %1400 = arith.addf %1397, %1399 : vector<1x128xf32>
    %1401 = vector.broadcast %1269 : f32 to vector<1x128xf32>
    %1402 = arith.mulf %1353, %1401 : vector<1x128xf32>
    %1403 = arith.addf %1400, %1402 : vector<1x128xf32>
    %1404 = vector.broadcast %1279 : f32 to vector<1x128xf32>
    %1405 = arith.mulf %1354, %1404 : vector<1x128xf32>
    %1406 = arith.addf %1403, %1405 : vector<1x128xf32>
    %1407 = vector.broadcast %1289 : f32 to vector<1x128xf32>
    %1408 = arith.mulf %1355, %1407 : vector<1x128xf32>
    %1409 = arith.addf %1406, %1408 : vector<1x128xf32>
    %1410 = vector.broadcast %1299 : f32 to vector<1x128xf32>
    %1411 = arith.mulf %1356, %1410 : vector<1x128xf32>
    %1412 = arith.addf %1409, %1411 : vector<1x128xf32>
    %1413 = vector.broadcast %1309 : f32 to vector<1x128xf32>
    %1414 = arith.mulf %1357, %1413 : vector<1x128xf32>
    %1415 = arith.addf %1412, %1414 : vector<1x128xf32>
    %1416 = vector.broadcast %1319 : f32 to vector<1x128xf32>
    %1417 = arith.mulf %1358, %1416 : vector<1x128xf32>
    %1418 = arith.addf %1415, %1417 : vector<1x128xf32>
    %1419 = vector.broadcast %1329 : f32 to vector<1x128xf32>
    %1420 = arith.mulf %1359, %1419 : vector<1x128xf32>
    %1421 = arith.addf %1418, %1420 : vector<1x128xf32>
    %1422 = vector.broadcast %1130 : f32 to vector<1x128xf32>
    %1423 = arith.mulf %1339, %1422 : vector<1x128xf32>
    %1424 = vector.broadcast %1140 : f32 to vector<1x128xf32>
    %1425 = arith.mulf %1340, %1424 : vector<1x128xf32>
    %1426 = arith.addf %1423, %1425 : vector<1x128xf32>
    %1427 = vector.broadcast %1150 : f32 to vector<1x128xf32>
    %1428 = arith.mulf %1341, %1427 : vector<1x128xf32>
    %1429 = arith.addf %1426, %1428 : vector<1x128xf32>
    %1430 = vector.broadcast %1160 : f32 to vector<1x128xf32>
    %1431 = arith.mulf %1342, %1430 : vector<1x128xf32>
    %1432 = arith.addf %1429, %1431 : vector<1x128xf32>
    %1433 = vector.broadcast %1170 : f32 to vector<1x128xf32>
    %1434 = arith.mulf %1343, %1433 : vector<1x128xf32>
    %1435 = arith.addf %1432, %1434 : vector<1x128xf32>
    %1436 = vector.broadcast %1180 : f32 to vector<1x128xf32>
    %1437 = arith.mulf %1344, %1436 : vector<1x128xf32>
    %1438 = arith.addf %1435, %1437 : vector<1x128xf32>
    %1439 = vector.broadcast %1190 : f32 to vector<1x128xf32>
    %1440 = arith.mulf %1345, %1439 : vector<1x128xf32>
    %1441 = arith.addf %1438, %1440 : vector<1x128xf32>
    %1442 = vector.broadcast %1200 : f32 to vector<1x128xf32>
    %1443 = arith.mulf %1346, %1442 : vector<1x128xf32>
    %1444 = arith.addf %1441, %1443 : vector<1x128xf32>
    %1445 = vector.broadcast %1210 : f32 to vector<1x128xf32>
    %1446 = arith.mulf %1347, %1445 : vector<1x128xf32>
    %1447 = arith.addf %1444, %1446 : vector<1x128xf32>
    %1448 = vector.broadcast %1220 : f32 to vector<1x128xf32>
    %1449 = arith.mulf %1348, %1448 : vector<1x128xf32>
    %1450 = arith.addf %1447, %1449 : vector<1x128xf32>
    %1451 = vector.broadcast %1230 : f32 to vector<1x128xf32>
    %1452 = arith.mulf %1349, %1451 : vector<1x128xf32>
    %1453 = arith.addf %1450, %1452 : vector<1x128xf32>
    %1454 = vector.broadcast %1240 : f32 to vector<1x128xf32>
    %1455 = arith.mulf %1350, %1454 : vector<1x128xf32>
    %1456 = arith.addf %1453, %1455 : vector<1x128xf32>
    %1457 = vector.broadcast %1250 : f32 to vector<1x128xf32>
    %1458 = arith.mulf %1351, %1457 : vector<1x128xf32>
    %1459 = arith.addf %1456, %1458 : vector<1x128xf32>
    %1460 = vector.broadcast %1260 : f32 to vector<1x128xf32>
    %1461 = arith.mulf %1352, %1460 : vector<1x128xf32>
    %1462 = arith.addf %1459, %1461 : vector<1x128xf32>
    %1463 = vector.broadcast %1270 : f32 to vector<1x128xf32>
    %1464 = arith.mulf %1353, %1463 : vector<1x128xf32>
    %1465 = arith.addf %1462, %1464 : vector<1x128xf32>
    %1466 = vector.broadcast %1280 : f32 to vector<1x128xf32>
    %1467 = arith.mulf %1354, %1466 : vector<1x128xf32>
    %1468 = arith.addf %1465, %1467 : vector<1x128xf32>
    %1469 = vector.broadcast %1290 : f32 to vector<1x128xf32>
    %1470 = arith.mulf %1355, %1469 : vector<1x128xf32>
    %1471 = arith.addf %1468, %1470 : vector<1x128xf32>
    %1472 = vector.broadcast %1300 : f32 to vector<1x128xf32>
    %1473 = arith.mulf %1356, %1472 : vector<1x128xf32>
    %1474 = arith.addf %1471, %1473 : vector<1x128xf32>
    %1475 = vector.broadcast %1310 : f32 to vector<1x128xf32>
    %1476 = arith.mulf %1357, %1475 : vector<1x128xf32>
    %1477 = arith.addf %1474, %1476 : vector<1x128xf32>
    %1478 = vector.broadcast %1320 : f32 to vector<1x128xf32>
    %1479 = arith.mulf %1358, %1478 : vector<1x128xf32>
    %1480 = arith.addf %1477, %1479 : vector<1x128xf32>
    %1481 = vector.broadcast %1330 : f32 to vector<1x128xf32>
    %1482 = arith.mulf %1359, %1481 : vector<1x128xf32>
    %1483 = arith.addf %1480, %1482 : vector<1x128xf32>
    %1484 = vector.broadcast %1131 : f32 to vector<1x128xf32>
    %1485 = arith.mulf %1339, %1484 : vector<1x128xf32>
    %1486 = vector.broadcast %1141 : f32 to vector<1x128xf32>
    %1487 = arith.mulf %1340, %1486 : vector<1x128xf32>
    %1488 = arith.addf %1485, %1487 : vector<1x128xf32>
    %1489 = vector.broadcast %1151 : f32 to vector<1x128xf32>
    %1490 = arith.mulf %1341, %1489 : vector<1x128xf32>
    %1491 = arith.addf %1488, %1490 : vector<1x128xf32>
    %1492 = vector.broadcast %1161 : f32 to vector<1x128xf32>
    %1493 = arith.mulf %1342, %1492 : vector<1x128xf32>
    %1494 = arith.addf %1491, %1493 : vector<1x128xf32>
    %1495 = vector.broadcast %1171 : f32 to vector<1x128xf32>
    %1496 = arith.mulf %1343, %1495 : vector<1x128xf32>
    %1497 = arith.addf %1494, %1496 : vector<1x128xf32>
    %1498 = vector.broadcast %1181 : f32 to vector<1x128xf32>
    %1499 = arith.mulf %1344, %1498 : vector<1x128xf32>
    %1500 = arith.addf %1497, %1499 : vector<1x128xf32>
    %1501 = vector.broadcast %1191 : f32 to vector<1x128xf32>
    %1502 = arith.mulf %1345, %1501 : vector<1x128xf32>
    %1503 = arith.addf %1500, %1502 : vector<1x128xf32>
    %1504 = vector.broadcast %1201 : f32 to vector<1x128xf32>
    %1505 = arith.mulf %1346, %1504 : vector<1x128xf32>
    %1506 = arith.addf %1503, %1505 : vector<1x128xf32>
    %1507 = vector.broadcast %1211 : f32 to vector<1x128xf32>
    %1508 = arith.mulf %1347, %1507 : vector<1x128xf32>
    %1509 = arith.addf %1506, %1508 : vector<1x128xf32>
    %1510 = vector.broadcast %1221 : f32 to vector<1x128xf32>
    %1511 = arith.mulf %1348, %1510 : vector<1x128xf32>
    %1512 = arith.addf %1509, %1511 : vector<1x128xf32>
    %1513 = vector.broadcast %1231 : f32 to vector<1x128xf32>
    %1514 = arith.mulf %1349, %1513 : vector<1x128xf32>
    %1515 = arith.addf %1512, %1514 : vector<1x128xf32>
    %1516 = vector.broadcast %1241 : f32 to vector<1x128xf32>
    %1517 = arith.mulf %1350, %1516 : vector<1x128xf32>
    %1518 = arith.addf %1515, %1517 : vector<1x128xf32>
    %1519 = vector.broadcast %1251 : f32 to vector<1x128xf32>
    %1520 = arith.mulf %1351, %1519 : vector<1x128xf32>
    %1521 = arith.addf %1518, %1520 : vector<1x128xf32>
    %1522 = vector.broadcast %1261 : f32 to vector<1x128xf32>
    %1523 = arith.mulf %1352, %1522 : vector<1x128xf32>
    %1524 = arith.addf %1521, %1523 : vector<1x128xf32>
    %1525 = vector.broadcast %1271 : f32 to vector<1x128xf32>
    %1526 = arith.mulf %1353, %1525 : vector<1x128xf32>
    %1527 = arith.addf %1524, %1526 : vector<1x128xf32>
    %1528 = vector.broadcast %1281 : f32 to vector<1x128xf32>
    %1529 = arith.mulf %1354, %1528 : vector<1x128xf32>
    %1530 = arith.addf %1527, %1529 : vector<1x128xf32>
    %1531 = vector.broadcast %1291 : f32 to vector<1x128xf32>
    %1532 = arith.mulf %1355, %1531 : vector<1x128xf32>
    %1533 = arith.addf %1530, %1532 : vector<1x128xf32>
    %1534 = vector.broadcast %1301 : f32 to vector<1x128xf32>
    %1535 = arith.mulf %1356, %1534 : vector<1x128xf32>
    %1536 = arith.addf %1533, %1535 : vector<1x128xf32>
    %1537 = vector.broadcast %1311 : f32 to vector<1x128xf32>
    %1538 = arith.mulf %1357, %1537 : vector<1x128xf32>
    %1539 = arith.addf %1536, %1538 : vector<1x128xf32>
    %1540 = vector.broadcast %1321 : f32 to vector<1x128xf32>
    %1541 = arith.mulf %1358, %1540 : vector<1x128xf32>
    %1542 = arith.addf %1539, %1541 : vector<1x128xf32>
    %1543 = vector.broadcast %1331 : f32 to vector<1x128xf32>
    %1544 = arith.mulf %1359, %1543 : vector<1x128xf32>
    %1545 = arith.addf %1542, %1544 : vector<1x128xf32>
    %1546 = vector.broadcast %1132 : f32 to vector<1x128xf32>
    %1547 = arith.mulf %1339, %1546 : vector<1x128xf32>
    %1548 = vector.broadcast %1142 : f32 to vector<1x128xf32>
    %1549 = arith.mulf %1340, %1548 : vector<1x128xf32>
    %1550 = arith.addf %1547, %1549 : vector<1x128xf32>
    %1551 = vector.broadcast %1152 : f32 to vector<1x128xf32>
    %1552 = arith.mulf %1341, %1551 : vector<1x128xf32>
    %1553 = arith.addf %1550, %1552 : vector<1x128xf32>
    %1554 = vector.broadcast %1162 : f32 to vector<1x128xf32>
    %1555 = arith.mulf %1342, %1554 : vector<1x128xf32>
    %1556 = arith.addf %1553, %1555 : vector<1x128xf32>
    %1557 = vector.broadcast %1172 : f32 to vector<1x128xf32>
    %1558 = arith.mulf %1343, %1557 : vector<1x128xf32>
    %1559 = arith.addf %1556, %1558 : vector<1x128xf32>
    %1560 = vector.broadcast %1182 : f32 to vector<1x128xf32>
    %1561 = arith.mulf %1344, %1560 : vector<1x128xf32>
    %1562 = arith.addf %1559, %1561 : vector<1x128xf32>
    %1563 = vector.broadcast %1192 : f32 to vector<1x128xf32>
    %1564 = arith.mulf %1345, %1563 : vector<1x128xf32>
    %1565 = arith.addf %1562, %1564 : vector<1x128xf32>
    %1566 = vector.broadcast %1202 : f32 to vector<1x128xf32>
    %1567 = arith.mulf %1346, %1566 : vector<1x128xf32>
    %1568 = arith.addf %1565, %1567 : vector<1x128xf32>
    %1569 = vector.broadcast %1212 : f32 to vector<1x128xf32>
    %1570 = arith.mulf %1347, %1569 : vector<1x128xf32>
    %1571 = arith.addf %1568, %1570 : vector<1x128xf32>
    %1572 = vector.broadcast %1222 : f32 to vector<1x128xf32>
    %1573 = arith.mulf %1348, %1572 : vector<1x128xf32>
    %1574 = arith.addf %1571, %1573 : vector<1x128xf32>
    %1575 = vector.broadcast %1232 : f32 to vector<1x128xf32>
    %1576 = arith.mulf %1349, %1575 : vector<1x128xf32>
    %1577 = arith.addf %1574, %1576 : vector<1x128xf32>
    %1578 = vector.broadcast %1242 : f32 to vector<1x128xf32>
    %1579 = arith.mulf %1350, %1578 : vector<1x128xf32>
    %1580 = arith.addf %1577, %1579 : vector<1x128xf32>
    %1581 = vector.broadcast %1252 : f32 to vector<1x128xf32>
    %1582 = arith.mulf %1351, %1581 : vector<1x128xf32>
    %1583 = arith.addf %1580, %1582 : vector<1x128xf32>
    %1584 = vector.broadcast %1262 : f32 to vector<1x128xf32>
    %1585 = arith.mulf %1352, %1584 : vector<1x128xf32>
    %1586 = arith.addf %1583, %1585 : vector<1x128xf32>
    %1587 = vector.broadcast %1272 : f32 to vector<1x128xf32>
    %1588 = arith.mulf %1353, %1587 : vector<1x128xf32>
    %1589 = arith.addf %1586, %1588 : vector<1x128xf32>
    %1590 = vector.broadcast %1282 : f32 to vector<1x128xf32>
    %1591 = arith.mulf %1354, %1590 : vector<1x128xf32>
    %1592 = arith.addf %1589, %1591 : vector<1x128xf32>
    %1593 = vector.broadcast %1292 : f32 to vector<1x128xf32>
    %1594 = arith.mulf %1355, %1593 : vector<1x128xf32>
    %1595 = arith.addf %1592, %1594 : vector<1x128xf32>
    %1596 = vector.broadcast %1302 : f32 to vector<1x128xf32>
    %1597 = arith.mulf %1356, %1596 : vector<1x128xf32>
    %1598 = arith.addf %1595, %1597 : vector<1x128xf32>
    %1599 = vector.broadcast %1312 : f32 to vector<1x128xf32>
    %1600 = arith.mulf %1357, %1599 : vector<1x128xf32>
    %1601 = arith.addf %1598, %1600 : vector<1x128xf32>
    %1602 = vector.broadcast %1322 : f32 to vector<1x128xf32>
    %1603 = arith.mulf %1358, %1602 : vector<1x128xf32>
    %1604 = arith.addf %1601, %1603 : vector<1x128xf32>
    %1605 = vector.broadcast %1332 : f32 to vector<1x128xf32>
    %1606 = arith.mulf %1359, %1605 : vector<1x128xf32>
    %1607 = arith.addf %1604, %1606 : vector<1x128xf32>
    %1608 = vector.broadcast %1133 : f32 to vector<1x128xf32>
    %1609 = arith.mulf %1339, %1608 : vector<1x128xf32>
    %1610 = vector.broadcast %1143 : f32 to vector<1x128xf32>
    %1611 = arith.mulf %1340, %1610 : vector<1x128xf32>
    %1612 = arith.addf %1609, %1611 : vector<1x128xf32>
    %1613 = vector.broadcast %1153 : f32 to vector<1x128xf32>
    %1614 = arith.mulf %1341, %1613 : vector<1x128xf32>
    %1615 = arith.addf %1612, %1614 : vector<1x128xf32>
    %1616 = vector.broadcast %1163 : f32 to vector<1x128xf32>
    %1617 = arith.mulf %1342, %1616 : vector<1x128xf32>
    %1618 = arith.addf %1615, %1617 : vector<1x128xf32>
    %1619 = vector.broadcast %1173 : f32 to vector<1x128xf32>
    %1620 = arith.mulf %1343, %1619 : vector<1x128xf32>
    %1621 = arith.addf %1618, %1620 : vector<1x128xf32>
    %1622 = vector.broadcast %1183 : f32 to vector<1x128xf32>
    %1623 = arith.mulf %1344, %1622 : vector<1x128xf32>
    %1624 = arith.addf %1621, %1623 : vector<1x128xf32>
    %1625 = vector.broadcast %1193 : f32 to vector<1x128xf32>
    %1626 = arith.mulf %1345, %1625 : vector<1x128xf32>
    %1627 = arith.addf %1624, %1626 : vector<1x128xf32>
    %1628 = vector.broadcast %1203 : f32 to vector<1x128xf32>
    %1629 = arith.mulf %1346, %1628 : vector<1x128xf32>
    %1630 = arith.addf %1627, %1629 : vector<1x128xf32>
    %1631 = vector.broadcast %1213 : f32 to vector<1x128xf32>
    %1632 = arith.mulf %1347, %1631 : vector<1x128xf32>
    %1633 = arith.addf %1630, %1632 : vector<1x128xf32>
    %1634 = vector.broadcast %1223 : f32 to vector<1x128xf32>
    %1635 = arith.mulf %1348, %1634 : vector<1x128xf32>
    %1636 = arith.addf %1633, %1635 : vector<1x128xf32>
    %1637 = vector.broadcast %1233 : f32 to vector<1x128xf32>
    %1638 = arith.mulf %1349, %1637 : vector<1x128xf32>
    %1639 = arith.addf %1636, %1638 : vector<1x128xf32>
    %1640 = vector.broadcast %1243 : f32 to vector<1x128xf32>
    %1641 = arith.mulf %1350, %1640 : vector<1x128xf32>
    %1642 = arith.addf %1639, %1641 : vector<1x128xf32>
    %1643 = vector.broadcast %1253 : f32 to vector<1x128xf32>
    %1644 = arith.mulf %1351, %1643 : vector<1x128xf32>
    %1645 = arith.addf %1642, %1644 : vector<1x128xf32>
    %1646 = vector.broadcast %1263 : f32 to vector<1x128xf32>
    %1647 = arith.mulf %1352, %1646 : vector<1x128xf32>
    %1648 = arith.addf %1645, %1647 : vector<1x128xf32>
    %1649 = vector.broadcast %1273 : f32 to vector<1x128xf32>
    %1650 = arith.mulf %1353, %1649 : vector<1x128xf32>
    %1651 = arith.addf %1648, %1650 : vector<1x128xf32>
    %1652 = vector.broadcast %1283 : f32 to vector<1x128xf32>
    %1653 = arith.mulf %1354, %1652 : vector<1x128xf32>
    %1654 = arith.addf %1651, %1653 : vector<1x128xf32>
    %1655 = vector.broadcast %1293 : f32 to vector<1x128xf32>
    %1656 = arith.mulf %1355, %1655 : vector<1x128xf32>
    %1657 = arith.addf %1654, %1656 : vector<1x128xf32>
    %1658 = vector.broadcast %1303 : f32 to vector<1x128xf32>
    %1659 = arith.mulf %1356, %1658 : vector<1x128xf32>
    %1660 = arith.addf %1657, %1659 : vector<1x128xf32>
    %1661 = vector.broadcast %1313 : f32 to vector<1x128xf32>
    %1662 = arith.mulf %1357, %1661 : vector<1x128xf32>
    %1663 = arith.addf %1660, %1662 : vector<1x128xf32>
    %1664 = vector.broadcast %1323 : f32 to vector<1x128xf32>
    %1665 = arith.mulf %1358, %1664 : vector<1x128xf32>
    %1666 = arith.addf %1663, %1665 : vector<1x128xf32>
    %1667 = vector.broadcast %1333 : f32 to vector<1x128xf32>
    %1668 = arith.mulf %1359, %1667 : vector<1x128xf32>
    %1669 = arith.addf %1666, %1668 : vector<1x128xf32>
    %1670 = vector.broadcast %1134 : f32 to vector<1x128xf32>
    %1671 = arith.mulf %1339, %1670 : vector<1x128xf32>
    %1672 = vector.broadcast %1144 : f32 to vector<1x128xf32>
    %1673 = arith.mulf %1340, %1672 : vector<1x128xf32>
    %1674 = arith.addf %1671, %1673 : vector<1x128xf32>
    %1675 = vector.broadcast %1154 : f32 to vector<1x128xf32>
    %1676 = arith.mulf %1341, %1675 : vector<1x128xf32>
    %1677 = arith.addf %1674, %1676 : vector<1x128xf32>
    %1678 = vector.broadcast %1164 : f32 to vector<1x128xf32>
    %1679 = arith.mulf %1342, %1678 : vector<1x128xf32>
    %1680 = arith.addf %1677, %1679 : vector<1x128xf32>
    %1681 = vector.broadcast %1174 : f32 to vector<1x128xf32>
    %1682 = arith.mulf %1343, %1681 : vector<1x128xf32>
    %1683 = arith.addf %1680, %1682 : vector<1x128xf32>
    %1684 = vector.broadcast %1184 : f32 to vector<1x128xf32>
    %1685 = arith.mulf %1344, %1684 : vector<1x128xf32>
    %1686 = arith.addf %1683, %1685 : vector<1x128xf32>
    %1687 = vector.broadcast %1194 : f32 to vector<1x128xf32>
    %1688 = arith.mulf %1345, %1687 : vector<1x128xf32>
    %1689 = arith.addf %1686, %1688 : vector<1x128xf32>
    %1690 = vector.broadcast %1204 : f32 to vector<1x128xf32>
    %1691 = arith.mulf %1346, %1690 : vector<1x128xf32>
    %1692 = arith.addf %1689, %1691 : vector<1x128xf32>
    %1693 = vector.broadcast %1214 : f32 to vector<1x128xf32>
    %1694 = arith.mulf %1347, %1693 : vector<1x128xf32>
    %1695 = arith.addf %1692, %1694 : vector<1x128xf32>
    %1696 = vector.broadcast %1224 : f32 to vector<1x128xf32>
    %1697 = arith.mulf %1348, %1696 : vector<1x128xf32>
    %1698 = arith.addf %1695, %1697 : vector<1x128xf32>
    %1699 = vector.broadcast %1234 : f32 to vector<1x128xf32>
    %1700 = arith.mulf %1349, %1699 : vector<1x128xf32>
    %1701 = arith.addf %1698, %1700 : vector<1x128xf32>
    %1702 = vector.broadcast %1244 : f32 to vector<1x128xf32>
    %1703 = arith.mulf %1350, %1702 : vector<1x128xf32>
    %1704 = arith.addf %1701, %1703 : vector<1x128xf32>
    %1705 = vector.broadcast %1254 : f32 to vector<1x128xf32>
    %1706 = arith.mulf %1351, %1705 : vector<1x128xf32>
    %1707 = arith.addf %1704, %1706 : vector<1x128xf32>
    %1708 = vector.broadcast %1264 : f32 to vector<1x128xf32>
    %1709 = arith.mulf %1352, %1708 : vector<1x128xf32>
    %1710 = arith.addf %1707, %1709 : vector<1x128xf32>
    %1711 = vector.broadcast %1274 : f32 to vector<1x128xf32>
    %1712 = arith.mulf %1353, %1711 : vector<1x128xf32>
    %1713 = arith.addf %1710, %1712 : vector<1x128xf32>
    %1714 = vector.broadcast %1284 : f32 to vector<1x128xf32>
    %1715 = arith.mulf %1354, %1714 : vector<1x128xf32>
    %1716 = arith.addf %1713, %1715 : vector<1x128xf32>
    %1717 = vector.broadcast %1294 : f32 to vector<1x128xf32>
    %1718 = arith.mulf %1355, %1717 : vector<1x128xf32>
    %1719 = arith.addf %1716, %1718 : vector<1x128xf32>
    %1720 = vector.broadcast %1304 : f32 to vector<1x128xf32>
    %1721 = arith.mulf %1356, %1720 : vector<1x128xf32>
    %1722 = arith.addf %1719, %1721 : vector<1x128xf32>
    %1723 = vector.broadcast %1314 : f32 to vector<1x128xf32>
    %1724 = arith.mulf %1357, %1723 : vector<1x128xf32>
    %1725 = arith.addf %1722, %1724 : vector<1x128xf32>
    %1726 = vector.broadcast %1324 : f32 to vector<1x128xf32>
    %1727 = arith.mulf %1358, %1726 : vector<1x128xf32>
    %1728 = arith.addf %1725, %1727 : vector<1x128xf32>
    %1729 = vector.broadcast %1334 : f32 to vector<1x128xf32>
    %1730 = arith.mulf %1359, %1729 : vector<1x128xf32>
    %1731 = arith.addf %1728, %1730 : vector<1x128xf32>
    %1732 = vector.broadcast %1135 : f32 to vector<1x128xf32>
    %1733 = arith.mulf %1339, %1732 : vector<1x128xf32>
    %1734 = vector.broadcast %1145 : f32 to vector<1x128xf32>
    %1735 = arith.mulf %1340, %1734 : vector<1x128xf32>
    %1736 = arith.addf %1733, %1735 : vector<1x128xf32>
    %1737 = vector.broadcast %1155 : f32 to vector<1x128xf32>
    %1738 = arith.mulf %1341, %1737 : vector<1x128xf32>
    %1739 = arith.addf %1736, %1738 : vector<1x128xf32>
    %1740 = vector.broadcast %1165 : f32 to vector<1x128xf32>
    %1741 = arith.mulf %1342, %1740 : vector<1x128xf32>
    %1742 = arith.addf %1739, %1741 : vector<1x128xf32>
    %1743 = vector.broadcast %1175 : f32 to vector<1x128xf32>
    %1744 = arith.mulf %1343, %1743 : vector<1x128xf32>
    %1745 = arith.addf %1742, %1744 : vector<1x128xf32>
    %1746 = vector.broadcast %1185 : f32 to vector<1x128xf32>
    %1747 = arith.mulf %1344, %1746 : vector<1x128xf32>
    %1748 = arith.addf %1745, %1747 : vector<1x128xf32>
    %1749 = vector.broadcast %1195 : f32 to vector<1x128xf32>
    %1750 = arith.mulf %1345, %1749 : vector<1x128xf32>
    %1751 = arith.addf %1748, %1750 : vector<1x128xf32>
    %1752 = vector.broadcast %1205 : f32 to vector<1x128xf32>
    %1753 = arith.mulf %1346, %1752 : vector<1x128xf32>
    %1754 = arith.addf %1751, %1753 : vector<1x128xf32>
    %1755 = vector.broadcast %1215 : f32 to vector<1x128xf32>
    %1756 = arith.mulf %1347, %1755 : vector<1x128xf32>
    %1757 = arith.addf %1754, %1756 : vector<1x128xf32>
    %1758 = vector.broadcast %1225 : f32 to vector<1x128xf32>
    %1759 = arith.mulf %1348, %1758 : vector<1x128xf32>
    %1760 = arith.addf %1757, %1759 : vector<1x128xf32>
    %1761 = vector.broadcast %1235 : f32 to vector<1x128xf32>
    %1762 = arith.mulf %1349, %1761 : vector<1x128xf32>
    %1763 = arith.addf %1760, %1762 : vector<1x128xf32>
    %1764 = vector.broadcast %1245 : f32 to vector<1x128xf32>
    %1765 = arith.mulf %1350, %1764 : vector<1x128xf32>
    %1766 = arith.addf %1763, %1765 : vector<1x128xf32>
    %1767 = vector.broadcast %1255 : f32 to vector<1x128xf32>
    %1768 = arith.mulf %1351, %1767 : vector<1x128xf32>
    %1769 = arith.addf %1766, %1768 : vector<1x128xf32>
    %1770 = vector.broadcast %1265 : f32 to vector<1x128xf32>
    %1771 = arith.mulf %1352, %1770 : vector<1x128xf32>
    %1772 = arith.addf %1769, %1771 : vector<1x128xf32>
    %1773 = vector.broadcast %1275 : f32 to vector<1x128xf32>
    %1774 = arith.mulf %1353, %1773 : vector<1x128xf32>
    %1775 = arith.addf %1772, %1774 : vector<1x128xf32>
    %1776 = vector.broadcast %1285 : f32 to vector<1x128xf32>
    %1777 = arith.mulf %1354, %1776 : vector<1x128xf32>
    %1778 = arith.addf %1775, %1777 : vector<1x128xf32>
    %1779 = vector.broadcast %1295 : f32 to vector<1x128xf32>
    %1780 = arith.mulf %1355, %1779 : vector<1x128xf32>
    %1781 = arith.addf %1778, %1780 : vector<1x128xf32>
    %1782 = vector.broadcast %1305 : f32 to vector<1x128xf32>
    %1783 = arith.mulf %1356, %1782 : vector<1x128xf32>
    %1784 = arith.addf %1781, %1783 : vector<1x128xf32>
    %1785 = vector.broadcast %1315 : f32 to vector<1x128xf32>
    %1786 = arith.mulf %1357, %1785 : vector<1x128xf32>
    %1787 = arith.addf %1784, %1786 : vector<1x128xf32>
    %1788 = vector.broadcast %1325 : f32 to vector<1x128xf32>
    %1789 = arith.mulf %1358, %1788 : vector<1x128xf32>
    %1790 = arith.addf %1787, %1789 : vector<1x128xf32>
    %1791 = vector.broadcast %1335 : f32 to vector<1x128xf32>
    %1792 = arith.mulf %1359, %1791 : vector<1x128xf32>
    %1793 = arith.addf %1790, %1792 : vector<1x128xf32>
    %1794 = vector.broadcast %1136 : f32 to vector<1x128xf32>
    %1795 = arith.mulf %1339, %1794 : vector<1x128xf32>
    %1796 = vector.broadcast %1146 : f32 to vector<1x128xf32>
    %1797 = arith.mulf %1340, %1796 : vector<1x128xf32>
    %1798 = arith.addf %1795, %1797 : vector<1x128xf32>
    %1799 = vector.broadcast %1156 : f32 to vector<1x128xf32>
    %1800 = arith.mulf %1341, %1799 : vector<1x128xf32>
    %1801 = arith.addf %1798, %1800 : vector<1x128xf32>
    %1802 = vector.broadcast %1166 : f32 to vector<1x128xf32>
    %1803 = arith.mulf %1342, %1802 : vector<1x128xf32>
    %1804 = arith.addf %1801, %1803 : vector<1x128xf32>
    %1805 = vector.broadcast %1176 : f32 to vector<1x128xf32>
    %1806 = arith.mulf %1343, %1805 : vector<1x128xf32>
    %1807 = arith.addf %1804, %1806 : vector<1x128xf32>
    %1808 = vector.broadcast %1186 : f32 to vector<1x128xf32>
    %1809 = arith.mulf %1344, %1808 : vector<1x128xf32>
    %1810 = arith.addf %1807, %1809 : vector<1x128xf32>
    %1811 = vector.broadcast %1196 : f32 to vector<1x128xf32>
    %1812 = arith.mulf %1345, %1811 : vector<1x128xf32>
    %1813 = arith.addf %1810, %1812 : vector<1x128xf32>
    %1814 = vector.broadcast %1206 : f32 to vector<1x128xf32>
    %1815 = arith.mulf %1346, %1814 : vector<1x128xf32>
    %1816 = arith.addf %1813, %1815 : vector<1x128xf32>
    %1817 = vector.broadcast %1216 : f32 to vector<1x128xf32>
    %1818 = arith.mulf %1347, %1817 : vector<1x128xf32>
    %1819 = arith.addf %1816, %1818 : vector<1x128xf32>
    %1820 = vector.broadcast %1226 : f32 to vector<1x128xf32>
    %1821 = arith.mulf %1348, %1820 : vector<1x128xf32>
    %1822 = arith.addf %1819, %1821 : vector<1x128xf32>
    %1823 = vector.broadcast %1236 : f32 to vector<1x128xf32>
    %1824 = arith.mulf %1349, %1823 : vector<1x128xf32>
    %1825 = arith.addf %1822, %1824 : vector<1x128xf32>
    %1826 = vector.broadcast %1246 : f32 to vector<1x128xf32>
    %1827 = arith.mulf %1350, %1826 : vector<1x128xf32>
    %1828 = arith.addf %1825, %1827 : vector<1x128xf32>
    %1829 = vector.broadcast %1256 : f32 to vector<1x128xf32>
    %1830 = arith.mulf %1351, %1829 : vector<1x128xf32>
    %1831 = arith.addf %1828, %1830 : vector<1x128xf32>
    %1832 = vector.broadcast %1266 : f32 to vector<1x128xf32>
    %1833 = arith.mulf %1352, %1832 : vector<1x128xf32>
    %1834 = arith.addf %1831, %1833 : vector<1x128xf32>
    %1835 = vector.broadcast %1276 : f32 to vector<1x128xf32>
    %1836 = arith.mulf %1353, %1835 : vector<1x128xf32>
    %1837 = arith.addf %1834, %1836 : vector<1x128xf32>
    %1838 = vector.broadcast %1286 : f32 to vector<1x128xf32>
    %1839 = arith.mulf %1354, %1838 : vector<1x128xf32>
    %1840 = arith.addf %1837, %1839 : vector<1x128xf32>
    %1841 = vector.broadcast %1296 : f32 to vector<1x128xf32>
    %1842 = arith.mulf %1355, %1841 : vector<1x128xf32>
    %1843 = arith.addf %1840, %1842 : vector<1x128xf32>
    %1844 = vector.broadcast %1306 : f32 to vector<1x128xf32>
    %1845 = arith.mulf %1356, %1844 : vector<1x128xf32>
    %1846 = arith.addf %1843, %1845 : vector<1x128xf32>
    %1847 = vector.broadcast %1316 : f32 to vector<1x128xf32>
    %1848 = arith.mulf %1357, %1847 : vector<1x128xf32>
    %1849 = arith.addf %1846, %1848 : vector<1x128xf32>
    %1850 = vector.broadcast %1326 : f32 to vector<1x128xf32>
    %1851 = arith.mulf %1358, %1850 : vector<1x128xf32>
    %1852 = arith.addf %1849, %1851 : vector<1x128xf32>
    %1853 = vector.broadcast %1336 : f32 to vector<1x128xf32>
    %1854 = arith.mulf %1359, %1853 : vector<1x128xf32>
    %1855 = arith.addf %1852, %1854 : vector<1x128xf32>
    %1856 = vector.broadcast %1137 : f32 to vector<1x128xf32>
    %1857 = arith.mulf %1339, %1856 : vector<1x128xf32>
    %1858 = vector.broadcast %1147 : f32 to vector<1x128xf32>
    %1859 = arith.mulf %1340, %1858 : vector<1x128xf32>
    %1860 = arith.addf %1857, %1859 : vector<1x128xf32>
    %1861 = vector.broadcast %1157 : f32 to vector<1x128xf32>
    %1862 = arith.mulf %1341, %1861 : vector<1x128xf32>
    %1863 = arith.addf %1860, %1862 : vector<1x128xf32>
    %1864 = vector.broadcast %1167 : f32 to vector<1x128xf32>
    %1865 = arith.mulf %1342, %1864 : vector<1x128xf32>
    %1866 = arith.addf %1863, %1865 : vector<1x128xf32>
    %1867 = vector.broadcast %1177 : f32 to vector<1x128xf32>
    %1868 = arith.mulf %1343, %1867 : vector<1x128xf32>
    %1869 = arith.addf %1866, %1868 : vector<1x128xf32>
    %1870 = vector.broadcast %1187 : f32 to vector<1x128xf32>
    %1871 = arith.mulf %1344, %1870 : vector<1x128xf32>
    %1872 = arith.addf %1869, %1871 : vector<1x128xf32>
    %1873 = vector.broadcast %1197 : f32 to vector<1x128xf32>
    %1874 = arith.mulf %1345, %1873 : vector<1x128xf32>
    %1875 = arith.addf %1872, %1874 : vector<1x128xf32>
    %1876 = vector.broadcast %1207 : f32 to vector<1x128xf32>
    %1877 = arith.mulf %1346, %1876 : vector<1x128xf32>
    %1878 = arith.addf %1875, %1877 : vector<1x128xf32>
    %1879 = vector.broadcast %1217 : f32 to vector<1x128xf32>
    %1880 = arith.mulf %1347, %1879 : vector<1x128xf32>
    %1881 = arith.addf %1878, %1880 : vector<1x128xf32>
    %1882 = vector.broadcast %1227 : f32 to vector<1x128xf32>
    %1883 = arith.mulf %1348, %1882 : vector<1x128xf32>
    %1884 = arith.addf %1881, %1883 : vector<1x128xf32>
    %1885 = vector.broadcast %1237 : f32 to vector<1x128xf32>
    %1886 = arith.mulf %1349, %1885 : vector<1x128xf32>
    %1887 = arith.addf %1884, %1886 : vector<1x128xf32>
    %1888 = vector.broadcast %1247 : f32 to vector<1x128xf32>
    %1889 = arith.mulf %1350, %1888 : vector<1x128xf32>
    %1890 = arith.addf %1887, %1889 : vector<1x128xf32>
    %1891 = vector.broadcast %1257 : f32 to vector<1x128xf32>
    %1892 = arith.mulf %1351, %1891 : vector<1x128xf32>
    %1893 = arith.addf %1890, %1892 : vector<1x128xf32>
    %1894 = vector.broadcast %1267 : f32 to vector<1x128xf32>
    %1895 = arith.mulf %1352, %1894 : vector<1x128xf32>
    %1896 = arith.addf %1893, %1895 : vector<1x128xf32>
    %1897 = vector.broadcast %1277 : f32 to vector<1x128xf32>
    %1898 = arith.mulf %1353, %1897 : vector<1x128xf32>
    %1899 = arith.addf %1896, %1898 : vector<1x128xf32>
    %1900 = vector.broadcast %1287 : f32 to vector<1x128xf32>
    %1901 = arith.mulf %1354, %1900 : vector<1x128xf32>
    %1902 = arith.addf %1899, %1901 : vector<1x128xf32>
    %1903 = vector.broadcast %1297 : f32 to vector<1x128xf32>
    %1904 = arith.mulf %1355, %1903 : vector<1x128xf32>
    %1905 = arith.addf %1902, %1904 : vector<1x128xf32>
    %1906 = vector.broadcast %1307 : f32 to vector<1x128xf32>
    %1907 = arith.mulf %1356, %1906 : vector<1x128xf32>
    %1908 = arith.addf %1905, %1907 : vector<1x128xf32>
    %1909 = vector.broadcast %1317 : f32 to vector<1x128xf32>
    %1910 = arith.mulf %1357, %1909 : vector<1x128xf32>
    %1911 = arith.addf %1908, %1910 : vector<1x128xf32>
    %1912 = vector.broadcast %1327 : f32 to vector<1x128xf32>
    %1913 = arith.mulf %1358, %1912 : vector<1x128xf32>
    %1914 = arith.addf %1911, %1913 : vector<1x128xf32>
    %1915 = vector.broadcast %1337 : f32 to vector<1x128xf32>
    %1916 = arith.mulf %1359, %1915 : vector<1x128xf32>
    %1917 = arith.addf %1914, %1916 : vector<1x128xf32>
    %1918 = vector.broadcast %1138 : f32 to vector<1x128xf32>
    %1919 = arith.mulf %1339, %1918 : vector<1x128xf32>
    %1920 = vector.broadcast %1148 : f32 to vector<1x128xf32>
    %1921 = arith.mulf %1340, %1920 : vector<1x128xf32>
    %1922 = arith.addf %1919, %1921 : vector<1x128xf32>
    %1923 = vector.broadcast %1158 : f32 to vector<1x128xf32>
    %1924 = arith.mulf %1341, %1923 : vector<1x128xf32>
    %1925 = arith.addf %1922, %1924 : vector<1x128xf32>
    %1926 = vector.broadcast %1168 : f32 to vector<1x128xf32>
    %1927 = arith.mulf %1342, %1926 : vector<1x128xf32>
    %1928 = arith.addf %1925, %1927 : vector<1x128xf32>
    %1929 = vector.broadcast %1178 : f32 to vector<1x128xf32>
    %1930 = arith.mulf %1343, %1929 : vector<1x128xf32>
    %1931 = arith.addf %1928, %1930 : vector<1x128xf32>
    %1932 = vector.broadcast %1188 : f32 to vector<1x128xf32>
    %1933 = arith.mulf %1344, %1932 : vector<1x128xf32>
    %1934 = arith.addf %1931, %1933 : vector<1x128xf32>
    %1935 = vector.broadcast %1198 : f32 to vector<1x128xf32>
    %1936 = arith.mulf %1345, %1935 : vector<1x128xf32>
    %1937 = arith.addf %1934, %1936 : vector<1x128xf32>
    %1938 = vector.broadcast %1208 : f32 to vector<1x128xf32>
    %1939 = arith.mulf %1346, %1938 : vector<1x128xf32>
    %1940 = arith.addf %1937, %1939 : vector<1x128xf32>
    %1941 = vector.broadcast %1218 : f32 to vector<1x128xf32>
    %1942 = arith.mulf %1347, %1941 : vector<1x128xf32>
    %1943 = arith.addf %1940, %1942 : vector<1x128xf32>
    %1944 = vector.broadcast %1228 : f32 to vector<1x128xf32>
    %1945 = arith.mulf %1348, %1944 : vector<1x128xf32>
    %1946 = arith.addf %1943, %1945 : vector<1x128xf32>
    %1947 = vector.broadcast %1238 : f32 to vector<1x128xf32>
    %1948 = arith.mulf %1349, %1947 : vector<1x128xf32>
    %1949 = arith.addf %1946, %1948 : vector<1x128xf32>
    %1950 = vector.broadcast %1248 : f32 to vector<1x128xf32>
    %1951 = arith.mulf %1350, %1950 : vector<1x128xf32>
    %1952 = arith.addf %1949, %1951 : vector<1x128xf32>
    %1953 = vector.broadcast %1258 : f32 to vector<1x128xf32>
    %1954 = arith.mulf %1351, %1953 : vector<1x128xf32>
    %1955 = arith.addf %1952, %1954 : vector<1x128xf32>
    %1956 = vector.broadcast %1268 : f32 to vector<1x128xf32>
    %1957 = arith.mulf %1352, %1956 : vector<1x128xf32>
    %1958 = arith.addf %1955, %1957 : vector<1x128xf32>
    %1959 = vector.broadcast %1278 : f32 to vector<1x128xf32>
    %1960 = arith.mulf %1353, %1959 : vector<1x128xf32>
    %1961 = arith.addf %1958, %1960 : vector<1x128xf32>
    %1962 = vector.broadcast %1288 : f32 to vector<1x128xf32>
    %1963 = arith.mulf %1354, %1962 : vector<1x128xf32>
    %1964 = arith.addf %1961, %1963 : vector<1x128xf32>
    %1965 = vector.broadcast %1298 : f32 to vector<1x128xf32>
    %1966 = arith.mulf %1355, %1965 : vector<1x128xf32>
    %1967 = arith.addf %1964, %1966 : vector<1x128xf32>
    %1968 = vector.broadcast %1308 : f32 to vector<1x128xf32>
    %1969 = arith.mulf %1356, %1968 : vector<1x128xf32>
    %1970 = arith.addf %1967, %1969 : vector<1x128xf32>
    %1971 = vector.broadcast %1318 : f32 to vector<1x128xf32>
    %1972 = arith.mulf %1357, %1971 : vector<1x128xf32>
    %1973 = arith.addf %1970, %1972 : vector<1x128xf32>
    %1974 = vector.broadcast %1328 : f32 to vector<1x128xf32>
    %1975 = arith.mulf %1358, %1974 : vector<1x128xf32>
    %1976 = arith.addf %1973, %1975 : vector<1x128xf32>
    %1977 = vector.broadcast %1338 : f32 to vector<1x128xf32>
    %1978 = arith.mulf %1359, %1977 : vector<1x128xf32>
    %1979 = arith.addf %1976, %1978 : vector<1x128xf32>
    %1980 = vector.extract_strided_slice %0 {offsets = [0, 0, 0, 0], sizes = [1, 1, 10, 128], strides = [1, 1, 1, 1]} : vector<2x3x10x128xf32> to vector<1x1x10x128xf32>
    %1981 = vector.shape_cast %1980 : vector<1x1x10x128xf32> to vector<10x128xf32>
    %1982 = tpu.concatenate %1421, %1483, %1545, %1607, %1669, %1731, %1793, %1855, %1917, %1979 in 0 : vector<1x128xf32>, vector<1x128xf32>, vector<1x128xf32>, vector<1x128xf32>, vector<1x128xf32>, vector<1x128xf32>, vector<1x128xf32>, vector<1x128xf32>, vector<1x128xf32>, vector<1x128xf32> -> vector<10x128xf32>
    %1983 = arith.addf %1981, %1982 : vector<10x128xf32>
    %c0_67 = arith.constant 0 : index
    %c0_68 = arith.constant 0 : index
    %c0_69 = arith.constant 0 : index
    %1984 = vector.load %arg3[%c0_67, %c0_68, %c0_69] : memref<2x10x128xf32, #tpu.memory_space<vmem>>, vector<1x10x128xf32>
    %1985 = vector.shape_cast %1984 : vector<1x10x128xf32> to vector<10x128xf32>
    %1986 = vector.shape_cast %1983 : vector<10x128xf32> to vector<1x10x128xf32>
    tpu.vector_store %arg3[%c0_67, %c0_68, %c0_69], %1986 {strides = array<i32>} : memref<2x10x128xf32, #tpu.memory_space<vmem>>, vector<1x10x128xf32>,
    %1987 = vector.extract_strided_slice %452 {offsets = [0, 0], sizes = [1, 128], strides = [1, 1]} : vector<7x128xf32> to vector<1x128xf32>
    %1988 = vector.extract_strided_slice %452 {offsets = [1, 0], sizes = [1, 128], strides = [1, 1]} : vector<7x128xf32> to vector<1x128xf32>
    %1989 = vector.extract_strided_slice %452 {offsets = [2, 0], sizes = [1, 128], strides = [1, 1]} : vector<7x128xf32> to vector<1x128xf32>
    %1990 = vector.extract_strided_slice %452 {offsets = [3, 0], sizes = [1, 128], strides = [1, 1]} : vector<7x128xf32> to vector<1x128xf32>
    %1991 = vector.extract_strided_slice %452 {offsets = [4, 0], sizes = [1, 128], strides = [1, 1]} : vector<7x128xf32> to vector<1x128xf32>
    %1992 = vector.extract_strided_slice %452 {offsets = [5, 0], sizes = [1, 128], strides = [1, 1]} : vector<7x128xf32> to vector<1x128xf32>
    %1993 = vector.extract_strided_slice %452 {offsets = [6, 0], sizes = [1, 128], strides = [1, 1]} : vector<7x128xf32> to vector<1x128xf32>
    %1994 = vector.extract_strided_slice %820 {offsets = [0, 0], sizes = [1, 128], strides = [1, 1]} : vector<7x128xf32> to vector<1x128xf32>
    %1995 = vector.extract_strided_slice %820 {offsets = [1, 0], sizes = [1, 128], strides = [1, 1]} : vector<7x128xf32> to vector<1x128xf32>
    %1996 = vector.extract_strided_slice %820 {offsets = [2, 0], sizes = [1, 128], strides = [1, 1]} : vector<7x128xf32> to vector<1x128xf32>
    %1997 = vector.extract_strided_slice %820 {offsets = [3, 0], sizes = [1, 128], strides = [1, 1]} : vector<7x128xf32> to vector<1x128xf32>
    %1998 = vector.extract_strided_slice %820 {offsets = [4, 0], sizes = [1, 128], strides = [1, 1]} : vector<7x128xf32> to vector<1x128xf32>
    %1999 = vector.extract_strided_slice %820 {offsets = [5, 0], sizes = [1, 128], strides = [1, 1]} : vector<7x128xf32> to vector<1x128xf32>
    %2000 = vector.extract_strided_slice %820 {offsets = [6, 0], sizes = [1, 128], strides = [1, 1]} : vector<7x128xf32> to vector<1x128xf32>
    %2001 = vector.extract_strided_slice %1128 {offsets = [0, 0], sizes = [1, 128], strides = [1, 1]} : vector<7x128xf32> to vector<1x128xf32>
    %2002 = vector.extract_strided_slice %1128 {offsets = [1, 0], sizes = [1, 128], strides = [1, 1]} : vector<7x128xf32> to vector<1x128xf32>
    %2003 = vector.extract_strided_slice %1128 {offsets = [2, 0], sizes = [1, 128], strides = [1, 1]} : vector<7x128xf32> to vector<1x128xf32>
    %2004 = vector.extract_strided_slice %1128 {offsets = [3, 0], sizes = [1, 128], strides = [1, 1]} : vector<7x128xf32> to vector<1x128xf32>
    %2005 = vector.extract_strided_slice %1128 {offsets = [4, 0], sizes = [1, 128], strides = [1, 1]} : vector<7x128xf32> to vector<1x128xf32>
    %2006 = vector.extract_strided_slice %1128 {offsets = [5, 0], sizes = [1, 128], strides = [1, 1]} : vector<7x128xf32> to vector<1x128xf32>
    %2007 = vector.extract_strided_slice %1128 {offsets = [6, 0], sizes = [1, 128], strides = [1, 1]} : vector<7x128xf32> to vector<1x128xf32>
    %2008 = vector.broadcast %1129 : f32 to vector<1x128xf32>
    %2009 = arith.mulf %1987, %2008 : vector<1x128xf32>
    %2010 = vector.broadcast %1139 : f32 to vector<1x128xf32>
    %2011 = arith.mulf %1988, %2010 : vector<1x128xf32>
    %2012 = arith.addf %2009, %2011 : vector<1x128xf32>
    %2013 = vector.broadcast %1149 : f32 to vector<1x128xf32>
    %2014 = arith.mulf %1989, %2013 : vector<1x128xf32>
    %2015 = arith.addf %2012, %2014 : vector<1x128xf32>
    %2016 = vector.broadcast %1159 : f32 to vector<1x128xf32>
    %2017 = arith.mulf %1990, %2016 : vector<1x128xf32>
    %2018 = arith.addf %2015, %2017 : vector<1x128xf32>
    %2019 = vector.broadcast %1169 : f32 to vector<1x128xf32>
    %2020 = arith.mulf %1991, %2019 : vector<1x128xf32>
    %2021 = arith.addf %2018, %2020 : vector<1x128xf32>
    %2022 = vector.broadcast %1179 : f32 to vector<1x128xf32>
    %2023 = arith.mulf %1992, %2022 : vector<1x128xf32>
    %2024 = arith.addf %2021, %2023 : vector<1x128xf32>
    %2025 = vector.broadcast %1189 : f32 to vector<1x128xf32>
    %2026 = arith.mulf %1993, %2025 : vector<1x128xf32>
    %2027 = arith.addf %2024, %2026 : vector<1x128xf32>
    %2028 = vector.broadcast %1199 : f32 to vector<1x128xf32>
    %2029 = arith.mulf %1994, %2028 : vector<1x128xf32>
    %2030 = arith.addf %2027, %2029 : vector<1x128xf32>
    %2031 = vector.broadcast %1209 : f32 to vector<1x128xf32>
    %2032 = arith.mulf %1995, %2031 : vector<1x128xf32>
    %2033 = arith.addf %2030, %2032 : vector<1x128xf32>
    %2034 = vector.broadcast %1219 : f32 to vector<1x128xf32>
    %2035 = arith.mulf %1996, %2034 : vector<1x128xf32>
    %2036 = arith.addf %2033, %2035 : vector<1x128xf32>
    %2037 = vector.broadcast %1229 : f32 to vector<1x128xf32>
    %2038 = arith.mulf %1997, %2037 : vector<1x128xf32>
    %2039 = arith.addf %2036, %2038 : vector<1x128xf32>
    %2040 = vector.broadcast %1239 : f32 to vector<1x128xf32>
    %2041 = arith.mulf %1998, %2040 : vector<1x128xf32>
    %2042 = arith.addf %2039, %2041 : vector<1x128xf32>
    %2043 = vector.broadcast %1249 : f32 to vector<1x128xf32>
    %2044 = arith.mulf %1999, %2043 : vector<1x128xf32>
    %2045 = arith.addf %2042, %2044 : vector<1x128xf32>
    %2046 = vector.broadcast %1259 : f32 to vector<1x128xf32>
    %2047 = arith.mulf %2000, %2046 : vector<1x128xf32>
    %2048 = arith.addf %2045, %2047 : vector<1x128xf32>
    %2049 = vector.broadcast %1269 : f32 to vector<1x128xf32>
    %2050 = arith.mulf %2001, %2049 : vector<1x128xf32>
    %2051 = arith.addf %2048, %2050 : vector<1x128xf32>
    %2052 = vector.broadcast %1279 : f32 to vector<1x128xf32>
    %2053 = arith.mulf %2002, %2052 : vector<1x128xf32>
    %2054 = arith.addf %2051, %2053 : vector<1x128xf32>
    %2055 = vector.broadcast %1289 : f32 to vector<1x128xf32>
    %2056 = arith.mulf %2003, %2055 : vector<1x128xf32>
    %2057 = arith.addf %2054, %2056 : vector<1x128xf32>
    %2058 = vector.broadcast %1299 : f32 to vector<1x128xf32>
    %2059 = arith.mulf %2004, %2058 : vector<1x128xf32>
    %2060 = arith.addf %2057, %2059 : vector<1x128xf32>
    %2061 = vector.broadcast %1309 : f32 to vector<1x128xf32>
    %2062 = arith.mulf %2005, %2061 : vector<1x128xf32>
    %2063 = arith.addf %2060, %2062 : vector<1x128xf32>
    %2064 = vector.broadcast %1319 : f32 to vector<1x128xf32>
    %2065 = arith.mulf %2006, %2064 : vector<1x128xf32>
    %2066 = arith.addf %2063, %2065 : vector<1x128xf32>
    %2067 = vector.broadcast %1329 : f32 to vector<1x128xf32>
    %2068 = arith.mulf %2007, %2067 : vector<1x128xf32>
    %2069 = arith.addf %2066, %2068 : vector<1x128xf32>
    %2070 = vector.broadcast %1130 : f32 to vector<1x128xf32>
    %2071 = arith.mulf %1987, %2070 : vector<1x128xf32>
    %2072 = vector.broadcast %1140 : f32 to vector<1x128xf32>
    %2073 = arith.mulf %1988, %2072 : vector<1x128xf32>
    %2074 = arith.addf %2071, %2073 : vector<1x128xf32>
    %2075 = vector.broadcast %1150 : f32 to vector<1x128xf32>
    %2076 = arith.mulf %1989, %2075 : vector<1x128xf32>
    %2077 = arith.addf %2074, %2076 : vector<1x128xf32>
    %2078 = vector.broadcast %1160 : f32 to vector<1x128xf32>
    %2079 = arith.mulf %1990, %2078 : vector<1x128xf32>
    %2080 = arith.addf %2077, %2079 : vector<1x128xf32>
    %2081 = vector.broadcast %1170 : f32 to vector<1x128xf32>
    %2082 = arith.mulf %1991, %2081 : vector<1x128xf32>
    %2083 = arith.addf %2080, %2082 : vector<1x128xf32>
    %2084 = vector.broadcast %1180 : f32 to vector<1x128xf32>
    %2085 = arith.mulf %1992, %2084 : vector<1x128xf32>
    %2086 = arith.addf %2083, %2085 : vector<1x128xf32>
    %2087 = vector.broadcast %1190 : f32 to vector<1x128xf32>
    %2088 = arith.mulf %1993, %2087 : vector<1x128xf32>
    %2089 = arith.addf %2086, %2088 : vector<1x128xf32>
    %2090 = vector.broadcast %1200 : f32 to vector<1x128xf32>
    %2091 = arith.mulf %1994, %2090 : vector<1x128xf32>
    %2092 = arith.addf %2089, %2091 : vector<1x128xf32>
    %2093 = vector.broadcast %1210 : f32 to vector<1x128xf32>
    %2094 = arith.mulf %1995, %2093 : vector<1x128xf32>
    %2095 = arith.addf %2092, %2094 : vector<1x128xf32>
    %2096 = vector.broadcast %1220 : f32 to vector<1x128xf32>
    %2097 = arith.mulf %1996, %2096 : vector<1x128xf32>
    %2098 = arith.addf %2095, %2097 : vector<1x128xf32>
    %2099 = vector.broadcast %1230 : f32 to vector<1x128xf32>
    %2100 = arith.mulf %1997, %2099 : vector<1x128xf32>
    %2101 = arith.addf %2098, %2100 : vector<1x128xf32>
    %2102 = vector.broadcast %1240 : f32 to vector<1x128xf32>
    %2103 = arith.mulf %1998, %2102 : vector<1x128xf32>
    %2104 = arith.addf %2101, %2103 : vector<1x128xf32>
    %2105 = vector.broadcast %1250 : f32 to vector<1x128xf32>
    %2106 = arith.mulf %1999, %2105 : vector<1x128xf32>
    %2107 = arith.addf %2104, %2106 : vector<1x128xf32>
    %2108 = vector.broadcast %1260 : f32 to vector<1x128xf32>
    %2109 = arith.mulf %2000, %2108 : vector<1x128xf32>
    %2110 = arith.addf %2107, %2109 : vector<1x128xf32>
    %2111 = vector.broadcast %1270 : f32 to vector<1x128xf32>
    %2112 = arith.mulf %2001, %2111 : vector<1x128xf32>
    %2113 = arith.addf %2110, %2112 : vector<1x128xf32>
    %2114 = vector.broadcast %1280 : f32 to vector<1x128xf32>
    %2115 = arith.mulf %2002, %2114 : vector<1x128xf32>
    %2116 = arith.addf %2113, %2115 : vector<1x128xf32>
    %2117 = vector.broadcast %1290 : f32 to vector<1x128xf32>
    %2118 = arith.mulf %2003, %2117 : vector<1x128xf32>
    %2119 = arith.addf %2116, %2118 : vector<1x128xf32>
    %2120 = vector.broadcast %1300 : f32 to vector<1x128xf32>
    %2121 = arith.mulf %2004, %2120 : vector<1x128xf32>
    %2122 = arith.addf %2119, %2121 : vector<1x128xf32>
    %2123 = vector.broadcast %1310 : f32 to vector<1x128xf32>
    %2124 = arith.mulf %2005, %2123 : vector<1x128xf32>
    %2125 = arith.addf %2122, %2124 : vector<1x128xf32>
    %2126 = vector.broadcast %1320 : f32 to vector<1x128xf32>
    %2127 = arith.mulf %2006, %2126 : vector<1x128xf32>
    %2128 = arith.addf %2125, %2127 : vector<1x128xf32>
    %2129 = vector.broadcast %1330 : f32 to vector<1x128xf32>
    %2130 = arith.mulf %2007, %2129 : vector<1x128xf32>
    %2131 = arith.addf %2128, %2130 : vector<1x128xf32>
    %2132 = vector.broadcast %1131 : f32 to vector<1x128xf32>
    %2133 = arith.mulf %1987, %2132 : vector<1x128xf32>
    %2134 = vector.broadcast %1141 : f32 to vector<1x128xf32>
    %2135 = arith.mulf %1988, %2134 : vector<1x128xf32>
    %2136 = arith.addf %2133, %2135 : vector<1x128xf32>
    %2137 = vector.broadcast %1151 : f32 to vector<1x128xf32>
    %2138 = arith.mulf %1989, %2137 : vector<1x128xf32>
    %2139 = arith.addf %2136, %2138 : vector<1x128xf32>
    %2140 = vector.broadcast %1161 : f32 to vector<1x128xf32>
    %2141 = arith.mulf %1990, %2140 : vector<1x128xf32>
    %2142 = arith.addf %2139, %2141 : vector<1x128xf32>
    %2143 = vector.broadcast %1171 : f32 to vector<1x128xf32>
    %2144 = arith.mulf %1991, %2143 : vector<1x128xf32>
    %2145 = arith.addf %2142, %2144 : vector<1x128xf32>
    %2146 = vector.broadcast %1181 : f32 to vector<1x128xf32>
    %2147 = arith.mulf %1992, %2146 : vector<1x128xf32>
    %2148 = arith.addf %2145, %2147 : vector<1x128xf32>
    %2149 = vector.broadcast %1191 : f32 to vector<1x128xf32>
    %2150 = arith.mulf %1993, %2149 : vector<1x128xf32>
    %2151 = arith.addf %2148, %2150 : vector<1x128xf32>
    %2152 = vector.broadcast %1201 : f32 to vector<1x128xf32>
    %2153 = arith.mulf %1994, %2152 : vector<1x128xf32>
    %2154 = arith.addf %2151, %2153 : vector<1x128xf32>
    %2155 = vector.broadcast %1211 : f32 to vector<1x128xf32>
    %2156 = arith.mulf %1995, %2155 : vector<1x128xf32>
    %2157 = arith.addf %2154, %2156 : vector<1x128xf32>
    %2158 = vector.broadcast %1221 : f32 to vector<1x128xf32>
    %2159 = arith.mulf %1996, %2158 : vector<1x128xf32>
    %2160 = arith.addf %2157, %2159 : vector<1x128xf32>
    %2161 = vector.broadcast %1231 : f32 to vector<1x128xf32>
    %2162 = arith.mulf %1997, %2161 : vector<1x128xf32>
    %2163 = arith.addf %2160, %2162 : vector<1x128xf32>
    %2164 = vector.broadcast %1241 : f32 to vector<1x128xf32>
    %2165 = arith.mulf %1998, %2164 : vector<1x128xf32>
    %2166 = arith.addf %2163, %2165 : vector<1x128xf32>
    %2167 = vector.broadcast %1251 : f32 to vector<1x128xf32>
    %2168 = arith.mulf %1999, %2167 : vector<1x128xf32>
    %2169 = arith.addf %2166, %2168 : vector<1x128xf32>
    %2170 = vector.broadcast %1261 : f32 to vector<1x128xf32>
    %2171 = arith.mulf %2000, %2170 : vector<1x128xf32>
    %2172 = arith.addf %2169, %2171 : vector<1x128xf32>
    %2173 = vector.broadcast %1271 : f32 to vector<1x128xf32>
    %2174 = arith.mulf %2001, %2173 : vector<1x128xf32>
    %2175 = arith.addf %2172, %2174 : vector<1x128xf32>
    %2176 = vector.broadcast %1281 : f32 to vector<1x128xf32>
    %2177 = arith.mulf %2002, %2176 : vector<1x128xf32>
    %2178 = arith.addf %2175, %2177 : vector<1x128xf32>
    %2179 = vector.broadcast %1291 : f32 to vector<1x128xf32>
    %2180 = arith.mulf %2003, %2179 : vector<1x128xf32>
    %2181 = arith.addf %2178, %2180 : vector<1x128xf32>
    %2182 = vector.broadcast %1301 : f32 to vector<1x128xf32>
    %2183 = arith.mulf %2004, %2182 : vector<1x128xf32>
    %2184 = arith.addf %2181, %2183 : vector<1x128xf32>
    %2185 = vector.broadcast %1311 : f32 to vector<1x128xf32>
    %2186 = arith.mulf %2005, %2185 : vector<1x128xf32>
    %2187 = arith.addf %2184, %2186 : vector<1x128xf32>
    %2188 = vector.broadcast %1321 : f32 to vector<1x128xf32>
    %2189 = arith.mulf %2006, %2188 : vector<1x128xf32>
    %2190 = arith.addf %2187, %2189 : vector<1x128xf32>
    %2191 = vector.broadcast %1331 : f32 to vector<1x128xf32>
    %2192 = arith.mulf %2007, %2191 : vector<1x128xf32>
    %2193 = arith.addf %2190, %2192 : vector<1x128xf32>
    %2194 = vector.broadcast %1132 : f32 to vector<1x128xf32>
    %2195 = arith.mulf %1987, %2194 : vector<1x128xf32>
    %2196 = vector.broadcast %1142 : f32 to vector<1x128xf32>
    %2197 = arith.mulf %1988, %2196 : vector<1x128xf32>
    %2198 = arith.addf %2195, %2197 : vector<1x128xf32>
    %2199 = vector.broadcast %1152 : f32 to vector<1x128xf32>
    %2200 = arith.mulf %1989, %2199 : vector<1x128xf32>
    %2201 = arith.addf %2198, %2200 : vector<1x128xf32>
    %2202 = vector.broadcast %1162 : f32 to vector<1x128xf32>
    %2203 = arith.mulf %1990, %2202 : vector<1x128xf32>
    %2204 = arith.addf %2201, %2203 : vector<1x128xf32>
    %2205 = vector.broadcast %1172 : f32 to vector<1x128xf32>
    %2206 = arith.mulf %1991, %2205 : vector<1x128xf32>
    %2207 = arith.addf %2204, %2206 : vector<1x128xf32>
    %2208 = vector.broadcast %1182 : f32 to vector<1x128xf32>
    %2209 = arith.mulf %1992, %2208 : vector<1x128xf32>
    %2210 = arith.addf %2207, %2209 : vector<1x128xf32>
    %2211 = vector.broadcast %1192 : f32 to vector<1x128xf32>
    %2212 = arith.mulf %1993, %2211 : vector<1x128xf32>
    %2213 = arith.addf %2210, %2212 : vector<1x128xf32>
    %2214 = vector.broadcast %1202 : f32 to vector<1x128xf32>
    %2215 = arith.mulf %1994, %2214 : vector<1x128xf32>
    %2216 = arith.addf %2213, %2215 : vector<1x128xf32>
    %2217 = vector.broadcast %1212 : f32 to vector<1x128xf32>
    %2218 = arith.mulf %1995, %2217 : vector<1x128xf32>
    %2219 = arith.addf %2216, %2218 : vector<1x128xf32>
    %2220 = vector.broadcast %1222 : f32 to vector<1x128xf32>
    %2221 = arith.mulf %1996, %2220 : vector<1x128xf32>
    %2222 = arith.addf %2219, %2221 : vector<1x128xf32>
    %2223 = vector.broadcast %1232 : f32 to vector<1x128xf32>
    %2224 = arith.mulf %1997, %2223 : vector<1x128xf32>
    %2225 = arith.addf %2222, %2224 : vector<1x128xf32>
    %2226 = vector.broadcast %1242 : f32 to vector<1x128xf32>
    %2227 = arith.mulf %1998, %2226 : vector<1x128xf32>
    %2228 = arith.addf %2225, %2227 : vector<1x128xf32>
    %2229 = vector.broadcast %1252 : f32 to vector<1x128xf32>
    %2230 = arith.mulf %1999, %2229 : vector<1x128xf32>
    %2231 = arith.addf %2228, %2230 : vector<1x128xf32>
    %2232 = vector.broadcast %1262 : f32 to vector<1x128xf32>
    %2233 = arith.mulf %2000, %2232 : vector<1x128xf32>
    %2234 = arith.addf %2231, %2233 : vector<1x128xf32>
    %2235 = vector.broadcast %1272 : f32 to vector<1x128xf32>
    %2236 = arith.mulf %2001, %2235 : vector<1x128xf32>
    %2237 = arith.addf %2234, %2236 : vector<1x128xf32>
    %2238 = vector.broadcast %1282 : f32 to vector<1x128xf32>
    %2239 = arith.mulf %2002, %2238 : vector<1x128xf32>
    %2240 = arith.addf %2237, %2239 : vector<1x128xf32>
    %2241 = vector.broadcast %1292 : f32 to vector<1x128xf32>
    %2242 = arith.mulf %2003, %2241 : vector<1x128xf32>
    %2243 = arith.addf %2240, %2242 : vector<1x128xf32>
    %2244 = vector.broadcast %1302 : f32 to vector<1x128xf32>
    %2245 = arith.mulf %2004, %2244 : vector<1x128xf32>
    %2246 = arith.addf %2243, %2245 : vector<1x128xf32>
    %2247 = vector.broadcast %1312 : f32 to vector<1x128xf32>
    %2248 = arith.mulf %2005, %2247 : vector<1x128xf32>
    %2249 = arith.addf %2246, %2248 : vector<1x128xf32>
    %2250 = vector.broadcast %1322 : f32 to vector<1x128xf32>
    %2251 = arith.mulf %2006, %2250 : vector<1x128xf32>
    %2252 = arith.addf %2249, %2251 : vector<1x128xf32>
    %2253 = vector.broadcast %1332 : f32 to vector<1x128xf32>
    %2254 = arith.mulf %2007, %2253 : vector<1x128xf32>
    %2255 = arith.addf %2252, %2254 : vector<1x128xf32>
    %2256 = vector.broadcast %1133 : f32 to vector<1x128xf32>
    %2257 = arith.mulf %1987, %2256 : vector<1x128xf32>
    %2258 = vector.broadcast %1143 : f32 to vector<1x128xf32>
    %2259 = arith.mulf %1988, %2258 : vector<1x128xf32>
    %2260 = arith.addf %2257, %2259 : vector<1x128xf32>
    %2261 = vector.broadcast %1153 : f32 to vector<1x128xf32>
    %2262 = arith.mulf %1989, %2261 : vector<1x128xf32>
    %2263 = arith.addf %2260, %2262 : vector<1x128xf32>
    %2264 = vector.broadcast %1163 : f32 to vector<1x128xf32>
    %2265 = arith.mulf %1990, %2264 : vector<1x128xf32>
    %2266 = arith.addf %2263, %2265 : vector<1x128xf32>
    %2267 = vector.broadcast %1173 : f32 to vector<1x128xf32>
    %2268 = arith.mulf %1991, %2267 : vector<1x128xf32>
    %2269 = arith.addf %2266, %2268 : vector<1x128xf32>
    %2270 = vector.broadcast %1183 : f32 to vector<1x128xf32>
    %2271 = arith.mulf %1992, %2270 : vector<1x128xf32>
    %2272 = arith.addf %2269, %2271 : vector<1x128xf32>
    %2273 = vector.broadcast %1193 : f32 to vector<1x128xf32>
    %2274 = arith.mulf %1993, %2273 : vector<1x128xf32>
    %2275 = arith.addf %2272, %2274 : vector<1x128xf32>
    %2276 = vector.broadcast %1203 : f32 to vector<1x128xf32>
    %2277 = arith.mulf %1994, %2276 : vector<1x128xf32>
    %2278 = arith.addf %2275, %2277 : vector<1x128xf32>
    %2279 = vector.broadcast %1213 : f32 to vector<1x128xf32>
    %2280 = arith.mulf %1995, %2279 : vector<1x128xf32>
    %2281 = arith.addf %2278, %2280 : vector<1x128xf32>
    %2282 = vector.broadcast %1223 : f32 to vector<1x128xf32>
    %2283 = arith.mulf %1996, %2282 : vector<1x128xf32>
    %2284 = arith.addf %2281, %2283 : vector<1x128xf32>
    %2285 = vector.broadcast %1233 : f32 to vector<1x128xf32>
    %2286 = arith.mulf %1997, %2285 : vector<1x128xf32>
    %2287 = arith.addf %2284, %2286 : vector<1x128xf32>
    %2288 = vector.broadcast %1243 : f32 to vector<1x128xf32>
    %2289 = arith.mulf %1998, %2288 : vector<1x128xf32>
    %2290 = arith.addf %2287, %2289 : vector<1x128xf32>
    %2291 = vector.broadcast %1253 : f32 to vector<1x128xf32>
    %2292 = arith.mulf %1999, %2291 : vector<1x128xf32>
    %2293 = arith.addf %2290, %2292 : vector<1x128xf32>
    %2294 = vector.broadcast %1263 : f32 to vector<1x128xf32>
    %2295 = arith.mulf %2000, %2294 : vector<1x128xf32>
    %2296 = arith.addf %2293, %2295 : vector<1x128xf32>
    %2297 = vector.broadcast %1273 : f32 to vector<1x128xf32>
    %2298 = arith.mulf %2001, %2297 : vector<1x128xf32>
    %2299 = arith.addf %2296, %2298 : vector<1x128xf32>
    %2300 = vector.broadcast %1283 : f32 to vector<1x128xf32>
    %2301 = arith.mulf %2002, %2300 : vector<1x128xf32>
    %2302 = arith.addf %2299, %2301 : vector<1x128xf32>
    %2303 = vector.broadcast %1293 : f32 to vector<1x128xf32>
    %2304 = arith.mulf %2003, %2303 : vector<1x128xf32>
    %2305 = arith.addf %2302, %2304 : vector<1x128xf32>
    %2306 = vector.broadcast %1303 : f32 to vector<1x128xf32>
    %2307 = arith.mulf %2004, %2306 : vector<1x128xf32>
    %2308 = arith.addf %2305, %2307 : vector<1x128xf32>
    %2309 = vector.broadcast %1313 : f32 to vector<1x128xf32>
    %2310 = arith.mulf %2005, %2309 : vector<1x128xf32>
    %2311 = arith.addf %2308, %2310 : vector<1x128xf32>
    %2312 = vector.broadcast %1323 : f32 to vector<1x128xf32>
    %2313 = arith.mulf %2006, %2312 : vector<1x128xf32>
    %2314 = arith.addf %2311, %2313 : vector<1x128xf32>
    %2315 = vector.broadcast %1333 : f32 to vector<1x128xf32>
    %2316 = arith.mulf %2007, %2315 : vector<1x128xf32>
    %2317 = arith.addf %2314, %2316 : vector<1x128xf32>
    %2318 = vector.broadcast %1134 : f32 to vector<1x128xf32>
    %2319 = arith.mulf %1987, %2318 : vector<1x128xf32>
    %2320 = vector.broadcast %1144 : f32 to vector<1x128xf32>
    %2321 = arith.mulf %1988, %2320 : vector<1x128xf32>
    %2322 = arith.addf %2319, %2321 : vector<1x128xf32>
    %2323 = vector.broadcast %1154 : f32 to vector<1x128xf32>
    %2324 = arith.mulf %1989, %2323 : vector<1x128xf32>
    %2325 = arith.addf %2322, %2324 : vector<1x128xf32>
    %2326 = vector.broadcast %1164 : f32 to vector<1x128xf32>
    %2327 = arith.mulf %1990, %2326 : vector<1x128xf32>
    %2328 = arith.addf %2325, %2327 : vector<1x128xf32>
    %2329 = vector.broadcast %1174 : f32 to vector<1x128xf32>
    %2330 = arith.mulf %1991, %2329 : vector<1x128xf32>
    %2331 = arith.addf %2328, %2330 : vector<1x128xf32>
    %2332 = vector.broadcast %1184 : f32 to vector<1x128xf32>
    %2333 = arith.mulf %1992, %2332 : vector<1x128xf32>
    %2334 = arith.addf %2331, %2333 : vector<1x128xf32>
    %2335 = vector.broadcast %1194 : f32 to vector<1x128xf32>
    %2336 = arith.mulf %1993, %2335 : vector<1x128xf32>
    %2337 = arith.addf %2334, %2336 : vector<1x128xf32>
    %2338 = vector.broadcast %1204 : f32 to vector<1x128xf32>
    %2339 = arith.mulf %1994, %2338 : vector<1x128xf32>
    %2340 = arith.addf %2337, %2339 : vector<1x128xf32>
    %2341 = vector.broadcast %1214 : f32 to vector<1x128xf32>
    %2342 = arith.mulf %1995, %2341 : vector<1x128xf32>
    %2343 = arith.addf %2340, %2342 : vector<1x128xf32>
    %2344 = vector.broadcast %1224 : f32 to vector<1x128xf32>
    %2345 = arith.mulf %1996, %2344 : vector<1x128xf32>
    %2346 = arith.addf %2343, %2345 : vector<1x128xf32>
    %2347 = vector.broadcast %1234 : f32 to vector<1x128xf32>
    %2348 = arith.mulf %1997, %2347 : vector<1x128xf32>
    %2349 = arith.addf %2346, %2348 : vector<1x128xf32>
    %2350 = vector.broadcast %1244 : f32 to vector<1x128xf32>
    %2351 = arith.mulf %1998, %2350 : vector<1x128xf32>
    %2352 = arith.addf %2349, %2351 : vector<1x128xf32>
    %2353 = vector.broadcast %1254 : f32 to vector<1x128xf32>
    %2354 = arith.mulf %1999, %2353 : vector<1x128xf32>
    %2355 = arith.addf %2352, %2354 : vector<1x128xf32>
    %2356 = vector.broadcast %1264 : f32 to vector<1x128xf32>
    %2357 = arith.mulf %2000, %2356 : vector<1x128xf32>
    %2358 = arith.addf %2355, %2357 : vector<1x128xf32>
    %2359 = vector.broadcast %1274 : f32 to vector<1x128xf32>
    %2360 = arith.mulf %2001, %2359 : vector<1x128xf32>
    %2361 = arith.addf %2358, %2360 : vector<1x128xf32>
    %2362 = vector.broadcast %1284 : f32 to vector<1x128xf32>
    %2363 = arith.mulf %2002, %2362 : vector<1x128xf32>
    %2364 = arith.addf %2361, %2363 : vector<1x128xf32>
    %2365 = vector.broadcast %1294 : f32 to vector<1x128xf32>
    %2366 = arith.mulf %2003, %2365 : vector<1x128xf32>
    %2367 = arith.addf %2364, %2366 : vector<1x128xf32>
    %2368 = vector.broadcast %1304 : f32 to vector<1x128xf32>
    %2369 = arith.mulf %2004, %2368 : vector<1x128xf32>
    %2370 = arith.addf %2367, %2369 : vector<1x128xf32>
    %2371 = vector.broadcast %1314 : f32 to vector<1x128xf32>
    %2372 = arith.mulf %2005, %2371 : vector<1x128xf32>
    %2373 = arith.addf %2370, %2372 : vector<1x128xf32>
    %2374 = vector.broadcast %1324 : f32 to vector<1x128xf32>
    %2375 = arith.mulf %2006, %2374 : vector<1x128xf32>
    %2376 = arith.addf %2373, %2375 : vector<1x128xf32>
    %2377 = vector.broadcast %1334 : f32 to vector<1x128xf32>
    %2378 = arith.mulf %2007, %2377 : vector<1x128xf32>
    %2379 = arith.addf %2376, %2378 : vector<1x128xf32>
    %2380 = vector.broadcast %1135 : f32 to vector<1x128xf32>
    %2381 = arith.mulf %1987, %2380 : vector<1x128xf32>
    %2382 = vector.broadcast %1145 : f32 to vector<1x128xf32>
    %2383 = arith.mulf %1988, %2382 : vector<1x128xf32>
    %2384 = arith.addf %2381, %2383 : vector<1x128xf32>
    %2385 = vector.broadcast %1155 : f32 to vector<1x128xf32>
    %2386 = arith.mulf %1989, %2385 : vector<1x128xf32>
    %2387 = arith.addf %2384, %2386 : vector<1x128xf32>
    %2388 = vector.broadcast %1165 : f32 to vector<1x128xf32>
    %2389 = arith.mulf %1990, %2388 : vector<1x128xf32>
    %2390 = arith.addf %2387, %2389 : vector<1x128xf32>
    %2391 = vector.broadcast %1175 : f32 to vector<1x128xf32>
    %2392 = arith.mulf %1991, %2391 : vector<1x128xf32>
    %2393 = arith.addf %2390, %2392 : vector<1x128xf32>
    %2394 = vector.broadcast %1185 : f32 to vector<1x128xf32>
    %2395 = arith.mulf %1992, %2394 : vector<1x128xf32>
    %2396 = arith.addf %2393, %2395 : vector<1x128xf32>
    %2397 = vector.broadcast %1195 : f32 to vector<1x128xf32>
    %2398 = arith.mulf %1993, %2397 : vector<1x128xf32>
    %2399 = arith.addf %2396, %2398 : vector<1x128xf32>
    %2400 = vector.broadcast %1205 : f32 to vector<1x128xf32>
    %2401 = arith.mulf %1994, %2400 : vector<1x128xf32>
    %2402 = arith.addf %2399, %2401 : vector<1x128xf32>
    %2403 = vector.broadcast %1215 : f32 to vector<1x128xf32>
    %2404 = arith.mulf %1995, %2403 : vector<1x128xf32>
    %2405 = arith.addf %2402, %2404 : vector<1x128xf32>
    %2406 = vector.broadcast %1225 : f32 to vector<1x128xf32>
    %2407 = arith.mulf %1996, %2406 : vector<1x128xf32>
    %2408 = arith.addf %2405, %2407 : vector<1x128xf32>
    %2409 = vector.broadcast %1235 : f32 to vector<1x128xf32>
    %2410 = arith.mulf %1997, %2409 : vector<1x128xf32>
    %2411 = arith.addf %2408, %2410 : vector<1x128xf32>
    %2412 = vector.broadcast %1245 : f32 to vector<1x128xf32>
    %2413 = arith.mulf %1998, %2412 : vector<1x128xf32>
    %2414 = arith.addf %2411, %2413 : vector<1x128xf32>
    %2415 = vector.broadcast %1255 : f32 to vector<1x128xf32>
    %2416 = arith.mulf %1999, %2415 : vector<1x128xf32>
    %2417 = arith.addf %2414, %2416 : vector<1x128xf32>
    %2418 = vector.broadcast %1265 : f32 to vector<1x128xf32>
    %2419 = arith.mulf %2000, %2418 : vector<1x128xf32>
    %2420 = arith.addf %2417, %2419 : vector<1x128xf32>
    %2421 = vector.broadcast %1275 : f32 to vector<1x128xf32>
    %2422 = arith.mulf %2001, %2421 : vector<1x128xf32>
    %2423 = arith.addf %2420, %2422 : vector<1x128xf32>
    %2424 = vector.broadcast %1285 : f32 to vector<1x128xf32>
    %2425 = arith.mulf %2002, %2424 : vector<1x128xf32>
    %2426 = arith.addf %2423, %2425 : vector<1x128xf32>
    %2427 = vector.broadcast %1295 : f32 to vector<1x128xf32>
    %2428 = arith.mulf %2003, %2427 : vector<1x128xf32>
    %2429 = arith.addf %2426, %2428 : vector<1x128xf32>
    %2430 = vector.broadcast %1305 : f32 to vector<1x128xf32>
    %2431 = arith.mulf %2004, %2430 : vector<1x128xf32>
    %2432 = arith.addf %2429, %2431 : vector<1x128xf32>
    %2433 = vector.broadcast %1315 : f32 to vector<1x128xf32>
    %2434 = arith.mulf %2005, %2433 : vector<1x128xf32>
    %2435 = arith.addf %2432, %2434 : vector<1x128xf32>
    %2436 = vector.broadcast %1325 : f32 to vector<1x128xf32>
    %2437 = arith.mulf %2006, %2436 : vector<1x128xf32>
    %2438 = arith.addf %2435, %2437 : vector<1x128xf32>
    %2439 = vector.broadcast %1335 : f32 to vector<1x128xf32>
    %2440 = arith.mulf %2007, %2439 : vector<1x128xf32>
    %2441 = arith.addf %2438, %2440 : vector<1x128xf32>
    %2442 = vector.broadcast %1136 : f32 to vector<1x128xf32>
    %2443 = arith.mulf %1987, %2442 : vector<1x128xf32>
    %2444 = vector.broadcast %1146 : f32 to vector<1x128xf32>
    %2445 = arith.mulf %1988, %2444 : vector<1x128xf32>
    %2446 = arith.addf %2443, %2445 : vector<1x128xf32>
    %2447 = vector.broadcast %1156 : f32 to vector<1x128xf32>
    %2448 = arith.mulf %1989, %2447 : vector<1x128xf32>
    %2449 = arith.addf %2446, %2448 : vector<1x128xf32>
    %2450 = vector.broadcast %1166 : f32 to vector<1x128xf32>
    %2451 = arith.mulf %1990, %2450 : vector<1x128xf32>
    %2452 = arith.addf %2449, %2451 : vector<1x128xf32>
    %2453 = vector.broadcast %1176 : f32 to vector<1x128xf32>
    %2454 = arith.mulf %1991, %2453 : vector<1x128xf32>
    %2455 = arith.addf %2452, %2454 : vector<1x128xf32>
    %2456 = vector.broadcast %1186 : f32 to vector<1x128xf32>
    %2457 = arith.mulf %1992, %2456 : vector<1x128xf32>
    %2458 = arith.addf %2455, %2457 : vector<1x128xf32>
    %2459 = vector.broadcast %1196 : f32 to vector<1x128xf32>
    %2460 = arith.mulf %1993, %2459 : vector<1x128xf32>
    %2461 = arith.addf %2458, %2460 : vector<1x128xf32>
    %2462 = vector.broadcast %1206 : f32 to vector<1x128xf32>
    %2463 = arith.mulf %1994, %2462 : vector<1x128xf32>
    %2464 = arith.addf %2461, %2463 : vector<1x128xf32>
    %2465 = vector.broadcast %1216 : f32 to vector<1x128xf32>
    %2466 = arith.mulf %1995, %2465 : vector<1x128xf32>
    %2467 = arith.addf %2464, %2466 : vector<1x128xf32>
    %2468 = vector.broadcast %1226 : f32 to vector<1x128xf32>
    %2469 = arith.mulf %1996, %2468 : vector<1x128xf32>
    %2470 = arith.addf %2467, %2469 : vector<1x128xf32>
    %2471 = vector.broadcast %1236 : f32 to vector<1x128xf32>
    %2472 = arith.mulf %1997, %2471 : vector<1x128xf32>
    %2473 = arith.addf %2470, %2472 : vector<1x128xf32>
    %2474 = vector.broadcast %1246 : f32 to vector<1x128xf32>
    %2475 = arith.mulf %1998, %2474 : vector<1x128xf32>
    %2476 = arith.addf %2473, %2475 : vector<1x128xf32>
    %2477 = vector.broadcast %1256 : f32 to vector<1x128xf32>
    %2478 = arith.mulf %1999, %2477 : vector<1x128xf32>
    %2479 = arith.addf %2476, %2478 : vector<1x128xf32>
    %2480 = vector.broadcast %1266 : f32 to vector<1x128xf32>
    %2481 = arith.mulf %2000, %2480 : vector<1x128xf32>
    %2482 = arith.addf %2479, %2481 : vector<1x128xf32>
    %2483 = vector.broadcast %1276 : f32 to vector<1x128xf32>
    %2484 = arith.mulf %2001, %2483 : vector<1x128xf32>
    %2485 = arith.addf %2482, %2484 : vector<1x128xf32>
    %2486 = vector.broadcast %1286 : f32 to vector<1x128xf32>
    %2487 = arith.mulf %2002, %2486 : vector<1x128xf32>
    %2488 = arith.addf %2485, %2487 : vector<1x128xf32>
    %2489 = vector.broadcast %1296 : f32 to vector<1x128xf32>
    %2490 = arith.mulf %2003, %2489 : vector<1x128xf32>
    %2491 = arith.addf %2488, %2490 : vector<1x128xf32>
    %2492 = vector.broadcast %1306 : f32 to vector<1x128xf32>
    %2493 = arith.mulf %2004, %2492 : vector<1x128xf32>
    %2494 = arith.addf %2491, %2493 : vector<1x128xf32>
    %2495 = vector.broadcast %1316 : f32 to vector<1x128xf32>
    %2496 = arith.mulf %2005, %2495 : vector<1x128xf32>
    %2497 = arith.addf %2494, %2496 : vector<1x128xf32>
    %2498 = vector.broadcast %1326 : f32 to vector<1x128xf32>
    %2499 = arith.mulf %2006, %2498 : vector<1x128xf32>
    %2500 = arith.addf %2497, %2499 : vector<1x128xf32>
    %2501 = vector.broadcast %1336 : f32 to vector<1x128xf32>
    %2502 = arith.mulf %2007, %2501 : vector<1x128xf32>
    %2503 = arith.addf %2500, %2502 : vector<1x128xf32>
    %2504 = vector.broadcast %1137 : f32 to vector<1x128xf32>
    %2505 = arith.mulf %1987, %2504 : vector<1x128xf32>
    %2506 = vector.broadcast %1147 : f32 to vector<1x128xf32>
    %2507 = arith.mulf %1988, %2506 : vector<1x128xf32>
    %2508 = arith.addf %2505, %2507 : vector<1x128xf32>
    %2509 = vector.broadcast %1157 : f32 to vector<1x128xf32>
    %2510 = arith.mulf %1989, %2509 : vector<1x128xf32>
    %2511 = arith.addf %2508, %2510 : vector<1x128xf32>
    %2512 = vector.broadcast %1167 : f32 to vector<1x128xf32>
    %2513 = arith.mulf %1990, %2512 : vector<1x128xf32>
    %2514 = arith.addf %2511, %2513 : vector<1x128xf32>
    %2515 = vector.broadcast %1177 : f32 to vector<1x128xf32>
    %2516 = arith.mulf %1991, %2515 : vector<1x128xf32>
    %2517 = arith.addf %2514, %2516 : vector<1x128xf32>
    %2518 = vector.broadcast %1187 : f32 to vector<1x128xf32>
    %2519 = arith.mulf %1992, %2518 : vector<1x128xf32>
    %2520 = arith.addf %2517, %2519 : vector<1x128xf32>
    %2521 = vector.broadcast %1197 : f32 to vector<1x128xf32>
    %2522 = arith.mulf %1993, %2521 : vector<1x128xf32>
    %2523 = arith.addf %2520, %2522 : vector<1x128xf32>
    %2524 = vector.broadcast %1207 : f32 to vector<1x128xf32>
    %2525 = arith.mulf %1994, %2524 : vector<1x128xf32>
    %2526 = arith.addf %2523, %2525 : vector<1x128xf32>
    %2527 = vector.broadcast %1217 : f32 to vector<1x128xf32>
    %2528 = arith.mulf %1995, %2527 : vector<1x128xf32>
    %2529 = arith.addf %2526, %2528 : vector<1x128xf32>
    %2530 = vector.broadcast %1227 : f32 to vector<1x128xf32>
    %2531 = arith.mulf %1996, %2530 : vector<1x128xf32>
    %2532 = arith.addf %2529, %2531 : vector<1x128xf32>
    %2533 = vector.broadcast %1237 : f32 to vector<1x128xf32>
    %2534 = arith.mulf %1997, %2533 : vector<1x128xf32>
    %2535 = arith.addf %2532, %2534 : vector<1x128xf32>
    %2536 = vector.broadcast %1247 : f32 to vector<1x128xf32>
    %2537 = arith.mulf %1998, %2536 : vector<1x128xf32>
    %2538 = arith.addf %2535, %2537 : vector<1x128xf32>
    %2539 = vector.broadcast %1257 : f32 to vector<1x128xf32>
    %2540 = arith.mulf %1999, %2539 : vector<1x128xf32>
    %2541 = arith.addf %2538, %2540 : vector<1x128xf32>
    %2542 = vector.broadcast %1267 : f32 to vector<1x128xf32>
    %2543 = arith.mulf %2000, %2542 : vector<1x128xf32>
    %2544 = arith.addf %2541, %2543 : vector<1x128xf32>
    %2545 = vector.broadcast %1277 : f32 to vector<1x128xf32>
    %2546 = arith.mulf %2001, %2545 : vector<1x128xf32>
    %2547 = arith.addf %2544, %2546 : vector<1x128xf32>
    %2548 = vector.broadcast %1287 : f32 to vector<1x128xf32>
    %2549 = arith.mulf %2002, %2548 : vector<1x128xf32>
    %2550 = arith.addf %2547, %2549 : vector<1x128xf32>
    %2551 = vector.broadcast %1297 : f32 to vector<1x128xf32>
    %2552 = arith.mulf %2003, %2551 : vector<1x128xf32>
    %2553 = arith.addf %2550, %2552 : vector<1x128xf32>
    %2554 = vector.broadcast %1307 : f32 to vector<1x128xf32>
    %2555 = arith.mulf %2004, %2554 : vector<1x128xf32>
    %2556 = arith.addf %2553, %2555 : vector<1x128xf32>
    %2557 = vector.broadcast %1317 : f32 to vector<1x128xf32>
    %2558 = arith.mulf %2005, %2557 : vector<1x128xf32>
    %2559 = arith.addf %2556, %2558 : vector<1x128xf32>
    %2560 = vector.broadcast %1327 : f32 to vector<1x128xf32>
    %2561 = arith.mulf %2006, %2560 : vector<1x128xf32>
    %2562 = arith.addf %2559, %2561 : vector<1x128xf32>
    %2563 = vector.broadcast %1337 : f32 to vector<1x128xf32>
    %2564 = arith.mulf %2007, %2563 : vector<1x128xf32>
    %2565 = arith.addf %2562, %2564 : vector<1x128xf32>
    %2566 = vector.broadcast %1138 : f32 to vector<1x128xf32>
    %2567 = arith.mulf %1987, %2566 : vector<1x128xf32>
    %2568 = vector.broadcast %1148 : f32 to vector<1x128xf32>
    %2569 = arith.mulf %1988, %2568 : vector<1x128xf32>
    %2570 = arith.addf %2567, %2569 : vector<1x128xf32>
    %2571 = vector.broadcast %1158 : f32 to vector<1x128xf32>
    %2572 = arith.mulf %1989, %2571 : vector<1x128xf32>
    %2573 = arith.addf %2570, %2572 : vector<1x128xf32>
    %2574 = vector.broadcast %1168 : f32 to vector<1x128xf32>
    %2575 = arith.mulf %1990, %2574 : vector<1x128xf32>
    %2576 = arith.addf %2573, %2575 : vector<1x128xf32>
    %2577 = vector.broadcast %1178 : f32 to vector<1x128xf32>
    %2578 = arith.mulf %1991, %2577 : vector<1x128xf32>
    %2579 = arith.addf %2576, %2578 : vector<1x128xf32>
    %2580 = vector.broadcast %1188 : f32 to vector<1x128xf32>
    %2581 = arith.mulf %1992, %2580 : vector<1x128xf32>
    %2582 = arith.addf %2579, %2581 : vector<1x128xf32>
    %2583 = vector.broadcast %1198 : f32 to vector<1x128xf32>
    %2584 = arith.mulf %1993, %2583 : vector<1x128xf32>
    %2585 = arith.addf %2582, %2584 : vector<1x128xf32>
    %2586 = vector.broadcast %1208 : f32 to vector<1x128xf32>
    %2587 = arith.mulf %1994, %2586 : vector<1x128xf32>
    %2588 = arith.addf %2585, %2587 : vector<1x128xf32>
    %2589 = vector.broadcast %1218 : f32 to vector<1x128xf32>
    %2590 = arith.mulf %1995, %2589 : vector<1x128xf32>
    %2591 = arith.addf %2588, %2590 : vector<1x128xf32>
    %2592 = vector.broadcast %1228 : f32 to vector<1x128xf32>
    %2593 = arith.mulf %1996, %2592 : vector<1x128xf32>
    %2594 = arith.addf %2591, %2593 : vector<1x128xf32>
    %2595 = vector.broadcast %1238 : f32 to vector<1x128xf32>
    %2596 = arith.mulf %1997, %2595 : vector<1x128xf32>
    %2597 = arith.addf %2594, %2596 : vector<1x128xf32>
    %2598 = vector.broadcast %1248 : f32 to vector<1x128xf32>
    %2599 = arith.mulf %1998, %2598 : vector<1x128xf32>
    %2600 = arith.addf %2597, %2599 : vector<1x128xf32>
    %2601 = vector.broadcast %1258 : f32 to vector<1x128xf32>
    %2602 = arith.mulf %1999, %2601 : vector<1x128xf32>
    %2603 = arith.addf %2600, %2602 : vector<1x128xf32>
    %2604 = vector.broadcast %1268 : f32 to vector<1x128xf32>
    %2605 = arith.mulf %2000, %2604 : vector<1x128xf32>
    %2606 = arith.addf %2603, %2605 : vector<1x128xf32>
    %2607 = vector.broadcast %1278 : f32 to vector<1x128xf32>
    %2608 = arith.mulf %2001, %2607 : vector<1x128xf32>
    %2609 = arith.addf %2606, %2608 : vector<1x128xf32>
    %2610 = vector.broadcast %1288 : f32 to vector<1x128xf32>
    %2611 = arith.mulf %2002, %2610 : vector<1x128xf32>
    %2612 = arith.addf %2609, %2611 : vector<1x128xf32>
    %2613 = vector.broadcast %1298 : f32 to vector<1x128xf32>
    %2614 = arith.mulf %2003, %2613 : vector<1x128xf32>
    %2615 = arith.addf %2612, %2614 : vector<1x128xf32>
    %2616 = vector.broadcast %1308 : f32 to vector<1x128xf32>
    %2617 = arith.mulf %2004, %2616 : vector<1x128xf32>
    %2618 = arith.addf %2615, %2617 : vector<1x128xf32>
    %2619 = vector.broadcast %1318 : f32 to vector<1x128xf32>
    %2620 = arith.mulf %2005, %2619 : vector<1x128xf32>
    %2621 = arith.addf %2618, %2620 : vector<1x128xf32>
    %2622 = vector.broadcast %1328 : f32 to vector<1x128xf32>
    %2623 = arith.mulf %2006, %2622 : vector<1x128xf32>
    %2624 = arith.addf %2621, %2623 : vector<1x128xf32>
    %2625 = vector.broadcast %1338 : f32 to vector<1x128xf32>
    %2626 = arith.mulf %2007, %2625 : vector<1x128xf32>
    %2627 = arith.addf %2624, %2626 : vector<1x128xf32>
    %2628 = vector.extract_strided_slice %0 {offsets = [1, 0, 0, 0], sizes = [1, 1, 10, 128], strides = [1, 1, 1, 1]} : vector<2x3x10x128xf32> to vector<1x1x10x128xf32>
    %2629 = vector.shape_cast %2628 : vector<1x1x10x128xf32> to vector<10x128xf32>
    %2630 = tpu.concatenate %2069, %2131, %2193, %2255, %2317, %2379, %2441, %2503, %2565, %2627 in 0 : vector<1x128xf32>, vector<1x128xf32>, vector<1x128xf32>, vector<1x128xf32>, vector<1x128xf32>, vector<1x128xf32>, vector<1x128xf32>, vector<1x128xf32>, vector<1x128xf32>, vector<1x128xf32> -> vector<10x128xf32>
    %2631 = arith.addf %2629, %2630 : vector<10x128xf32>
    %c1_70 = arith.constant 1 : index
    %c0_71 = arith.constant 0 : index
    %c0_72 = arith.constant 0 : index
    %2632 = vector.load %arg3[%c1_70, %c0_71, %c0_72] : memref<2x10x128xf32, #tpu.memory_space<vmem>>, vector<1x10x128xf32>
    %2633 = vector.shape_cast %2632 : vector<1x10x128xf32> to vector<10x128xf32>
    %2634 = vector.shape_cast %2631 : vector<10x128xf32> to vector<1x10x128xf32>
    tpu.vector_store %arg3[%c1_70, %c0_71, %c0_72], %2634 {strides = array<i32>} : memref<2x10x128xf32, #tpu.memory_space<vmem>>, vector<1x10x128xf32>,
    return
  }
  func.func @transform_0(%arg0: i32) -> i32 {
    %c0_i32 = arith.constant 0 : i32
    %c0_i32_0 = arith.constant 0 : i32
    return %c0_i32 : i32
  }
  func.func @transform_1(%arg0: i32) -> (i32, i32, i32, i32) {
    %c0_i32 = arith.constant 0 : i32
    %c0_i32_0 = arith.constant 0 : i32
    %c0_i32_1 = arith.constant 0 : i32
    %c0_i32_2 = arith.constant 0 : i32
    return %c0_i32, %c0_i32_0, %c0_i32_1, %arg0 : i32, i32, i32, i32
  }
  func.func @transform_2(%arg0: i32) -> (i32, i32, i32) {
    %c0_i32 = arith.constant 0 : i32
    %c0_i32_0 = arith.constant 0 : i32
    %c0_i32_1 = arith.constant 0 : i32
    return %c0_i32, %c0_i32_0, %arg0 : i32, i32, i32
  }
}

</mosaic_0001>

<bundles_post_ra>
// kernel: squeeze.5
= control target key start
LH: loop header
LB: loop body
LE: loop exit
PB: predicated region body
PF: predicated region fallthrough
CT: control target
= control target key end

     0   :  { %s59_s10 = smov 60   ;;  %s60_s11 = smov 40   ;;  %vm3_vm0 = vcmask 80896   ;;  %vm9_vm1 = vcmask 572896   ;;  %vm15_vm2 = vcmask 490896   ;;  %vm21_vm3 = vcmask 408896   ;;  %s99_s0 = inlined_call_operand.vmem [shape: f32[1,7,10], index: 0, kind: input, shape index: {}]   ;;  %s100_s1 = inlined_call_operand.vmem [shape: f32[70], index: 1, kind: output, shape index: {}]  }
   0x1   :  { %v47_v0 = vld [vmem:[%s99_s0 + $0x6] sm:$0x1]   ;;  %v49_v1 = vld [vmem:[%s99_s0 + $0x4] sm:$0x1]   ;;  %v48_v2 = vld [vmem:[%s99_s0 + $0x5] sm:$0x1]  }
   0x2   :  { %7 = vrot.lane.b32.xlu0 %v47_v0, %s59_s10  ;;  %19 = vrot.lane.b32.xlu1 %v49_v1, %s60_s11  ;;  %v50_v3 = vld [vmem:[%s99_s0 + $0x3] sm:$0x1]   ;;  %v2_v4 = vld [vmem:[%s99_s0] sm:$0x1]   ;;  %s61_s18 = smov 50   ;;  %s62_s19 = smov 30  }
   0x3   :  { %4 = vst.msk [vmem:[#allocation0] sm:$0x1] %vm3_vm0, %v2_v4   ;;  %v51_v5 = vld [vmem:[%s99_s0 + $0x2] sm:$0x1]   ;;  %v52_v6 = vld [vmem:[%s99_s0 + $0x1] sm:$0x1]  }
   0x4   :  { %s63_s0 = smov 20   ;;  %s64_s24 = smov 10   ;;  %vm27_vm4 = vcmask 326896   ;;  %vm33_vm5 = vcmask 244896   ;;  %vm39_vm6 = vcmask 162896  }
   0x6   :  { %13 = vrot.lane.b32.xlu0 %v48_v2, %s61_s18  ;;  %25 = vrot.lane.b32.xlu1 %v50_v3, %s62_s19 }
   0xa   :  { %31 = vrot.lane.b32.xlu0 %v51_v5, %s63_s0  ;;  %37 = vrot.lane.b32.xlu1 %v52_v6, %s64_s24 }
  0x74   :  { %v8_v7 = vpop.permute.xlu0 %7   ;;  %v20_v8 = vpop.permute.xlu1 %19  }
  0x75   :  { %10 = vst.msk [vmem:[#allocation0] sm:$0x1] %vm9_vm1, %v8_v7  }
  0x78   :  { %v14_v9 = vpop.permute.xlu0 %13   ;;  %v26_v10 = vpop.permute.xlu1 %25  }
  0x79   :  { %16 = vst.msk [vmem:[#allocation0] sm:$0x1] %vm15_vm2, %v14_v9  }
  0x7a   :  { %22 = vst.msk [vmem:[#allocation0] sm:$0x1] %vm21_vm3, %v20_v8  }
  0x7b   :  { %28 = vst.msk [vmem:[#allocation0] sm:$0x1] %vm27_vm4, %v26_v10  }
  0x7c   :  { %v32_v11 = vpop.permute.xlu0 %31   ;;  %v38_v12 = vpop.permute.xlu1 %37  }
  0x7d   :  { %34 = vst.msk [vmem:[#allocation0] sm:$0x1] %vm33_vm5, %v32_v11  }
  0x7e   :  { %40 = vst.msk [vmem:[#allocation0] sm:$0x1] %vm39_vm6, %v38_v12  }
  0x85   :  { %v44_v13 = vld [vmem:[#allocation0] sm:$0x1] }
  0x86   :  { %46 = vst [vmem:[%s100_s1] sm:$0x1] %v44_v13 }

// kernel: node3_forward.1
= control target key start
LH: loop header
LB: loop body
LE: loop exit
PB: predicated region body
PF: predicated region fallthrough
CT: control target
= control target key end

     0   :  { %s8432_s0 = inlined_call_operand.vmem [shape: f32[344], index: 0, kind: input, shape index: {}]   ;;  %s8433_s1 = inlined_call_operand.vmem [shape: f32[2,3,10,128], index: 1, kind: input, shape index: {}]   ;;  %s8434_s2 = inlined_call_operand.vmem [shape: f32[2,10,128], index: 2, kind: output, shape index: {}]  }
   0x1   :  { %8847 = sst [smem:[#allocation196_spill]] %s8433_s1 }
   0x2   :  { %8848 = sst [smem:[#allocation197_spill]] %s8434_s2 }
   0x3   :  { %7 = vsyncpa [#allocation3], 0  ;;  %s14_s11 = sshll.u32 %s8432_s0, 4  ;;  %s15_s11 = int_to_ptr.vmem [resolvable:$true] %s14_s11 }
   0x4   :  { %s4941_s12 = scalar_lea.vmem %s15_s11, 48  ;;  %s4945_s13 = scalar_lea.vmem %s15_s11, 64 }
   0x5   :  { %p4942_p0 = scmp.ne.s32.totalorder %s15_s11, %s4941_s12  ;;  %p4946_p1 = scmp.lt.s32.totalorder %s15_s11, %s15_s11 }
   0x6   :  { %p4947_p2 = scmp.lt.s32.totalorder %s4945_s13, %s4941_s12 }
   0x8   :  { %p4948_p3 = por %p4947_p2, %p4946_p1 }
   0xa   :  { %p4949_p4 = pnand %p4948_p3, %p4942_p0 }
   0xc   :  { %4952 = shalt.err (!%p4949_p4)
}
   0xd   :  { %s4955_s14 = smov [#allocation2]  }
   0xe   :  { %17 = dma.vmem_to_smem %s15_s11, 48, %s4955_s14, [#allocation3]  }
   0xf   :  { %4953 = dma.done.wait [#allocation3], 48  }
  0x10   :  { %4954 = vsyncadd [#allocation3], 4294967248 }
  0x11   :  { %23 = sfence }
  0x12   :  { %s36_s15 = sld [smem:[#allocation2]]  ;;  %s4109_s16 = sld [smem:[#allocation2 + $0x1]]  ;;  %v4977_v0 = vld [vmem:[%s8433_s1] sm:$0xff]  ;;  %v4982_v1 = vld [vmem:[%s8433_s1 + $0x8] sm:$0x3]  ;;  %v4987_v2 = vld [vmem:[%s8433_s1 + $0x10] sm:$0xff] }
  0x13   :  { %v4992_v3 = vld [vmem:[%s8433_s1 + $0x18] sm:$0x3]  ;;  %s4110_s24 = sld [smem:[#allocation2 + $0x2]]  ;;  %s4111_s25 = sld [smem:[#allocation2 + $0x3]]  ;;  %v4997_v4 = vld [vmem:[%s8433_s1 + $0x20] sm:$0xff]  ;;  %v5007_v6 = vld [vmem:[%s8433_s1 + $0x30] sm:$0xff] }
  0x14   :  { %v5002_v5 = vld [vmem:[%s8433_s1 + $0x28] sm:$0x3]  ;;  %v5012_v8 = vld [vmem:[%s8433_s1 + $0x38] sm:$0x3]  ;;  %v5017_v9 = vld [vmem:[%s8433_s1 + $0x40] sm:$0xff]  ;;  %s5043_s14 = sld [smem:[#allocation2 + $0x4]] }
  0x15   :  { %v5028_v17 = vld [vmem:[%s8433_s1 + $0x48] sm:$0x3]  ;;  %v5033_v18 = vld [vmem:[%s8433_s1 + $0x50] sm:$0xff]  ;;  %v5041_v24 = vld [vmem:[%s8433_s1 + $0x58] sm:$0x3]  ;;  %s5051_s17 = sld [smem:[#allocation2 + $0x7]] }
  0x16   :  { %8849 = vst [vmem:[#allocation5_spill] sm:$0xff] %v5041_v24  ;;  %s5053_s18 = sld [smem:[#allocation2 + $0x8]]  ;;  %s5056_s0 = sld [smem:[#allocation2 + $0x9]]  ;;  %vm158_vm0 = vcmask 1046528   ;;  %vm918_vm1 = vcmask 1045504   ;;  %vm1415_vm2 = vcmask 1044480  }
  0x17   :  { %s5058_s19 = sld [smem:[#allocation2 + $0xa]]  ;;  %s5060_s20 = sld [smem:[#allocation2 + $0xb]]  ;;  %vm3101_vm3 = vcmask 1040384   ;;  %vm3103_vm4 = vcmask 1041408   ;;  %vm3105_vm5 = vcmask 1042432   ;;  %vm3107_vm6 = vcmask 1043456  }
  0x18   :  { %v50_v7 = vstv %s36_s15  ;;  %v100_v16 = vstv %s4109_s16  ;;  %s5045_s15 = sld [smem:[#allocation2 + $0x5]]  ;;  %s5047_s16 = sld [smem:[#allocation2 + $0x6]] }
  0x19   :  { %v51_v10 = vmul.f32 %v50_v7, %v4977_v0  ;;  %v52_v11 = vmul.f32 %v50_v7, %v4982_v1  ;;  %v68_v12 = vmul.f32 %v50_v7, %v4987_v2  ;;  %v69_v13 = vmul.f32 %v50_v7, %v4992_v3  ;;  %s5062_s21 = sld [smem:[#allocation2 + $0xc]]  ;;  %s5064_s22 = sld [smem:[#allocation2 + $0xd]] }
  0x1a   :  { %v84_v14 = vmul.f32 %v50_v7, %v4997_v4  ;;  %v85_v15 = vmul.f32 %v50_v7, %v5002_v5  ;;  %v101_v19 = vmul.f32 %v100_v16, %v5007_v6  ;;  %v53_v20 = vstv %s4110_s24  ;;  %s5066_s23 = sld [smem:[#allocation2 + $0xe]]  ;;  %s5068_s24 = sld [smem:[#allocation2 + $0xf]] }
  0x1b   :  { %v102_v21 = vmul.f32 %v100_v16, %v5012_v8  ;;  %v103_v22 = vstv %s4111_s25  ;;  %v118_v23 = vmul.f32 %v100_v16, %v5017_v9  ;;  %v54_v25 = vadd.f32 %v53_v20, %v51_v10  ;;  %s5070_s25 = sld [smem:[#allocation2 + $0x10]]  ;;  %s5072_s26 = sld [smem:[#allocation2 + $0x11]] }
  0x1c   :  { %v55_v26 = vadd.f32 %v53_v20, %v52_v11  ;;  %v70_v27 = vadd.f32 %v68_v12, %v53_v20  ;;  %v71_v28 = vadd.f32 %v69_v13, %v53_v20  ;;  %v86_v29 = vadd.f32 %v84_v14, %v53_v20  ;;  %s5074_s27 = sld [smem:[#allocation2 + $0x12]]  ;;  %s5076_s28 = sld [smem:[#allocation2 + $0x13]] }
  0x1d   :  { %v87_v30 = vadd.f32 %v85_v15, %v53_v20  ;;  %v119_v31 = vmul.f32 %v100_v16, %v5028_v17  ;;  %v134_v32 = vmul.f32 %v100_v16, %v5033_v18  ;;  %v4122_v33 = vmul.f32 -1.442695, %v54_v25  ;;  %s5078_s29 = sld [smem:[#allocation2 + $0x14]]  ;;  %s5080_s30 = sld [smem:[#allocation2 + $0x15]] }
  0x1e   :  { %v4123_v34 = vmul.f32 -1.442695, %v55_v26  ;;  %v4124_v35 = vmul.f32 -1.442695, %v70_v27  ;;  %v104_v36 = vadd.f32 %v103_v22, %v101_v19  ;;  %v4125_v37 = vmul.f32 -1.442695, %v71_v28 }
  0x1f   :  { %v105_v38 = vadd.f32 %v103_v22, %v102_v21  ;;  %v135_v39 = vmul.f32 %v100_v16, %v5041_v24  ;;  %4549 = vpow2.f32 %v4122_v33  ;;  %v4126_v40 = vmul.f32 -1.442695, %v86_v29  ;;  %s5082_s3 = sld [smem:[#allocation2 + $0x16]]  ;;  %s5084_s4 = sld [smem:[#allocation2 + $0x17]] }
  0x20   :  { %v120_v41 = vadd.f32 %v118_v23, %v103_v22  ;;  %4551 = vpow2.f32 %v4123_v34  ;;  %v4127_v42 = vmul.f32 -1.442695, %v87_v30  ;;  %v121_v43 = vadd.f32 %v119_v31, %v103_v22  ;;  %s5086_s5 = sld [smem:[#allocation2 + $0x18]]  ;;  %s5097_s6 = sld [smem:[#allocation2 + $0x19]] }
  0x21   :  { %4553 = vpow2.f32 %v4124_v35  ;;  %v4128_v44 = vmul.f32 -1.442695, %v104_v36  ;;  %v136_v45 = vadd.f32 %v134_v32, %v103_v22  ;;  %v4129_v46 = vmul.f32 -1.442695, %v105_v38  ;;  %s5099_s7 = sld [smem:[#allocation2 + $0x1a]]  ;;  %s5110_s8 = sld [smem:[#allocation2 + $0x1b]] }
  0x22   :  { %4555 = vpow2.f32 %v4125_v37  ;;  %v137_v47 = vadd.f32 %v135_v39, %v103_v22  ;;  %v4130_v48 = vmul.f32 -1.442695, %v120_v41  ;;  %v4131_v49 = vmul.f32 -1.442695, %v121_v43  ;;  %s5112_s9 = sld [smem:[#allocation2 + $0x1c]]  ;;  %s5123_s10 = sld [smem:[#allocation2 + $0x1d]] }
  0x23   :  { %4557 = vpow2.f32 %v4126_v40  ;;  %v4132_v50 = vmul.f32 -1.442695, %v136_v45  ;;  %v5089_v52 = vstv %s5043_s14  ;;  %v5092_v53 = vstv %s5045_s15  ;;  %s5125_s11 = sld [smem:[#allocation2 + $0x1e]]  ;;  %s5130_s12 = sld [smem:[#allocation2 + $0x1f]] }
  0x24   :  { %4559 = vpow2.f32 %v4127_v42  ;;  %v4133_v51 = vmul.f32 -1.442695, %v137_v47  ;;  %v5095_v54 = vstv %s5047_s16  ;;  %v5102_v55 = vstv %s5051_s17  ;;  %s5132_s13 = sld [smem:[#allocation2 + $0x20]]  ;;  %s5137_s14 = sld [smem:[#allocation2 + $0x21]] }
  0x25   :  { %4561 = vpow2.f32 %v4128_v44  ;;  %v5105_v56 = vstv %s5062_s21  ;;  %v5108_v57 = vstv %s5053_s18  ;;  %v5115_v59 = vstv %s5056_s0  ;;  %s5139_s15 = sld [smem:[#allocation2 + $0x22]]  ;;  %s5150_s16 = sld [smem:[#allocation2 + $0x23]] }
  0x26   :  { %4563 = vpow2.f32 %v4129_v46  ;;  %v5118_v60 = vstv %s5058_s19  ;;  %v5121_v61 = vstv %s5060_s20  ;;  %v5128_v7 = vstv %s5064_s22  ;;  %s5152_s17 = sld [smem:[#allocation2 + $0x24]]  ;;  %s5156_s18 = sld [smem:[#allocation2 + $0x25]] }
  0x27   :  { %4565 = vpow2.f32 %v4130_v48  ;;  %v5135_v10 = vstv %s5066_s23  ;;  %v5142_v13 = vstv %s5070_s25  ;;  %v5145_v14 = vstv %s5068_s24  ;;  %s5158_s0 = sld [smem:[#allocation2 + $0x26]]  ;;  %s5162_s19 = sld [smem:[#allocation2 + $0x27]] }
  0x28   :  { %4567 = vpow2.f32 %v4131_v49  ;;  %8850 = sst [smem:[#allocation6_spill]] %s5112_s9  ;;  %v5148_v15 = vstv %s5072_s26  ;;  %s5286_s21 = sld [smem:[#allocation2 + $0x2a]] }
  0x29   :  { %v4550_v58 = vpop.eup %4549  ;;  %4569 = vpow2.f32 %v4132_v50  ;;  %8851 = sst [smem:[#allocation7_spill]] %s5123_s10  ;;  %s5164_s20 = sld [smem:[#allocation2 + $0x28]] }
  0x2a   :  { %v4552_v62 = vpop.eup %4551  ;;  %v62_v63 = vadd.f32 1.0, %v4550_v58  ;;  %4571 = vpow2.f32 %v4133_v51  ;;  %s5311_s22 = sld [smem:[#allocation2 + $0x3a]]  ;;  %s5318_s23 = sld [smem:[#allocation2 + $0x3c]] }
  0x2b   :  { %v4554_v11 = vpop.eup %4553  ;;  %v63_v12 = vadd.f32 1.0, %v4552_v62  ;;  %s5327_s24 = sld [smem:[#allocation2 + $0x29]]  ;;  %s5329_s25 = sld [smem:[#allocation2 + $0x2b]] }
  0x2c   :  { %v4556_v16 = vpop.eup %4555  ;;  %4573 = vrcp.f32 %v62_v63  ;;  %v78_v19 = vadd.f32 1.0, %v4554_v11  ;;  %s5344_s26 = sld [smem:[#allocation2 + $0x2c]]  ;;  %s5358_s2 = sld [smem:[#allocation2 + $0x2d]] }
  0x2d   :  { %v4558_v22 = vpop.eup %4557  ;;  %4575 = vrcp.f32 %v63_v12  ;;  %v79_v23 = vadd.f32 1.0, %v4556_v16  ;;  %s5360_s1 = sld [smem:[#allocation2 + $0x2f]]  ;;  %s5385_s9 = sld [smem:[#allocation2 + $0x33]] }
  0x2e   :  { %v4560_v27 = vpop.eup %4559  ;;  %4577 = vrcp.f32 %v78_v19  ;;  %v94_v28 = vadd.f32 1.0, %v4558_v22  ;;  %8854 = sst [smem:[#allocation9_spill]] %s5286_s21  ;;  %s5392_s10 = sld [smem:[#allocation2 + $0x35]] }
  0x2f   :  { %8852 = sst [smem:[#allocation8_spill]] %s5164_s20  ;;  %v4562_v31 = vpop.eup %4561  ;;  %4579 = vrcp.f32 %v79_v23  ;;  %v95_v32 = vadd.f32 1.0, %v4560_v27  ;;  %s5377_s20 = sld [smem:[#allocation2 + $0x34]] }
  0x30   :  { %v4564_v35 = vpop.eup %4563  ;;  %4581 = vrcp.f32 %v94_v28  ;;  %v112_v36 = vadd.f32 1.0, %v4562_v31 }
  0x31   :  { %v4566_v39 = vpop.eup %4565  ;;  %4583 = vrcp.f32 %v95_v32  ;;  %v113_v40 = vadd.f32 1.0, %v4564_v35  ;;  %8855 = sst [smem:[#allocation10_spill]] %s5327_s24 }
  0x32   :  { %v4568_v43 = vpop.eup %4567  ;;  %4585 = vrcp.f32 %v112_v36  ;;  %v128_v44 = vadd.f32 1.0, %v4566_v39  ;;  %8856 = sst [smem:[#allocation11_spill]] %s5329_s25 }
  0x33   :  { %v4570_v47 = vpop.eup %4569  ;;  %4587 = vrcp.f32 %v113_v40  ;;  %v129_v48 = vadd.f32 1.0, %v4568_v43 }
  0x34   :  { %v4572_v51 = vpop.eup %4571  ;;  %4589 = vrcp.f32 %v128_v44  ;;  %v144_v58 = vadd.f32 1.0, %v4570_v47 }
  0x35   :  { %4591 = vrcp.f32 %v129_v48  ;;  %v145_v11 = vadd.f32 1.0, %v4572_v51 }
  0x36   :  { %v4574_v19 = vpop.eup %4573  ;;  %4593 = vrcp.f32 %v144_v58 }
  0x37   :  { %v4576_v28 = vpop.eup %4575  ;;  %4595 = vrcp.f32 %v145_v11  ;;  %v151_v31 = vmul.f32 %v4574_v19, %v5089_v52  ;;  %v154_v32 = vmul.f32 %v4574_v19, %v5092_v53  ;;  %v5188_v35 = vmul.f32 %v4574_v19, %v5108_v57 }
  0x38   :  { %v5190_v36 = vpop.eup %4577  ;;  %v152_v39 = vmul.f32 %v4576_v28, %v5089_v52  ;;  %v155_v40 = vmul.f32 %v4576_v28, %v5092_v53  ;;  %v5195_v43 = vmul.f32 %v4576_v28, %v5108_v57  ;;  %v5198_v44 = vmul.f32 %v4574_v19, %v5115_v59 }
  0x39   :  { %v5200_v47 = vpop.eup %4579  ;;  %v159_v48 = vrot.slane %v154_v32, 1  ;;  %v198_v51 = vmul.f32 %v5190_v36, %v5089_v52  ;;  %v200_v58 = vmul.f32 %v5190_v36, %v5092_v53  ;;  %v5207_v11 = vmul.f32 %v4576_v28, %v5115_v59 }
  0x3a   :  { %v5209_v27 = vpop.eup %4581  ;;  %v160_v41 = vrot.slane %v155_v40, 1  ;;  %v199_v42 = vmul.f32 %v5200_v47, %v5089_v52  ;;  %v201_v19 = vmul.f32 %v5200_v47, %v5092_v53 }
  0x3b   :  { %v5216_v23 = vpop.eup %4583  ;;  %v204_v22 = vrot.slane %v200_v58, 1  ;;  %v240_v38 = vmul.f32 %v5209_v27, %v5089_v52  ;;  %v242_v28 = vmul.f32 %v5209_v27, %v5092_v53  ;;  %v291_v37 = vrot.slane %v5207_v11, 1 }
  0x3c   :  { %v5223_v40 = vpop.eup %4585  ;;  %v161_v16 = vsel %vm158_vm0, %v159_v48, %v160_v41  ;;  %v165_v12 = vadd.f32 %v160_v41, %v152_v39  ;;  %v205_v34 = vrot.slane %v201_v19, 1  ;;  %v241_v33 = vmul.f32 %v5216_v23, %v5089_v52 }
  0x3d   :  { %v5228_v62 = vpop.eup %4587  ;;  %v164_v58 = vadd.f32 %v161_v16, %v151_v31  ;;  %v167_v63 = vmul.f32 %v5223_v40, %v5095_v54  ;;  %v172_v50 = vmul.f32 %v5223_v40, %v5102_v55  ;;  %v243_v11 = vmul.f32 %v5216_v23, %v5092_v53 }
  0x3e   :  { %v5236_v29 = vpop.eup %4589  ;;  %v168_v41 = vmul.f32 %v5228_v62, %v5095_v54  ;;  %v173_v52 = vmul.f32 %v5228_v62, %v5102_v55  ;;  %v206_v39 = vsel %vm158_vm0, %v204_v22, %v205_v34  ;;  %v210_v16 = vadd.f32 %v205_v34, %v199_v42 }
  0x3f   :  { %v5243_v31 = vpop.eup %4591  ;;  %v169_v48 = vadd.f32 %v167_v63, %v164_v58  ;;  %v176_v19 = vrot.slane %v172_v50, 1  ;;  %v209_v30 = vadd.f32 %v206_v39, %v198_v51  ;;  %v211_v49 = vmul.f32 %v5236_v29, %v5095_v54 }
  0x40   :  { %v5247_v53 = vpop.eup %4593  ;;  %v170_v26 = vadd.f32 %v168_v41, %v165_v12  ;;  %v177_v25 = vrot.slane %v173_v52, 1  ;;  %v212_v46 = vmul.f32 %v5243_v31, %v5095_v54  ;;  %v215_v45 = vmul.f32 %v5236_v29, %v5102_v55 }
  0x41   :  { %v5253_v22 = vpop.eup %4595  ;;  %v213_v34 = vadd.f32 %v211_v49, %v209_v30  ;;  %v216_v42 = vmul.f32 %v5243_v31, %v5102_v55  ;;  %v246_v50 = vrot.slane %v242_v28, 1  ;;  %v247_v63 = vrot.slane %v243_v11, 1 }
  0x42   :  { %v178_v51 = vsel %vm158_vm0, %v176_v19, %v177_v25  ;;  %v182_v58 = vadd.f32 %v177_v25, %v170_v26  ;;  %v214_v39 = vadd.f32 %v212_v46, %v210_v16  ;;  %v219_v12 = vrot.slane %v215_v45, 1 }
  0x43   :  { %v181_v41 = vadd.f32 %v178_v51, %v169_v48  ;;  %v220_v52 = vrot.slane %v216_v42, 1  ;;  %v248_v21 = vsel %vm158_vm0, %v246_v50, %v247_v63  ;;  %v252_v20 = vadd.f32 %v247_v63, %v241_v33 }
  0x44   :  { %v185_v32 = vadd.f32 %v5105_v56, %v182_v58  ;;  %v251_v24 = vadd.f32 %v248_v21, %v240_v38  ;;  %v253_v30 = vmul.f32 %v5247_v53, %v5095_v54  ;;  %v254_v49 = vmul.f32 %v5253_v22, %v5095_v54 }
  0x45   :  { %v184_v28 = vadd.f32 %v5105_v56, %v181_v41  ;;  %v221_v25 = vsel %vm158_vm0, %v219_v12, %v220_v52  ;;  %v225_v26 = vadd.f32 %v220_v52, %v214_v39  ;;  %v257_v45 = vmul.f32 %v5247_v53, %v5102_v55 }
  0x46   :  { %v4135_v46 = vmul.f32 -1.442695, %v185_v32  ;;  %v224_v11 = vadd.f32 %v221_v25, %v213_v34  ;;  %v255_v33 = vadd.f32 %v253_v30, %v251_v24  ;;  %v256_v16 = vadd.f32 %v254_v49, %v252_v20 }
  0x47   :  { %v4134_v48 = vmul.f32 -1.442695, %v184_v28  ;;  %v227_v21 = vadd.f32 %v225_v26, %v5105_v56  ;;  %v258_v38 = vmul.f32 %v5253_v22, %v5102_v55  ;;  %v261_v19 = vrot.slane %v257_v45, 1 }
  0x48   :  { %4597 = vpow2.f32 %v4135_v46  ;;  %v226_v54 = vadd.f32 %v224_v11, %v5105_v56  ;;  %v8853_v42 = vrot.slane %v5198_v44, 1  ;;  %v296_v63 = vadd.f32 %v291_v37, %v5195_v43 }
  0x49   :  { %4599 = vpow2.f32 %v4134_v48  ;;  %v4137_v32 = vmul.f32 -1.442695, %v227_v21  ;;  %v262_v24 = vrot.slane %v258_v38, 1  ;;  %v298_v51 = vmul.f32 %v5223_v40, %v5118_v60 }
  0x4a   :  { %v292_v50 = vsel %vm158_vm0, %v8853_v42, %v291_v37  ;;  %v4136_v34 = vmul.f32 -1.442695, %v226_v54  ;;  %v299_v55 = vmul.f32 %v5228_v62, %v5118_v60  ;;  %v303_v58 = vmul.f32 %v5223_v40, %v5121_v61 }
  0x4b   :  { %v295_v20 = vadd.f32 %v292_v50, %v5188_v35  ;;  %4601 = vpow2.f32 %v4137_v32  ;;  %v263_v44 = vsel %vm158_vm0, %v261_v19, %v262_v24  ;;  %v267_v39 = vadd.f32 %v262_v24, %v256_v16 }
  0x4c   :  { %v304_v37 = vmul.f32 %v5228_v62, %v5121_v61  ;;  %4603 = vpow2.f32 %v4136_v34  ;;  %v266_v35 = vadd.f32 %v263_v44, %v255_v33  ;;  %v301_v12 = vadd.f32 %v299_v55, %v296_v63 }
  0x4d   :  { %v300_v43 = vadd.f32 %v298_v51, %v295_v20  ;;  %v269_v41 = vadd.f32 %v267_v39, %v5105_v56  ;;  %v307_v52 = vrot.slane %v303_v58, 1  ;;  %v329_v40 = vmul.f32 %v5190_v36, %v5108_v57 }
  0x4e   :  { %v308_v30 = vrot.slane %v304_v37, 1  ;;  %v268_v49 = vadd.f32 %v266_v35, %v5105_v56  ;;  %v330_v28 = vmul.f32 %v5200_v47, %v5108_v57  ;;  %v331_v62 = vmul.f32 %v5190_v36, %v5115_v59 }
  0x4f   :  { %v332_v25 = vmul.f32 %v5200_v47, %v5115_v59  ;;  %v4139_v26 = vmul.f32 -1.442695, %v269_v41  ;;  %v342_v11 = vmul.f32 %v5236_v29, %v5118_v60  ;;  %v343_v36 = vmul.f32 %v5243_v31, %v5118_v60 }
  0x50   :  { %v309_v45 = vsel %vm158_vm0, %v307_v52, %v308_v30  ;;  %v313_v46 = vadd.f32 %v308_v30, %v301_v12  ;;  %v4138_v33 = vmul.f32 -1.442695, %v268_v49  ;;  %v335_v56 = vrot.slane %v331_v62, 1 }
  0x51   :  { %v312_v16 = vadd.f32 %v309_v45, %v300_v43  ;;  %v336_v48 = vrot.slane %v332_v25, 1  ;;  %4605 = vpow2.f32 %v4139_v26  ;;  %v346_v47 = vmul.f32 %v5236_v29, %v5121_v61 }
  0x52   :  { %v316_v21 = vadd.f32 %v5128_v7, %v313_v46  ;;  %v4598_v38 = vpop.eup %4597  ;;  %4607 = vpow2.f32 %v4138_v33  ;;  %v347_v24 = vmul.f32 %v5243_v31, %v5121_v61  ;;  %v620_v20 = vstv %s5286_s21  ;;  %s5375_s21 = sld [smem:[#allocation2 + $0x32]] }
  0x53   :  { %v315_v19 = vadd.f32 %v5128_v7, %v312_v16  ;;  %v337_v54 = vsel %vm158_vm0, %v335_v56, %v336_v48  ;;  %v341_v42 = vadd.f32 %v336_v48, %v330_v28  ;;  %v4600_v50 = vpop.eup %4599  ;;  %v193_v63 = vadd.f32 1.0, %v4598_v38 }
  0x54   :  { %v340_v32 = vadd.f32 %v337_v54, %v329_v40  ;;  %v192_v34 = vadd.f32 1.0, %v4600_v50  ;;  %v350_v29 = vrot.slane %v346_v47, 1  ;;  %v4141_v44 = vmul.f32 -1.442695, %v316_v21 }
  0x55   :  { %v4140_v51 = vmul.f32 -1.442695, %v315_v19  ;;  %v345_v55 = vadd.f32 %v343_v36, %v341_v42  ;;  %v4602_v58 = vpop.eup %4601  ;;  %4609 = vrcp.f32 %v193_v63  ;;  %v351_v37 = vrot.slane %v347_v24, 1 }
  0x56   :  { %v344_v39 = vadd.f32 %v342_v11, %v340_v32  ;;  %v4604_v35 = vpop.eup %4603  ;;  %4611 = vrcp.f32 %v192_v34  ;;  %v235_v43 = vadd.f32 1.0, %v4602_v58  ;;  %v372_v12 = vmul.f32 %v5216_v23, %v5108_v57 }
  0x57   :  { %v373_v31 = vmul.f32 %v5209_v27, %v5115_v59  ;;  %v234_v41 = vadd.f32 1.0, %v4604_v35  ;;  %4613 = vpow2.f32 %v4140_v51  ;;  %v352_v52 = vsel %vm158_vm0, %v350_v29, %v351_v37 }
  0x58   :  { %v356_v30 = vadd.f32 %v351_v37, %v345_v55  ;;  %4615 = vrcp.f32 %v235_v43  ;;  %v355_v40 = vadd.f32 %v352_v52, %v344_v39  ;;  %v374_v49 = vmul.f32 %v5216_v23, %v5115_v59 }
  0x59   :  { %v377_v28 = vrot.slane %v373_v31, 1  ;;  %4617 = vrcp.f32 %v234_v41  ;;  %v371_v25 = vmul.f32 %v5209_v27, %v5108_v57  ;;  %v385_v26 = vmul.f32 %v5253_v22, %v5118_v60 }
  0x5a   :  { %v358_v62 = vadd.f32 %v356_v30, %v5128_v7  ;;  %4619 = vpow2.f32 %v4141_v44  ;;  %v357_v45 = vadd.f32 %v355_v40, %v5128_v7  ;;  %v378_v46 = vrot.slane %v374_v49, 1 }
  0x5b   :  { %v388_v59 = vmul.f32 %v5247_v53, %v5121_v61  ;;  %v4606_v23 = vpop.eup %4605  ;;  %v384_v33 = vmul.f32 %v5247_v53, %v5118_v60  ;;  %v389_v57 = vmul.f32 %v5253_v22, %v5121_v61  ;;  %v5339_v27 = vstv %s5311_s22  ;;  %s5353_s22 = sld [smem:[#allocation2 + $0x2e]] }
  0x5c   :  { %v4143_v11 = vmul.f32 -1.442695, %v358_v62  ;;  %v4608_v16 = vpop.eup %4607  ;;  %v277_v56 = vadd.f32 1.0, %v4606_v23  ;;  %v4142_v48 = vmul.f32 -1.442695, %v357_v45  ;;  %v379_v21 = vsel %vm158_vm0, %v377_v28, %v378_v46 }
  0x5d   :  { %v383_v36 = vadd.f32 %v378_v46, %v372_v12  ;;  %v276_v47 = vadd.f32 1.0, %v4608_v16  ;;  %v382_v38 = vadd.f32 %v379_v21, %v371_v25  ;;  %v392_v19 = vrot.slane %v388_v59, 1 }
  0x5e   :  { %4621 = vpow2.f32 %v4143_v11  ;;  %v393_v42 = vrot.slane %v389_v57, 1  ;;  %v812_v60 = vmul.f32 %v5339_v27, %v4977_v0  ;;  %v813_v22 = vmul.f32 %v5339_v27, %v4982_v1 }
  0x5f   :  { %4623 = vrcp.f32 %v277_v56  ;;  %v387_v54 = vadd.f32 %v385_v26, %v383_v36  ;;  %v4610_v61 = vpop.eup %4609  ;;  %v386_v53 = vadd.f32 %v384_v33, %v382_v38  ;;  %v5349_v50 = vstv %s5318_s23  ;;  %s5363_s23 = sld [smem:[#allocation2 + $0x30]] }
  0x60   :  { %4625 = vrcp.f32 %v276_v47  ;;  %v4612_v63 = vpop.eup %4611  ;;  %v394_v32 = vsel %vm158_vm0, %v392_v19, %v393_v42  ;;  %v445_v34 = vmul.f32 %v4610_v61, %v5135_v10  ;;  %v695_v29 = vstv %s5327_s24  ;;  %s5388_s24 = sld [smem:[#allocation2 + $0x3b]] }
  0x61   :  { %4627 = vpow2.f32 %v4142_v48  ;;  %v398_v24 = vadd.f32 %v393_v42, %v387_v54  ;;  %8857 = sst [smem:[#allocation12_spill]] %s5353_s22  ;;  %v4614_v0 = vpop.eup %4613  ;;  %v397_v51 = vadd.f32 %v394_v32, %v386_v53  ;;  %v444_v55 = vmul.f32 %v4612_v63, %v5135_v10 }
  0x62   :  { %v705_v58 = vstv %s5329_s25  ;;  %v4616_v1 = vpop.eup %4615  ;;  %v323_v44 = vadd.f32 1.0, %v4614_v0  ;;  %v815_v37 = vadd.f32 %v5349_v50, %v812_v60  ;;  %v829_v35 = vmul.f32 %v5339_v27, %v4987_v2  ;;  %s5372_s25 = sld [smem:[#allocation2 + $0x31]] }
  0x63   :  { %v400_v39 = vadd.f32 %v398_v24, %v5128_v7  ;;  %v4618_v43 = vpop.eup %4617  ;;  %v399_v12 = vadd.f32 %v397_v51, %v5128_v7  ;;  %v447_v31 = vadd.f32 %v5142_v13, %v444_v55  ;;  %v448_v41 = vadd.f32 %v5142_v13, %v445_v34 }
  0x64   :  { %v462_v52 = vmul.f32 %v4616_v1, %v5135_v10  ;;  %v4620_v30 = vpop.eup %4619  ;;  %4629 = vrcp.f32 %v323_v44  ;;  %v461_v49 = vmul.f32 %v4618_v43, %v5135_v10  ;;  %v816_v2 = vadd.f32 %v5349_v50, %v813_v22 }
  0x65   :  { %v4145_v40 = vmul.f32 -1.442695, %v400_v39  ;;  %v324_v7 = vadd.f32 1.0, %v4620_v30  ;;  %v4144_v28 = vmul.f32 -1.442695, %v399_v12  ;;  %v830_v25 = vmul.f32 %v5339_v27, %v4992_v3 }
  0x66   :  { %v4176_v62 = vmul.f32 -1.442695, %v447_v31  ;;  %v463_v26 = vadd.f32 %v461_v49, %v5142_v13  ;;  %v464_v45 = vadd.f32 %v462_v52, %v5142_v13  ;;  %v831_v46 = vadd.f32 %v829_v35, %v5349_v50 }
  0x67   :  { %4631 = vpow2.f32 %v4145_v40  ;;  %v4177_v23 = vmul.f32 -1.442695, %v448_v41  ;;  %v727_v11 = vstv %s5344_s26  ;;  %v845_v3 = vmul.f32 %v5339_v27, %v4997_v4  ;;  %s5716_s26 = sld [smem:[#allocation2 + $0x55]] }
  0x68   :  { %v4622_v59 = vpop.eup %4621  ;;  %4633 = vrcp.f32 %v324_v7  ;;  %v4178_v16 = vmul.f32 -1.442695, %v463_v26  ;;  %v729_v56 = vstv %s5353_s22  ;;  %v737_v36 = vstv %s5358_s2  ;;  %s5404_s22 = sld [smem:[#allocation2 + $0x3d]]  ;;  %s5725_s2 = sld [smem:[#allocation2 + $0x64]] }
  0x69   :  { %v4624_v33 = vpop.eup %4623  ;;  %v366_v57 = vadd.f32 1.0, %v4622_v59  ;;  %4635 = vpow2.f32 %v4144_v28  ;;  %v739_v47 = vstv %s5360_s1  ;;  %v4179_v4 = vmul.f32 -1.442695, %v464_v45  ;;  %s5741_s1 = sld [smem:[#allocation2 + $0x59]] }
  0x6a   :  { %v4626_v48 = vpop.eup %4625  ;;  %4637 = vpow2.f32 %v4176_v62  ;;  %v478_v21 = vmul.f32 %v4624_v33, %v5135_v10  ;;  %v747_v54 = vstv %s5363_s23  ;;  %v749_v61 = vstv %s5372_s25  ;;  %s5907_s25 = sld [smem:[#allocation2 + $0x73]]  ;;  %s6147_s23 = sld [smem:[#allocation2 + $0x79]] }
  0x6b   :  { %v4628_v38 = vpop.eup %4627  ;;  %4639 = vrcp.f32 %v366_v57  ;;  %v477_v19 = vmul.f32 %v4626_v48, %v5135_v10  ;;  %v772_v22 = vstv %s5377_s20  ;;  %v832_v63 = vadd.f32 %v830_v25, %v5349_v50  ;;  %s5887_s20 = sld [smem:[#allocation2 + $0x6d]] }
  0x6c   :  { %v365_v42 = vadd.f32 1.0, %v4628_v38  ;;  %4641 = vpow2.f32 %v4177_v23  ;;  %v480_v60 = vadd.f32 %v478_v21, %v5142_v13  ;;  %v755_v10 = vstv %s5375_s21  ;;  %s5889_s21 = sld [smem:[#allocation2 + $0x6f]] }
  0x6d   :  { %4643 = vpow2.f32 %v4178_v16  ;;  %v479_v53 = vadd.f32 %v477_v19, %v5142_v13  ;;  %v4222_v24 = vmul.f32 -1.442695, %v815_v37  ;;  %v4223_v51 = vmul.f32 -1.442695, %v816_v2  ;;  %8908 = sst [smem:[#allocation14_spill]] %s5716_s26 }
  0x6e   :  { %4645 = vrcp.f32 %v365_v42  ;;  %v4181_v32 = vmul.f32 -1.442695, %v480_v60  ;;  %v4630_v34 = vpop.eup %4629  ;;  %v846_v55 = vmul.f32 %v5339_v27, %v5002_v5  ;;  %v758_v1 = vstv %s5385_s9  ;;  %s5884_s9 = sld [smem:[#allocation2 + $0x6b]] }
  0x6f   :  { %4647 = vpow2.f32 %v4179_v4  ;;  %v4180_v0 = vmul.f32 -1.442695, %v479_v53  ;;  %v494_v13 = vmul.f32 %v4630_v34, %v5145_v14  ;;  %v861_v44 = vstv %s5388_s24  ;;  %s5430_s24 = sld [smem:[#allocation2 + $0x3e]]  ;;  %v8858_v34 = vld [vmem:[#allocation5_spill] sm:$0xff] }
  0x70   :  { %4649 = vpow2.f32 %v4181_v32  ;;  %v774_v35 = vstv %s5392_s10  ;;  %v4224_v43 = vmul.f32 -1.442695, %v831_v46  ;;  %v5414_v12 = vmul.f32 -1.442695, %v832_v63  ;;  %s5881_s10 = sld [smem:[#allocation2 + $0x6a]] }
  0x71   :  { %v4632_v39 = vpop.eup %4631  ;;  %4651 = vpow2.f32 %v4180_v0  ;;  %v497_v41 = vadd.f32 %v5148_v15, %v494_v13  ;;  %v847_v52 = vadd.f32 %v845_v3, %v5349_v50  ;;  %v848_v30 = vadd.f32 %v846_v55, %v5349_v50 }
  0x72   :  { %v4634_v31 = vpop.eup %4633  ;;  %v408_v37 = vadd.f32 1.0, %v4632_v39  ;;  %4653 = vpow2.f32 %v4222_v24  ;;  %v862_v40 = vmul.f32 %v861_v44, %v5007_v6  ;;  %v863_v28 = vmul.f32 %v861_v44, %v5012_v8 }
  0x73   :  { %v4636_v5 = vpop.eup %4635  ;;  %v495_v27 = vmul.f32 %v4634_v31, %v5145_v14  ;;  %4655 = vpow2.f32 %v4223_v51  ;;  %v4182_v7 = vmul.f32 -1.442695, %v497_v41  ;;  %v864_v45 = vstv %s5404_s22  ;;  %s5674_s22 = sld [smem:[#allocation2 + $0x48]] }
  0x74   :  { %v4638_v49 = vpop.eup %4637  ;;  %v407_v2 = vadd.f32 1.0, %v4636_v5  ;;  %4657 = vrcp.f32 %v408_v37  ;;  %v879_v50 = vmul.f32 %v861_v44, %v5017_v9  ;;  %v880_v6 = vmul.f32 %v861_v44, %v5028_v17 }
  0x75   :  { %v4640_v62 = vpop.eup %4639  ;;  %v455_v25 = vadd.f32 1.0, %v4638_v49  ;;  %v498_v26 = vadd.f32 %v5148_v15, %v495_v27  ;;  %4659 = vpow2.f32 %v4224_v43  ;;  %v5427_v57 = vmul.f32 -1.442695, %v847_v52 }
  0x76   :  { %v4642_v46 = vpop.eup %4641  ;;  %4661 = vrcp.f32 %v407_v2  ;;  %v512_v59 = vmul.f32 %v4640_v62, %v5145_v14  ;;  %v895_v21 = vmul.f32 %v861_v44, %v5033_v18  ;;  %v865_v17 = vadd.f32 %v864_v45, %v862_v40 }
  0x77   :  { %v4644_v23 = vpop.eup %4643  ;;  %v456_v3 = vadd.f32 1.0, %v4642_v46  ;;  %4663 = vrcp.f32 %v455_v25  ;;  %v4183_v33 = vmul.f32 -1.442695, %v498_v26  ;;  %v866_v4 = vadd.f32 %v864_v45, %v863_v28 }
  0x78   :  { %v4646_v8 = vpop.eup %4645  ;;  %v471_v16 = vadd.f32 1.0, %v4644_v23  ;;  %4665 = vpow2.f32 %v4182_v7  ;;  %v514_v48 = vadd.f32 %v512_v59, %v5148_v15  ;;  %v881_v60 = vadd.f32 %v879_v50, %v864_v45 }
  0x79   :  { %v4648_v38 = vpop.eup %4647  ;;  %4667 = vrcp.f32 %v456_v3  ;;  %v511_v9 = vmul.f32 %v4646_v8, %v5145_v14  ;;  %v882_v53 = vadd.f32 %v880_v6, %v864_v45  ;;  %v896_v0 = vmul.f32 %v861_v44, %v8858_v34 }
  0x7a   :  { %v4650_v19 = vpop.eup %4649  ;;  %v472_v42 = vadd.f32 1.0, %v4648_v38  ;;  %4669 = vrcp.f32 %v471_v16  ;;  %v4185_v55 = vmul.f32 -1.442695, %v514_v48  ;;  %v897_v13 = vadd.f32 %v895_v21, %v864_v45 }
  0x7b   :  { %v4652_v63 = vpop.eup %4651  ;;  %v488_v32 = vadd.f32 1.0, %v4650_v19  ;;  %4671 = vpow2.f32 %v4183_v33  ;;  %v513_v24 = vadd.f32 %v511_v9, %v5148_v15  ;;  %v5436_v37 = vmul.f32 -1.442695, %v848_v30 }
  0x7c   :  { %v4654_v51 = vpop.eup %4653  ;;  %4673 = vrcp.f32 %v472_v42  ;;  %v487_v18 = vadd.f32 1.0, %v4652_v63  ;;  %v5438_v52 = vmul.f32 -1.442695, %v865_v17  ;;  %v5440_v5 = vmul.f32 -1.442695, %v866_v4 }
  0x7d   :  { %v4656_v39 = vpop.eup %4655  ;;  %4675 = vrcp.f32 %v488_v32  ;;  %v4184_v43 = vmul.f32 -1.442695, %v513_v24  ;;  %v823_v31 = vadd.f32 1.0, %v4654_v51  ;;  %v5442_v27 = vmul.f32 -1.442695, %v881_v60 }
  0x7e   :  { %v4658_v41 = vpop.eup %4657  ;;  %4677 = vrcp.f32 %v487_v18  ;;  %v824_v49 = vadd.f32 1.0, %v4656_v39  ;;  %v5445_v2 = vmul.f32 -1.442695, %v882_v53  ;;  %v5447_v7 = vadd.f32 %v896_v0, %v864_v45 }
  0x7f   :  { %v4660_v44 = vpop.eup %4659  ;;  %4679 = vpow2.f32 %v4184_v43  ;;  %v528_v40 = vmul.f32 %v4658_v41, %v5145_v14  ;;  %v5449_v28 = vmul.f32 -1.442695, %v897_v13  ;;  %v5452_v62 = vstv %s5430_s24  ;;  %s5676_s24 = sld [smem:[#allocation2 + $0x4a]] }
  0x80   :  { %v4662_v30 = vpop.eup %4661  ;;  %4681 = vpow2.f32 %v4185_v55  ;;  %v5456_v59 = vadd.f32 1.0, %v4660_v44  ;;  %v8859_v6 = vstv %s5074_s27  ;;  %v8860_v3 = vstv %s5076_s28  ;;  %s5471_s27 = sld [smem:[#allocation2 + $0x3f]]  ;;  %s5502_s28 = sld [smem:[#allocation2 + $0x40]] }
  0x81   :  { %v4664_v25 = vpop.eup %4663  ;;  %v527_v26 = vmul.f32 %v4662_v30, %v5145_v14  ;;  %v530_v46 = vadd.f32 %v528_v40, %v5148_v15  ;;  %4683 = vrcp.f32 %v823_v31  ;;  %v8861_v33 = vstv %s5125_s11  ;;  %s5590_s11 = sld [smem:[#allocation2 + $0x44]] }
  0x82   :  { %v4666_v50 = vpop.eup %4665  ;;  %v544_v23 = vmul.f32 %v4664_v25, %v8859_v6  ;;  %v546_v45 = vmul.f32 %v4664_v25, %v8860_v3  ;;  %v629_v8 = vmul.f32 %v4664_v25, %v8861_v33  ;;  %v8862_v16 = vstv %s5130_s12  ;;  %s5710_s12 = sld [smem:[#allocation2 + $0x54]] }
  0x83   :  { %v631_v48 = vmul.f32 %v4664_v25, %v8862_v16  ;;  %v4668_v21 = vpop.eup %4667  ;;  %v505_v38 = vadd.f32 1.0, %v4666_v50  ;;  %v529_v14 = vadd.f32 %v527_v26, %v5148_v15  ;;  %v4187_v9 = vmul.f32 -1.442695, %v530_v46 }
  0x84   :  { %4685 = vrcp.f32 %v824_v49  ;;  %v4670_v17 = vpop.eup %4669  ;;  %v8863_v4 = vmov %v8860_v3  ;;  %v550_v42 = vrot.slane %v546_v45, 1  ;;  %v8864_v60 = vmov %v8862_v16 }
  0x85   :  { %v547_v19 = vmul.f32 %v4668_v21, %v8863_v4  ;;  %v632_v53 = vmul.f32 %v4668_v21, %v8864_v60  ;;  %v635_v63 = vrot.slane %v631_v48, 1  ;;  %v4672_v32 = vpop.eup %4671  ;;  %4687 = vrcp.f32 %v505_v38 }
  0x86   :  { %v4186_v24 = vmul.f32 -1.442695, %v529_v14  ;;  %v8865_v34 = vstv %s5078_s29  ;;  %v8866_v15 = vstv %s5080_s30  ;;  %v4674_v18 = vpop.eup %4673  ;;  %v506_v55 = vadd.f32 1.0, %v4672_v32  ;;  %s5508_s29 = sld [smem:[#allocation2 + $0x41]]  ;;  %s5510_s30 = sld [smem:[#allocation2 + $0x46]] }
  0x87   :  { %v556_v0 = vmul.f32 %v4670_v17, %v8865_v34  ;;  %v559_v51 = vmul.f32 %v4670_v17, %v8866_v15  ;;  %4689 = vpow2.f32 %v4187_v9  ;;  %v551_v13 = vrot.slane %v547_v19, 1  ;;  %v4676_v43 = vpop.eup %4675 }
  0x88   :  { %v636_v39 = vrot.slane %v632_v53, 1  ;;  %4691 = vpow2.f32 %v4186_v24  ;;  %v8867_v31 = vmov %v8866_v15  ;;  %v8868_v40 = vstv %s5132_s13  ;;  %v4678_v30 = vpop.eup %4677  ;;  %s5594_s13 = sld [smem:[#allocation2 + $0x45]]  ;;  %8907 = sst [smem:[#allocation13_spill]] %s5710_s12 }
  0x89   :  { %v560_v41 = vmul.f32 %v4674_v18, %v8867_v31  ;;  %v563_v44 = vrot.slane %v559_v51, 1  ;;  %v641_v49 = vmul.f32 %v4670_v17, %v8868_v40  ;;  %4693 = vrcp.f32 %v506_v55  ;;  %v4680_v6 = vpop.eup %4679 }
  0x8a   :  { %v552_v25 = vsel %vm158_vm0, %v550_v42, %v551_v13  ;;  %v8869_v26 = vstv %s5084_s4  ;;  %v637_v50 = vsel %vm158_vm0, %v635_v63, %v636_v39  ;;  %v8870_v33 = vstv %s5082_s3  ;;  %v4682_v38 = vpop.eup %4681  ;;  %s5533_s3 = sld [smem:[#allocation2 + $0x43]]  ;;  %s8889_s4 = sld [smem:[#allocation7_spill]] }
  0x8b   :  { %v573_v46 = vmul.f32 %v4676_v43, %v8869_v26  ;;  %v554_v3 = vadd.f32 %v552_v25, %v544_v23  ;;  %v564_v45 = vrot.slane %v560_v41, 1  ;;  %v569_v16 = vmul.f32 %v4678_v30, %v8870_v33  ;;  %v5491_v42 = vpop.eup %4683 }
  0x8c   :  { %v8871_v48 = vmov %v8869_v26  ;;  %v521_v14 = vadd.f32 1.0, %v4680_v6  ;;  %v639_v4 = vadd.f32 %v637_v50, %v629_v8  ;;  %v8872_v19 = vstv %s5137_s14  ;;  %s5723_s14 = sld [smem:[#allocation2 + $0x57]] }
  0x8d   :  { %v572_v21 = vmul.f32 %v4678_v30, %v8871_v48  ;;  %v577_v9 = vrot.slane %v573_v46, 1  ;;  %v644_v60 = vmul.f32 %v4670_v17, %v8872_v19  ;;  %v522_v53 = vadd.f32 1.0, %v4682_v38 }
  0x8e   :  { %v557_v63 = vadd.f32 %v556_v0, %v554_v3  ;;  %v565_v23 = vsel %vm158_vm0, %v563_v44, %v564_v45  ;;  %4695 = vrcp.f32 %v521_v14  ;;  %v8873_v24 = vmov %v8872_v19  ;;  %v5499_v55 = vpop.eup %4685 }
  0x8f   :  { %v576_v32 = vrot.slane %v572_v21, 1  ;;  %v645_v34 = vmul.f32 %v4674_v18, %v8873_v24  ;;  %v648_v15 = vrot.slane %v644_v60, 1  ;;  %v5497_v51 = vstv %s5471_s27  ;;  %v4688_v44 = vpop.eup %4687  ;;  %s5679_s27 = sld [smem:[#allocation2 + $0x49]] }
  0x90   :  { %4697 = vrcp.f32 %v522_v53  ;;  %v567_v8 = vadd.f32 %v565_v23, %v557_v63  ;;  %v642_v13 = vadd.f32 %v641_v49, %v639_v4  ;;  %v8874_v39 = vstv %s5150_s16  ;;  %s5656_s16 = sld [smem:[#allocation2 + $0x36]] }
  0x91   :  { %v578_v17 = vsel %vm158_vm0, %v576_v32, %v577_v9  ;;  %v649_v0 = vrot.slane %v645_v34, 1  ;;  %v657_v31 = vmul.f32 %v4678_v30, %v8874_v39  ;;  %v8875_v41 = vmov %v8874_v39  ;;  %v4690_v46 = vpop.eup %4689 }
  0x92   :  { %v658_v18 = vmul.f32 %v4676_v43, %v8875_v41  ;;  %4699 = vpow2.f32 %v5414_v12  ;;  %v570_v40 = vadd.f32 %v569_v16, %v567_v8  ;;  %v8876_v25 = vstv %s5139_s15  ;;  %v4692_v33 = vpop.eup %4691  ;;  %s5600_s15 = sld [smem:[#allocation2 + $0x47]]  ;;  %8910 = sst [smem:[#allocation16_spill]] %s5723_s14 }
  0x93   :  { %v654_v26 = vmul.f32 %v4678_v30, %v8876_v25  ;;  %4701 = vrcp.f32 %v5456_v59  ;;  %v5517_v49 = vmul.f32 -1.442695, %v5447_v7  ;;  %v8877_v50 = vstv %s5086_s5  ;;  %v4694_v59 = vpop.eup %4693  ;;  %s5696_s5 = sld [smem:[#allocation2 + $0x50]] }
  0x94   :  { %v582_v43 = vmul.f32 %v4688_v44, %v8877_v50  ;;  %v8878_v6 = vstv %s5097_s6  ;;  %v650_v45 = vsel %vm158_vm0, %v648_v15, %v649_v0  ;;  %v661_v12 = vrot.slane %v657_v31, 1  ;;  %s5563_s6 = sld [smem:[#allocation2 + $0x42]] }
  0x95   :  { %v585_v3 = vmul.f32 %v4688_v44, %v8878_v6  ;;  %v538_v16 = vadd.f32 1.0, %v4690_v46  ;;  %v580_v30 = vadd.f32 %v578_v17, %v570_v40  ;;  %v652_v48 = vadd.f32 %v650_v45, %v642_v13 }
  0x96   :  { %v662_v21 = vrot.slane %v658_v18, 1  ;;  %v537_v38 = vadd.f32 1.0, %v4692_v33  ;;  %v8879_v14 = vstv %s5152_s17  ;;  %v8880_v4 = vstv %s5156_s18  ;;  %s5660_s17 = sld [smem:[#allocation2 + $0x38]]  ;;  %s5664_s18 = sld [smem:[#allocation2 + $0x66]] }
  0x97   :  { %v589_v7 = vrot.slane %v585_v3, 1  ;;  %v667_v9 = vmul.f32 %v4688_v44, %v8879_v14  ;;  %v670_v19 = vmul.f32 %v4688_v44, %v8880_v4  ;;  %4703 = vrcp.f32 %v538_v16 }
  0x98   :  { %v583_v60 = vadd.f32 %v582_v43, %v580_v30  ;;  %v8881_v53 = vmov %v8878_v6  ;;  %v655_v23 = vadd.f32 %v654_v26, %v652_v48  ;;  %4705 = vrcp.f32 %v537_v38  ;;  %v4696_v0 = vpop.eup %4695 }
  0x99   :  { %v586_v63 = vmul.f32 %v4694_v59, %v8881_v53  ;;  %v663_v32 = vsel %vm158_vm0, %v661_v12, %v662_v21  ;;  %v8882_v24 = vmov %v8880_v4  ;;  %v674_v15 = vrot.slane %v670_v19, 1  ;;  %8903 = sst [smem:[#allocation9_spill]] %s5696_s5 }
  0x9a   :  { %v671_v34 = vmul.f32 %v4694_v59, %v8882_v24  ;;  %v665_v17 = vadd.f32 %v663_v32, %v655_v23  ;;  %4707 = vpow2.f32 %v5427_v57  ;;  %v5537_v13 = vstv %s5502_s28  ;;  %v4698_v18 = vpop.eup %4697  ;;  %s5681_s28 = sld [smem:[#allocation2 + $0x4b]] }
  0x9b   :  { %v590_v8 = vrot.slane %v586_v63, 1  ;;  %4709 = vpow2.f32 %v5436_v37  ;;  %v5541_v31 = vstv %s5508_s29  ;;  %v5544_v41 = vstv %s5510_s30  ;;  %s5685_s29 = sld [smem:[#allocation2 + $0x4c]]  ;;  %s5687_s30 = sld [smem:[#allocation2 + $0x4d]] }
  0x9c   :  { %v675_v39 = vrot.slane %v671_v34, 1  ;;  %v8883_v40 = vstv %s5099_s7  ;;  %v8884_v26 = vstv %s5110_s8  ;;  %v668_v46 = vadd.f32 %v667_v9, %v665_v17  ;;  %v4700_v50 = vpop.eup %4699  ;;  %s8891_s7 = sld [smem:[#allocation6_spill]]  ;;  %s8892_s8 = sld [smem:[#allocation8_spill]] }
  0x9d   :  { %v591_v44 = vsel %vm158_vm0, %v589_v7, %v590_v8  ;;  %v595_v25 = vmul.f32 %v4696_v0, %v8883_v40  ;;  %v598_v57 = vmul.f32 %v4696_v0, %v8884_v26  ;;  %v8885_v6 = vmov %v8884_v26  ;;  %v5556_v33 = vpop.eup %4701  ;;  %8899 = sst [smem:[#allocation7_spill]] %s5660_s17 }
  0x9e   :  { %v593_v43 = vadd.f32 %v591_v44, %v583_v60  ;;  %v599_v3 = vmul.f32 %v4698_v18, %v8885_v6  ;;  %v676_v37 = vsel %vm158_vm0, %v674_v15, %v675_v39  ;;  %v8886_v45 = vstv %s5158_s0  ;;  %s5666_s0 = sld [smem:[#allocation2 + $0x37]] }
  0x9f   :  { %v680_v12 = vmul.f32 %v4696_v0, %v8886_v45  ;;  %v602_v16 = vrot.slane %v598_v57, 1  ;;  %v678_v30 = vadd.f32 %v676_v37, %v668_v46  ;;  %v8887_v48 = vstv %s5162_s19  ;;  %s5668_s19 = sld [smem:[#allocation2 + $0x39]] }
  0xa0   :  { %v683_v21 = vmul.f32 %v4696_v0, %v8887_v48  ;;  %v8888_v59 = vmov %v8887_v48  ;;  %v596_v7 = vadd.f32 %v595_v25, %v593_v43  ;;  %v603_v14 = vrot.slane %v599_v3, 1 }
  0xa1   :  { %v684_v38 = vmul.f32 %v4698_v18, %v8888_v59  ;;  %v840_v9 = vadd.f32 1.0, %v4700_v50  ;;  %4711 = vpow2.f32 %v5438_v52  ;;  %v681_v4 = vadd.f32 %v680_v12, %v678_v30  ;;  %v4704_v23 = vpop.eup %4703 }
  0xa2   :  { %v687_v19 = vrot.slane %v683_v21, 1  ;;  %4713 = vpow2.f32 %v5440_v5  ;;  %v604_v53 = vsel %vm158_vm0, %v602_v16, %v603_v14  ;;  %v914_v63 = vmul.f32 %v5491_v42, %v5497_v51  ;;  %v4706_v34 = vpop.eup %4705 }
  0xa3   :  { %v688_v60 = vrot.slane %v684_v38, 1  ;;  %4715 = vrcp.f32 %v840_v9  ;;  %v5570_v52 = vstv %s5533_s3  ;;  %v606_v32 = vadd.f32 %v604_v53, %v596_v7  ;;  %s5692_s3 = sld [smem:[#allocation2 + $0x4e]] }
  0xa4   :  { %4717 = vpow2.f32 %v5442_v27  ;;  %v915_v5 = vmul.f32 %v5499_v55, %v5497_v51  ;;  %v8893_v15 = vstv %s8889_s4  ;;  %v697_v0 = vmul.f32 %v4704_v23, %v695_v29  ;;  %v4708_v39 = vpop.eup %4707  ;;  %s5694_s4 = sld [smem:[#allocation2 + $0x4f]] }
  0xa5   :  { %v689_v24 = vsel %vm158_vm0, %v687_v19, %v688_v60  ;;  %v612_v8 = vmul.f32 %v4704_v23, %v8893_v15  ;;  %4719 = vpow2.f32 %v5445_v2  ;;  %v8894_v18 = vstv %s8891_s7  ;;  %v4710_v46 = vpop.eup %4709  ;;  %8900 = sst [smem:[#allocation10_spill]] %s5668_s19  ;;  %s5738_s7 = sld [smem:[#allocation2 + $0x68]] }
  0xa6   :  { %v691_v17 = vadd.f32 %v689_v24, %v681_v4  ;;  %v608_v44 = vmul.f32 %v4706_v34, %v8894_v18  ;;  %v8895_v40 = vmov %v8893_v15  ;;  %v8896_v26 = vstv %s8892_s8  ;;  %s5702_s8 = sld [smem:[#allocation2 + $0x52]] }
  0xa7   :  { %v611_v25 = vmul.f32 %v4706_v34, %v8895_v40  ;;  %v693_v57 = vmul.f32 %v4706_v34, %v8896_v26  ;;  %v696_v27 = vmul.f32 %v4706_v34, %v695_v29  ;;  %v616_v50 = vrot.slane %v612_v8, 1 }
  0xa8   :  { %v701_v43 = vrot.slane %v697_v0, 1  ;;  %v855_v6 = vadd.f32 1.0, %v4708_v39  ;;  %4721 = vpow2.f32 %v5449_v28  ;;  %v609_v3 = vadd.f32 %v608_v44, %v606_v32 }
  0xa9   :  { %v615_v37 = vrot.slane %v611_v25, 1  ;;  %v694_v45 = vadd.f32 %v693_v57, %v691_v17  ;;  %v700_v2 = vrot.slane %v696_v27, 1  ;;  %v856_v12 = vadd.f32 1.0, %v4710_v46  ;;  %8901 = sst [smem:[#allocation6_spill]] %s5692_s3 }
  0xaa   :  { %4723 = vrcp.f32 %v855_v6  ;;  %v919_v16 = vrot.slane %v914_v63, 2  ;;  %v920_v30 = vrot.slane %v915_v5, 2  ;;  %v5598_v28 = vstv %s5563_s6  ;;  %8902 = sst [smem:[#allocation8_spill]] %s5694_s4  ;;  %s5698_s6 = sld [smem:[#allocation2 + $0x51]] }
  0xab   :  { %v617_v48 = vsel %vm158_vm0, %v615_v37, %v616_v50  ;;  %v702_v29 = vsel %vm158_vm0, %v700_v2, %v701_v43  ;;  %4725 = vpow2.f32 %v5517_v49  ;;  %v4712_v21 = vpop.eup %4711  ;;  %v1004_v7 = vmul.f32 %v5491_v42, %v5570_v52 }
  0xac   :  { %v619_v59 = vadd.f32 %v617_v48, %v609_v3  ;;  %v704_v38 = vadd.f32 %v702_v29, %v694_v45  ;;  %4727 = vrcp.f32 %v856_v12  ;;  %v4714_v14 = vpop.eup %4713  ;;  %v873_v9 = vadd.f32 1.0, %v4712_v21  ;;  %8906 = sst [smem:[#allocation12_spill]] %s5702_s8 }
  0xad   :  { %v912_v4 = vmul.f32 %v5491_v42, %v5452_v62  ;;  %v946_v19 = vmul.f32 %v5556_v33, %v5497_v51  ;;  %v1005_v49 = vmul.f32 %v5499_v55, %v5570_v52  ;;  %v4716_v60 = vpop.eup %4715  ;;  %v874_v23 = vadd.f32 1.0, %v4714_v14 }
  0xae   :  { %v621_v53 = vadd.f32 %v620_v20, %v619_v59  ;;  %v706_v63 = vadd.f32 %v705_v58, %v704_v38  ;;  %v921_v32 = vsel %vm918_vm1, %v919_v16, %v920_v30  ;;  %v4718_v24 = vpop.eup %4717  ;;  %4729 = vrcp.f32 %v873_v9 }
  0xaf   :  { %v947_v5 = vmul.f32 %v4716_v60, %v5497_v51  ;;  %v1008_v34 = vrot.slane %v1004_v7, 2  ;;  %v1009_v15 = vrot.slane %v1005_v49, 2  ;;  %v4720_v8 = vpop.eup %4719  ;;  %4731 = vrcp.f32 %v874_v23 }
  0xb0   :  { %v4188_v17 = vmul.f32 -1.442695, %v621_v53  ;;  %v4189_v0 = vmul.f32 -1.442695, %v706_v63  ;;  %v889_v55 = vadd.f32 1.0, %v4718_v24  ;;  %v890_v39 = vadd.f32 1.0, %v4720_v8 }
  0xb1   :  { %v1002_v20 = vmul.f32 %v5491_v42, %v5598_v28  ;;  %v5619_v58 = vstv %s5590_s11  ;;  %v1035_v18 = vmul.f32 %v5556_v33, %v5570_v52  ;;  %v945_v40 = vmul.f32 %v5556_v33, %v5452_v62  ;;  %8904 = sst [smem:[#allocation11_spill]] %s5698_s6  ;;  %s5708_s11 = sld [smem:[#allocation2 + $0x53]] }
  0xb2   :  { %v4722_v44 = vpop.eup %4721  ;;  %4733 = vpow2.f32 %v4188_v17  ;;  %v950_v25 = vrot.slane %v946_v19, 2  ;;  %v1036_v26 = vmul.f32 %v4716_v60, %v5570_v52  ;;  %v923_v27 = vadd.f32 %v921_v32, %v912_v4 }
  0xb3   :  { %4735 = vpow2.f32 %v4189_v0  ;;  %v905_v57 = vadd.f32 1.0, %v4722_v44  ;;  %v5627_v46 = vstv %s5594_s13  ;;  %v951_v50 = vrot.slane %v947_v5, 2  ;;  %s5718_s13 = sld [smem:[#allocation2 + $0x56]] }
  0xb4   :  { %v4724_v42 = vpop.eup %4723  ;;  %4737 = vrcp.f32 %v889_v55  ;;  %v1010_v43 = vsel %vm918_vm1, %v1008_v34, %v1009_v15  ;;  %v5631_v6 = vstv %s5600_s15  ;;  %v1039_v45 = vrot.slane %v1035_v18, 2  ;;  %s5730_s15 = sld [smem:[#allocation2 + $0x58]] }
  0xb5   :  { %v4726_v3 = vpop.eup %4725  ;;  %4739 = vrcp.f32 %v890_v39  ;;  %v974_v37 = vmul.f32 %v4724_v42, %v5497_v51  ;;  %v1040_v2 = vrot.slane %v1036_v26, 2  ;;  %v1034_v30 = vmul.f32 %v5556_v33, %v5598_v28 }
  0xb6   :  { %v4728_v12 = vpop.eup %4727  ;;  %v906_v16 = vadd.f32 1.0, %v4726_v3  ;;  %4741 = vrcp.f32 %v905_v57  ;;  %v1063_v48 = vmul.f32 %v4724_v42, %v5570_v52  ;;  %v1012_v59 = vadd.f32 %v1010_v43, %v1002_v20 }
  0xb7   :  { %v975_v29 = vmul.f32 %v4728_v12, %v5497_v51  ;;  %v978_v21 = vrot.slane %v974_v37, 2  ;;  %v1064_v38 = vmul.f32 %v4728_v12, %v5570_v52  ;;  %v952_v7 = vsel %vm918_vm1, %v950_v25, %v951_v50 }
  0xb8   :  { %4743 = vrcp.f32 %v906_v16  ;;  %v973_v14 = vmul.f32 %v4724_v42, %v5452_v62  ;;  %v1067_v9 = vrot.slane %v1063_v48, 2  ;;  %v4730_v4 = vpop.eup %4729  ;;  %v1041_v49 = vsel %vm918_vm1, %v1039_v45, %v1040_v2 }
  0xb9   :  { %v979_v19 = vrot.slane %v975_v29, 2  ;;  %v1062_v33 = vmul.f32 %v4724_v42, %v5598_v28  ;;  %v1068_v60 = vrot.slane %v1064_v38, 2  ;;  %v4732_v53 = vpop.eup %4731  ;;  %v925_v51 = vmul.f32 %v4730_v4, %v5537_v13  ;;  %8909 = sst [smem:[#allocation15_spill]] %s5718_s13 }
  0xba   :  { %v928_v63 = vmul.f32 %v4730_v4, %v5541_v31  ;;  %v1014_v52 = vmul.f32 %v4730_v4, %v5619_v58  ;;  %v1017_v23 = vmul.f32 %v4730_v4, %v5627_v46  ;;  %v929_v32 = vmul.f32 %v4732_v53, %v5541_v31 }
  0xbb   :  { %v980_v62 = vsel %vm918_vm1, %v978_v21, %v979_v19  ;;  %v1018_v24 = vmul.f32 %v4732_v53, %v5627_v46  ;;  %v1069_v5 = vsel %vm918_vm1, %v1067_v9, %v1068_v60  ;;  %v926_v28 = vadd.f32 %v925_v51, %v923_v27 }
  0xbc   :  { %v4734_v34 = vpop.eup %4733  ;;  %v932_v15 = vrot.slane %v928_v63, 2  ;;  %v954_v8 = vadd.f32 %v952_v7, %v945_v40  ;;  %v1043_v17 = vadd.f32 %v1041_v49, %v1034_v30  ;;  %v933_v39 = vrot.slane %v929_v32, 2 }
  0xbd   :  { %v4736_v0 = vpop.eup %4735  ;;  %v625_v55 = vadd.f32 1.0, %v4734_v34  ;;  %v1021_v20 = vrot.slane %v1017_v23, 2  ;;  %v1022_v18 = vrot.slane %v1018_v24, 2  ;;  %v982_v26 = vadd.f32 %v980_v62, %v973_v14 }
  0xbe   :  { %v4738_v44 = vpop.eup %4737  ;;  %v710_v25 = vadd.f32 1.0, %v4736_v0  ;;  %v1015_v57 = vadd.f32 %v1014_v52, %v1012_v59  ;;  %v1071_v42 = vadd.f32 %v1069_v5, %v1062_v33  ;;  %v934_v43 = vsel %vm918_vm1, %v932_v15, %v933_v39 }
  0xbf   :  { %v4740_v50 = vpop.eup %4739  ;;  %4745 = vrcp.f32 %v625_v55  ;;  %v955_v3 = vmul.f32 %v4738_v44, %v5537_v13  ;;  %v957_v27 = vmul.f32 %v4738_v44, %v5541_v31  ;;  %v936_v37 = vadd.f32 %v934_v43, %v926_v28 }
  0xc0   :  { %v4742_v40 = vpop.eup %4741  ;;  %4747 = vrcp.f32 %v710_v25  ;;  %v958_v45 = vmul.f32 %v4740_v50, %v5541_v31  ;;  %v1023_v2 = vsel %vm918_vm1, %v1021_v20, %v1022_v18  ;;  %v1044_v7 = vmul.f32 %v4738_v44, %v5619_v58 }
  0xc1   :  { %v956_v12 = vadd.f32 %v955_v3, %v954_v8  ;;  %v961_v16 = vrot.slane %v957_v27, 2  ;;  %v983_v30 = vmul.f32 %v4742_v40, %v5537_v13  ;;  %v985_v48 = vmul.f32 %v4742_v40, %v5541_v31 }
  0xc2   :  { %v4744_v29 = vpop.eup %4743  ;;  %v938_v21 = vadd.f32 %v5544_v41, %v936_v37  ;;  %v962_v59 = vrot.slane %v958_v45, 2  ;;  %v1025_v38 = vadd.f32 %v1023_v2, %v1015_v57  ;;  %v1046_v4 = vmul.f32 %v4738_v44, %v5627_v46 }
  0xc3   :  { %v984_v14 = vadd.f32 %v983_v30, %v982_v26  ;;  %v986_v13 = vmul.f32 %v4744_v29, %v5541_v31  ;;  %v989_v9 = vrot.slane %v985_v48, 2  ;;  %v1045_v60 = vadd.f32 %v1044_v7, %v1043_v17 }
  0xc4   :  { %v4234_v19 = vmul.f32 -1.442695, %v938_v21  ;;  %v963_v49 = vsel %vm918_vm1, %v961_v16, %v962_v59  ;;  %v1027_v33 = vadd.f32 %v5631_v6, %v1025_v38  ;;  %v1047_v63 = vmul.f32 %v4740_v50, %v5627_v46 }
  0xc5   :  { %v965_v53 = vadd.f32 %v963_v49, %v956_v12  ;;  %v990_v51 = vrot.slane %v986_v13, 2  ;;  %v1050_v52 = vrot.slane %v1046_v4, 2  ;;  %v1072_v23 = vmul.f32 %v4742_v40, %v5619_v58 }
  0xc6   :  { %4749 = vpow2.f32 %v4234_v19  ;;  %v4237_v31 = vmul.f32 -1.442695, %v1027_v33  ;;  %v1074_v32 = vmul.f32 %v4742_v40, %v5627_v46  ;;  %v1051_v5 = vrot.slane %v1047_v63, 2 }
  0xc7   :  { %v966_v62 = vadd.f32 %v965_v53, %v5544_v41  ;;  %v991_v24 = vsel %vm918_vm1, %v989_v9, %v990_v51  ;;  %v1075_v34 = vmul.f32 %v4744_v29, %v5627_v46  ;;  %v1073_v28 = vadd.f32 %v1072_v23, %v1071_v42 }
  0xc8   :  { %v993_v58 = vadd.f32 %v991_v24, %v984_v14  ;;  %4751 = vpow2.f32 %v4237_v31  ;;  %v1078_v15 = vrot.slane %v1074_v32, 2  ;;  %v780_v17 = vstv %s5656_s16  ;;  %s5896_s16 = sld [smem:[#allocation2 + $0x6c]] }
  0xc9   :  { %v4746_v8 = vpop.eup %4745  ;;  %v4235_v0 = vmul.f32 -1.442695, %v966_v62  ;;  %v1052_v46 = vsel %vm918_vm1, %v1050_v52, %v1051_v5  ;;  %v1079_v55 = vrot.slane %v1075_v34, 2  ;;  %v764_v18 = vstv %s5660_s17  ;;  %s5758_s17 = sld [smem:[#allocation2 + $0x5d]] }
  0xca   :  { %v4748_v39 = vpop.eup %4747  ;;  %v728_v20 = vmul.f32 %v4746_v8, %v727_v11  ;;  %v994_v44 = vadd.f32 %v993_v58, %v5544_v41  ;;  %v1054_v25 = vadd.f32 %v1052_v46, %v1045_v60  ;;  %v783_v57 = vstv %s5666_s0  ;;  %s5898_s0 = sld [smem:[#allocation2 + $0x6e]] }
  0xcb   :  { %v738_v26 = vmul.f32 %v4748_v39, %v737_v36  ;;  %4753 = vpow2.f32 %v4235_v0  ;;  %v1080_v42 = vsel %vm918_vm1, %v1078_v15, %v1079_v55  ;;  %v789_v3 = vstv %s5668_s19  ;;  %s5743_s19 = sld [smem:[#allocation2 + $0x5a]] }
  0xcc   :  { %v730_v11 = vadd.f32 %v729_v56, %v728_v20  ;;  %v4236_v41 = vmul.f32 -1.442695, %v994_v44  ;;  %v1055_v50 = vadd.f32 %v1054_v25, %v5631_v6  ;;  %v1082_v43 = vadd.f32 %v1080_v42, %v1073_v28 }
  0xcd   :  { %v740_v36 = vadd.f32 %v739_v47, %v738_v26  ;;  %v5733_v27 = vstv %s5674_s22  ;;  %v5736_v40 = vstv %s5676_s24  ;;  %s5745_s22 = sld [smem:[#allocation2 + $0x5b]]  ;;  %v5748_v2 = vstv %s5679_s27  ;;  %s5754_s24 = sld [smem:[#allocation2 + $0x5c]] }
  0xce   :  { %v4204_v56 = vmul.f32 -1.442695, %v730_v11  ;;  %4755 = vpow2.f32 %v4236_v41  ;;  %v4238_v37 = vmul.f32 -1.442695, %v1055_v50  ;;  %v1083_v45 = vadd.f32 %v1082_v43, %v5631_v6  ;;  %s5762_s27 = sld [smem:[#allocation2 + $0x5e]] }
  0xcf   :  { %v4205_v47 = vmul.f32 -1.442695, %v740_v36  ;;  %v5751_v12 = vstv %s5681_s28  ;;  %v1172_v16 = vstv %s5685_s29  ;;  %v1174_v48 = vstv %s5687_s30  ;;  %s5764_s28 = sld [smem:[#allocation2 + $0x5f]]  ;;  %s6199_s29 = sld [smem:[#allocation2 + $0x91]] }
  0xd0   :  { %v4750_v30 = vpop.eup %4749  ;;  %4757 = vpow2.f32 %v4204_v56  ;;  %v4239_v6 = vmul.f32 -1.442695, %v1083_v45  ;;  %v1180_v29 = vstv %s5692_s3  ;;  %v1183_v59 = vstv %s5694_s4  ;;  %s5771_s4 = sld [smem:[#allocation2 + $0x67]]  ;;  %s5798_s3 = sld [smem:[#allocation2 + $0x61]] }
  0xd1   :  { %4759 = vpow2.f32 %v4205_v47  ;;  %v942_v21 = vadd.f32 1.0, %v4750_v30  ;;  %v1189_v38 = vstv %s5696_s5  ;;  %v1192_v14 = vstv %s5698_s6  ;;  %s5773_s5 = sld [smem:[#allocation2 + $0x60]]  ;;  %s5810_s6 = sld [smem:[#allocation2 + $0x62]] }
  0xd2   :  { %v4752_v7 = vpop.eup %4751  ;;  %4761 = vpow2.f32 %v4238_v37  ;;  %v1198_v13 = vstv %s5702_s8  ;;  %v1201_v9 = vstv %s5708_s11  ;;  %v1207_v19 = vstv %s5710_s12  ;;  %s5812_s12 = sld [smem:[#allocation2 + $0x63]]  ;;  %s5817_s8 = sld [smem:[#allocation2 + $0x65]] }
  0xd3   :  { %4763 = vrcp.f32 %v942_v21  ;;  %v1031_v4 = vadd.f32 1.0, %v4752_v7  ;;  %v1210_v49 = vstv %s5716_s26  ;;  %v1216_v33 = vstv %s5718_s13  ;;  %s8911_s26 = sld [smem:[#allocation196_spill]]  ;;  %s6167_s13 = sld [smem:[#allocation2 + $0xea]] }
  0xd4   :  { %4765 = vpow2.f32 %v4239_v6  ;;  %v1219_v60 = vstv %s5723_s14  ;;  %v1225_v53 = vstv %s5725_s2  ;;  %v1233_v63 = vstv %s5730_s15  ;;  %s5903_s14 = sld [smem:[#allocation2 + $0x70]]  ;;  %s6112_s2 = sld [smem:[#allocation2 + $0x75]] }
  0xd5   :  { %v4754_v51 = vpop.eup %4753  ;;  %4767 = vrcp.f32 %v1031_v4  ;;  %v1308_v52 = vstv %s5664_s18  ;;  %v1311_v31 = vstv %s5738_s7  ;;  %v1235_v28 = vstv %s5741_s1  ;;  %s5793_s18 = sld [smem:[#allocation2 + $0x69]]  ;;  %s6188_s7 = sld [smem:[#allocation2 + $0x7b]] }
  0xd6   :  { %v970_v23 = vadd.f32 1.0, %v4754_v51  ;;  %v1241_v15 = vstv %s5743_s19  ;;  %v1244_v8 = vstv %s5745_s22  ;;  %v1250_v39 = vstv %s5754_s24  ;;  %s6114_s24 = sld [smem:[#allocation2 + $0x76]]  ;;  %8937 = sst [smem:[#allocation19_spill]] %s6199_s29 }
  0xd7   :  { %v1253_v26 = vstv %s5758_s17  ;;  %v1259_v36 = vstv %s5762_s27  ;;  %v1262_v56 = vstv %s5764_s28  ;;  %v5815_v21 = vstv %s5771_s4  ;;  %s5905_s4 = sld [smem:[#allocation2 + $0x71]]  ;;  %s6118_s27 = sld [smem:[#allocation2 + $0x77]] }
  0xd8   :  { %v4756_v55 = vpop.eup %4755  ;;  %4769 = vrcp.f32 %v970_v23  ;;  %v1268_v51 = vstv %s5773_s5  ;;  %s6108_s5 = sld [smem:[#allocation2 + $0x74]]  ;;  %s6120_s28 = sld [smem:[#allocation2 + $0x90]] }
  0xd9   :  { %v4925_v32 = vld [vmem:[%s8911_s26] sm:$0xff]  ;;  %v4926_v24 = vld [vmem:[%s8911_s26 + $0x8] sm:$0x3]  ;;  %v4927_v34 = vld [vmem:[%s8911_s26 + $0x10] sm:$0xff]  ;;  %v998_v25 = vadd.f32 1.0, %v4756_v55  ;;  %8933 = sst [smem:[#allocation16_spill]] %s6167_s13 }
  0xda   :  { %v1309_v62 = vmul.f32 %v4925_v32, %v1308_v52  ;;  %v1310_v5 = vmul.f32 %v4926_v24, %v1308_v52  ;;  %v1326_v58 = vmul.f32 %v4927_v34, %v1308_v52  ;;  %v4928_v0 = vld [vmem:[%s8911_s26 + $0x18] sm:$0x3]  ;;  %v4929_v42 = vld [vmem:[%s8911_s26 + $0x20] sm:$0xff]  ;;  %v4930_v41 = vld [vmem:[%s8911_s26 + $0x28] sm:$0x3]  ;;  %v4758_v43 = vpop.eup %4757  ;;  %s6212_s30 = sld [smem:[#allocation2 + $0xfe]] }
  0xdb   :  { %v1327_v46 = vmul.f32 %v4928_v0, %v1308_v52  ;;  %v1342_v11 = vmul.f32 %v4929_v42, %v1308_v52  ;;  %v1343_v50 = vmul.f32 %v4930_v41, %v1308_v52  ;;  %v4760_v47 = vpop.eup %4759  ;;  %v734_v30 = vadd.f32 1.0, %v4758_v43  ;;  %v4931_v0 = vld [vmem:[%s8911_s26 + $0x30] sm:$0xff]  ;;  %s6215_s11 = sld [smem:[#allocation2 + $0x9b]]  ;;  %s6225_s15 = sld [smem:[#allocation2 + $0xa5]] }
  0xdc   :  { %v1312_v20 = vadd.f32 %v1311_v31, %v1309_v62  ;;  %v1313_v44 = vadd.f32 %v1311_v31, %v1310_v5  ;;  %v1328_v45 = vadd.f32 %v1326_v58, %v1311_v31  ;;  %4771 = vrcp.f32 %v998_v25  ;;  %v4762_v7 = vpop.eup %4761  ;;  %s6227_s19 = sld [smem:[#allocation2 + $0xaf]]  ;;  %s6239_s1 = sld [smem:[#allocation2 + $0x108]] }
  0xdd   :  { %v1329_v6 = vadd.f32 %v1327_v46, %v1311_v31  ;;  %v744_v4 = vadd.f32 1.0, %v4760_v47  ;;  %v4764_v23 = vpop.eup %4763  ;;  %v1059_v32 = vadd.f32 1.0, %v4762_v7  ;;  %v1344_v62 = vadd.f32 %v1342_v11, %v1311_v31  ;;  %s6248_s22 = sld [smem:[#allocation2 + $0xb9]]  ;;  %s6262_s17 = sld [smem:[#allocation2 + $0xc3]] }
  0xde   :  { %v4292_v37 = vmul.f32 -1.442695, %v1312_v20  ;;  %v4293_v52 = vmul.f32 -1.442695, %v1313_v44  ;;  %v1345_v24 = vadd.f32 %v1343_v50, %v1311_v31  ;;  %v4766_v5 = vpop.eup %4765  ;;  %v1121_v34 = vmul.f32 %v4764_v23, %v5733_v27  ;;  %v4932_v50 = vld [vmem:[%s8911_s26 + $0x38] sm:$0x3] }
  0xdf   :  { %v4294_v58 = vmul.f32 -1.442695, %v1328_v45  ;;  %v1359_v46 = vmul.f32 %v4931_v0, %v5815_v21  ;;  %v4768_v55 = vpop.eup %4767  ;;  %v1087_v20 = vadd.f32 1.0, %v4766_v5  ;;  %v4295_v44 = vmul.f32 -1.442695, %v1329_v6  ;;  %8924 = sst [smem:[#allocation7_spill]] %s6120_s28 }
  0xe0   :  { %4773 = vpow2.f32 %v4292_v37  ;;  %v5826_v25 = vstv %s5793_s18  ;;  %v1123_v42 = vadd.f32 %v5736_v40, %v1121_v34  ;;  %v1147_v31 = vmul.f32 %v4768_v55, %v5748_v2  ;;  %v4933_v37 = vld [vmem:[%s8911_s26 + $0x40] sm:$0xff]  ;;  %s5900_s18 = sld [smem:[#allocation2 + $0x72]]  ;;  %8938 = sst [smem:[#allocation20_spill]] %s6212_s30 }
  0xe1   :  { %4775 = vrcp.f32 %v734_v30  ;;  %v1271_v11 = vstv %s5798_s3  ;;  %v4296_v41 = vmul.f32 -1.442695, %v1344_v62  ;;  %v1360_v43 = vmul.f32 %v4932_v50, %v5815_v21  ;;  %s6125_s3 = sld [smem:[#allocation2 + $0x86]]  ;;  %8939 = sst [smem:[#allocation21_spill]] %s6215_s11 }
  0xe2   :  { %4777 = vrcp.f32 %v744_v4  ;;  %v1376_v45 = vmul.f32 %v4933_v37, %v5815_v21  ;;  %v4770_v47 = vpop.eup %4769  ;;  %v4270_v30 = vmul.f32 -1.442695, %v1123_v42  ;;  %v1149_v6 = vadd.f32 %v5751_v12, %v1147_v31  ;;  %8940 = sst [smem:[#allocation22_spill]] %s6225_s15 }
  0xe3   :  { %4779 = vrcp.f32 %v1059_v32  ;;  %v1362_v7 = vadd.f32 %v5826_v25, %v1359_v46  ;;  %v1130_v4 = vmul.f32 %v4770_v47, %v5733_v27  ;;  %v4297_v23 = vmul.f32 -1.442695, %v1345_v24  ;;  %8941 = sst [smem:[#allocation23_spill]] %s6227_s19 }
  0xe4   :  { %4781 = vpow2.f32 %v4293_v52  ;;  %v1277_v52 = vstv %s5810_s6  ;;  %v4273_v32 = vmul.f32 -1.442695, %v1149_v6  ;;  %v1280_v62 = vstv %s5812_s12  ;;  %s6127_s6 = sld [smem:[#allocation2 + $0x9a]]  ;;  %s6131_s12 = sld [smem:[#allocation2 + $0xa4]] }
  0xe5   :  { %4783 = vrcp.f32 %v1087_v20  ;;  %v1131_v0 = vadd.f32 %v1130_v4, %v5736_v40  ;;  %v5847_v55 = vadd.f32 %v5826_v25, %v1360_v43  ;;  %v5857_v42 = vadd.f32 %v1376_v45, %v5826_v25  ;;  %v4935_v43 = vld [vmem:[%s8911_s26 + $0x50] sm:$0xff]  ;;  %8942 = sst [smem:[#allocation24_spill]] %s6239_s1 }
  0xe6   :  { %4785 = vpow2.f32 %v4294_v58  ;;  %v4772_v34 = vpop.eup %4771  ;;  %v4934_v58 = vld [vmem:[%s8911_s26 + $0x48] sm:$0x3]  ;;  %8943 = sst [smem:[#allocation25_spill]] %s6248_s22 }
  0xe7   :  { %4787 = vpow2.f32 %v4295_v44  ;;  %v1377_v24 = vmul.f32 %v4934_v58, %v5815_v21  ;;  %v1138_v20 = vmul.f32 %v4772_v34, %v5733_v27  ;;  %v5854_v44 = vmul.f32 -1.442695, %v1362_v7  ;;  %8925 = sst [smem:[#allocation10_spill]] %s6125_s3 }
  0xe8   :  { %4789 = vpow2.f32 %v4270_v30  ;;  %v1392_v27 = vmul.f32 %v4935_v43, %v5815_v21  ;;  %8944 = sst [smem:[#allocation26_spill]] %s6262_s17 }
  0xe9   :  { %4791 = vpow2.f32 %v4296_v41  ;;  %v4271_v41 = vmul.f32 -1.442695, %v1131_v0 }
  0xea   :  { %v4774_v46 = vpop.eup %4773  ;;  %4793 = vpow2.f32 %v4273_v32  ;;  %8926 = sst [smem:[#allocation12_spill]] %s6127_s6 }
  0xeb   :  { %v4776_v31 = vpop.eup %4775  ;;  %v1320_v50 = vadd.f32 1.0, %v4774_v46  ;;  %4795 = vpow2.f32 %v4297_v23  ;;  %8927 = sst [smem:[#allocation6_spill]] %s6131_s12 }
  0xec   :  { %v4778_v37 = vpop.eup %4777  ;;  %v748_v47 = vmul.f32 %v4776_v31, %v747_v54  ;;  %v750_v30 = vmul.f32 %v4776_v31, %v749_v61  ;;  %v773_v6 = vmul.f32 %v4776_v31, %v772_v22  ;;  %v775_v45 = vmul.f32 %v4776_v31, %v774_v35 }
  0xed   :  { %v4780_v7 = vpop.eup %4779  ;;  %v756_v4 = vmul.f32 %v4778_v37, %v755_v10  ;;  %v759_v23 = vmul.f32 %v4778_v37, %v758_v1  ;;  %v781_v32 = vmul.f32 %v4778_v37, %v780_v17  ;;  %v784_v34 = vmul.f32 %v4778_v37, %v783_v57 }
  0xee   :  { %v4782_v0 = vpop.eup %4781  ;;  %v752_v58 = vrot.slane %v750_v30, 1  ;;  %v777_v46 = vrot.slane %v775_v45, 1  ;;  %4797 = vpow2.f32 %v4271_v41  ;;  %v1139_v54 = vadd.f32 %v1138_v20, %v5736_v40  ;;  %v4936_v20 = vld [vmem:[%s8911_s26 + $0x58] sm:$0x3]  ;;  %s6342_s26 = sld [smem:[#allocation2 + $0x130]] }
  0xef   :  { %v4784_v61 = vpop.eup %4783  ;;  %v761_v43 = vrot.slane %v759_v23, 1  ;;  %v786_v22 = vrot.slane %v784_v34, 1  ;;  %v1156_v35 = vmul.f32 %v4780_v7, %v5748_v2  ;;  %v1321_v10 = vadd.f32 1.0, %v4782_v0 }
  0xf0   :  { %v4786_v31 = vpop.eup %4785  ;;  %v754_v1 = vadd.f32 %v752_v58, %v748_v47  ;;  %v779_v5 = vadd.f32 %v777_v46, %v773_v6  ;;  %v4272_v17 = vmul.f32 -1.442695, %v1139_v54  ;;  %v1164_v57 = vmul.f32 %v4784_v61, %v5748_v2 }
  0xf1   :  { %v4788_v37 = vpop.eup %4787  ;;  %v1157_v41 = vadd.f32 %v1156_v35, %v5751_v12  ;;  %4799 = vrcp.f32 %v1320_v50  ;;  %v1336_v40 = vadd.f32 1.0, %v4786_v31  ;;  %v1393_v47 = vmul.f32 %v4936_v20, %v5815_v21 }
  0xf2   :  { %v4790_v30 = vpop.eup %4789  ;;  %v757_v6 = vadd.f32 %v756_v4, %v754_v1  ;;  %v782_v2 = vadd.f32 %v781_v32, %v779_v5  ;;  %4801 = vpow2.f32 %v4272_v17  ;;  %v1165_v45 = vadd.f32 %v1164_v57, %v5751_v12 }
  0xf3   :  { %v4792_v7 = vpop.eup %4791  ;;  %v1127_v23 = vadd.f32 1.0, %v4790_v30  ;;  %v4274_v50 = vmul.f32 -1.442695, %v1157_v41  ;;  %4803 = vrcp.f32 %v1321_v10  ;;  %v1379_v34 = vadd.f32 %v1377_v24, %v5826_v25 }
  0xf4   :  { %v4794_v21 = vpop.eup %4793  ;;  %v763_v0 = vadd.f32 %v761_v43, %v757_v6  ;;  %v788_v4 = vadd.f32 %v786_v22, %v782_v2  ;;  %v4275_v5 = vmul.f32 -1.442695, %v1165_v45  ;;  %4805 = vrcp.f32 %v1336_v40 }
  0xf5   :  { %v4796_v12 = vpop.eup %4795  ;;  %4807 = vrcp.f32 %v1127_v23  ;;  %v1153_v32 = vadd.f32 1.0, %v4794_v21  ;;  %v1337_v58 = vadd.f32 1.0, %v4788_v37  ;;  %v1394_v24 = vadd.f32 %v1392_v27, %v5826_v25 }
  0xf6   :  { %v765_v46 = vadd.f32 %v764_v18, %v763_v0  ;;  %4809 = vpow2.f32 %v4274_v50  ;;  %v5913_v54 = vmul.f32 -1.442695, %v5847_v55  ;;  %v1395_v61 = vadd.f32 %v1393_v47, %v5826_v25 }
  0xf7   :  { %4811 = vrcp.f32 %v1153_v32  ;;  %v5917_v43 = vmul.f32 -1.442695, %v5857_v42  ;;  %v5919_v22 = vmul.f32 -1.442695, %v1379_v34  ;;  %v5922_v35 = vstv %s5881_s10  ;;  %s6197_s10 = sld [smem:[#allocation2 + $0x87]] }
  0xf8   :  { %v4798_v10 = vpop.eup %4797  ;;  %v4206_v27 = vmul.f32 -1.442695, %v765_v46  ;;  %v790_v18 = vadd.f32 %v789_v3, %v788_v4  ;;  %4813 = vpow2.f32 %v4275_v5  ;;  %v5927_v55 = vstv %s5884_s9  ;;  %s6137_s9 = sld [smem:[#allocation2 + $0xb8]] }
  0xf9   :  { %v1135_v25 = vadd.f32 1.0, %v4798_v10  ;;  %4815 = vrcp.f32 %v1337_v58  ;;  %v1352_v42 = vadd.f32 1.0, %v4792_v7  ;;  %v5929_v31 = vmul.f32 -1.442695, %v1394_v24 }
  0xfa   :  { %4817 = vpow2.f32 %v4206_v27  ;;  %v1353_v1 = vadd.f32 1.0, %v4796_v12  ;;  %v5931_v17 = vmul.f32 -1.442695, %v1395_v61  ;;  %v5934_v57 = vstv %s5896_s16  ;;  %s6155_s16 = sld [smem:[#allocation2 + $0xd6]] }
  0xfb   :  { %v4800_v3 = vpop.eup %4799  ;;  %v5937_v37 = vstv %s5887_s20  ;;  %v5940_v41 = vstv %s5900_s18  ;;  %v5943_v40 = vstv %s5898_s0  ;;  %v5946_v20 = vstv %s5889_s21  ;;  %s6139_s20 = sld [smem:[#allocation2 + $0xc2]]  ;;  %s6141_s21 = sld [smem:[#allocation2 + $0x78]] }
  0xfc   :  { %v4802_v47 = vpop.eup %4801  ;;  %v5948_v30 = vmul.f32 -1.442695, %v790_v18  ;;  %4819 = vrcp.f32 %v1135_v25  ;;  %v1411_v6 = vmul.f32 %v4800_v3, %v5927_v55  ;;  %v5952_v2 = vstv %s5903_s14  ;;  %s6157_s0 = sld [smem:[#allocation2 + $0x7a]]  ;;  %s6162_s18 = sld [smem:[#allocation2 + $0xe0]] }
  0xfd   :  { %v4804_v45 = vpop.eup %4803  ;;  %v1143_v7 = vadd.f32 1.0, %v4802_v47  ;;  %4821 = vrcp.f32 %v1352_v42  ;;  %v5955_v23 = vstv %s5905_s4  ;;  %v5958_v50 = vstv %s5907_s25  ;;  %s6175_s14 = sld [smem:[#allocation2 + $0xcc]] }
  0xfe   :  { %v5960_v34 = vpop.eup %4805  ;;  %4823 = vrcp.f32 %v1353_v1  ;;  %v1409_v21 = vmul.f32 %v4800_v3, %v5922_v35  ;;  %v1412_v0 = vmul.f32 %v4804_v45, %v5927_v55  ;;  %v5965_v4 = vmul.f32 %v4800_v3, %v5943_v40  ;;  %8929 = sst [smem:[#allocation9_spill]] %s6137_s9  ;;  %s6190_s4 = sld [smem:[#allocation2 + $0xf4]] }
  0xff   :  { %v4808_v5 = vpop.eup %4807  ;;  %4825 = vrcp.f32 %v1143_v7  ;;  %v1416_v12 = vrot.slane %v1411_v6, 3  ;;  %v5968_v32 = vmul.f32 %v4800_v3, %v5946_v20  ;;  %v5971_v58 = vmul.f32 %v4804_v45, %v5946_v20  ;;  %s6194_s25 = sld [smem:[#allocation2 + $0x7c]] }
 0x100   :  { %v4810_v24 = vpop.eup %4809  ;;  %v1173_v46 = vmul.f32 %v4808_v5, %v1172_v16  ;;  %v1175_v61 = vmul.f32 %v4808_v5, %v1174_v48  ;;  %v1236_v10 = vmul.f32 %v4808_v5, %v1235_v28  ;;  %v1443_v27 = vmul.f32 %v5960_v34, %v5927_v55  ;;  %8931 = sst [smem:[#allocation13_spill]] %s6155_s16 }
 0x101   :  { %v4812_v18 = vpop.eup %4811  ;;  %v1161_v25 = vadd.f32 1.0, %v4810_v24  ;;  %v1234_v42 = vmul.f32 %v4808_v5, %v1233_v63  ;;  %4827 = vpow2.f32 %v5854_v44  ;;  %v1417_v1 = vrot.slane %v1412_v0, 3  ;;  %8930 = sst [smem:[#allocation11_spill]] %s6139_s20 }
 0x102   :  { %v4814_v3 = vpop.eup %4813  ;;  %v1177_v47 = vrot.slane %v1175_v61, 1  ;;  %v5986_v16 = vmul.f32 %v4812_v18, %v1201_v9  ;;  %v1238_v48 = vrot.slane %v1236_v10, 1  ;;  %v1442_v28 = vmul.f32 %v5960_v34, %v5922_v35  ;;  %8932 = sst [smem:[#allocation14_spill]] %s6162_s18 }
 0x103   :  { %v5990_v6 = vpop.eup %4815  ;;  %4829 = vrcp.f32 %v1161_v25  ;;  %v1169_v45 = vadd.f32 1.0, %v4814_v3  ;;  %v5994_v7 = vmul.f32 %v4812_v18, %v1262_v56  ;;  %v1505_v63 = vrot.slane %v5968_v32, 3  ;;  %8934 = sst [smem:[#allocation15_spill]] %s6175_s14 }
 0x104   :  { %v4818_v44 = vpop.eup %4817  ;;  %v1179_v0 = vadd.f32 %v1177_v47, %v1173_v46  ;;  %v1199_v9 = vmul.f32 %v4812_v18, %v1198_v13  ;;  %4831 = vpow2.f32 %v5913_v54  ;;  %v1447_v5 = vrot.slane %v1443_v27, 3  ;;  %8935 = sst [smem:[#allocation17_spill]] %s6190_s4 }
 0x105   :  { %v769_v24 = vadd.f32 1.0, %v4818_v44  ;;  %4833 = vrcp.f32 %v1169_v45  ;;  %v1240_v61 = vadd.f32 %v1238_v48, %v1234_v42  ;;  %v1418_v10 = vsel %vm1415_vm2, %v1416_v12, %v1417_v1  ;;  %8936 = sst [smem:[#allocation18_spill]] %s6197_s10 }
 0x106   :  { %v4820_v56 = vpop.eup %4819  ;;  %v1204_v25 = vrot.slane %v5986_v16, 1  ;;  %v1260_v3 = vmul.f32 %v4812_v18, %v1259_v36  ;;  %4835 = vpow2.f32 %v5917_v43  ;;  %v1444_v46 = vmul.f32 %v5990_v6, %v5927_v55 }
 0x107   :  { %v6007_v13 = vpop.eup %4821  ;;  %v1181_v54 = vmul.f32 %v4820_v56, %v1180_v29  ;;  %v1184_v27 = vmul.f32 %v4820_v56, %v1183_v59  ;;  %v1242_v12 = vmul.f32 %v4820_v56, %v1241_v15  ;;  %v1265_v42 = vrot.slane %v5994_v7, 1 }
 0x108   :  { %v6016_v1 = vpop.eup %4823  ;;  %4837 = vrcp.f32 %v769_v24  ;;  %v1245_v36 = vmul.f32 %v4820_v56, %v1244_v8  ;;  %v6020_v43 = vadd.f32 %v1418_v10, %v1409_v21  ;;  %v1448_v18 = vrot.slane %v1444_v46, 3 }
 0x109   :  { %v4826_v47 = vpop.eup %4825  ;;  %v1182_v16 = vadd.f32 %v1181_v54, %v1179_v0  ;;  %v1186_v48 = vrot.slane %v1184_v27, 1  ;;  %v1243_v29 = vadd.f32 %v1242_v12, %v1240_v61  ;;  %4839 = vpow2.f32 %v5919_v22 }
 0x10a   :  { %v1190_v59 = vmul.f32 %v4826_v47, %v1189_v38  ;;  %v1193_v15 = vmul.f32 %v4826_v47, %v1192_v14  ;;  %v1247_v45 = vrot.slane %v1245_v36, 1  ;;  %v1251_v7 = vmul.f32 %v4826_v47, %v1250_v39 }
 0x10b   :  { %v4828_v44 = vpop.eup %4827  ;;  %v1188_v8 = vadd.f32 %v1186_v48, %v1182_v16  ;;  %v1254_v21 = vmul.f32 %v4826_v47, %v1253_v26  ;;  %4841 = vpow2.f32 %v5929_v31  ;;  %v1449_v0 = vsel %vm1415_vm2, %v1447_v5, %v1448_v18 }
 0x10c   :  { %v1195_v24 = vrot.slane %v1193_v15, 1  ;;  %v1249_v22 = vadd.f32 %v1247_v45, %v1243_v29  ;;  %v1370_v61 = vadd.f32 1.0, %v4828_v44  ;;  %4843 = vpow2.f32 %v5931_v17 }
 0x10d   :  { %v4830_v38 = vpop.eup %4829  ;;  %v1191_v14 = vadd.f32 %v1190_v59, %v1188_v8  ;;  %v1256_v39 = vrot.slane %v1254_v21, 1  ;;  %v6034_v10 = vadd.f32 %v1449_v0, %v1442_v28  ;;  %v1470_v26 = vmul.f32 %v6007_v13, %v5922_v35 }
 0x10e   :  { %v4832_v56 = vpop.eup %4831  ;;  %v1208_v31 = vmul.f32 %v4830_v38, %v1207_v19  ;;  %v1211_v5 = vmul.f32 %v4830_v38, %v1210_v49  ;;  %v1252_v46 = vadd.f32 %v1251_v7, %v1249_v22  ;;  %v1471_v17 = vmul.f32 %v6007_v13, %v5927_v55 }
 0x10f   :  { %v4834_v54 = vpop.eup %4833  ;;  %v1197_v27 = vadd.f32 %v1195_v24, %v1191_v14  ;;  %v1272_v28 = vmul.f32 %v4830_v38, %v1271_v11  ;;  %v1371_v12 = vadd.f32 1.0, %v4832_v56  ;;  %4845 = vrcp.f32 %v1370_v61 }
 0x110   :  { %v4836_v36 = vpop.eup %4835  ;;  %v1213_v35 = vrot.slane %v1211_v5, 1  ;;  %v1220_v18 = vmul.f32 %v4834_v54, %v1219_v60  ;;  %v1258_v47 = vadd.f32 %v1256_v39, %v1252_v46  ;;  %v1269_v19 = vmul.f32 %v4830_v38, %v1268_v51 }
 0x111   :  { %v1200_v49 = vadd.f32 %v1199_v9, %v1197_v27  ;;  %v1217_v16 = vmul.f32 %v4834_v54, %v1216_v33  ;;  %v1274_v48 = vrot.slane %v1272_v28, 1  ;;  %v1281_v29 = vmul.f32 %v4834_v54, %v1280_v62 }
 0x112   :  { %v6054_v59 = vpop.eup %4837  ;;  %v1261_v15 = vadd.f32 %v1260_v3, %v1258_v47  ;;  %v1278_v11 = vmul.f32 %v4834_v54, %v1277_v52  ;;  %4847 = vrcp.f32 %v1371_v12  ;;  %v1386_v45 = vadd.f32 1.0, %v4836_v36 }
 0x113   :  { %v4840_v7 = vpop.eup %4839  ;;  %v1206_v44 = vadd.f32 %v1204_v25, %v1200_v49  ;;  %v1222_v8 = vrot.slane %v1220_v18, 1  ;;  %v1472_v60 = vmul.f32 %v6016_v1, %v5927_v55  ;;  %v1475_v51 = vrot.slane %v1471_v17, 3 }
 0x114   :  { %v1267_v9 = vadd.f32 %v1265_v42, %v1261_v15  ;;  %v1387_v21 = vadd.f32 1.0, %v4840_v7  ;;  %4849 = vrcp.f32 %v1386_v45  ;;  %v1506_v33 = vrot.slane %v5971_v58, 3 }
 0x115   :  { %v4842_v62 = vpop.eup %4841  ;;  %v1209_v0 = vadd.f32 %v1208_v31, %v1206_v44  ;;  %v1283_v24 = vrot.slane %v1281_v29, 1  ;;  %v1476_v3 = vrot.slane %v1472_v60, 3  ;;  %v1532_v52 = vmul.f32 %v5960_v34, %v5946_v20 }
 0x116   :  { %v4844_v22 = vpop.eup %4843  ;;  %v1270_v61 = vadd.f32 %v1269_v19, %v1267_v9  ;;  %4851 = vrcp.f32 %v1387_v21  ;;  %v1402_v25 = vadd.f32 1.0, %v4842_v62  ;;  %v1507_v55 = vsel %vm1415_vm2, %v1505_v63, %v1506_v33 }
 0x117   :  { %v1215_v42 = vadd.f32 %v1213_v35, %v1209_v0  ;;  %v1403_v38 = vadd.f32 1.0, %v4844_v22  ;;  %v1477_v14 = vsel %vm1415_vm2, %v1475_v51, %v1476_v3  ;;  %v1531_v58 = vmul.f32 %v5960_v34, %v5943_v40 }
 0x118   :  { %v1276_v39 = vadd.f32 %v1274_v48, %v1270_v61  ;;  %4853 = vrcp.f32 %v1402_v25  ;;  %v1509_v56 = vadd.f32 %v1507_v55, %v5965_v4  ;;  %v1533_v31 = vmul.f32 %v5990_v6, %v5946_v20 }
 0x119   :  { %v4846_v5 = vpop.eup %4845  ;;  %v1218_v46 = vadd.f32 %v1217_v16, %v1215_v42  ;;  %4855 = vrcp.f32 %v1403_v38  ;;  %v1479_v32 = vadd.f32 %v1477_v14, %v1470_v26  ;;  %v1536_v63 = vrot.slane %v1532_v52, 3 }
 0x11a   :  { %v1279_v17 = vadd.f32 %v1278_v11, %v1276_v39  ;;  %v1422_v54 = vmul.f32 %v4846_v5, %v5934_v57  ;;  %v1425_v27 = vmul.f32 %v4846_v5, %v5937_v37  ;;  %v1511_v34 = vmul.f32 %v4846_v5, %v5952_v2 }
 0x11b   :  { %v1224_v28 = vadd.f32 %v1222_v8, %v1218_v46  ;;  %v1514_v4 = vmul.f32 %v4846_v5, %v5955_v23  ;;  %v1537_v12 = vrot.slane %v1533_v31, 3  ;;  %v6078_v6 = vmul.f32 %v6007_v13, %v5943_v40 }
 0x11c   :  { %v4848_v36 = vpop.eup %4847  ;;  %v1285_v35 = vadd.f32 %v1283_v24, %v1279_v17  ;;  %v1423_v26 = vadd.f32 %v1422_v54, %v6020_v43  ;;  %v1429_v18 = vrot.slane %v1425_v27, 3  ;;  %v1560_v47 = vmul.f32 %v6007_v13, %v5946_v20 }
 0x11d   :  { %v1226_v19 = vadd.f32 %v1225_v53, %v1224_v28  ;;  %v1426_v49 = vmul.f32 %v4848_v36, %v5937_v37  ;;  %v1512_v16 = vadd.f32 %v1511_v34, %v1509_v56  ;;  %v1515_v48 = vmul.f32 %v4848_v36, %v5955_v23 }
 0x11e   :  { %v4850_v29 = vpop.eup %4849  ;;  %v8923_v15 = vstv %s5817_s8  ;;  %v1518_v40 = vrot.slane %v1514_v4, 3  ;;  %v1538_v45 = vsel %vm1415_vm2, %v1536_v63, %v1537_v12  ;;  %v1561_v43 = vmul.f32 %v6016_v1, %v5946_v20  ;;  %s6133_s8 = sld [smem:[#allocation2 + $0xae]] }
 0x11f   :  { %v1287_v11 = vadd.f32 %v8923_v15, %v1285_v35  ;;  %v4276_v7 = vmul.f32 -1.442695, %v1226_v19  ;;  %v1430_v44 = vrot.slane %v1426_v49, 3  ;;  %v1452_v13 = vmul.f32 %v4850_v29, %v5934_v57 }
 0x120   :  { %v1454_v53 = vmul.f32 %v4850_v29, %v5937_v37  ;;  %v4852_v8 = vpop.eup %4851  ;;  %v1519_v60 = vrot.slane %v1515_v48, 3  ;;  %v1540_v51 = vadd.f32 %v1538_v45, %v1531_v58  ;;  %v1541_v9 = vmul.f32 %v4850_v29, %v5952_v2 }
 0x121   :  { %v1564_v21 = vrot.slane %v1560_v47, 3  ;;  %4857 = vpow2.f32 %v4276_v7  ;;  %v4277_v33 = vmul.f32 -1.442695, %v1287_v11  ;;  %v1431_v62 = vsel %vm1415_vm2, %v1429_v18, %v1430_v44 }
 0x122   :  { %v1455_v0 = vmul.f32 %v4852_v8, %v5937_v37  ;;  %v4854_v24 = vpop.eup %4853  ;;  %v1433_v20 = vadd.f32 %v1431_v62, %v1423_v26  ;;  %v1453_v1 = vadd.f32 %v1452_v13, %v6034_v10  ;;  %v1458_v3 = vrot.slane %v1454_v53, 3 }
 0x123   :  { %v1520_v52 = vsel %vm1415_vm2, %v1518_v40, %v1519_v60  ;;  %v4856_v22 = vpop.eup %4855  ;;  %v1480_v25 = vmul.f32 %v4854_v24, %v5934_v57  ;;  %v1482_v55 = vmul.f32 %v4854_v24, %v5937_v37  ;;  %v1542_v58 = vadd.f32 %v1541_v9, %v1540_v51 }
 0x124   :  { %v1459_v61 = vrot.slane %v1455_v0, 3  ;;  %v1522_v42 = vadd.f32 %v1520_v52, %v1512_v16  ;;  %v1435_v38 = vadd.f32 %v5940_v41, %v1433_v20  ;;  %v1483_v14 = vmul.f32 %v4856_v22, %v5937_v37  ;;  %8928 = sst [smem:[#allocation8_spill]] %s6133_s8 }
 0x125   :  { %v1543_v39 = vmul.f32 %v4850_v29, %v5955_v23  ;;  %v1481_v10 = vadd.f32 %v1480_v25, %v1479_v32  ;;  %v1486_v31 = vrot.slane %v1482_v55, 3  ;;  %v1544_v57 = vmul.f32 %v4852_v8, %v5955_v23 }
 0x126   :  { %v1460_v56 = vsel %vm1415_vm2, %v1458_v3, %v1459_v61  ;;  %v1524_v5 = vadd.f32 %v5958_v50, %v1522_v42  ;;  %v4304_v46 = vmul.f32 -1.442695, %v1435_v38  ;;  %v1487_v17 = vrot.slane %v1483_v14, 3 }
 0x127   :  { %v1462_v63 = vadd.f32 %v1460_v56, %v1453_v1  ;;  %v1547_v27 = vrot.slane %v1543_v39, 3  ;;  %v1565_v34 = vrot.slane %v1561_v43, 3  ;;  %v1569_v28 = vmul.f32 %v4854_v24, %v5952_v2 }
 0x128   :  { %v4307_v54 = vmul.f32 -1.442695, %v1524_v5  ;;  %4859 = vpow2.f32 %v4304_v46  ;;  %v1488_v32 = vsel %vm1415_vm2, %v1486_v31, %v1487_v17  ;;  %v1548_v4 = vrot.slane %v1544_v57, 3 }
 0x129   :  { %v1463_v37 = vadd.f32 %v1462_v63, %v5940_v41  ;;  %v1490_v12 = vadd.f32 %v1488_v32, %v1481_v10  ;;  %v1566_v36 = vsel %vm1415_vm2, %v1564_v21, %v1565_v34  ;;  %v1571_v35 = vmul.f32 %v4854_v24, %v5955_v23 }
 0x12a   :  { %4861 = vpow2.f32 %v4307_v54  ;;  %v1549_v26 = vsel %vm1415_vm2, %v1547_v27, %v1548_v4  ;;  %v1568_v18 = vadd.f32 %v1566_v36, %v6078_v6  ;;  %v1572_v47 = vmul.f32 %v4856_v22, %v5955_v23 }
 0x12b   :  { %v4305_v2 = vmul.f32 -1.442695, %v1463_v37  ;;  %v4858_v19 = vpop.eup %4857  ;;  %4863 = vpow2.f32 %v5948_v30  ;;  %v1491_v49 = vadd.f32 %v1490_v12, %v5940_v41  ;;  %v1551_v16 = vadd.f32 %v1549_v26, %v1542_v58 }
 0x12c   :  { %v1575_v48 = vrot.slane %v1571_v35, 3  ;;  %v1230_v29 = vadd.f32 1.0, %v4858_v19  ;;  %v1570_v15 = vadd.f32 %v1569_v28, %v1568_v18  ;;  %v1576_v11 = vrot.slane %v1572_v47, 3 }
 0x12d   :  { %4865 = vpow2.f32 %v4305_v2  ;;  %v4306_v23 = vmul.f32 -1.442695, %v1491_v49  ;;  %v1552_v6 = vadd.f32 %v1551_v16, %v5958_v50  ;;  %v6144_v45 = vstv %s6108_s5  ;;  %s6268_s5 = sld [smem:[#allocation2 + $0x7d]] }
 0x12e   :  { %4867 = vpow2.f32 %v4277_v33  ;;  %v1577_v30 = vsel %vm1415_vm2, %v1575_v48, %v1576_v11  ;;  %v6150_v7 = vstv %s6114_s24  ;;  %v6153_v44 = vstv %s6112_s2  ;;  %s6274_s2 = sld [smem:[#allocation2 + $0xcd]]  ;;  %s6276_s24 = sld [smem:[#allocation2 + $0xd7]] }
 0x12f   :  { %4869 = vrcp.f32 %v1230_v29  ;;  %v4308_v41 = vmul.f32 -1.442695, %v1552_v6  ;;  %v1579_v40 = vadd.f32 %v1577_v30, %v1570_v15  ;;  %v6160_v53 = vstv %s6118_s27  ;;  %s6283_s27 = sld [smem:[#allocation2 + $0x84]] }
 0x130   :  { %4871 = vpow2.f32 %v4306_v23  ;;  %v1919_v8 = vstv %s6120_s28  ;;  %v8615_v60 = vstv %s6127_s6  ;;  %v8600_v20 = vstv %s6131_s12  ;;  %s6372_s12 = sld [smem:[#allocation2 + $0xb0]]  ;;  %s6380_s6 = sld [smem:[#allocation2 + $0x109]] }
 0x131   :  { %4873 = vpow2.f32 %v4308_v41  ;;  %v1580_v43 = vadd.f32 %v1579_v40, %v5958_v50  ;;  %v1917_v50 = vstv %s6125_s3  ;;  %v1920_v62 = vmul.f32 %v6054_v59, %v1919_v8  ;;  %s6390_s28 = sld [smem:[#allocation2 + $0xc4]]  ;;  %s6407_s3 = sld [smem:[#allocation2 + $0xd8]] }
 0x132   :  { %v4860_v13 = vpop.eup %4859  ;;  %v1918_v33 = vmul.f32 %v6054_v59, %v1917_v50  ;;  %v1926_v24 = vmul.f32 %v6054_v59, %v8615_v60  ;;  %v8599_v1 = vstv %s6133_s8  ;;  %v1932_v22 = vmul.f32 %v6054_v59, %v8600_v20  ;;  %s6370_s8 = sld [smem:[#allocation2 + $0xa6]] }
 0x133   :  { %v1439_v9 = vadd.f32 1.0, %v4860_v13  ;;  %v4309_v21 = vmul.f32 -1.442695, %v1580_v43  ;;  %v1922_v52 = vrot.slane %v1920_v62, 1  ;;  %v1938_v61 = vmul.f32 %v6054_v59, %v8599_v1 }
 0x134   :  { %v4862_v51 = vpop.eup %4861  ;;  %v1928_v55 = vrot.slane %v1926_v24, 2  ;;  %v8597_v42 = vstv %s6137_s9  ;;  %v8596_v38 = vstv %s6139_s20  ;;  %v1934_v39 = vrot.slane %v1932_v22, 3  ;;  %8945 = sst [smem:[#allocation27_spill]] %s6274_s2  ;;  %s6359_s20 = sld [smem:[#allocation2 + $0x13a]] }
 0x135   :  { %v1528_v0 = vadd.f32 1.0, %v4862_v51  ;;  %v4864_v3 = vpop.eup %4863  ;;  %4875 = vrcp.f32 %v1439_v9  ;;  %v1924_v58 = vadd.f32 %v1922_v52, %v1918_v33  ;;  %v1657_v31 = vstv %s6141_s21  ;;  %8946 = sst [smem:[#allocation28_spill]] %s6276_s24  ;;  %s6364_s9 = sld [smem:[#allocation2 + $0x9c]] }
 0x136   :  { %v794_v10 = vadd.f32 1.0, %v4864_v3  ;;  %v1940_v5 = vrot.slane %v1938_v61, 4  ;;  %v1944_v46 = vmul.f32 %v6054_v59, %v8597_v42  ;;  %v1950_v57 = vmul.f32 %v6054_v59, %v8596_v38  ;;  %8955 = sst [smem:[#allocation37_spill]] %s6372_s12  ;;  %s6453_s21 = sld [smem:[#allocation2 + $0x113]] }
 0x137   :  { %v4866_v25 = vpop.eup %4865  ;;  %4877 = vrcp.f32 %v1528_v0  ;;  %v1930_v17 = vadd.f32 %v1928_v55, %v1924_v58  ;;  %v8593_v54 = vstv %s6155_s16  ;;  %v1659_v34 = vstv %s6147_s23  ;;  %s6340_s16 = sld [smem:[#allocation2 + $0x126]]  ;;  %8957 = sst [smem:[#allocation39_spill]] %s6380_s6 }
 0x138   :  { %v1467_v14 = vadd.f32 1.0, %v4866_v25  ;;  %4879 = vpow2.f32 %v4309_v21  ;;  %v4868_v56 = vpop.eup %4867  ;;  %v1662_v28 = vstv %s6157_s0  ;;  %v1946_v37 = vrot.slane %v1944_v46, 5  ;;  %8954 = sst [smem:[#allocation36_spill]] %s6370_s8  ;;  %s6463_s23 = sld [smem:[#allocation2 + $0x131]] }
 0x139   :  { %v6204_v63 = vpop.eup %4869  ;;  %v8587_v32 = vstv %s6162_s18  ;;  %v1936_v36 = vadd.f32 %v1934_v39, %v1930_v17  ;;  %v8586_v2 = vstv %s6167_s13  ;;  %v8588_v18 = vstv %s6175_s14  ;;  %s6320_s13 = sld [smem:[#allocation2 + $0x82]]  ;;  %s6329_s18 = sld [smem:[#allocation2 + $0xf5]] }
 0x13a   :  { %4881 = vrcp.f32 %v1467_v14  ;;  %v4872_v27 = vpop.eup %4871  ;;  %v1959_v35 = vmul.f32 %v6204_v63, %v8593_v54  ;;  %v1965_v47 = vmul.f32 %v6204_v63, %v8587_v32  ;;  %v1952_v49 = vrot.slane %v1950_v57, 6  ;;  %s6335_s14 = sld [smem:[#allocation2 + $0x11c]]  ;;  %8958 = sst [smem:[#allocation40_spill]] %s6390_s28 }
 0x13b   :  { %v4874_v4 = vpop.eup %4873  ;;  %v1495_v12 = vadd.f32 1.0, %v4872_v27  ;;  %4883 = vrcp.f32 %v794_v10  ;;  %v1942_v19 = vadd.f32 %v1940_v5, %v1936_v36  ;;  %v6232_v16 = vmul.f32 %v6204_v63, %v8586_v2  ;;  %8953 = sst [smem:[#allocation35_spill]] %s6364_s9  ;;  %s6495_s0 = sld [smem:[#allocation2 + $0x89]] }
 0x13c   :  { %v1556_v26 = vadd.f32 1.0, %v4874_v4  ;;  %v6234_v48 = vadd.f32 1.0, %v4868_v56  ;;  %v1665_v29 = vstv %s6188_s7  ;;  %v8580_v15 = vstv %s6190_s4  ;;  %s6315_s4 = sld [smem:[#allocation2 + $0xeb]]  ;;  %8960 = sst [smem:[#allocation42_spill]] %s6407_s3 }
 0x13d   :  { %4885 = vrcp.f32 %v1495_v12  ;;  %v1668_v23 = vstv %s6194_s25  ;;  %v1948_v6 = vadd.f32 %v1946_v37, %v1942_v19  ;;  %v1956_v30 = vmul.f32 %v6204_v63, %v8588_v18  ;;  %s6484_s7 = sld [smem:[#allocation2 + $0x93]]  ;;  %s6497_s25 = sld [smem:[#allocation2 + $0x9d]] }
 0x13e   :  { %4887 = vrcp.f32 %v1556_v26  ;;  %v1961_v41 = vrot.slane %v1959_v35, 1  ;;  %v1967_v13 = vrot.slane %v1965_v47, 2  ;;  %v8579_v51 = vstv %s6197_s10  ;;  %s6313_s10 = sld [smem:[#allocation2 + $0x81]] }
 0x13f   :  { %v4876_v11 = vpop.eup %4875  ;;  %v8578_v9 = vstv %s6199_s29  ;;  %v1954_v62 = vadd.f32 %v1952_v49, %v1948_v6  ;;  %v1973_v0 = vrot.slane %v6232_v16, 3  ;;  %v6254_v24 = vmul.f32 %v6204_v63, %v8580_v15  ;;  %s6300_s29 = sld [smem:[#allocation2 + $0x7f]]  ;;  %8949 = sst [smem:[#allocation31_spill]] %s6329_s18 }
 0x140   :  { %v1606_v43 = vmul.f32 %v4876_v11, %v6144_v45  ;;  %v8575_v22 = vstv %s6212_s30  ;;  %v2034_v61 = vmul.f32 %v6054_v59, %v8579_v51  ;;  %v2036_v58 = vmul.f32 %v6054_v59, %v8578_v9  ;;  %s6322_s30 = sld [smem:[#allocation2 + $0x83]] }
 0x141   :  { %v4878_v40 = vpop.eup %4877  ;;  %v1957_v14 = vadd.f32 %v1956_v30, %v1954_v62  ;;  %v8577_v39 = vstv %s6215_s11  ;;  %v8501_v57 = vstv %s6225_s15  ;;  %v8500_v27 = vstv %s6227_s19  ;;  %s6294_s11 = sld [smem:[#allocation2 + $0xe1]]  ;;  %s6298_s15 = sld [smem:[#allocation2 + $0x7e]] }
 0x142   :  { %v4880_v21 = vpop.eup %4879  ;;  %v1632_v33 = vmul.f32 %v4878_v40, %v6153_v44  ;;  %v1608_v52 = vadd.f32 %v6150_v7, %v1606_v43  ;;  %v2042_v5 = vmul.f32 %v6054_v59, %v8577_v39  ;;  %v2038_v12 = vrot.slane %v2036_v58, 1  ;;  %s6303_s19 = sld [smem:[#allocation2 + $0x80]]  ;;  %8968 = sst [smem:[#allocation50_spill]] %s6495_s0 }
 0x143   :  { %v1584_v3 = vadd.f32 1.0, %v4880_v21  ;;  %v1963_v17 = vadd.f32 %v1961_v41, %v1957_v14  ;;  %v8498_v47 = vstv %s6239_s1  ;;  %v2048_v19 = vmul.f32 %v6054_v59, %v8501_v57  ;;  %8948 = sst [smem:[#allocation30_spill]] %s6315_s4  ;;  %s6348_s1 = sld [smem:[#allocation2 + $0x92]] }
 0x144   :  { %v4882_v25 = vpop.eup %4881  ;;  %v1634_v55 = vadd.f32 %v6160_v53, %v1632_v33  ;;  %v4328_v56 = vmul.f32 -1.442695, %v1608_v52  ;;  %v2044_v36 = vrot.slane %v2042_v5, 2  ;;  %v2040_v6 = vadd.f32 %v2038_v12, %v2034_v61  ;;  %8966 = sst [smem:[#allocation48_spill]] %s6484_s7 }
 0x145   :  { %4889 = vrcp.f32 %v1584_v3  ;;  %v1615_v10 = vmul.f32 %v4882_v25, %v6144_v45  ;;  %v6280_v37 = vpop.eup %4883  ;;  %v1969_v26 = vadd.f32 %v1967_v13, %v1963_v17  ;;  %v2054_v30 = vmul.f32 %v6054_v59, %v8500_v27  ;;  %8969 = sst [smem:[#allocation51_spill]] %s6497_s25 }
 0x146   :  { %v4331_v46 = vmul.f32 -1.442695, %v1634_v55  ;;  %4891 = vpow2.f32 %v4328_v56  ;;  %v1979_v40 = vrot.slane %v6254_v24, 4  ;;  %v2050_v43 = vrot.slane %v2048_v19, 3 }
 0x147   :  { %v1616_v4 = vadd.f32 %v1615_v10, %v6150_v7  ;;  %v4886_v35 = vpop.eup %4885  ;;  %8947 = sst [smem:[#allocation29_spill]] %s6294_s11  ;;  %v8499_v13 = vstv %s6248_s22  ;;  %v2046_v21 = vadd.f32 %v2044_v36, %v2040_v6  ;;  %v2056_v33 = vrot.slane %v2054_v30, 4  ;;  %s6327_s22 = sld [smem:[#allocation2 + $0x85]] }
 0x148   :  { %4893 = vpow2.f32 %v4331_v46  ;;  %v4888_v49 = vpop.eup %4887  ;;  %v1623_v11 = vmul.f32 %v4886_v35, %v6144_v45  ;;  %v1983_v24 = vmul.f32 %v6204_v63, %v8575_v22  ;;  %v2060_v3 = vmul.f32 %v6054_v59, %v8499_v13 }
 0x149   :  { %v4329_v16 = vmul.f32 -1.442695, %v1616_v4  ;;  %v1641_v41 = vmul.f32 %v4888_v49, %v6153_v44  ;;  %v8497_v52 = vstv %s6262_s17  ;;  %v2052_v25 = vadd.f32 %v2050_v43, %v2046_v21  ;;  %s6333_s17 = sld [smem:[#allocation2 + $0x112]] }
 0x14a   :  { %v1624_v45 = vadd.f32 %v1623_v11, %v6150_v7  ;;  %v1975_v7 = vadd.f32 %v1973_v0, %v1969_v26  ;;  %v2066_v55 = vmul.f32 %v6054_v59, %v8497_v52  ;;  %v1671_v58 = vstv %s6268_s5  ;;  %8950 = sst [smem:[#allocation32_spill]] %s6348_s1  ;;  %s6538_s5 = sld [smem:[#allocation2 + $0x145]] }
 0x14b   :  { %4895 = vpow2.f32 %v4329_v16  ;;  %v1642_v62 = vadd.f32 %v1641_v41, %v6160_v53  ;;  %v8489_v56 = vstv %s6274_s2  ;;  %v8496_v10 = vstv %s6276_s24  ;;  %s6357_s2 = sld [smem:[#allocation2 + $0x88]]  ;;  %s6362_s24 = sld [smem:[#allocation2 + $0xff]] }
 0x14c   :  { %v4330_v61 = vmul.f32 -1.442695, %v1624_v45  ;;  %v2058_v0 = vadd.f32 %v2056_v33, %v2052_v25  ;;  %v2062_v46 = vrot.slane %v2060_v3, 5  ;;  %v2068_v17 = vrot.slane %v2066_v55, 6 }
 0x14d   :  { %v4332_v14 = vmul.f32 -1.442695, %v1642_v62  ;;  %v1674_v12 = vstv %s6283_s27  ;;  %v1989_v36 = vmul.f32 %v6204_v63, %v8498_v47  ;;  %v1981_v26 = vadd.f32 %v1979_v40, %v1975_v7  ;;  %s6567_s27 = sld [smem:[#allocation2 + $0xed]] }
 0x14e   :  { %4897 = vpow2.f32 %v4330_v61  ;;  %v1985_v19 = vrot.slane %v1983_v24, 5  ;;  %v2072_v49 = vmul.f32 %v6204_v63, %v8489_v56  ;;  %v2075_v30 = vmul.f32 %v6204_v63, %v8496_v10 }
 0x14f   :  { %v4890_v5 = vpop.eup %4889  ;;  %4899 = vpow2.f32 %v4332_v14  ;;  %v8491_v41 = vstv %s6294_s11  ;;  %v1682_v40 = vstv %s6298_s15  ;;  %v1684_v43 = vstv %s6300_s29  ;;  %s6378_s11 = sld [smem:[#allocation2 + $0xba]]  ;;  %s6455_s15 = sld [smem:[#allocation2 + $0x11d]] }
 0x150   :  { %v1649_v4 = vmul.f32 %v4890_v5, %v6153_v44  ;;  %v4892_v35 = vpop.eup %4891  ;;  %v2064_v44 = vadd.f32 %v2062_v46, %v2058_v0  ;;  %4901 = vrcp.f32 %v6234_v48  ;;  %v1991_v33 = vrot.slane %v1989_v36, 6  ;;  %s6470_s29 = sld [smem:[#allocation2 + $0xf6]]  ;;  %8977 = sst [smem:[#allocation59_spill]] %s6538_s5 }
 0x151   :  { %v1612_v11 = vadd.f32 1.0, %v4892_v35  ;;  %8951 = sst [smem:[#allocation33_spill]] %s6357_s2  ;;  %v1987_v24 = vadd.f32 %v1985_v19, %v1981_v26  ;;  %v2081_v3 = vmul.f32 %v6204_v63, %v8491_v41  ;;  %v8486_v61 = vstv %s6315_s4  ;;  %s6397_s4 = sld [smem:[#allocation2 + $0xce]] }
 0x152   :  { %v4894_v16 = vpop.eup %4893  ;;  %v1650_v6 = vadd.f32 %v1649_v4, %v6160_v53  ;;  %v2070_v45 = vadd.f32 %v2068_v17, %v2064_v44  ;;  %v1687_v53 = vstv %s6303_s19  ;;  %8952 = sst [smem:[#allocation34_spill]] %s6362_s24  ;;  %v2077_v55 = vrot.slane %v2075_v30, 1  ;;  %s6510_s19 = sld [smem:[#allocation2 + $0xb1]] }
 0x153   :  { %4903 = vrcp.f32 %v1612_v11  ;;  %v1638_v48 = vadd.f32 1.0, %v4894_v16  ;;  %v1690_v14 = vstv %s6313_s10  ;;  %v1693_v5 = vstv %s6320_s13  ;;  %s6486_s10 = sld [smem:[#allocation2 + $0x100]]  ;;  %s6508_s13 = sld [smem:[#allocation2 + $0xa7]] }
 0x154   :  { %v4333_v21 = vmul.f32 -1.442695, %v1650_v6  ;;  %v2073_v25 = vadd.f32 %v2072_v49, %v2070_v45  ;;  %v1696_v0 = vstv %s6322_s30  ;;  %v1699_v46 = vstv %s6327_s22  ;;  %s6536_s30 = sld [smem:[#allocation2 + $0xd9]]  ;;  %8983 = sst [smem:[#allocation65_spill]] %s6567_s27 }
 0x155   :  { %v4896_v62 = vpop.eup %4895  ;;  %8956 = sst [smem:[#allocation38_spill]] %s6378_s11  ;;  %v8594_v17 = vstv %s6333_s17  ;;  %v8595_v4 = vstv %s6335_s14  ;;  %v2087_v36 = vmul.f32 %v6204_v63, %v8486_v61  ;;  %v8598_v26 = vstv %s6340_s16 }
 0x156   :  { %v1620_v7 = vadd.f32 1.0, %v4896_v62  ;;  %4905 = vpow2.f32 %v4333_v21  ;;  %v8613_v19 = vstv %s6342_s26  ;;  %v8485_v44 = vstv %s6329_s18  ;;  %s6421_s18 = sld [smem:[#allocation2 + $0xe2]]  ;;  %8964 = sst [smem:[#allocation46_spill]] %s6470_s29 }
 0x157   :  { %v6392_v11 = vadd.f32 %v1991_v33, %v1987_v24  ;;  %v2079_v6 = vadd.f32 %v2077_v55, %v2073_v25  ;;  %v2083_v30 = vrot.slane %v2081_v3, 2  ;;  %v8612_v21 = vstv %s6359_s20  ;;  %8959 = sst [smem:[#allocation41_spill]] %s6397_s4  ;;  %s6580_s22 = sld [smem:[#allocation2 + $0x128]] }
 0x158   :  { %4907 = vrcp.f32 %v1620_v7  ;;  %v4898_v35 = vpop.eup %4897  ;;  %v8488_v62 = vstv %s6357_s2  ;;  %v2089_v7 = vrot.slane %v2087_v36, 3  ;;  %v6402_v33 = vmul.f32 %v6204_v63, %v8485_v44  ;;  %8971 = sst [smem:[#allocation53_spill]] %s6510_s19  ;;  %s6603_s2 = sld [smem:[#allocation2 + $0x101]] }
 0x159   :  { %4909 = vrcp.f32 %v1638_v48  ;;  %v4900_v49 = vpop.eup %4899  ;;  %v1628_v16 = vadd.f32 1.0, %v4898_v35  ;;  %v8490_v48 = vstv %s6348_s1  ;;  %v8495_v24 = vstv %s6362_s24  ;;  %s6434_s1 = sld [smem:[#allocation2 + $0x144]]  ;;  %8967 = sst [smem:[#allocation49_spill]] %s6486_s10 }
 0x15a   :  { %v1646_v45 = vadd.f32 1.0, %v4900_v49  ;;  %v6405_v3 = vpop.eup %4901  ;;  %v2150_v25 = vmul.f32 %v6054_v59, %v8488_v62  ;;  %v2152_v55 = vmul.f32 %v6054_v59, %v8490_v48  ;;  %v8494_v36 = vstv %s6364_s9  ;;  %s6432_s9 = sld [smem:[#allocation2 + $0xec]]  ;;  %8970 = sst [smem:[#allocation52_spill]] %s6508_s13 }
 0x15b   :  { %4911 = vrcp.f32 %v1628_v16  ;;  %v2085_v49 = vadd.f32 %v2083_v30, %v2079_v6  ;;  %v2158_v16 = vmul.f32 %v6054_v59, %v8494_v36  ;;  %v8573_v44 = vstv %s6370_s8  ;;  %8976 = sst [smem:[#allocation58_spill]] %s6536_s30  ;;  %s6553_s8 = sld [smem:[#allocation2 + $0xcf]] }
 0x15c   :  { %4913 = vrcp.f32 %v1646_v45  ;;  %v8572_v61 = vstv %s6372_s12  ;;  %8961 = sst [smem:[#allocation43_spill]] %s6421_s18  ;;  %v6426_v45 = vmul.f32 %v6204_v63, %v8495_v24  ;;  %v8560_v62 = vstv %s6380_s6  ;;  %s6457_s12 = sld [smem:[#allocation2 + $0x127]] }
 0x15d   :  { %v4904_v35 = vpop.eup %4903  ;;  %v2154_v56 = vrot.slane %v2152_v55, 1  ;;  %v8561_v48 = vstv %s6378_s11  ;;  %v2095_v30 = vrot.slane %v6402_v33, 4  ;;  %v2160_v36 = vrot.slane %v2158_v16, 2  ;;  %s6541_s6 = sld [smem:[#allocation2 + $0x14e]]  ;;  %s6543_s11 = sld [smem:[#allocation2 + $0x14f]] }
 0x15e   :  { %v1658_v6 = vmul.f32 %v4904_v35, %v1657_v31  ;;  %v2164_v24 = vmul.f32 %v6054_v59, %v8573_v44  ;;  %v1683_v55 = vmul.f32 %v4904_v35, %v1682_v40  ;;  %v2170_v47 = vmul.f32 %v6054_v59, %v8572_v61  ;;  %s6555_s24 = sld [smem:[#allocation2 + $0x114]]  ;;  %8985 = sst [smem:[#allocation67_spill]] %s6580_s22 }
 0x15f   :  { %8963 = sst [smem:[#allocation45_spill]] %s6434_s1  ;;  %v2156_v52 = vadd.f32 %v2154_v56, %v2150_v25  ;;  %v2091_v13 = vadd.f32 %v2089_v7, %v2085_v49  ;;  %v2176_v57 = vmul.f32 %v6054_v59, %v8561_v48  ;;  %v8555_v33 = vstv %s6390_s28  ;;  %s6479_s28 = sld [smem:[#allocation2 + $0x13b]] }
 0x160   :  { %v4906_v41 = vpop.eup %4905  ;;  %8962 = sst [smem:[#allocation44_spill]] %s6432_s9  ;;  %v2166_v27 = vrot.slane %v2164_v24, 3  ;;  %v2172_v7 = vrot.slane %v2170_v47, 4 }
 0x161   :  { %v1654_v10 = vadd.f32 1.0, %v4906_v41  ;;  %v2162_v40 = vadd.f32 %v2160_v36, %v2156_v52  ;;  %v2178_v24 = vrot.slane %v2176_v57, 5  ;;  %v8550_v36 = vstv %s6407_s3  ;;  %s6530_s3 = sld [smem:[#allocation2 + $0xc5]]  ;;  %8980 = sst [smem:[#allocation62_spill]] %s6553_s8 }
 0x162   :  { %v4908_v31 = vpop.eup %4907  ;;  %8991 = sst [smem:[#allocation73_spill]] %s6603_s2 }
 0x163   :  { %v4910_v16 = vpop.eup %4909  ;;  %4915 = vrcp.f32 %v1654_v10  ;;  %v1660_v41 = vmul.f32 %v4908_v31, %v1659_v34  ;;  %v1685_v56 = vmul.f32 %v4908_v31, %v1684_v43  ;;  %v2182_v10 = vmul.f32 %v6054_v59, %v8555_v33  ;;  %8978 = sst [smem:[#allocation60_spill]] %s6541_s6 }
 0x164   :  { %v8546_v34 = vstv %s6397_s4  ;;  %v2168_v52 = vadd.f32 %v2166_v27, %v2162_v40  ;;  %v1666_v47 = vmul.f32 %v4910_v16, %v1665_v29  ;;  %v1691_v57 = vmul.f32 %v4910_v16, %v1690_v14  ;;  %s6512_s4 = sld [smem:[#allocation2 + $0x10a]]  ;;  %8979 = sst [smem:[#allocation61_spill]] %s6543_s11 }
 0x165   :  { %v1661_v25 = vadd.f32 %v1660_v41, %v1658_v6  ;;  %v1686_v43 = vadd.f32 %v1685_v56, %v1683_v55  ;;  %v4912_v35 = vpop.eup %4911  ;;  %v2184_v49 = vrot.slane %v2182_v10, 6  ;;  %v2191_v6 = vmul.f32 %v6204_v63, %v8550_v36  ;;  %8965 = sst [smem:[#allocation47_spill]] %s6479_s28 }
 0x166   :  { %v4914_v55 = vpop.eup %4913  ;;  %v1663_v31 = vmul.f32 %v4912_v35, %v1662_v28  ;;  %v1688_v27 = vmul.f32 %v4912_v35, %v1687_v53  ;;  %v2174_v41 = vadd.f32 %v2172_v7, %v2168_v52  ;;  %v8537_v29 = vstv %s6421_s18  ;;  %s6520_s18 = sld [smem:[#allocation2 + $0xbb]]  ;;  %8981 = sst [smem:[#allocation63_spill]] %s6555_s24 }
 0x167   :  { %v1669_v14 = vmul.f32 %v4914_v55, %v1668_v23  ;;  %v2021_v16 = vstv %s6434_s1  ;;  %v2188_v56 = vmul.f32 %v6204_v63, %v8546_v34  ;;  %v8534_v40 = vstv %s6432_s9  ;;  %s6528_s9 = sld [smem:[#allocation2 + $0x8a]]  ;;  %8975 = sst [smem:[#allocation57_spill]] %s6530_s3 }
 0x168   :  { %v1664_v28 = vadd.f32 %v1663_v31, %v1661_v25  ;;  %v1689_v10 = vadd.f32 %v1688_v27, %v1686_v43  ;;  %v1694_v53 = vmul.f32 %v4914_v55, %v1693_v5  ;;  %v2180_v23 = vadd.f32 %v2178_v24, %v2174_v41  ;;  %s6611_s1 = sld [smem:[#allocation2 + $0x9e]] }
 0x169   :  { %v2097_v7 = vadd.f32 %v2095_v30, %v2091_v13  ;;  %v2101_v52 = vrot.slane %v6426_v45, 5  ;;  %v6503_v35 = vmul.f32 %v6204_v63, %v8560_v62  ;;  %v2197_v25 = vmul.f32 %v6204_v63, %v8537_v29 }
 0x16a   :  { %v1667_v5 = vadd.f32 %v1666_v47, %v1664_v28  ;;  %v1692_v43 = vadd.f32 %v1691_v57, %v1689_v10  ;;  %v2186_v24 = vadd.f32 %v2184_v49, %v2180_v23  ;;  %v2193_v13 = vrot.slane %v2191_v6, 1  ;;  %8972 = sst [smem:[#allocation54_spill]] %s6512_s4 }
 0x16b   :  { %v8606_v45 = vstv %s6453_s21  ;;  %v8611_v30 = vstv %s6455_s15  ;;  %v8609_v55 = vstv %s6457_s12  ;;  %v2203_v31 = vmul.f32 %v6204_v63, %v8534_v40 }
 0x16c   :  { %v1670_v57 = vadd.f32 %v1669_v14, %v1667_v5  ;;  %v1695_v27 = vadd.f32 %v1694_v53, %v1692_v43  ;;  %8973 = sst [smem:[#allocation55_spill]] %s6520_s18  ;;  %v8607_v41 = vstv %s6463_s23  ;;  %v2189_v28 = vadd.f32 %v2188_v56, %v2186_v24 }
 0x16d   :  { %v4916_v47 = vpop.eup %4915  ;;  %v2199_v10 = vrot.slane %v2197_v25, 2  ;;  %v8533_v23 = vstv %s6470_s29  ;;  %8974 = sst [smem:[#allocation56_spill]] %s6528_s9  ;;  %v6532_v14 = vadd.f32 %v2101_v52, %v2097_v7  ;;  %v2107_v56 = vrot.slane %v6503_v35, 6  ;;  %s6565_s29 = sld [smem:[#allocation2 + $0xe3]] }
 0x16e   :  { %v1672_v49 = vmul.f32 %v4916_v47, %v1671_v58  ;;  %v1697_v6 = vmul.f32 %v4916_v47, %v1696_v0  ;;  %v2131_v53 = vstv %s6479_s28  ;;  %v2195_v5 = vadd.f32 %v2193_v13, %v2189_v28  ;;  %8993 = sst [smem:[#allocation75_spill]] %s6611_s1  ;;  %s6619_s28 = sld [smem:[#allocation2 + $0x10b]] }
 0x16f   :  { %v2205_v25 = vrot.slane %v2203_v31, 3  ;;  %v8532_v43 = vstv %s6486_s10  ;;  %v2209_v7 = vmul.f32 %v6204_v63, %v8533_v23  ;;  %v8522_v52 = vstv %s6495_s0  ;;  %s6574_s0 = sld [smem:[#allocation2 + $0x11e]]  ;;  %s6601_s10 = sld [smem:[#allocation2 + $0xf7]] }
 0x170   :  { %v1673_v58 = vadd.f32 %v1672_v49, %v1670_v57  ;;  %v1698_v0 = vadd.f32 %v1697_v6, %v1695_v27  ;;  %v8519_v35 = vstv %s6484_s7  ;;  %v8515_v24 = vstv %s6497_s25  ;;  %s6582_s7 = sld [smem:[#allocation2 + $0x132]]  ;;  %s6591_s25 = sld [smem:[#allocation2 + $0x13c]] }
 0x171   :  { %v2201_v31 = vadd.f32 %v2199_v10, %v2195_v5  ;;  %v2266_v47 = vmul.f32 %v6054_v59, %v8522_v52  ;;  %v2268_v57 = vmul.f32 %v6054_v59, %v8519_v35  ;;  %v8518_v28 = vstv %s6508_s13  ;;  %s6593_s13 = sld [smem:[#allocation2 + $0x146]] }
 0x172   :  { %v1675_v13 = vadd.f32 %v1674_v12, %v1673_v58  ;;  %v1700_v27 = vadd.f32 %v1699_v46, %v1698_v0  ;;  %v2274_v12 = vmul.f32 %v6054_v59, %v8515_v24  ;;  %v8521_v49 = vstv %s6510_s19  ;;  %s6598_s19 = sld [smem:[#allocation2 + $0x150]] }
 0x173   :  { %8982 = sst [smem:[#allocation64_spill]] %s6565_s29  ;;  %v8536_v10 = vstv %s6512_s4  ;;  %v2270_v5 = vrot.slane %v2268_v57, 1  ;;  %v2280_v58 = vmul.f32 %v6054_v59, %v8518_v28  ;;  %v2215_v46 = vmul.f32 %v6204_v63, %v8532_v43 }
 0x174   :  { %v4334_v6 = vmul.f32 -1.442695, %v1675_v13  ;;  %v2276_v0 = vrot.slane %v2274_v12, 2  ;;  %v2286_v13 = vmul.f32 %v6054_v59, %v8521_v49  ;;  %v8525_v24 = vstv %s6520_s18  ;;  %s6609_s18 = sld [smem:[#allocation2 + $0x94]]  ;;  %8994 = sst [smem:[#allocation76_spill]] %s6619_s28 }
 0x175   :  { %8984 = sst [smem:[#allocation66_spill]] %s6574_s0  ;;  %v2272_v57 = vadd.f32 %v2270_v5, %v2266_v47  ;;  %v2282_v28 = vrot.slane %v2280_v58, 3  ;;  %v2292_v35 = vmul.f32 %v6054_v59, %v8525_v24  ;;  %v4335_v12 = vmul.f32 -1.442695, %v1700_v27  ;;  %s6632_s4 = sld [smem:[#allocation2 + $0xb2]] }
 0x176   :  { %8986 = sst [smem:[#allocation68_spill]] %s6582_s7  ;;  %4917 = vpow2.f32 %v4334_v6  ;;  %v2207_v49 = vadd.f32 %v2205_v25, %v2201_v31  ;;  %v2211_v52 = vrot.slane %v2209_v7, 4  ;;  %v8531_v6 = vstv %s6530_s3  ;;  %s6626_s3 = sld [smem:[#allocation2 + $0xa8]] }
 0x177   :  { %8987 = sst [smem:[#allocation69_spill]] %s6591_s25  ;;  %v2137_v47 = vstv %s6538_s5  ;;  %v2278_v5 = vadd.f32 %v2276_v0, %v2272_v57  ;;  %v2288_v58 = vrot.slane %v2286_v13, 4  ;;  %v2298_v24 = vmul.f32 %v6054_v59, %v8531_v6  ;;  %s6639_s5 = sld [smem:[#allocation2 + $0x115]] }
 0x178   :  { %8988 = sst [smem:[#allocation70_spill]] %s6593_s13  ;;  %v2027_v27 = vstv %s6541_s6  ;;  %v2143_v25 = vstv %s6543_s11  ;;  %v2221_v7 = vmul.f32 %v6204_v63, %v8536_v10  ;;  %v8545_v31 = vstv %s6536_s30  ;;  %s6634_s11 = sld [smem:[#allocation2 + $0xbc]] }
 0x179   :  { %8989 = sst [smem:[#allocation71_spill]] %s6598_s19  ;;  %v6622_v0 = vadd.f32 %v2107_v56, %v6532_v14  ;;  %v8614_v13 = vstv %s6555_s24  ;;  %v2284_v57 = vadd.f32 %v2282_v28, %v2278_v5  ;;  %v2294_v6 = vrot.slane %v2292_v35, 5  ;;  %s6641_s6 = sld [smem:[#allocation2 + $0x11f]] }
 0x17a   :  { %8990 = sst [smem:[#allocation72_spill]] %s6601_s10  ;;  %4919 = vpow2.f32 %v4335_v12  ;;  %v2213_v43 = vadd.f32 %v2211_v52, %v2207_v49  ;;  %v2217_v23 = vrot.slane %v2215_v46, 5  ;;  %v8551_v40 = vstv %s6553_s8  ;;  %s6653_s30 = sld [smem:[#allocation2 + $0xc6]] }
 0x17b   :  { %8992 = sst [smem:[#allocation74_spill]] %s6609_s18  ;;  %v2290_v10 = vadd.f32 %v2288_v58, %v2284_v57  ;;  %v2300_v29 = vrot.slane %v2298_v24, 6  ;;  %v2307_v14 = vmul.f32 %v6204_v63, %v8545_v31  ;;  %v8554_v56 = vstv %s6565_s29  ;;  %s6659_s8 = sld [smem:[#allocation2 + $0xd0]] }
 0x17c   :  { %8995 = sst [smem:[#allocation77_spill]] %s6626_s3  ;;  %v2223_v52 = vrot.slane %v2221_v7, 6  ;;  %v2229_v35 = vstv %s6574_s0  ;;  %v2235_v28 = vstv %s6580_s22  ;;  %v8620_v49 = vstv %s6582_s7  ;;  %s6661_s29 = sld [smem:[#allocation2 + $0xda]] }
 0x17d   :  { %8996 = sst [smem:[#allocation78_spill]] %s6632_s4  ;;  %v2247_v24 = vstv %s6591_s25  ;;  %v2253_v46 = vstv %s6593_s13  ;;  %v2296_v12 = vadd.f32 %v2294_v6, %v2290_v10  ;;  %v2304_v5 = vmul.f32 %v6204_v63, %v8551_v40  ;;  %s6655_s25 = sld [smem:[#allocation2 + $0x129]] }
 0x17e   :  { %8997 = sst [smem:[#allocation79_spill]] %s6634_s11  ;;  %v2219_v58 = vadd.f32 %v2217_v23, %v2213_v43  ;;  %v2259_v7 = vstv %s6598_s19  ;;  %v2313_v57 = vmul.f32 %v6204_v63, %v8554_v56  ;;  %v8565_v31 = vstv %s6567_s27  ;;  %s6666_s19 = sld [smem:[#allocation2 + $0x133]] }
 0x17f   :  { %8998 = sst [smem:[#allocation80_spill]] %s6639_s5  ;;  %v2302_v10 = vadd.f32 %v2300_v29, %v2296_v12  ;;  %v2309_v6 = vrot.slane %v2307_v14, 1  ;;  %v8571_v36 = vstv %s6601_s10  ;;  %v8574_v40 = vstv %s6603_s2  ;;  %s6668_s13 = sld [smem:[#allocation2 + $0x13d]] }
 0x180   :  { %8999 = sst [smem:[#allocation81_spill]] %s6641_s6  ;;  %v4918_v34 = vpop.eup %4917  ;;  %v8569_v43 = vstv %s6528_s9  ;;  %v8566_v56 = vstv %s6609_s18  ;;  %v8568_v33 = vstv %s6611_s1  ;;  %v2319_v29 = vmul.f32 %v6204_v63, %v8565_v31  ;;  %s6683_s27 = sld [smem:[#allocation2 + $0x147]] }
 0x181   :  { %9000 = sst [smem:[#allocation82_spill]] %s6653_s30  ;;  %v1679_v23 = vadd.f32 1.0, %v4918_v34  ;;  %v2305_v62 = vadd.f32 %v2304_v5, %v2302_v10  ;;  %v8576_v14 = vstv %s6619_s28  ;;  %v2384_v34 = vmul.f32 %v6054_v59, %v8566_v56  ;;  %s6685_s7 = sld [smem:[#allocation2 + $0x151]] }
 0x182   :  { %9002 = sst [smem:[#allocation84_spill]] %s6659_s8  ;;  %v2315_v12 = vrot.slane %v2313_v57, 2  ;;  %v2382_v48 = vmul.f32 %v6054_v59, %v8569_v43  ;;  %v2390_v5 = vmul.f32 %v6054_v59, %v8568_v33  ;;  %v6687_v10 = vadd.f32 %v2223_v52, %v2219_v58  ;;  %s6690_s18 = sld [smem:[#allocation2 + $0xe4]] }
 0x183   :  { %9001 = sst [smem:[#allocation83_spill]] %s6655_s25  ;;  %4921 = vrcp.f32 %v1679_v23  ;;  %v2311_v31 = vadd.f32 %v2309_v6, %v2305_v62  ;;  %v2386_v56 = vrot.slane %v2384_v34, 1  ;;  %v8585_v23 = vstv %s6626_s3  ;;  %s6706_s1 = sld [smem:[#allocation2 + $0xee]] }
 0x184   :  { %9003 = sst [smem:[#allocation85_spill]] %s6661_s29  ;;  %v4920_v57 = vpop.eup %4919  ;;  %v2325_v33 = vmul.f32 %v6204_v63, %v8571_v36  ;;  %v6698_v43 = vmul.f32 %v6204_v63, %v8574_v40  ;;  %v6703_v52 = vmul.f32 %v6204_v63, %v8576_v14  ;;  %v8583_v62 = vstv %s6632_s4  ;;  %s6732_s28 = sld [smem:[#allocation2 + $0xf8]] }
 0x185   :  { %9004 = sst [smem:[#allocation86_spill]] %s6666_s19  ;;  %v2321_v58 = vrot.slane %v2319_v29, 3  ;;  %v2342_v6 = vstv %s6639_s5  ;;  %v2345_v34 = vstv %s6641_s6  ;;  %v8584_v36 = vstv %s6634_s11  ;;  %s6734_s4 = sld [smem:[#allocation2 + $0x102]] }
 0x186   :  { %9005 = sst [smem:[#allocation87_spill]] %s6668_s13  ;;  %v2317_v61 = vadd.f32 %v2315_v12, %v2311_v31  ;;  %v2388_v44 = vadd.f32 %v2386_v56, %v2382_v48  ;;  %v2392_v40 = vrot.slane %v2390_v5, 2  ;;  %v2396_v22 = vmul.f32 %v6054_v59, %v8585_v23  ;;  %s6746_s11 = sld [smem:[#allocation2 + $0x10c]] }
 0x187   :  { %9006 = sst [smem:[#allocation88_spill]] %s6683_s27  ;;  %v1704_v14 = vadd.f32 1.0, %v4920_v57  ;;  %v2351_v39 = vstv %s6655_s25  ;;  %v6718_v9 = vmul.f32 %v6054_v59, %v8583_v62  ;;  %v8592_v29 = vstv %s6653_s30  ;;  %s6834_s3 = sld [smem:[#allocation2 + $0x116]] }
 0x188   :  { %9007 = sst [smem:[#allocation89_spill]] %s6685_s7  ;;  %v2327_v51 = vrot.slane %v2325_v33, 4  ;;  %v2333_v15 = vrot.slane %v6698_v43, 5  ;;  %v2339_v31 = vrot.slane %v6703_v52, 6  ;;  %v6726_v48 = vmul.f32 %v6054_v59, %v8584_v36  ;;  %s6857_s5 = sld [smem:[#allocation2 + $0x12a]] }
 0x189   :  { %9008 = sst [smem:[#allocation90_spill]] %s6690_s18  ;;  %v2357_v56 = vstv %s6666_s19  ;;  %v2363_v12 = vstv %s6668_s13  ;;  %v8590_v5 = vstv %s6659_s8  ;;  %v8591_v57 = vstv %s6661_s29  ;;  %s6865_s25 = sld [smem:[#allocation2 + $0x8b]] }
 0x18a   :  { %9009 = sst [smem:[#allocation91_spill]] %s6706_s1  ;;  %v2323_v33 = vadd.f32 %v2321_v58, %v2317_v61  ;;  %v2394_v43 = vadd.f32 %v2392_v40, %v2388_v44  ;;  %v2398_v62 = vrot.slane %v2396_v22, 3  ;;  %v6739_v36 = vmul.f32 %v6054_v59, %v8592_v29  ;;  %s6879_s6 = sld [smem:[#allocation2 + $0x9f]] }
 0x18b   :  { %9010 = sst [smem:[#allocation92_spill]] %s6732_s28  ;;  %4923 = vrcp.f32 %v1704_v14  ;;  %v2369_v23 = vstv %s6683_s27  ;;  %v2375_v2 = vstv %s6685_s7  ;;  %v2404_v32 = vrot.slane %v6718_v9, 4  ;;  %s6896_s19 = sld [smem:[#allocation2 + $0xa9]] }
 0x18c   :  { %9011 = sst [smem:[#allocation93_spill]] %s6734_s4  ;;  %v2410_v61 = vrot.slane %v6726_v48, 5  ;;  %v6752_v22 = vmul.f32 %v6204_v63, %v8590_v5  ;;  %v6757_v44 = vmul.f32 %v6204_v63, %v8591_v57  ;;  %v8605_v40 = vstv %s6690_s18  ;;  %s6850_s18 = sld [smem:[#allocation2 + $0x120]] }
 0x18d   :  { %v6744_v18 = vpop.eup %4921  ;;  %9012 = sst [smem:[#allocation94_spill]] %s6746_s11  ;;  %v8604_v5 = vstv %s6706_s1  ;;  %v2329_v29 = vadd.f32 %v2327_v51, %v2323_v33  ;;  %v2400_v54 = vadd.f32 %v2398_v62, %v2394_v43  ;;  %v6783_v51 = vmul.f32 %v6204_v63, %v8605_v40  ;;  %s6898_s24 = sld [smem:[#allocation2 + $0xb3]] }
 0x18e   :  { %v1995_v9 = vmul.f32 %v6744_v18, %v8594_v17  ;;  %v1998_v14 = vmul.f32 %v6744_v18, %v8595_v4  ;;  %v2004_v58 = vmul.f32 %v6744_v18, %v8598_v26  ;;  %v2111_v57 = vmul.f32 %v6744_v18, %v8606_v45  ;;  %9019 = sst [smem:[#allocation47_spill]] %s6834_s3  ;;  %s6919_s27 = sld [smem:[#allocation2 + $0xc7]] }
 0x18f   :  { %v2416_v17 = vrot.slane %v6739_v36, 6  ;;  %v2010_v26 = vmul.f32 %v6744_v18, %v8613_v19  ;;  %v2425_v20 = vrot.slane %v6757_v44, 1  ;;  %v6788_v62 = vmul.f32 %v6204_v63, %v8604_v5  ;;  %9024 = sst [smem:[#allocation60_spill]] %s6857_s5  ;;  %s6928_s13 = sld [smem:[#allocation2 + $0x148]] }
 0x190   :  { %v1996_v4 = vadd.f32 %v1995_v9, %v6392_v11  ;;  %v2000_v38 = vrot.slane %v1998_v14, 1  ;;  %v2006_v42 = vrot.slane %v2004_v58, 2  ;;  %v2112_v1 = vadd.f32 %v2111_v57, %v6622_v0  ;;  %9025 = sst [smem:[#allocation59_spill]] %s6865_s25  ;;  %s6921_s7 = sld [smem:[#allocation2 + $0x13e]] }
 0x191   :  { %v2114_v33 = vmul.f32 %v6744_v18, %v8611_v30  ;;  %v2120_v43 = vmul.f32 %v6744_v18, %v8609_v55  ;;  %v2126_v0 = vmul.f32 %v6744_v18, %v8607_v41  ;;  %v2016_v57 = vmul.f32 %v6744_v18, %v8612_v21  ;;  %9027 = sst [smem:[#allocation95_spill]] %s6879_s6  ;;  %s6938_s10 = sld [smem:[#allocation2 + $0xdb]] }
 0x192   :  { %v2002_v11 = vadd.f32 %v2000_v38, %v1996_v4  ;;  %v2227_v9 = vmul.f32 %v6744_v18, %v8614_v13  ;;  %v8729_v14 = vstv %s6732_s28  ;;  %v8641_v38 = vstv %s6734_s4  ;;  %9023 = sst [smem:[#allocation45_spill]] %s6850_s18  ;;  %s6877_s28 = sld [smem:[#allocation2 + $0x95]] }
 0x193   :  { %v2012_v58 = vrot.slane %v2010_v26, 3  ;;  %v2116_v5 = vrot.slane %v2114_v33, 1  ;;  %v2122_v40 = vrot.slane %v2120_v43, 2  ;;  %v2128_v45 = vrot.slane %v2126_v0, 3  ;;  %9028 = sst [smem:[#allocation96_spill]] %s6896_s19  ;;  %s6914_s4 = sld [smem:[#allocation2 + $0x134]] }
 0x194   :  { %v2008_v4 = vadd.f32 %v2006_v42, %v2002_v11  ;;  %v2132_v41 = vmul.f32 %v6744_v18, %v2131_v53  ;;  %v2335_v55 = vadd.f32 %v2333_v15, %v2329_v29  ;;  %v8640_v30 = vstv %s6746_s11  ;;  %9029 = sst [smem:[#allocation97_spill]] %s6898_s24  ;;  %s6912_s11 = sld [smem:[#allocation2 + $0xbd]] }
 0x195   :  { %v6811_v21 = vpop.eup %4923  ;;  %v2118_v19 = vadd.f32 %v2116_v5, %v2112_v1  ;;  %v2228_v13 = vadd.f32 %v2227_v9, %v6687_v10  ;;  %v2230_v60 = vmul.f32 %v6744_v18, %v2229_v35  ;;  %v2236_v42 = vmul.f32 %v6744_v18, %v2235_v28  ;;  %9032 = sst [smem:[#allocation100_spill]] %s6919_s27  ;;  %s6947_s2 = sld [smem:[#allocation2 + $0xd1]] }
 0x196   :  { %v2018_v26 = vrot.slane %v2016_v57, 4  ;;  %v2022_v11 = vmul.f32 %v6744_v18, %v2021_v16  ;;  %v2242_v15 = vmul.f32 %v6744_v18, %v8620_v49  ;;  %v2406_v29 = vadd.f32 %v2404_v32, %v2400_v54  ;;  %9033 = sst [smem:[#allocation101_spill]] %s6921_s7  ;;  %s6949_s22 = sld [smem:[#allocation2 + $0x152]] }
 0x197   :  { %v2014_v33 = vadd.f32 %v2012_v58, %v2008_v4  ;;  %v2124_v1 = vadd.f32 %v2122_v40, %v2118_v19  ;;  %v2232_v10 = vrot.slane %v2230_v60, 1  ;;  %v2238_v5 = vrot.slane %v2236_v42, 2  ;;  %9034 = sst [smem:[#allocation102_spill]] %s6928_s13  ;;  %s7612_s0 = sld [smem:[#allocation2 + $0x125]] }
 0x198   :  { %v2028_v43 = vmul.f32 %v6744_v18, %v2027_v27  ;;  %v2138_v0 = vmul.f32 %v6744_v18, %v2137_v47  ;;  %v2431_v57 = vrot.slane %v6783_v51, 2  ;;  %v2437_v9 = vrot.slane %v6788_v62, 3  ;;  %9026 = sst [smem:[#allocation61_spill]] %s6877_s28  ;;  %s9187_s1 = sld [smem:[#allocation36_spill]] }
 0x199   :  { %v2130_v54 = vadd.f32 %v2128_v45, %v2124_v1  ;;  %v2134_v32 = vrot.slane %v2132_v41, 4  ;;  %v2234_v4 = vadd.f32 %v2232_v10, %v2228_v13  ;;  %v2341_v60 = vadd.f32 %v2339_v31, %v2335_v55  ;;  %9031 = sst [smem:[#allocation99_spill]] %s6914_s4  ;;  %s9195_s29 = sld [smem:[#allocation38_spill]] }
 0x19a   :  { %v2244_v19 = vrot.slane %v2242_v15, 3  ;;  %v2248_v40 = vmul.f32 %v6744_v18, %v2247_v24  ;;  %v2343_v58 = vmul.f32 %v6744_v18, %v2342_v6  ;;  %v2346_v42 = vmul.f32 %v6744_v18, %v2345_v34  ;;  %9030 = sst [smem:[#allocation98_spill]] %s6912_s11  ;;  %s9217_s8 = sld [smem:[#allocation51_spill]] }
 0x19b   :  { %v2020_v49 = vadd.f32 %v2018_v26, %v2014_v33  ;;  %v2024_v45 = vrot.slane %v2022_v11, 5  ;;  %v2240_v41 = vadd.f32 %v2238_v5, %v2234_v4  ;;  %v2352_v13 = vmul.f32 %v6744_v18, %v2351_v39  ;;  %9035 = sst [smem:[#allocation103_spill]] %s6938_s10  ;;  %s9218_s30 = sld [smem:[#allocation52_spill]] }
 0x19c   :  { %v2030_v55 = vrot.slane %v2028_v43, 6  ;;  %v2344_v52 = vadd.f32 %v2343_v58, %v2341_v60  ;;  %v2348_v31 = vrot.slane %v2346_v42, 1  ;;  %v6855_v15 = vmul.f32 %v6204_v63, %v8729_v14  ;;  %9036 = sst [smem:[#allocation104_spill]] %s6947_s2  ;;  %s9240_s9 = sld [smem:[#allocation58_spill]] }
 0x19d   :  { %v2136_v26 = vadd.f32 %v2134_v32, %v2130_v54  ;;  %v2140_v11 = vrot.slane %v2138_v0, 5  ;;  %v2144_v33 = vmul.f32 %v6744_v18, %v2143_v25  ;;  %v2254_v1 = vmul.f32 %v6744_v18, %v2253_v46  ;;  %9037 = sst [smem:[#allocation105_spill]] %s6949_s22 }
 0x19e   :  { %v2246_v10 = vadd.f32 %v2244_v19, %v2240_v41  ;;  %v2250_v5 = vrot.slane %v2248_v40, 4  ;;  %v6870_v43 = vmul.f32 %v6744_v18, %v2259_v7  ;;  %v2412_v0 = vadd.f32 %v2410_v61, %v2406_v29  ;;  %9122 = sst [smem:[#allocation190_spill]] %s7612_s0 }
 0x19f   :  { %v2026_v54 = vadd.f32 %v2024_v45, %v2020_v49  ;;  %v2350_v32 = vadd.f32 %v2348_v31, %v2344_v52  ;;  %v2354_v4 = vrot.slane %v2352_v13, 2  ;;  %v2358_v60 = vmul.f32 %v6744_v18, %v2357_v56 }
 0x1a0   :  { %v6884_v19 = vmul.f32 %v6744_v18, %v2363_v12  ;;  %v2418_v48 = vadd.f32 %v2416_v17, %v2412_v0  ;;  %v2447_v49 = vmul.f32 %v6204_v63, %v8641_v38  ;;  %v6894_v61 = vmul.f32 %v6204_v63, %v8640_v30 }
 0x1a1   :  { %v2142_v29 = vadd.f32 %v2140_v11, %v2136_v26  ;;  %v2146_v40 = vrot.slane %v2144_v33, 6  ;;  %v6903_v58 = vmul.f32 %v6744_v18, %v2369_v23  ;;  %v8637_v42 = vstv %s6834_s3  ;;  %s6962_s3 = sld [smem:[#allocation2 + $0xe5]] }
 0x1a2   :  { %v2252_v17 = vadd.f32 %v2250_v5, %v2246_v10  ;;  %v2256_v36 = vrot.slane %v2254_v1, 5  ;;  %v6909_v45 = vmul.f32 %v6744_v18, %v2375_v2  ;;  %v2421_v41 = vadd.f32 %v6752_v22, %v2418_v48 }
 0x1a3   :  { %v6916_v13 = vadd.f32 %v2030_v55, %v2026_v54  ;;  %v2262_v52 = vrot.slane %v6870_v43, 6  ;;  %v2356_v31 = vadd.f32 %v2354_v4, %v2350_v32  ;;  %v2360_v26 = vrot.slane %v2358_v60, 3 }
 0x1a4   :  { %v2366_v11 = vrot.slane %v6884_v19, 4  ;;  %v2427_v22 = vadd.f32 %v2425_v20, %v2421_v41  ;;  %v2443_v33 = vrot.slane %v6855_v15, 4  ;;  %v8639_v55 = vstv %s6850_s18  ;;  %s6964_s18 = sld [smem:[#allocation2 + $0xef]] }
 0x1a5   :  { %v6930_v1 = vadd.f32 %v2146_v40, %v2142_v29  ;;  %v2372_v10 = vrot.slane %v6903_v58, 5  ;;  %v2449_v5 = vrot.slane %v2447_v49, 5  ;;  %v8638_v43 = vstv %s6857_s5  ;;  %s6972_s5 = sld [smem:[#allocation2 + $0xf9]] }
 0x1a6   :  { %v2258_v0 = vadd.f32 %v2256_v36, %v2252_v17  ;;  %v2378_v44 = vrot.slane %v6909_v45, 6  ;;  %v2433_v20 = vadd.f32 %v2431_v57, %v2427_v22  ;;  %v2497_v15 = vstv %s6865_s25  ;;  %s6974_s25 = sld [smem:[#allocation2 + $0x103]] }
 0x1a7   :  { %v2362_v54 = vadd.f32 %v2360_v26, %v2356_v31  ;;  %v2455_v32 = vrot.slane %v6894_v61, 6  ;;  %v2459_v4 = vmul.f32 %v6744_v18, %v8637_v42  ;;  %v2462_v60 = vmul.f32 %v6744_v18, %v8639_v55  ;;  %9038 = sst [smem:[#allocation106_spill]] %s6962_s3 }
 0x1a8   :  { %v2439_v51 = vadd.f32 %v2437_v9, %v2433_v20  ;;  %v6956_v57 = vmul.f32 %v6744_v18, %v8638_v43  ;;  %v2498_v19 = vmul.f32 %v6054_v59, %v2497_v15  ;;  %v2499_v48 = vstv %s6877_s28  ;;  %s7055_s28 = sld [smem:[#allocation2 + $0xb4]] }
 0x1a9   :  { %v2500_v62 = vmul.f32 %v6054_v59, %v2499_v48  ;;  %v8728_v9 = vstv %s6879_s6  ;;  %v8685_v49 = vstv %s6896_s19  ;;  %v8683_v61 = vstv %s6898_s24  ;;  %s7000_s24 = sld [smem:[#allocation2 + $0x10d]]  ;;  %s7002_s19 = sld [smem:[#allocation2 + $0x117]] }
 0x1aa   :  { %9039 = sst [smem:[#allocation107_spill]] %s6964_s18  ;;  %v6976_v29 = vadd.f32 %v2262_v52, %v2258_v0  ;;  %v2445_v40 = vadd.f32 %v2443_v33, %v2439_v51  ;;  %v2506_v17 = vmul.f32 %v6054_v59, %v8728_v9  ;;  %v2512_v36 = vmul.f32 %v6054_v59, %v8685_v49  ;;  %s7038_s6 = sld [smem:[#allocation2 + $0xa0]] }
 0x1ab   :  { %9040 = sst [smem:[#allocation108_spill]] %s6972_s5  ;;  %v8652_v41 = vstv %s6914_s4  ;;  %v2502_v31 = vrot.slane %v2500_v62, 1  ;;  %v2518_v26 = vmul.f32 %v6054_v59, %v8683_v61  ;;  %v8681_v22 = vstv %s6912_s11  ;;  %s7019_s4 = sld [smem:[#allocation2 + $0x121]] }
 0x1ac   :  { %9041 = sst [smem:[#allocation109_spill]] %s6974_s25  ;;  %v2451_v20 = vadd.f32 %v2449_v5, %v2445_v40  ;;  %v8650_v42 = vstv %s6921_s7  ;;  %v2508_v52 = vrot.slane %v2506_v17, 2  ;;  %v8654_v0 = vstv %s6919_s27  ;;  %s7023_s27 = sld [smem:[#allocation2 + $0x8c]] }
 0x1ad   :  { %v8647_v33 = vstv %s6928_s13  ;;  %v2504_v51 = vadd.f32 %v2502_v31, %v2498_v19  ;;  %v2514_v43 = vrot.slane %v2512_v36, 3  ;;  %v2524_v55 = vmul.f32 %v6054_v59, %v8681_v22  ;;  %s7025_s7 = sld [smem:[#allocation2 + $0x12b]]  ;;  %s7033_s13 = sld [smem:[#allocation2 + $0x96]] }
 0x1ae   :  { %v2368_v62 = vadd.f32 %v2366_v11, %v2362_v54  ;;  %v2457_v30 = vadd.f32 %v2455_v32, %v2451_v20  ;;  %v2464_v38 = vrot.slane %v2462_v60, 1  ;;  %v6998_v5 = vmul.f32 %v6744_v18, %v8652_v41  ;;  %s7035_s11 = sld [smem:[#allocation2 + $0x135]]  ;;  %9051 = sst [smem:[#allocation119_spill]] %s7055_s28 }
 0x1af   :  { %9042 = sst [smem:[#allocation110_spill]] %s7000_s24  ;;  %v2510_v19 = vadd.f32 %v2508_v52, %v2504_v51  ;;  %v2520_v40 = vrot.slane %v2518_v26, 4  ;;  %v2530_v11 = vmul.f32 %v6054_v59, %v8654_v0  ;;  %v8653_v54 = vstv %s6938_s10  ;;  %s7053_s10 = sld [smem:[#allocation2 + $0xaa]] }
 0x1b0   :  { %9043 = sst [smem:[#allocation111_spill]] %s7002_s19  ;;  %v2460_v32 = vadd.f32 %v2459_v4, %v2457_v30  ;;  %v7011_v60 = vmul.f32 %v6744_v18, %v8650_v42  ;;  %v7016_v17 = vmul.f32 %v6744_v18, %v8647_v33  ;;  %v8662_v36 = vstv %s6949_s22  ;;  %s7073_s22 = sld [smem:[#allocation2 + $0xc8]] }
 0x1b1   :  { %9044 = sst [smem:[#allocation112_spill]] %s7019_s4  ;;  %v2516_v31 = vadd.f32 %v2514_v43, %v2510_v19  ;;  %v2526_v26 = vrot.slane %v2524_v55, 5  ;;  %v8678_v20 = vstv %s6962_s3  ;;  %v8661_v52 = vstv %s6964_s18  ;;  %s7068_s18 = sld [smem:[#allocation2 + $0xbe]] }
 0x1b2   :  { %9045 = sst [smem:[#allocation113_spill]] %s7023_s27  ;;  %v8679_v30 = vstv %s6947_s2  ;;  %v2539_v4 = vmul.f32 %v6204_v63, %v8653_v54  ;;  %v8659_v51 = vstv %s6972_s5  ;;  %v8660_v33 = vstv %s6974_s25  ;;  %s7082_s25 = sld [smem:[#allocation2 + $0x13f]] }
 0x1b3   :  { %9046 = sst [smem:[#allocation114_spill]] %s7025_s7  ;;  %v2466_v55 = vadd.f32 %v2464_v38, %v2460_v32  ;;  %v2470_v43 = vrot.slane %v6956_v57, 2  ;;  %v2522_v19 = vadd.f32 %v2520_v40, %v2516_v31  ;;  %v2532_v42 = vrot.slane %v2530_v11, 6  ;;  %s7088_s3 = sld [smem:[#allocation2 + $0x149]] }
 0x1b4   :  { %9047 = sst [smem:[#allocation115_spill]] %s7033_s13  ;;  %v2374_v41 = vadd.f32 %v2372_v10, %v2368_v62  ;;  %v7045_v54 = vmul.f32 %v6744_v18, %v8662_v36  ;;  %v2545_v0 = vmul.f32 %v6204_v63, %v8678_v20  ;;  %v2551_v38 = vmul.f32 %v6204_v63, %v8661_v52  ;;  %s7086_s5 = sld [smem:[#allocation2 + $0xdc]] }
 0x1b5   :  { %9048 = sst [smem:[#allocation116_spill]] %s7035_s11  ;;  %v2528_v57 = vadd.f32 %v2526_v26, %v2522_v19  ;;  %v2536_v58 = vmul.f32 %v6204_v63, %v8679_v30  ;;  %v2557_v10 = vmul.f32 %v6204_v63, %v8659_v51  ;;  %v7066_v62 = vmul.f32 %v6204_v63, %v8660_v33  ;;  %s7102_s2 = sld [smem:[#allocation2 + $0xd2]] }
 0x1b6   :  { %9049 = sst [smem:[#allocation117_spill]] %s7038_s6  ;;  %v2476_v40 = vrot.slane %v6998_v5, 3  ;;  %v2482_v11 = vrot.slane %v7011_v60, 4  ;;  %v2488_v32 = vrot.slane %v7016_v17, 5  ;;  %v2541_v31 = vrot.slane %v2539_v4, 1 }
 0x1b7   :  { %9050 = sst [smem:[#allocation118_spill]] %s7053_s10  ;;  %v2472_v26 = vadd.f32 %v2470_v43, %v2466_v55  ;;  %v2534_v19 = vadd.f32 %v2532_v42, %v2528_v57  ;;  %v8668_v51 = vstv %s7000_s24  ;;  %v8667_v33 = vstv %s7002_s19  ;;  %s7116_s19 = sld [smem:[#allocation2 + $0xe6]] }
 0x1b8   :  { %9052 = sst [smem:[#allocation120_spill]] %s7068_s18  ;;  %v7079_v52 = vadd.f32 %v2378_v44, %v2374_v41  ;;  %v2494_v5 = vrot.slane %v7045_v54, 6  ;;  %v2547_v36 = vrot.slane %v2545_v0, 2  ;;  %v2553_v4 = vrot.slane %v2551_v38, 3  ;;  %s7118_s24 = sld [smem:[#allocation2 + $0xf0]] }
 0x1b9   :  { %9053 = sst [smem:[#allocation121_spill]] %s7073_s22  ;;  %v2537_v55 = vadd.f32 %v2536_v58, %v2534_v19  ;;  %v2559_v42 = vrot.slane %v2557_v10, 4  ;;  %v2565_v43 = vrot.slane %v7066_v62, 5  ;;  %v8671_v57 = vstv %s7019_s4  ;;  %s7125_s4 = sld [smem:[#allocation2 + $0xfa]] }
 0x1ba   :  { %9054 = sst [smem:[#allocation122_spill]] %s7082_s25  ;;  %v2569_v45 = vmul.f32 %v6204_v63, %v8668_v51  ;;  %v7096_v44 = vmul.f32 %v6744_v18, %v8667_v33  ;;  %v8687_v41 = vstv %s7025_s7  ;;  %v8675_v0 = vstv %s7023_s27  ;;  %s7158_s7 = sld [smem:[#allocation2 + $0x118]] }
 0x1bb   :  { %9055 = sst [smem:[#allocation123_spill]] %s7086_s5  ;;  %v2478_v38 = vadd.f32 %v2476_v40, %v2472_v26  ;;  %v2543_v58 = vadd.f32 %v2541_v31, %v2537_v55  ;;  %v8688_v10 = vstv %s7035_s11  ;;  %v8674_v62 = vstv %s7033_s13  ;;  %s7127_s27 = sld [smem:[#allocation2 + $0x104]] }
 0x1bc   :  { %9056 = sst [smem:[#allocation124_spill]] %s7088_s3  ;;  %v7107_v19 = vmul.f32 %v6744_v18, %v8671_v57  ;;  %v2614_v33 = vmul.f32 %v6054_v59, %v8675_v0  ;;  %v2616_v51 = vmul.f32 %v6054_v59, %v8674_v62  ;;  %v8677_v40 = vstv %s7038_s6  ;;  %s7136_s6 = sld [smem:[#allocation2 + $0x153]] }
 0x1bd   :  { %9057 = sst [smem:[#allocation125_spill]] %s7102_s2  ;;  %v2549_v31 = vadd.f32 %v2547_v36, %v2543_v58  ;;  %v2622_v26 = vmul.f32 %v6054_v59, %v8677_v40  ;;  %v8682_v55 = vstv %s7053_s10  ;;  %v8684_v57 = vstv %s7055_s28  ;;  %s7144_s10 = sld [smem:[#allocation2 + $0x10e]] }
 0x1be   :  { %9058 = sst [smem:[#allocation126_spill]] %s7116_s19  ;;  %v2618_v62 = vrot.slane %v2616_v51, 1  ;;  %v2628_v0 = vmul.f32 %v6054_v59, %v8682_v55  ;;  %v2634_v36 = vmul.f32 %v6054_v59, %v8684_v57  ;;  %v8727_v58 = vstv %s7068_s18  ;;  %s7166_s11 = sld [smem:[#allocation2 + $0x122]] }
 0x1bf   :  { %9059 = sst [smem:[#allocation127_spill]] %s7118_s24  ;;  %v2555_v40 = vadd.f32 %v2553_v4, %v2549_v31  ;;  %v7141_v20 = vmul.f32 %v6744_v18, %v8687_v41  ;;  %v2624_v30 = vrot.slane %v2622_v26, 2  ;;  %v8690_v51 = vstv %s7073_s22  ;;  %s7174_s22 = sld [smem:[#allocation2 + $0x8d]] }
 0x1c0   :  { %9060 = sst [smem:[#allocation128_spill]] %s7125_s4  ;;  %v2571_v22 = vrot.slane %v2569_v45, 6  ;;  %v2620_v55 = vadd.f32 %v2618_v62, %v2614_v33  ;;  %v2630_v61 = vrot.slane %v2628_v0, 3  ;;  %v2640_v57 = vmul.f32 %v6054_v59, %v8727_v58  ;;  %s7182_s18 = sld [smem:[#allocation2 + $0x12c]] }
 0x1c1   :  { %9061 = sst [smem:[#allocation129_spill]] %s7127_s27  ;;  %v2561_v49 = vadd.f32 %v2559_v42, %v2555_v40  ;;  %v7152_v4 = vmul.f32 %v6744_v18, %v8688_v10  ;;  %v8726_v31 = vstv %s7082_s25  ;;  %v2646_v26 = vmul.f32 %v6054_v59, %v8690_v51  ;;  %s7180_s25 = sld [smem:[#allocation2 + $0x97]] }
 0x1c2   :  { %9062 = sst [smem:[#allocation130_spill]] %s7136_s6  ;;  %v8707_v41 = vstv %s7088_s3  ;;  %v2626_v33 = vadd.f32 %v2624_v30, %v2620_v55  ;;  %v2636_v45 = vrot.slane %v2634_v36, 4  ;;  %v8698_v0 = vstv %s7086_s5  ;;  %s7198_s5 = sld [smem:[#allocation2 + $0xa1]] }
 0x1c3   :  { %9063 = sst [smem:[#allocation131_spill]] %s7144_s10  ;;  %v2484_v42 = vadd.f32 %v2482_v11, %v2478_v38  ;;  %v2567_v62 = vadd.f32 %v2565_v43, %v2561_v49  ;;  %v2580_v40 = vrot.slane %v7107_v19, 1  ;;  %v2586_v10 = vrot.slane %v7141_v20, 2  ;;  %s7200_s28 = sld [smem:[#allocation2 + $0xab]] }
 0x1c4   :  { %9064 = sst [smem:[#allocation132_spill]] %s7158_s7  ;;  %v7171_v51 = vmul.f32 %v6744_v18, %v8726_v31  ;;  %v2632_v30 = vadd.f32 %v2630_v61, %v2626_v33  ;;  %v2642_v55 = vrot.slane %v2640_v57, 5  ;;  %v8697_v60 = vstv %s7102_s2  ;;  %s7207_s3 = sld [smem:[#allocation2 + $0xb5]] }
 0x1c5   :  { %9065 = sst [smem:[#allocation133_spill]] %s7166_s11  ;;  %v2573_v49 = vadd.f32 %v2571_v22, %v2567_v62  ;;  %v2648_v11 = vrot.slane %v2646_v26, 6  ;;  %v2655_v43 = vmul.f32 %v6204_v63, %v8698_v0  ;;  %v8705_v38 = vstv %s7116_s19  ;;  %s7223_s2 = sld [smem:[#allocation2 + $0xc9]] }
 0x1c6   :  { %9066 = sst [smem:[#allocation134_spill]] %s7174_s22  ;;  %v2638_v19 = vadd.f32 %v2636_v45, %v2632_v30  ;;  %v8704_v61 = vstv %s7118_s24  ;;  %v8702_v57 = vstv %s7125_s4  ;;  %v8703_v36 = vstv %s7127_s27  ;;  %s7221_s19 = sld [smem:[#allocation2 + $0xbf]] }
 0x1c7   :  { %9067 = sst [smem:[#allocation135_spill]] %s7180_s25  ;;  %v2490_v22 = vadd.f32 %v2488_v32, %v2484_v42  ;;  %v7192_v26 = vmul.f32 %v6744_v18, %v8707_v41  ;;  %v8708_v33 = vstv %s7136_s6  ;;  %v2652_v62 = vmul.f32 %v6204_v63, %v8697_v60  ;;  %s7227_s24 = sld [smem:[#allocation2 + $0x136]] }
 0x1c8   :  { %9068 = sst [smem:[#allocation136_spill]] %s7182_s18  ;;  %v2576_v45 = vadd.f32 %v7096_v44, %v2573_v49  ;;  %v2644_v30 = vadd.f32 %v2642_v55, %v2638_v19  ;;  %v2661_v17 = vmul.f32 %v6204_v63, %v8705_v38  ;;  %v8716_v32 = vstv %s7144_s10  ;;  %s7243_s27 = sld [smem:[#allocation2 + $0x140]] }
 0x1c9   :  { %9069 = sst [smem:[#allocation137_spill]] %s7198_s5  ;;  %v2592_v42 = vrot.slane %v7152_v4, 3  ;;  %v2667_v60 = vmul.f32 %v6204_v63, %v8704_v61  ;;  %v2673_v0 = vmul.f32 %v6204_v63, %v8702_v57  ;;  %v7219_v44 = vmul.f32 %v6204_v63, %v8703_v36  ;;  %s7251_s10 = sld [smem:[#allocation2 + $0xdd]] }
 0x1ca   :  { %9070 = sst [smem:[#allocation138_spill]] %s7200_s28  ;;  %v2598_v55 = vrot.slane %v7171_v51, 4  ;;  %v2650_v49 = vadd.f32 %v2648_v11, %v2644_v30  ;;  %v2657_v4 = vrot.slane %v2655_v43, 1  ;;  %v8713_v19 = vstv %s7158_s7  ;;  %s7256_s4 = sld [smem:[#allocation2 + $0xd3]] }
 0x1cb   :  { %9071 = sst [smem:[#allocation139_spill]] %s7207_s3  ;;  %v7231_v57 = vadd.f32 %v2494_v5, %v2490_v22  ;;  %v2604_v36 = vrot.slane %v7192_v26, 5  ;;  %v7237_v61 = vmul.f32 %v6744_v18, %v8708_v33  ;;  %v2685_v11 = vmul.f32 %v6204_v63, %v8716_v32  ;;  %s7258_s6 = sld [smem:[#allocation2 + $0xe7]] }
 0x1cc   :  { %9072 = sst [smem:[#allocation140_spill]] %s7221_s19  ;;  %v2582_v43 = vadd.f32 %v2580_v40, %v2576_v45  ;;  %v2653_v30 = vadd.f32 %v2652_v62, %v2650_v49  ;;  %v2663_v38 = vrot.slane %v2661_v17, 2  ;;  %v8715_v54 = vstv %s7166_s11  ;;  %s7271_s7 = sld [smem:[#allocation2 + $0x14a]] }
 0x1cd   :  { %9073 = sst [smem:[#allocation141_spill]] %s7223_s2  ;;  %v2669_v5 = vrot.slane %v2667_v60, 3  ;;  %v2675_v22 = vrot.slane %v2673_v0, 4  ;;  %v2681_v41 = vrot.slane %v7219_v44, 5  ;;  %v7249_v33 = vmul.f32 %v6744_v18, %v8713_v19  ;;  %s7277_s11 = sld [smem:[#allocation2 + $0x154]] }
 0x1ce   :  { %9074 = sst [smem:[#allocation142_spill]] %s7227_s24  ;;  %v2659_v40 = vadd.f32 %v2657_v4, %v2653_v30  ;;  %v8723_v62 = vstv %s7182_s18  ;;  %v8718_v45 = vstv %s7174_s22  ;;  %v8717_v17 = vstv %s7180_s25  ;;  %s7290_s25 = sld [smem:[#allocation2 + $0xf1]] }
 0x1cf   :  { %9075 = sst [smem:[#allocation143_spill]] %s7243_s27  ;;  %v2687_v0 = vrot.slane %v2685_v11, 6  ;;  %v7263_v60 = vmul.f32 %v6744_v18, %v8715_v54  ;;  %v2730_v44 = vmul.f32 %v6054_v59, %v8718_v45  ;;  %v2732_v49 = vmul.f32 %v6054_v59, %v8717_v17  ;;  %s7292_s22 = sld [smem:[#allocation2 + $0xfb]] }
 0x1d0   :  { %9076 = sst [smem:[#allocation144_spill]] %s7251_s10  ;;  %v2588_v4 = vadd.f32 %v2586_v10, %v2582_v43  ;;  %v2665_v30 = vadd.f32 %v2663_v38, %v2659_v40  ;;  %v8725_v11 = vstv %s7198_s5  ;;  %v8724_v19 = vstv %s7200_s28  ;;  %s7297_s18 = sld [smem:[#allocation2 + $0x105]] }
 0x1d1   :  { %9077 = sst [smem:[#allocation145_spill]] %s7256_s4  ;;  %v7282_v54 = vmul.f32 %v6744_v18, %v8723_v62  ;;  %v2734_v32 = vrot.slane %v2732_v49, 1  ;;  %v2738_v17 = vmul.f32 %v6054_v59, %v8725_v11  ;;  %v2744_v45 = vmul.f32 %v6054_v59, %v8724_v19  ;;  %s7299_s5 = sld [smem:[#allocation2 + $0x10f]] }
 0x1d2   :  { %9078 = sst [smem:[#allocation146_spill]] %s7258_s6  ;;  %v2671_v20 = vadd.f32 %v2669_v5, %v2665_v30  ;;  %v8770_v10 = vstv %s7207_s3  ;;  %v8768_v38 = vstv %s7221_s19  ;;  %v8767_v43 = vstv %s7223_s2  ;;  %s7321_s2 = sld [smem:[#allocation2 + $0x123]] }
 0x1d3   :  { %9079 = sst [smem:[#allocation147_spill]] %s7271_s7  ;;  %v8765_v40 = vstv %s7227_s24  ;;  %v2736_v49 = vadd.f32 %v2734_v32, %v2730_v44  ;;  %v2740_v62 = vrot.slane %v2738_v17, 2  ;;  %v2746_v19 = vrot.slane %v2744_v45, 3  ;;  %s7331_s24 = sld [smem:[#allocation2 + $0x119]] }
 0x1d4   :  { %9080 = sst [smem:[#allocation148_spill]] %s7277_s11  ;;  %v2594_v11 = vadd.f32 %v2592_v42, %v2588_v4  ;;  %v2677_v31 = vadd.f32 %v2675_v22, %v2671_v20  ;;  %v2750_v5 = vmul.f32 %v6054_v59, %v8770_v10  ;;  %v2756_v30 = vmul.f32 %v6054_v59, %v8768_v38  ;;  %s7333_s19 = sld [smem:[#allocation2 + $0x12d]] }
 0x1d5   :  { %9081 = sst [smem:[#allocation149_spill]] %s7290_s25  ;;  %v2696_v58 = vrot.slane %v7263_v60, 1  ;;  %v8764_v9 = vstv %s7243_s27  ;;  %v2742_v14 = vadd.f32 %v2740_v62, %v2736_v49  ;;  %v2762_v32 = vmul.f32 %v6054_v59, %v8767_v43  ;;  %s7339_s3 = sld [smem:[#allocation2 + $0x8e]] }
 0x1d6   :  { %9082 = sst [smem:[#allocation150_spill]] %s7292_s22  ;;  %v2683_v45 = vadd.f32 %v2681_v41, %v2677_v31  ;;  %v7316_v42 = vmul.f32 %v6744_v18, %v8765_v40  ;;  %v2752_v22 = vrot.slane %v2750_v5, 4  ;;  %v8738_v17 = vstv %s7251_s10  ;;  %s7354_s10 = sld [smem:[#allocation2 + $0xa2]] }
 0x1d7   :  { %9083 = sst [smem:[#allocation151_spill]] %s7297_s18  ;;  %v2748_v44 = vadd.f32 %v2746_v19, %v2742_v14  ;;  %v2758_v4 = vrot.slane %v2756_v30, 5  ;;  %v8736_v60 = vstv %s7256_s4  ;;  %v8737_v20 = vstv %s7258_s6  ;;  %s7349_s27 = sld [smem:[#allocation2 + $0x98]] }
 0x1d8   :  { %9084 = sst [smem:[#allocation152_spill]] %s7299_s5  ;;  %v2600_v41 = vadd.f32 %v2598_v55, %v2594_v11  ;;  %v2689_v31 = vadd.f32 %v2687_v0, %v2683_v45  ;;  %v7328_v62 = vmul.f32 %v6744_v18, %v8764_v9  ;;  %v8752_v49 = vstv %s7271_s7  ;;  %s7369_s6 = sld [smem:[#allocation2 + $0xac]] }
 0x1d9   :  { %9085 = sst [smem:[#allocation153_spill]] %s7321_s2  ;;  %v8749_v14 = vstv %s7277_s11  ;;  %v2754_v19 = vadd.f32 %v2752_v22, %v2748_v44  ;;  %v2764_v5 = vrot.slane %v2762_v32, 6  ;;  %v2771_v51 = vmul.f32 %v6204_v63, %v8738_v17  ;;  %s7371_s4 = sld [smem:[#allocation2 + $0xb6]] }
 0x1da   :  { %9086 = sst [smem:[#allocation154_spill]] %s7331_s24  ;;  %v2768_v55 = vmul.f32 %v6204_v63, %v8736_v60  ;;  %v2777_v0 = vmul.f32 %v6204_v63, %v8737_v20  ;;  %v8745_v11 = vstv %s7290_s25  ;;  %v8744_v30 = vstv %s7292_s22  ;;  %s7377_s7 = sld [smem:[#allocation2 + $0x137]] }
 0x1db   :  { %9087 = sst [smem:[#allocation155_spill]] %s7333_s19  ;;  %v2692_v45 = vadd.f32 %v7249_v33, %v2689_v31  ;;  %v2760_v32 = vadd.f32 %v2758_v4, %v2754_v19  ;;  %v8746_v22 = vstv %s7297_s18  ;;  %v8747_v44 = vstv %s7299_s5  ;;  %s7391_s25 = sld [smem:[#allocation2 + $0xc0]] }
 0x1dc   :  { %9088 = sst [smem:[#allocation156_spill]] %s7339_s3  ;;  %v2606_v60 = vadd.f32 %v2604_v36, %v2600_v41  ;;  %v2610_v20 = vrot.slane %v7237_v61, 6  ;;  %v7362_v17 = vmul.f32 %v6744_v18, %v8752_v49  ;;  %v7367_v33 = vmul.f32 %v6744_v18, %v8749_v14  ;;  %s7393_s11 = sld [smem:[#allocation2 + $0xca]] }
 0x1dd   :  { %9089 = sst [smem:[#allocation157_spill]] %s7349_s27  ;;  %v2702_v4 = vrot.slane %v7282_v54, 2  ;;  %v2766_v31 = vadd.f32 %v2764_v5, %v2760_v32  ;;  %v2773_v19 = vrot.slane %v2771_v51, 1  ;;  %v2783_v61 = vmul.f32 %v6204_v63, %v8745_v11  ;;  %s7401_s5 = sld [smem:[#allocation2 + $0xde]] }
 0x1de   :  { %9090 = sst [smem:[#allocation158_spill]] %s7354_s10  ;;  %v2708_v36 = vrot.slane %v7316_v42, 3  ;;  %v2789_v26 = vmul.f32 %v6204_v63, %v8744_v30  ;;  %v2795_v41 = vmul.f32 %v6204_v63, %v8746_v22  ;;  %v7389_v54 = vmul.f32 %v6204_v63, %v8747_v44  ;;  %s7405_s18 = sld [smem:[#allocation2 + $0x141]] }
 0x1df   :  { %9091 = sst [smem:[#allocation159_spill]] %s7369_s6  ;;  %v2698_v5 = vadd.f32 %v2696_v58, %v2692_v45  ;;  %v2714_v51 = vrot.slane %v7328_v62, 4  ;;  %v2769_v42 = vadd.f32 %v2768_v55, %v2766_v31  ;;  %v2779_v32 = vrot.slane %v2777_v0, 2  ;;  %s7409_s22 = sld [smem:[#allocation2 + $0x14b]] }
 0x1e0   :  { %9092 = sst [smem:[#allocation160_spill]] %s7371_s4  ;;  %v7396_v30 = vadd.f32 %v2610_v20, %v2606_v60  ;;  %v2720_v11 = vrot.slane %v7362_v17, 5  ;;  %v2726_v22 = vrot.slane %v7367_v33, 6  ;;  %v8759_v44 = vstv %s7321_s2  ;;  %s7417_s28 = sld [smem:[#allocation2 + $0x155]] }
 0x1e1   :  { %9093 = sst [smem:[#allocation161_spill]] %s7377_s7  ;;  %v2775_v14 = vadd.f32 %v2773_v19, %v2769_v42  ;;  %v2785_v58 = vrot.slane %v2783_v61, 3  ;;  %v8774_v45 = vstv %s7331_s24  ;;  %v8756_v55 = vstv %s7333_s19  ;;  %s7431_s2 = sld [smem:[#allocation2 + $0xd4]] }
 0x1e2   :  { %9094 = sst [smem:[#allocation162_spill]] %s7391_s25  ;;  %v2791_v60 = vrot.slane %v2789_v26, 4  ;;  %v2797_v20 = vrot.slane %v2795_v41, 5  ;;  %v2803_v0 = vrot.slane %v7389_v54, 6  ;;  %v8761_v31 = vstv %s7339_s3  ;;  %s7433_s13 = sld [smem:[#allocation2 + $0xe8]] }
 0x1e3   :  { %9095 = sst [smem:[#allocation163_spill]] %s7393_s11  ;;  %v2704_v49 = vadd.f32 %v2702_v4, %v2698_v5  ;;  %v2781_v19 = vadd.f32 %v2779_v32, %v2775_v14  ;;  %v7414_v61 = vmul.f32 %v6744_v18, %v8759_v44  ;;  %v8760_v42 = vstv %s7349_s27  ;;  %s7440_s19 = sld [smem:[#allocation2 + $0xf2]] }
 0x1e4   :  { %9096 = sst [smem:[#allocation164_spill]] %s7401_s5  ;;  %v7422_v26 = vmul.f32 %v6744_v18, %v8756_v55  ;;  %v2846_v41 = vmul.f32 %v6054_v59, %v8761_v31  ;;  %v2848_v14 = vmul.f32 %v6054_v59, %v8760_v42  ;;  %v8763_v4 = vstv %s7354_s10  ;;  %s7442_s3 = sld [smem:[#allocation2 + $0xfc]] }
 0x1e5   :  { %9097 = sst [smem:[#allocation165_spill]] %s7405_s18  ;;  %v2787_v54 = vadd.f32 %v2785_v58, %v2781_v19  ;;  %v2854_v5 = vmul.f32 %v6054_v59, %v8763_v4  ;;  %v8769_v32 = vstv %s7369_s6  ;;  %v8771_v55 = vstv %s7371_s4  ;;  %s7451_s10 = sld [smem:[#allocation2 + $0x106]] }
 0x1e6   :  { %9098 = sst [smem:[#allocation166_spill]] %s7409_s22  ;;  %v8775_v44 = vstv %s7377_s7  ;;  %v2850_v42 = vrot.slane %v2848_v14, 1  ;;  %v2860_v31 = vmul.f32 %v6054_v59, %v8769_v32  ;;  %v2866_v58 = vmul.f32 %v6054_v59, %v8771_v55  ;;  %s7471_s4 = sld [smem:[#allocation2 + $0x11a]] }
 0x1e7   :  { %9099 = sst [smem:[#allocation167_spill]] %s7417_s28  ;;  %v2793_v19 = vadd.f32 %v2791_v60, %v2787_v54  ;;  %v2856_v4 = vrot.slane %v2854_v5, 2  ;;  %v8815_v9 = vstv %s7391_s25  ;;  %v8810_v40 = vstv %s7393_s11  ;;  %s7455_s27 = sld [smem:[#allocation2 + $0x110]] }
 0x1e8   :  { %9100 = sst [smem:[#allocation168_spill]] %s7431_s2  ;;  %v2710_v43 = vadd.f32 %v2708_v36, %v2704_v49  ;;  %v2852_v14 = vadd.f32 %v2850_v42, %v2846_v41  ;;  %v2862_v38 = vrot.slane %v2860_v31, 3  ;;  %v2872_v32 = vmul.f32 %v6054_v59, %v8815_v9  ;;  %s7478_s24 = sld [smem:[#allocation2 + $0x124]] }
 0x1e9   :  { %9101 = sst [smem:[#allocation169_spill]] %s7433_s13  ;;  %v2799_v10 = vadd.f32 %v2797_v20, %v2793_v19  ;;  %v2807_v55 = vmul.f32 %v6744_v18, %v8774_v45  ;;  %v7466_v60 = vmul.f32 %v6744_v18, %v8775_v44  ;;  %v2878_v54 = vmul.f32 %v6054_v59, %v8810_v40  ;;  %s7488_s7 = sld [smem:[#allocation2 + $0x8f]] }
 0x1ea   :  { %9102 = sst [smem:[#allocation170_spill]] %s7440_s19  ;;  %v8789_v49 = vstv %s7405_s18  ;;  %v2858_v36 = vadd.f32 %v2856_v4, %v2852_v14  ;;  %v2868_v31 = vrot.slane %v2866_v58, 4  ;;  %v8785_v42 = vstv %s7401_s5  ;;  %s7492_s11 = sld [smem:[#allocation2 + $0x99]] }
 0x1eb   :  { %9103 = sst [smem:[#allocation171_spill]] %s7442_s3  ;;  %v2805_v20 = vadd.f32 %v2803_v0, %v2799_v10  ;;  %v2812_v41 = vrot.slane %v7414_v61, 1  ;;  %v2818_v5 = vrot.slane %v7422_v26, 2  ;;  %v8784_v19 = vstv %s7409_s22  ;;  %s7494_s25 = sld [smem:[#allocation2 + $0x12e]] }
 0x1ec   :  { %9104 = sst [smem:[#allocation172_spill]] %s7451_s10  ;;  %v2716_v45 = vadd.f32 %v2714_v51, %v2710_v43  ;;  %v8783_v44 = vstv %s7417_s28  ;;  %v2864_v4 = vadd.f32 %v2862_v38, %v2858_v36  ;;  %v2874_v58 = vrot.slane %v2872_v32, 5  ;;  %s7512_s5 = sld [smem:[#allocation2 + $0xa3]] }
 0x1ed   :  { %9105 = sst [smem:[#allocation173_spill]] %s7455_s27  ;;  %v2880_v10 = vrot.slane %v2878_v54, 6  ;;  %v8787_v0 = vstv %s7431_s2  ;;  %v2887_v61 = vmul.f32 %v6204_v63, %v8785_v42  ;;  %v8788_v26 = vstv %s7433_s13  ;;  %s7514_s6 = sld [smem:[#allocation2 + $0xad]] }
 0x1ee   :  { %9106 = sst [smem:[#allocation174_spill]] %s7471_s4  ;;  %v2808_v62 = vadd.f32 %v2807_v55, %v2805_v20  ;;  %v2870_v14 = vadd.f32 %v2868_v31, %v2864_v4  ;;  %v8809_v43 = vstv %s7440_s19  ;;  %v8795_v51 = vstv %s7442_s3  ;;  %s7523_s28 = sld [smem:[#allocation2 + $0xb7]] }
 0x1ef   :  { %9107 = sst [smem:[#allocation175_spill]] %s7478_s24  ;;  %v7499_v38 = vmul.f32 %v6744_v18, %v8789_v49  ;;  %v7504_v32 = vmul.f32 %v6744_v18, %v8784_v19  ;;  %v7509_v55 = vmul.f32 %v6744_v18, %v8783_v44  ;;  %v8792_v54 = vstv %s7451_s10  ;;  %s7525_s22 = sld [smem:[#allocation2 + $0x138]] }
 0x1f0   :  { %9108 = sst [smem:[#allocation176_spill]] %s7488_s7  ;;  %v2876_v36 = vadd.f32 %v2874_v58, %v2870_v14  ;;  %v2884_v31 = vmul.f32 %v6204_v63, %v8787_v0  ;;  %v2893_v20 = vmul.f32 %v6204_v63, %v8788_v26  ;;  %v8793_v4 = vstv %s7455_s27  ;;  %s7535_s2 = sld [smem:[#allocation2 + $0xc1]] }
 0x1f1   :  { %9109 = sst [smem:[#allocation177_spill]] %s7492_s11  ;;  %v2722_v44 = vadd.f32 %v2720_v11, %v2716_v45  ;;  %v2889_v19 = vrot.slane %v2887_v61, 1  ;;  %v2899_v42 = vmul.f32 %v6204_v63, %v8809_v43  ;;  %v2905_v58 = vmul.f32 %v6204_v63, %v8795_v51  ;;  %s7551_s3 = sld [smem:[#allocation2 + $0x142]] }
 0x1f2   :  { %9110 = sst [smem:[#allocation178_spill]] %s7494_s25  ;;  %v2814_v14 = vadd.f32 %v2812_v41, %v2808_v62  ;;  %v2882_v0 = vadd.f32 %v2880_v10, %v2876_v36  ;;  %v2911_v26 = vmul.f32 %v6204_v63, %v8792_v54  ;;  %v8802_v49 = vstv %s7471_s4  ;;  %s7541_s13 = sld [smem:[#allocation2 + $0xcb]] }
 0x1f3   :  { %9111 = sst [smem:[#allocation179_spill]] %s7512_s5  ;;  %v2824_v17 = vrot.slane %v7466_v60, 3  ;;  %v2830_v11 = vrot.slane %v7499_v38, 4  ;;  %v2836_v45 = vrot.slane %v7504_v32, 5  ;;  %v7549_v61 = vmul.f32 %v6204_v63, %v8793_v4  ;;  %s7564_s27 = sld [smem:[#allocation2 + $0xdf]] }
 0x1f4   :  { %9112 = sst [smem:[#allocation180_spill]] %s7523_s28  ;;  %v2842_v41 = vrot.slane %v7509_v55, 6  ;;  %v2885_v10 = vadd.f32 %v2884_v31, %v2882_v0  ;;  %v2895_v62 = vrot.slane %v2893_v20, 2  ;;  %v8803_v36 = vstv %s7478_s24  ;;  %s7567_s10 = sld [smem:[#allocation2 + $0x14c]] }
 0x1f5   :  { %9113 = sst [smem:[#allocation181_spill]] %s7525_s22  ;;  %v7557_v60 = vadd.f32 %v2726_v22, %v2722_v44  ;;  %v2901_v38 = vrot.slane %v2899_v42, 3  ;;  %v2907_v54 = vrot.slane %v2905_v58, 4  ;;  %v7562_v4 = vmul.f32 %v6744_v18, %v8802_v49  ;;  %s7577_s4 = sld [smem:[#allocation2 + $0x156]] }
 0x1f6   :  { %v2820_v51 = vadd.f32 %v2818_v5, %v2814_v14  ;;  %v2891_v0 = vadd.f32 %v2889_v19, %v2885_v10  ;;  %v2913_v31 = vrot.slane %v2911_v26, 5  ;;  %v8808_v33 = vstv %s7488_s7  ;;  %s7586_s19 = sld [smem:[#allocation2 + $0xd5]]  ;;  %s7588_s24 = sld [smem:[#allocation2 + $0xe9]] }
 0x1f7   :  { %v2919_v22 = vrot.slane %v7549_v61, 6  ;;  %v7573_v44 = vmul.f32 %v6744_v18, %v8803_v36  ;;  %v8820_v42 = vstv %s7494_s25  ;;  %v8804_v20 = vstv %s7492_s11  ;;  %s7596_s7 = sld [smem:[#allocation2 + $0xf3]]  ;;  %s7598_s18 = sld [smem:[#allocation2 + $0xfd]] }
 0x1f8   :  { %v2897_v5 = vadd.f32 %v2895_v62, %v2891_v0  ;;  %v2962_v19 = vmul.f32 %v6054_v59, %v8808_v33  ;;  %v2964_v26 = vmul.f32 %v6054_v59, %v8804_v20  ;;  %v8807_v58 = vstv %s7512_s5  ;;  %s7606_s5 = sld [smem:[#allocation2 + $0x107]]  ;;  %s7608_s11 = sld [smem:[#allocation2 + $0x111]] }
 0x1f9   :  { %v8819_v14 = vstv %s7525_s22  ;;  %v2970_v61 = vmul.f32 %v6054_v59, %v8807_v58  ;;  %v8812_v10 = vstv %s7514_s6  ;;  %v8813_v62 = vstv %s7523_s28  ;;  %s7622_s28 = sld [smem:[#allocation2 + $0x11b]]  ;;  %s7639_s25 = sld [smem:[#allocation2 + $0x12f]] }
 0x1fa   :  { %9114 = sst [smem:[#allocation182_spill]] %s7567_s10  ;;  %v2903_v0 = vadd.f32 %v2901_v38, %v2897_v5  ;;  %v2966_v49 = vrot.slane %v2964_v26, 1  ;;  %v2976_v36 = vmul.f32 %v6054_v59, %v8812_v10  ;;  %v2982_v20 = vmul.f32 %v6054_v59, %v8813_v62  ;;  %s7642_s22 = sld [smem:[#allocation2 + $0x139]] }
 0x1fb   :  { %9115 = sst [smem:[#allocation183_spill]] %s7577_s4  ;;  %v2826_v58 = vadd.f32 %v2824_v17, %v2820_v51  ;;  %v2972_v33 = vrot.slane %v2970_v61, 2  ;;  %v8833_v43 = vstv %s7535_s2  ;;  %v8822_v40 = vstv %s7541_s13 }
 0x1fc   :  { %9116 = sst [smem:[#allocation184_spill]] %s7586_s19  ;;  %v2909_v38 = vadd.f32 %v2907_v54, %v2903_v0  ;;  %v8818_v5 = vstv %s7551_s3  ;;  %v2968_v26 = vadd.f32 %v2966_v49, %v2962_v19  ;;  %v2978_v10 = vrot.slane %v2976_v36, 3 }
 0x1fd   :  { %9117 = sst [smem:[#allocation185_spill]] %s7588_s24  ;;  %v2928_v62 = vrot.slane %v7573_v44, 1  ;;  %v2932_v51 = vmul.f32 %v6744_v18, %v8820_v42  ;;  %v2984_v17 = vrot.slane %v2982_v20, 4  ;;  %v2988_v61 = vmul.f32 %v6054_v59, %v8833_v43 }
 0x1fe   :  { %9118 = sst [smem:[#allocation186_spill]] %s7596_s7  ;;  %v2915_v9 = vadd.f32 %v2913_v31, %v2909_v38  ;;  %v2974_v54 = vadd.f32 %v2972_v33, %v2968_v26  ;;  %v2994_v49 = vmul.f32 %v6054_v59, %v8822_v40  ;;  %v8821_v36 = vstv %s7564_s27 }
 0x1ff   :  { %9119 = sst [smem:[#allocation187_spill]] %s7598_s18  ;;  %v2832_v19 = vadd.f32 %v2830_v11, %v2826_v58  ;;  %v7631_v44 = vmul.f32 %v6744_v18, %v8819_v14  ;;  %v7636_v20 = vmul.f32 %v6744_v18, %v8818_v5  ;;  %v8832_v0 = vstv %s7567_s10  ;;  %s9131_s10 = sld [smem:[#allocation12_spill]] }
 0x200   :  { %9120 = sst [smem:[#allocation188_spill]] %s7606_s5  ;;  %v2921_v31 = vadd.f32 %v2919_v22, %v2915_v9  ;;  %v2955_v33 = vstv %s7577_s4  ;;  %v2980_v59 = vadd.f32 %v2978_v10, %v2974_v54  ;;  %v2990_v11 = vrot.slane %v2988_v61, 5  ;;  %s9147_s4 = sld [smem:[#allocation17_spill]] }
 0x201   :  { %9121 = sst [smem:[#allocation189_spill]] %s7608_s11  ;;  %v2934_v58 = vrot.slane %v2932_v51, 2  ;;  %v8824_v38 = vstv %s7586_s19  ;;  %v3003_v26 = vmul.f32 %v6204_v63, %v8821_v36  ;;  %v8823_v5 = vstv %s7588_s24 }
 0x202   :  { %9123 = sst [smem:[#allocation191_spill]] %s7622_s28  ;;  %v2986_v14 = vadd.f32 %v2984_v17, %v2980_v59  ;;  %v2996_v42 = vrot.slane %v2994_v49, 6  ;;  %v8827_v9 = vstv %s7596_s7  ;;  %v8825_v22 = vstv %s7598_s18  ;;  %s9133_s7 = sld [smem:[#allocation8_spill]] }
 0x203   :  { %9124 = sst [smem:[#allocation192_spill]] %s7639_s25  ;;  %v2838_v10 = vadd.f32 %v2836_v45, %v2832_v19  ;;  %v2924_v61 = vadd.f32 %v7562_v4, %v2921_v31  ;;  %v8826_v51 = vstv %s7606_s5  ;;  %v8829_v54 = vstv %s7608_s11  ;;  %s7691_s11 = sld [smem:[#allocation2 + $0x143]] }
 0x204   :  { %9125 = sst [smem:[#allocation193_spill]] %s7642_s22  ;;  %v2992_v36 = vadd.f32 %v2990_v11, %v2986_v14  ;;  %v3000_v40 = vmul.f32 %v6204_v63, %v8824_v38  ;;  %v3009_v17 = vmul.f32 %v6204_v63, %v8823_v5  ;;  %v8831_v49 = vstv %s7612_s0  ;;  %s7697_s0 = sld [smem:[#allocation2 + $0x14d]] }
 0x205   :  { %v2940_v59 = vrot.slane %v7631_v44, 3  ;;  %v3005_v32 = vrot.slane %v3003_v26, 1  ;;  %v3015_v45 = vmul.f32 %v6204_v63, %v8827_v9  ;;  %v3021_v4 = vmul.f32 %v6204_v63, %v8825_v22  ;;  %s9138_s18 = sld [smem:[#allocation11_spill]]  ;;  %s9142_s5 = sld [smem:[#allocation13_spill]] }
 0x206   :  { %v2998_v19 = vadd.f32 %v2996_v42, %v2992_v36  ;;  %v3027_v14 = vmul.f32 %v6204_v63, %v8826_v51  ;;  %v3033_v31 = vmul.f32 %v6204_v63, %v8829_v54  ;;  %v3038_v11 = vstv %s7622_s28  ;;  %s7705_s28 = sld [smem:[#allocation2 + $0x157]] }
 0x207   :  { %v2930_v5 = vadd.f32 %v2928_v62, %v2924_v61  ;;  %v2946_v38 = vrot.slane %v7636_v20, 4  ;;  %v7681_v26 = vmul.f32 %v6744_v18, %v8832_v0  ;;  %v7686_v22 = vmul.f32 %v6744_v18, %v8831_v49  ;;  %s9144_s24 = sld [smem:[#allocation197_spill]] }
 0x208   :  { %v2844_v42 = vadd.f32 %v2842_v41, %v2838_v10  ;;  %v3001_v36 = vadd.f32 %v3000_v40, %v2998_v19  ;;  %v3011_v51 = vrot.slane %v3009_v17, 2  ;;  %v3047_v9 = vstv %s7639_s25  ;;  %s9132_s25 = sld [smem:[#allocation6_spill]]  ;;  %s9151_s19 = sld [smem:[#allocation21_spill]] }
 0x209   :  { %9126 = sst [smem:[#allocation194_spill]] %s7691_s11  ;;  %v3017_v63 = vrot.slane %v3015_v45, 3  ;;  %v3023_v62 = vrot.slane %v3021_v4, 4  ;;  %v3039_v61 = vmul.f32 %v6744_v18, %v3038_v11  ;;  %v3053_v54 = vstv %s7642_s22  ;;  %s9134_s22 = sld [smem:[#allocation9_spill]] }
 0x20a   :  { %9127 = sst [smem:[#allocation195_spill]] %s7697_s0  ;;  %v3007_v49 = vadd.f32 %v3005_v32, %v3001_v36  ;;  %v3029_v0 = vrot.slane %v3027_v14, 5  ;;  %v3035_v43 = vrot.slane %v3033_v31, 6  ;;  %v3078_v55 = vrot.slane %v6930_v1, 7 }
 0x20b   :  { %v2936_v41 = vadd.f32 %v2934_v58, %v2930_v5  ;;  %v3044_v40 = vrot.slane %v7686_v22, 1  ;;  %v3048_v10 = vmul.f32 %v6744_v18, %v3047_v9  ;;  %v3081_v17 = vrot.slane %v6976_v29, 6 }
 0x20c   :  { %9129 = sst [smem:[#allocation10_spill]] %s7705_s28  ;;  %v3013_v45 = vadd.f32 %v3011_v51, %v3007_v49  ;;  %v7710_v32 = vmul.f32 %v6744_v18, %v3053_v54  ;;  %v3084_v4 = vrot.slane %v7079_v52, 5  ;;  %v3087_v1 = vrot.slane %v7231_v57, 4 }
 0x20d   :  { %v3090_v5 = vrot.slane %v7396_v30, 3  ;;  %v3093_v29 = vrot.slane %v7557_v60, 2  ;;  %v3096_v22 = vrot.slane %v2844_v42, 1  ;;  %v3102_v51 = vsel %vm3101_vm3, %v6916_v13, %v3078_v55 }
 0x20e   :  { %v3019_v58 = vadd.f32 %v3017_v63, %v3013_v45  ;;  %v3104_v52 = vsel %vm3103_vm4, %v3102_v51, %v3081_v17  ;;  %v3117_v57 = vmul.f32 %v6280_v37, %v1917_v50  ;;  %v3118_v30 = vmul.f32 %v6280_v37, %v1919_v8 }
 0x20f   :  { %v3106_v49 = vsel %vm3105_vm5, %v3104_v52, %v3084_v4  ;;  %v9135_v19 = vstv %s9131_s10  ;;  %v9136_v31 = vstv %s9132_s25  ;;  %v3059_v42 = vstv %s7691_s11  ;;  %s9140_s25 = sld [smem:[#allocation196_spill]]  ;;  %s9146_s11 = sld [smem:[#allocation16_spill]] }
 0x210   :  { %v3025_v60 = vadd.f32 %v3023_v62, %v3019_v58  ;;  %v3123_v14 = vmul.f32 %v6280_v37, %v9135_v19  ;;  %v3128_v13 = vmul.f32 %v6280_v37, %v9136_v31  ;;  %v3108_v36 = vsel %vm3107_vm6, %v3106_v49, %v3087_v1  ;;  %s9150_s10 = sld [smem:[#allocation19_spill]] }
 0x211   :  { %v3120_v63 = vrot.slane %v3118_v30, 1  ;;  %v9137_v55 = vstv %s9133_s7  ;;  %v3065_v8 = vstv %s7697_s0  ;;  %v3109_v62 = vsel %vm1415_vm2, %v3108_v36, %v3090_v5  ;;  %s9149_s7 = sld [smem:[#allocation18_spill]]  ;;  %s9155_s0 = sld [smem:[#allocation22_spill]] }
 0x212   :  { %v3133_v50 = vmul.f32 %v6280_v37, %v9137_v55  ;;  %v3031_v17 = vadd.f32 %v3029_v0, %v3025_v60  ;;  %v3125_v45 = vrot.slane %v3123_v14, 2  ;;  %v3110_v4 = vsel %vm918_vm1, %v3109_v62, %v3093_v29 }
 0x213   :  { %v3122_v58 = vadd.f32 %v3120_v63, %v3117_v57  ;;  %v3130_v51 = vrot.slane %v3128_v13, 3  ;;  %v9139_v52 = vstv %s9134_s22  ;;  %v2942_v1 = vadd.f32 %v2940_v59, %v2936_v41  ;;  %s9143_s22 = sld [smem:[#allocation15_spill]] }
 0x214   :  { %v3138_v19 = vmul.f32 %v6280_v37, %v9139_v52  ;;  %v3037_v30 = vadd.f32 %v3035_v43, %v3031_v17  ;;  %v3071_v49 = vstv %s7705_s28  ;;  %v3111_v0 = vsel %vm158_vm0, %v3110_v4, %v3096_v22  ;;  %s9154_s28 = sld [smem:[#allocation20_spill]] }
 0x215   :  { %v4937_v5 = vld [vmem:[%s9140_s25] sm:$0xff]  ;;  %v3127_v29 = vadd.f32 %v3125_v45, %v3122_v58  ;;  %v3135_v57 = vrot.slane %v3133_v50, 4  ;;  %v9141_v14 = vstv %s9138_s18  ;;  %v2956_v44 = vmul.f32 %v6744_v18, %v2955_v33  ;;  %s9145_s18 = sld [smem:[#allocation14_spill]] }
 0x216   :  { %v3113_v60 = vadd.f32 %v4937_v5, %v3111_v0  ;;  %v3143_v31 = vmul.f32 %v6280_v37, %v9141_v14  ;;  %v3040_v43 = vadd.f32 %v3039_v61, %v3037_v30  ;;  %v3050_v59 = vrot.slane %v3048_v10, 2 }
 0x217   :  { %v3060_v41 = vmul.f32 %v6744_v18, %v3059_v42  ;;  %v2952_v22 = vrot.slane %v7681_v26, 5  ;;  %v3056_v13 = vrot.slane %v7710_v32, 3  ;;  %v3132_v36 = vadd.f32 %v3130_v51, %v3127_v29 }
 0x218   :  { %3115 = vst [vmem:[%s9144_s24] sm:$0xff] %v3113_v60  ;;  %v3140_v63 = vrot.slane %v3138_v19, 5  ;;  %v2948_v55 = vadd.f32 %v2946_v38, %v2942_v1  ;;  %v3046_v61 = vadd.f32 %v3044_v40, %v3040_v43  ;;  %v3066_v10 = vmul.f32 %v6744_v18, %v3065_v8 }
 0x219   :  { %v3072_v26 = vmul.f32 %v6744_v18, %v3071_v49  ;;  %v3137_v50 = vadd.f32 %v3135_v57, %v3132_v36  ;;  %v3145_v32 = vrot.slane %v3143_v31, 6  ;;  %v9148_v17 = vstv %s9142_s5  ;;  %s9156_s5 = sld [smem:[#allocation23_spill]] }
 0x21a   :  { %v3150_v62 = vmul.f32 %v6405_v3, %v9148_v17  ;;  %v3052_v45 = vadd.f32 %v3050_v59, %v3046_v61  ;;  %v3062_v4 = vrot.slane %v3060_v41, 4  ;;  %v2958_v20 = vrot.slane %v2956_v44, 6 }
 0x21b   :  { %v3142_v38 = vadd.f32 %v3140_v63, %v3137_v50  ;;  %v9152_v40 = vstv %s9143_s22  ;;  %v9153_v51 = vstv %s9145_s18  ;;  %v2954_v52 = vadd.f32 %v2952_v22, %v2948_v55  ;;  %s9162_s22 = sld [smem:[#allocation25_spill]]  ;;  %s9311_s18 = sld [smem:[#allocation103_spill]] }
 0x21c   :  { %v3148_v58 = vmul.f32 %v6405_v3, %v9152_v40  ;;  %v3155_v18 = vmul.f32 %v6405_v3, %v9153_v51  ;;  %v3058_v19 = vadd.f32 %v3056_v13, %v3052_v45  ;;  %v3068_v1 = vrot.slane %v3066_v10, 5 }
 0x21d   :  { %v3074_v30 = vrot.slane %v3072_v26, 6  ;;  %v3147_v0 = vadd.f32 %v3145_v32, %v3142_v38  ;;  %v3152_v5 = vrot.slane %v3150_v62, 1  ;;  %v9157_v60 = vstv %s9146_s11  ;;  %s9167_s11 = sld [smem:[#allocation26_spill]] }
 0x21e   :  { %v3160_v29 = vmul.f32 %v6405_v3, %v9157_v60  ;;  %v9158_v57 = vstv %s9147_s4  ;;  %v3064_v31 = vadd.f32 %v3062_v4, %v3058_v19  ;;  %v9159_v44 = vstv %s9149_s7  ;;  %s9165_s4 = sld [smem:[#allocation24_spill]]  ;;  %s9314_s7 = sld [smem:[#allocation102_spill]] }
 0x21f   :  { %v3165_v14 = vmul.f32 %v6405_v3, %v9158_v57  ;;  %v3212_v43 = vmul.f32 %v6280_v37, %v9159_v44  ;;  %v9160_v59 = vstv %s9150_s10  ;;  %v9161_v22 = vstv %s9151_s19  ;;  %s9183_s10 = sld [smem:[#allocation32_spill]]  ;;  %s9210_s19 = sld [smem:[#allocation43_spill]] }
 0x220   :  { %v3213_v41 = vmul.f32 %v6280_v37, %v9160_v59  ;;  %v3218_v13 = vmul.f32 %v6280_v37, %v9161_v22  ;;  %v3149_v36 = vadd.f32 %v3148_v58, %v3147_v0  ;;  %v3157_v63 = vrot.slane %v3155_v18, 2 }
 0x221   :  { %v9163_v55 = vstv %s9154_s28  ;;  %v9164_v10 = vstv %s9155_s0  ;;  %v3070_v50 = vadd.f32 %v3068_v1, %v3064_v31  ;;  %v9166_v62 = vstv %s9156_s5  ;;  %s9171_s28 = sld [smem:[#allocation28_spill]]  ;;  %s9184_s5 = sld [smem:[#allocation35_spill]] }
 0x222   :  { %v3170_v61 = vmul.f32 %v6405_v3, %v9163_v55  ;;  %v3223_v26 = vmul.f32 %v6280_v37, %v9164_v10  ;;  %v3215_v32 = vrot.slane %v3213_v41, 1  ;;  %v3220_v17 = vrot.slane %v3218_v13, 2  ;;  %s9209_s0 = sld [smem:[#allocation41_spill]] }
 0x223   :  { %v3228_v45 = vmul.f32 %v6280_v37, %v9166_v62  ;;  %v2960_v4 = vadd.f32 %v2958_v20, %v2954_v52  ;;  %v3154_v38 = vadd.f32 %v3152_v5, %v3149_v36  ;;  %v3162_v40 = vrot.slane %v3160_v29, 3 }
 0x224   :  { %v3167_v58 = vrot.slane %v3165_v14, 4  ;;  %v3076_v51 = vadd.f32 %v3074_v30, %v3070_v50  ;;  %v3217_v18 = vadd.f32 %v3215_v32, %v3212_v43  ;;  %v3225_v19 = vrot.slane %v3223_v26, 3 }
 0x225   :  { %v9168_v0 = vstv %s9162_s22  ;;  %v3159_v60 = vadd.f32 %v3157_v63, %v3154_v38  ;;  %v3172_v57 = vrot.slane %v3170_v61, 5  ;;  %v9169_v31 = vstv %s9165_s4  ;;  %s9186_s22 = sld [smem:[#allocation34_spill]]  ;;  %s9189_s4 = sld [smem:[#allocation37_spill]] }
 0x226   :  { %v3233_v1 = vmul.f32 %v6280_v37, %v9168_v0  ;;  %v3175_v44 = vmul.f32 %v6405_v3, %v9169_v31  ;;  %v9170_v59 = vstv %s6335_s14  ;;  %v3099_v52 = vrot.slane %v3076_v51, 7  ;;  %s9177_s14 = sld [smem:[#allocation29_spill]] }
 0x227   :  { %v3182_v20 = vmul.f32 %v6811_v21, %v9170_v59  ;;  %v3222_v5 = vadd.f32 %v3220_v17, %v3217_v18  ;;  %v3230_v29 = vrot.slane %v3228_v45, 4  ;;  %v9172_v14 = vstv %s9167_s11  ;;  %v4938_v17 = vld [vmem:[%s9140_s25 + $0x8] sm:$0x3]  ;;  %s9198_s11 = sld [smem:[#allocation39_spill]] }
 0x228   :  { %v3238_v30 = vmul.f32 %v6280_v37, %v9172_v14  ;;  %v3164_v43 = vadd.f32 %v3162_v40, %v3159_v60  ;;  %v9173_v41 = vstv %s6333_s17  ;;  %v9174_v13 = vstv %s6340_s16  ;;  %s9178_s16 = sld [smem:[#allocation27_spill]]  ;;  %s9182_s17 = sld [smem:[#allocation33_spill]] }
 0x229   :  { %v3180_v22 = vmul.f32 %v6811_v21, %v9173_v41  ;;  %v3187_v36 = vmul.f32 %v6811_v21, %v9174_v13  ;;  %v9175_v63 = vstv %s6342_s26  ;;  %v3112_v61 = vsel %vm3101_vm3, %v2960_v4, %v3099_v52  ;;  %s9180_s26 = sld [smem:[#allocation30_spill]] }
 0x22a   :  { %v3192_v55 = vmul.f32 %v6811_v21, %v9175_v63  ;;  %v9176_v10 = vstv %s6359_s20  ;;  %v3227_v50 = vadd.f32 %v3225_v19, %v3222_v5  ;;  %v3235_v32 = vrot.slane %v3233_v1, 5  ;;  %s9181_s20 = sld [smem:[#allocation31_spill]] }
 0x22b   :  { %v3197_v26 = vmul.f32 %v6811_v21, %v9176_v10  ;;  %v3114_v62 = vadd.f32 %v4938_v17, %v3112_v61  ;;  %v3169_v45 = vadd.f32 %v3167_v58, %v3164_v43  ;;  %v3177_v38 = vrot.slane %v3175_v44, 6 }
 0x22c   :  { %v9179_v40 = vstv %s9171_s28  ;;  %v3184_v4 = vrot.slane %v3182_v20, 1  ;;  %v3202_v18 = vmul.f32 %v6811_v21, %v2021_v16  ;;  %v3232_v19 = vadd.f32 %v3230_v29, %v3227_v50  ;;  %s9200_s28 = sld [smem:[#allocation40_spill]] }
 0x22d   :  { %v3245_v51 = vmul.f32 %v6405_v3, %v9179_v40  ;;  %v3240_v0 = vrot.slane %v3238_v30, 6  ;;  %3116 = vst [vmem:[%s9144_s24 + $0x8] sm:$0x3] %v3114_v62  ;;  %v3174_v58 = vadd.f32 %v3172_v57, %v3169_v45  ;;  %v3189_v1 = vrot.slane %v3187_v36, 2 }
 0x22e   :  { %v3194_v60 = vrot.slane %v3192_v55, 3  ;;  %v9185_v31 = vstv %s9177_s14  ;;  %v3199_v59 = vrot.slane %v3197_v26, 4  ;;  %v3207_v16 = vmul.f32 %v6811_v21, %v2027_v27  ;;  %s9204_s14 = sld [smem:[#allocation42_spill]] }
 0x22f   :  { %v3250_v44 = vmul.f32 %v6405_v3, %v9185_v31  ;;  %v3237_v20 = vadd.f32 %v3235_v32, %v3232_v19  ;;  %v9188_v52 = vstv %s9178_s16  ;;  %v3179_v29 = vadd.f32 %v3177_v38, %v3174_v58  ;;  %s9216_s16 = sld [smem:[#allocation48_spill]] }
 0x230   :  { %v3243_v5 = vmul.f32 %v6405_v3, %v9188_v52  ;;  %v3247_v14 = vrot.slane %v3245_v51, 1  ;;  %v9190_v30 = vstv %s9180_s26  ;;  %v9191_v43 = vstv %s9181_s20  ;;  %s9223_s26 = sld [smem:[#allocation53_spill]]  ;;  %s9229_s20 = sld [smem:[#allocation55_spill]] }
 0x231   :  { %v3255_v57 = vmul.f32 %v6405_v3, %v9190_v30  ;;  %v3260_v41 = vmul.f32 %v6405_v3, %v9191_v43  ;;  %v3242_v13 = vadd.f32 %v3240_v0, %v3237_v20  ;;  %v9192_v36 = vstv %s9182_s17  ;;  %s9230_s17 = sld [smem:[#allocation54_spill]] }
 0x232   :  { %v3307_v63 = vmul.f32 %v6280_v37, %v9192_v36  ;;  %v9193_v55 = vstv %s9183_s10  ;;  %v9194_v61 = vstv %s9184_s5  ;;  %v3181_v26 = vadd.f32 %v3180_v22, %v3179_v29  ;;  %s9234_s10 = sld [smem:[#allocation57_spill]]  ;;  %s9235_s5 = sld [smem:[#allocation68_spill]] }
 0x233   :  { %v3308_v27 = vmul.f32 %v6280_v37, %v9193_v55  ;;  %v3313_v10 = vmul.f32 %v6280_v37, %v9194_v61  ;;  %v3252_v50 = vrot.slane %v3250_v44, 2  ;;  %v9196_v32 = vstv %s9186_s22  ;;  %s9279_s22 = sld [smem:[#allocation85_spill]] }
 0x234   :  { %v3265_v17 = vmul.f32 %v6405_v3, %v9196_v32  ;;  %v9197_v62 = vstv %s9187_s1  ;;  %v3244_v38 = vadd.f32 %v3243_v5, %v3242_v13  ;;  %v9199_v19 = vstv %s9189_s4  ;;  %s9237_s1 = sld [smem:[#allocation63_spill]]  ;;  %s9324_s4 = sld [smem:[#allocation113_spill]] }
 0x235   :  { %v3318_v45 = vmul.f32 %v6280_v37, %v9197_v62  ;;  %v3310_v40 = vrot.slane %v3308_v27, 1  ;;  %v3315_v51 = vrot.slane %v3313_v10, 2  ;;  %v3323_v0 = vmul.f32 %v6280_v37, %v9199_v19 }
 0x236   :  { %v3186_v58 = vadd.f32 %v3184_v4, %v3181_v26  ;;  %v3204_v31 = vrot.slane %v3202_v18, 5  ;;  %v3209_v20 = vrot.slane %v3207_v16, 6  ;;  %v3257_v22 = vrot.slane %v3255_v57, 3 }
 0x237   :  { %v3249_v44 = vadd.f32 %v3247_v14, %v3244_v38  ;;  %v3312_v52 = vadd.f32 %v3310_v40, %v3307_v63  ;;  %v3320_v29 = vrot.slane %v3318_v45, 3  ;;  %v9201_v30 = vstv %s9195_s29  ;;  %s9245_s29 = sld [smem:[#allocation62_spill]] }
 0x238   :  { %v3328_v5 = vmul.f32 %v6280_v37, %v9201_v30  ;;  %v3191_v43 = vadd.f32 %v3189_v1, %v3186_v58  ;;  %v3262_v13 = vrot.slane %v3260_v41, 4  ;;  %v3267_v36 = vrot.slane %v3265_v17, 5 }
 0x239   :  { %v9202_v55 = vstv %s9198_s11  ;;  %v3254_v18 = vadd.f32 %v3252_v50, %v3249_v44  ;;  %v3317_v16 = vadd.f32 %v3315_v51, %v3312_v52  ;;  %v3325_v27 = vrot.slane %v3323_v0, 4  ;;  %s9246_s11 = sld [smem:[#allocation64_spill]] }
 0x23a   :  { %v3270_v4 = vmul.f32 %v6405_v3, %v9202_v55  ;;  %v9203_v57 = vstv %s9200_s28  ;;  %v3196_v63 = vadd.f32 %v3194_v60, %v3191_v43  ;;  %v9205_v61 = vstv %s6455_s15  ;;  %s9212_s15 = sld [smem:[#allocation46_spill]] }
 0x23b   :  { %v3333_v14 = vmul.f32 %v6280_v37, %v9203_v57  ;;  %v3277_v10 = vmul.f32 %v6811_v21, %v9205_v61  ;;  %v9206_v26 = vstv %s6457_s12  ;;  %v9207_v41 = vstv %s6463_s23  ;;  %s9211_s12 = sld [smem:[#allocation44_spill]]  ;;  %s9215_s23 = sld [smem:[#allocation50_spill]] }
 0x23c   :  { %v3282_v1 = vmul.f32 %v6811_v21, %v9206_v26  ;;  %v3287_v32 = vmul.f32 %v6811_v21, %v9207_v41  ;;  %v3259_v17 = vadd.f32 %v3257_v22, %v3254_v18  ;;  %v9208_v62 = vstv %s6453_s21  ;;  %s9214_s21 = sld [smem:[#allocation49_spill]]  ;;  %s9330_s28 = sld [smem:[#allocation118_spill]] }
 0x23d   :  { %v3275_v50 = vmul.f32 %v6811_v21, %v9208_v62  ;;  %v3322_v45 = vadd.f32 %v3320_v29, %v3317_v16  ;;  %v3330_v38 = vrot.slane %v3328_v5, 5  ;;  %v3201_v40 = vadd.f32 %v3199_v59, %v3196_v63 }
 0x23e   :  { %v3272_v51 = vrot.slane %v3270_v4, 6  ;;  %v3292_v60 = vmul.f32 %v6811_v21, %v2131_v53  ;;  %v7902_v19 = vmul.f32 %v6811_v21, %v2137_v47  ;;  %v3264_v0 = vadd.f32 %v3262_v13, %v3259_v17 }
 0x23f   :  { %v3327_v58 = vadd.f32 %v3325_v27, %v3322_v45  ;;  %v3335_v22 = vrot.slane %v3333_v14, 6  ;;  %v9213_v44 = vstv %s9204_s14  ;;  %v3206_v29 = vadd.f32 %v3204_v31, %v3201_v40  ;;  %s9249_s14 = sld [smem:[#allocation65_spill]] }
 0x240   :  { %v3340_v52 = vmul.f32 %v6405_v3, %v9213_v44  ;;  %v3279_v59 = vrot.slane %v3277_v10, 1  ;;  %v3284_v30 = vrot.slane %v3282_v1, 2  ;;  %v3289_v53 = vrot.slane %v3287_v32, 3 }
 0x241   :  { %v3269_v5 = vadd.f32 %v3267_v36, %v3264_v0  ;;  %v3332_v43 = vadd.f32 %v3330_v38, %v3327_v58  ;;  %v9219_v47 = vstv %s9209_s0  ;;  %v9220_v13 = vstv %s9210_s19  ;;  %s9250_s0 = sld [smem:[#allocation72_spill]] }
 0x242   :  { %v3338_v55 = vmul.f32 %v6405_v3, %v9219_v47  ;;  %v3345_v4 = vmul.f32 %v6405_v3, %v9220_v13  ;;  %v7913_v18 = vadd.f32 %v3209_v20, %v3206_v29  ;;  %v3294_v16 = vrot.slane %v3292_v60, 4  ;;  %s9251_s19 = sld [smem:[#allocation56_spill]] }
 0x243   :  { %v9221_v31 = vstv %s9211_s12  ;;  %v9222_v57 = vstv %s9212_s15  ;;  %v3274_v63 = vadd.f32 %v3272_v51, %v3269_v5  ;;  %v3337_v36 = vadd.f32 %v3335_v22, %v3332_v43  ;;  %s9252_s12 = sld [smem:[#allocation74_spill]]  ;;  %s9253_s15 = sld [smem:[#allocation75_spill]] }
 0x244   :  { %v3350_v27 = vmul.f32 %v6405_v3, %v9221_v31  ;;  %v3355_v14 = vmul.f32 %v6405_v3, %v9222_v57  ;;  %v3342_v61 = vrot.slane %v3340_v52, 1  ;;  %v9224_v10 = vstv %s9214_s21  ;;  %s9254_s21 = sld [smem:[#allocation77_spill]] }
 0x245   :  { %v3360_v26 = vmul.f32 %v6405_v3, %v9224_v10  ;;  %v9225_v1 = vstv %s9215_s23  ;;  %v9226_v20 = vstv %s9216_s16  ;;  %v9227_v17 = vstv %s9217_s8  ;;  %s9257_s23 = sld [smem:[#allocation73_spill]]  ;;  %s9258_s16 = sld [smem:[#allocation78_spill]] }
 0x246   :  { %v3402_v41 = vmul.f32 %v6280_v37, %v9225_v1  ;;  %v3403_v32 = vmul.f32 %v6280_v37, %v9226_v20  ;;  %v3408_v62 = vmul.f32 %v6280_v37, %v9227_v17  ;;  %v9228_v45 = vstv %s9218_s30  ;;  %s9265_s8 = sld [smem:[#allocation79_spill]]  ;;  %s9267_s30 = sld [smem:[#allocation76_spill]] }
 0x247   :  { %v3413_v38 = vmul.f32 %v6280_v37, %v9228_v45  ;;  %v3276_v40 = vadd.f32 %v3275_v50, %v3274_v63  ;;  %v3299_v51 = vrot.slane %v7902_v19, 5  ;;  %v3339_v60 = vadd.f32 %v3338_v55, %v3337_v36 }
 0x248   :  { %v3347_v0 = vrot.slane %v3345_v4, 2  ;;  %v3302_v58 = vmul.f32 %v6811_v21, %v2143_v25  ;;  %v3405_v22 = vrot.slane %v3403_v32, 1  ;;  %v3410_v44 = vrot.slane %v3408_v62, 2 }
 0x249   :  { %v9233_v52 = vstv %s9223_s26  ;;  %v3281_v5 = vadd.f32 %v3279_v59, %v3276_v40  ;;  %v3344_v43 = vadd.f32 %v3342_v61, %v3339_v60  ;;  %v3352_v47 = vrot.slane %v3350_v27, 3  ;;  %s9305_s26 = sld [smem:[#allocation47_spill]] }
 0x24a   :  { %v3418_v29 = vmul.f32 %v6280_v37, %v9233_v52  ;;  %v3357_v50 = vrot.slane %v3355_v14, 4  ;;  %v3362_v19 = vrot.slane %v3360_v26, 5  ;;  %v3407_v55 = vadd.f32 %v3405_v22, %v3402_v41 }
 0x24b   :  { %v3415_v13 = vrot.slane %v3413_v38, 3  ;;  %v9238_v4 = vstv %s9229_s20  ;;  %v3286_v31 = vadd.f32 %v3284_v30, %v3281_v5  ;;  %v3349_v57 = vadd.f32 %v3347_v0, %v3344_v43  ;;  %s9270_s20 = sld [smem:[#allocation82_spill]] }
 0x24c   :  { %v3423_v25 = vmul.f32 %v6280_v37, %v9238_v4  ;;  %v9239_v63 = vstv %s9230_s17  ;;  %v3372_v59 = vmul.f32 %v6811_v21, %v2229_v35  ;;  %v3377_v27 = vmul.f32 %v6811_v21, %v2235_v28  ;;  %s9309_s17 = sld [smem:[#allocation101_spill]] }
 0x24d   :  { %v3365_v36 = vmul.f32 %v6405_v3, %v9239_v63  ;;  %v3412_v14 = vadd.f32 %v3410_v44, %v3407_v55  ;;  %v3420_v61 = vrot.slane %v3418_v29, 4  ;;  %v9241_v10 = vstv %s9234_s10  ;;  %s9316_s10 = sld [smem:[#allocation104_spill]] }
 0x24e   :  { %v3428_v26 = vmul.f32 %v6280_v37, %v9241_v10  ;;  %v3291_v1 = vadd.f32 %v3289_v53, %v3286_v31  ;;  %v3354_v41 = vadd.f32 %v3352_v47, %v3349_v57  ;;  %v9242_v20 = vstv %s9235_s5  ;;  %s9317_s5 = sld [smem:[#allocation106_spill]] }
 0x24f   :  { %v3382_v30 = vmul.f32 %v6811_v21, %v9242_v20  ;;  %v3387_v32 = vmul.f32 %v6811_v21, %v2247_v24  ;;  %v3304_v17 = vrot.slane %v3302_v58, 6  ;;  %v9243_v62 = vstv %s9237_s1  ;;  %s9280_s1 = sld [smem:[#allocation84_spill]] }
 0x250   :  { %v3370_v35 = vmul.f32 %v6811_v21, %v9243_v62  ;;  %v3417_v45 = vadd.f32 %v3415_v13, %v3412_v14  ;;  %v3425_v28 = vrot.slane %v3423_v25, 5  ;;  %v3296_v38 = vadd.f32 %v3294_v16, %v3291_v1 }
 0x251   :  { %v3359_v40 = vadd.f32 %v3357_v50, %v3354_v41  ;;  %v3367_v60 = vrot.slane %v3365_v36, 6  ;;  %v9247_v53 = vstv %s9240_s9  ;;  %v3374_v22 = vrot.slane %v3372_v59, 1  ;;  %s9281_s9 = sld [smem:[#allocation90_spill]] }
 0x252   :  { %v3435_v0 = vmul.f32 %v6405_v3, %v9247_v53  ;;  %v3379_v44 = vrot.slane %v3377_v27, 2  ;;  %v3422_v24 = vadd.f32 %v3420_v61, %v3417_v45  ;;  %v3430_v58 = vrot.slane %v3428_v26, 6 }
 0x253   :  { %v3301_v52 = vadd.f32 %v3299_v51, %v3296_v38  ;;  %v3364_v29 = vadd.f32 %v3362_v19, %v3359_v40  ;;  %v3384_v5 = vrot.slane %v3382_v30, 3  ;;  %v3389_v43 = vrot.slane %v3387_v32, 4 }
 0x254   :  { %v3392_v16 = vmul.f32 %v6811_v21, %v2253_v46  ;;  %v3427_v47 = vadd.f32 %v3425_v28, %v3422_v24  ;;  %v9255_v50 = vstv %s9245_s29  ;;  %v9256_v13 = vstv %s9246_s11  ;;  %s9283_s29 = sld [smem:[#allocation91_spill]]  ;;  %s9327_s11 = sld [smem:[#allocation117_spill]] }
 0x255   :  { %v3433_v55 = vmul.f32 %v6405_v3, %v9255_v50  ;;  %v3440_v4 = vmul.f32 %v6405_v3, %v9256_v13  ;;  %v7979_v25 = vadd.f32 %v3304_v17, %v3301_v52  ;;  %v3369_v51 = vadd.f32 %v3367_v60, %v3364_v29 }
 0x256   :  { %v3397_v19 = vmul.f32 %v6811_v21, %v2259_v7  ;;  %v3437_v31 = vrot.slane %v3435_v0, 1  ;;  %v3432_v57 = vadd.f32 %v3430_v58, %v3427_v47  ;;  %v9259_v63 = vstv %s9249_s14  ;;  %s9287_s14 = sld [smem:[#allocation92_spill]] }
 0x257   :  { %v3445_v46 = vmul.f32 %v6405_v3, %v9259_v63  ;;  %v9260_v36 = vstv %s9250_s0  ;;  %v9261_v27 = vstv %s9251_s19  ;;  %v3371_v61 = vadd.f32 %v3370_v35, %v3369_v51  ;;  %s9288_s0 = sld [smem:[#allocation95_spill]]  ;;  %s9289_s19 = sld [smem:[#allocation96_spill]] }
 0x258   :  { %v3450_v59 = vmul.f32 %v6405_v3, %v9260_v36  ;;  %v3497_v14 = vmul.f32 %v6280_v37, %v9261_v27  ;;  %v9262_v10 = vstv %s9252_s12  ;;  %v9263_v1 = vstv %s9253_s15  ;;  %s9292_s12 = sld [smem:[#allocation97_spill]]  ;;  %s9294_s15 = sld [smem:[#allocation93_spill]] }
 0x259   :  { %v3498_v26 = vmul.f32 %v6280_v37, %v9262_v10  ;;  %v3503_v41 = vmul.f32 %v6280_v37, %v9263_v1  ;;  %v9264_v7 = vstv %s9254_s21  ;;  %v3394_v30 = vrot.slane %v3392_v16, 5  ;;  %s9295_s21 = sld [smem:[#allocation98_spill]] }
 0x25a   :  { %v3508_v20 = vmul.f32 %v6280_v37, %v9264_v7  ;;  %v3434_v32 = vadd.f32 %v3433_v55, %v3432_v57  ;;  %v3442_v17 = vrot.slane %v3440_v4, 2  ;;  %v9266_v62 = vstv %s9257_s23  ;;  %s9299_s23 = sld [smem:[#allocation94_spill]] }
 0x25b   :  { %v3455_v45 = vmul.f32 %v6405_v3, %v9266_v62  ;;  %v3376_v28 = vadd.f32 %v3374_v22, %v3371_v61  ;;  %v3500_v35 = vrot.slane %v3498_v26, 1  ;;  %v3505_v38 = vrot.slane %v3503_v41, 2 }
 0x25c   :  { %v9269_v40 = vstv %s9258_s16  ;;  %v3399_v53 = vrot.slane %v3397_v19, 6  ;;  %v3439_v0 = vadd.f32 %v3437_v31, %v3434_v32  ;;  %v3447_v24 = vrot.slane %v3445_v46, 3  ;;  %s9301_s16 = sld [smem:[#allocation100_spill]] }
 0x25d   :  { %v3513_v60 = vmul.f32 %v6280_v37, %v9269_v40  ;;  %v3452_v58 = vrot.slane %v3450_v59, 4  ;;  %v3381_v52 = vadd.f32 %v3379_v44, %v3376_v28  ;;  %v3502_v29 = vadd.f32 %v3500_v35, %v3497_v14 }
 0x25e   :  { %v3510_v16 = vrot.slane %v3508_v20, 3  ;;  %v9275_v47 = vstv %s9265_s8  ;;  %v3444_v50 = vadd.f32 %v3442_v17, %v3439_v0  ;;  %v3457_v55 = vrot.slane %v3455_v45, 5  ;;  %s9303_s8 = sld [smem:[#allocation45_spill]] }
 0x25f   :  { %v3518_v22 = vmul.f32 %v6280_v37, %v9275_v47  ;;  %v9276_v13 = vstv %s9267_s30  ;;  %v3467_v51 = vmul.f32 %v6811_v21, %v2345_v34  ;;  %v3386_v19 = vadd.f32 %v3384_v5, %v3381_v52  ;;  %s9304_s30 = sld [smem:[#allocation60_spill]] }
 0x260   :  { %v3460_v4 = vmul.f32 %v6405_v3, %v9276_v13  ;;  %v3507_v31 = vadd.f32 %v3505_v38, %v3502_v29  ;;  %v3515_v57 = vrot.slane %v3513_v60, 4  ;;  %v9278_v63 = vstv %s9270_s20  ;;  %s9308_s20 = sld [smem:[#allocation99_spill]] }
 0x261   :  { %v3523_v44 = vmul.f32 %v6280_v37, %v9278_v63  ;;  %v3449_v46 = vadd.f32 %v3447_v24, %v3444_v50  ;;  %v3472_v36 = vmul.f32 %v6811_v21, %v2351_v39  ;;  %v3477_v59 = vmul.f32 %v6811_v21, %v2357_v56 }
 0x262   :  { %v3482_v27 = vmul.f32 %v6811_v21, %v2363_v12  ;;  %v3391_v14 = vadd.f32 %v3389_v43, %v3386_v19  ;;  %v3465_v34 = vmul.f32 %v6811_v21, %v2342_v6  ;;  %v3512_v5 = vadd.f32 %v3510_v16, %v3507_v31 }
 0x263   :  { %v3520_v61 = vrot.slane %v3518_v22, 5  ;;  %v3454_v10 = vadd.f32 %v3452_v58, %v3449_v46  ;;  %v3462_v26 = vrot.slane %v3460_v4, 6  ;;  %v3469_v1 = vrot.slane %v3467_v51, 1 }
 0x264   :  { %v3487_v39 = vmul.f32 %v6811_v21, %v2369_v23  ;;  %v3396_v56 = vadd.f32 %v3394_v30, %v3391_v14  ;;  %v3517_v41 = vadd.f32 %v3515_v57, %v3512_v5  ;;  %v3525_v7 = vrot.slane %v3523_v44, 6 }
 0x265   :  { %v9284_v12 = vstv %s9279_s22  ;;  %v3459_v6 = vadd.f32 %v3457_v55, %v3454_v10  ;;  %v3474_v20 = vrot.slane %v3472_v36, 2  ;;  %v3479_v32 = vrot.slane %v3477_v59, 3  ;;  %s9320_s22 = sld [smem:[#allocation105_spill]] }
 0x266   :  { %v3530_v43 = vmul.f32 %v6405_v3, %v9284_v12  ;;  %v3484_v17 = vrot.slane %v3482_v27, 4  ;;  %v8038_v62 = vadd.f32 %v3399_v53, %v3396_v56  ;;  %v3522_v45 = vadd.f32 %v3520_v61, %v3517_v41 }
 0x267   :  { %v9290_v23 = vstv %s9280_s1  ;;  %v9291_v28 = vstv %s9281_s9  ;;  %v3464_v38 = vadd.f32 %v3462_v26, %v3459_v6  ;;  %v3489_v40 = vrot.slane %v3487_v39, 5  ;;  %s9322_s1 = sld [smem:[#allocation107_spill]]  ;;  %s9323_s9 = sld [smem:[#allocation108_spill]] }
 0x268   :  { %v3528_v30 = vmul.f32 %v6405_v3, %v9290_v23  ;;  %v3535_v35 = vmul.f32 %v6405_v3, %v9291_v28  ;;  %v3492_v60 = vmul.f32 %v6811_v21, %v2375_v2  ;;  %v9293_v0 = vstv %s9283_s29  ;;  %s9326_s29 = sld [smem:[#allocation115_spill]] }
 0x269   :  { %v3540_v24 = vmul.f32 %v6405_v3, %v9293_v0  ;;  %v3527_v58 = vadd.f32 %v3525_v7, %v3522_v45  ;;  %v3532_v53 = vrot.slane %v3530_v43, 1  ;;  %v3592_v52 = vmul.f32 %v6280_v37, %v2497_v15 }
 0x26a   :  { %v3593_v29 = vmul.f32 %v6280_v37, %v2499_v48  ;;  %v3466_v16 = vadd.f32 %v3465_v34, %v3464_v38  ;;  %v9296_v47 = vstv %s9287_s14  ;;  %v9297_v50 = vstv %s9288_s0  ;;  %s9331_s14 = sld [smem:[#allocation109_spill]]  ;;  %s9333_s0 = sld [smem:[#allocation119_spill]] }
 0x26b   :  { %v3545_v22 = vmul.f32 %v6405_v3, %v9296_v47  ;;  %v3598_v2 = vmul.f32 %v6280_v37, %v9297_v50  ;;  %v9298_v55 = vstv %s9289_s19  ;;  %v3529_v4 = vadd.f32 %v3528_v30, %v3527_v58  ;;  %s9339_s19 = sld [smem:[#allocation120_spill]] }
 0x26c   :  { %v3603_v13 = vmul.f32 %v6280_v37, %v9298_v55  ;;  %v3537_v51 = vrot.slane %v3535_v35, 2  ;;  %v3595_v19 = vrot.slane %v3593_v29, 1  ;;  %v9300_v31 = vstv %s9292_s12  ;;  %s9342_s12 = sld [smem:[#allocation110_spill]] }
 0x26d   :  { %v3608_v15 = vmul.f32 %v6280_v37, %v9300_v31  ;;  %v3471_v48 = vadd.f32 %v3469_v1, %v3466_v16  ;;  %v3542_v57 = vrot.slane %v3540_v24, 3  ;;  %v9302_v63 = vstv %s9294_s15  ;;  %s9344_s15 = sld [smem:[#allocation121_spill]] }
 0x26e   :  { %v3550_v44 = vmul.f32 %v6405_v3, %v9302_v63  ;;  %v3600_v46 = vrot.slane %v3598_v2, 2  ;;  %v3534_v36 = vadd.f32 %v3532_v53, %v3529_v4  ;;  %v3597_v59 = vadd.f32 %v3595_v19, %v3592_v52 }
 0x26f   :  { %v3605_v27 = vrot.slane %v3603_v13, 3  ;;  %v9306_v14 = vstv %s9295_s21  ;;  %v3476_v5 = vadd.f32 %v3474_v20, %v3471_v48  ;;  %v3494_v61 = vrot.slane %v3492_v60, 6  ;;  %s9345_s21 = sld [smem:[#allocation112_spill]] }
 0x270   :  { %v3613_v34 = vmul.f32 %v6280_v37, %v9306_v14  ;;  %v3547_v10 = vrot.slane %v3545_v22, 4  ;;  %v9307_v26 = vstv %s9299_s23  ;;  %v3539_v39 = vadd.f32 %v3537_v51, %v3534_v36  ;;  %s9346_s23 = sld [smem:[#allocation114_spill]] }
 0x271   :  { %v3555_v1 = vmul.f32 %v6405_v3, %v9307_v26  ;;  %v3602_v56 = vadd.f32 %v3600_v46, %v3597_v59  ;;  %v3610_v41 = vrot.slane %v3608_v15, 4  ;;  %v9310_v7 = vstv %s9301_s16  ;;  %s9347_s16 = sld [smem:[#allocation111_spill]] }
 0x272   :  { %v3618_v12 = vmul.f32 %v6280_v37, %v9310_v7  ;;  %v3481_v43 = vadd.f32 %v3479_v32, %v3476_v5  ;;  %v3552_v6 = vrot.slane %v3550_v44, 5  ;;  %v9312_v45 = vstv %s9303_s8  ;;  %s9348_s8 = sld [smem:[#allocation116_spill]] }
 0x273   :  { %v3562_v23 = vmul.f32 %v6811_v21, %v9312_v45  ;;  %v9313_v20 = vstv %s9304_s30  ;;  %v3544_v28 = vadd.f32 %v3542_v57, %v3539_v39  ;;  %v9315_v35 = vstv %s9305_s26  ;;  %s9351_s30 = sld [smem:[#allocation122_spill]]  ;;  %s9352_s26 = sld [smem:[#allocation124_spill]] }
 0x274   :  { %v3567_v30 = vmul.f32 %v6811_v21, %v9313_v20  ;;  %v3560_v38 = vmul.f32 %v6811_v21, %v9315_v35  ;;  %v3607_v60 = vadd.f32 %v3605_v27, %v3602_v56  ;;  %v3615_v0 = vrot.slane %v3613_v34, 5 }
 0x275   :  { %v3486_v24 = vadd.f32 %v3484_v17, %v3481_v43  ;;  %v3557_v58 = vrot.slane %v3555_v1, 6  ;;  %v9318_v53 = vstv %s9308_s20  ;;  %v9319_v52 = vstv %s9309_s17  ;;  %s9354_s20 = sld [smem:[#allocation123_spill]]  ;;  %s9359_s17 = sld [smem:[#allocation125_spill]] }
 0x276   :  { %v3572_v32 = vmul.f32 %v6811_v21, %v9318_v53  ;;  %v3577_v29 = vmul.f32 %v6811_v21, %v9319_v52  ;;  %v3549_v16 = vadd.f32 %v3547_v10, %v3544_v28  ;;  %v3612_v47 = vadd.f32 %v3610_v41, %v3607_v60 }
 0x277   :  { %v3620_v22 = vrot.slane %v3618_v12, 6  ;;  %v9321_v50 = vstv %s9311_s18  ;;  %v3491_v55 = vadd.f32 %v3489_v40, %v3486_v24  ;;  %v3564_v13 = vrot.slane %v3562_v23, 1  ;;  %s9360_s18 = sld [smem:[#allocation126_spill]] }
 0x278   :  { %v3625_v2 = vmul.f32 %v6405_v3, %v9321_v50  ;;  %v3569_v17 = vrot.slane %v3567_v30, 2  ;;  %v9325_v4 = vstv %s9314_s7  ;;  %v3554_v19 = vadd.f32 %v3552_v6, %v3549_v16  ;;  %s9363_s7 = sld [smem:[#allocation130_spill]] }
 0x279   :  { %v3582_v51 = vmul.f32 %v6811_v21, %v9325_v4  ;;  %v3617_v31 = vadd.f32 %v3615_v0, %v3612_v47  ;;  %v9328_v15 = vstv %s9316_s10  ;;  %v9329_v57 = vstv %s9317_s5  ;;  %s9365_s10 = sld [smem:[#allocation127_spill]]  ;;  %s9366_s5 = sld [smem:[#allocation134_spill]] }
 0x27a   :  { %v3623_v48 = vmul.f32 %v6405_v3, %v9328_v15  ;;  %v3630_v63 = vmul.f32 %v6405_v3, %v9329_v57  ;;  %v8109_v44 = vadd.f32 %v3494_v61, %v3491_v55  ;;  %v3574_v40 = vrot.slane %v3572_v32, 3 }
 0x27b   :  { %v3579_v46 = vrot.slane %v3577_v29, 4  ;;  %v9332_v36 = vstv %s9320_s22  ;;  %v3559_v27 = vadd.f32 %v3557_v58, %v3554_v19  ;;  %v3622_v14 = vadd.f32 %v3620_v22, %v3617_v31  ;;  %s9367_s22 = sld [smem:[#allocation135_spill]] }
 0x27c   :  { %v3587_v59 = vmul.f32 %v6811_v21, %v9332_v36  ;;  %v3627_v34 = vrot.slane %v3625_v2, 1  ;;  %v9334_v5 = vstv %s9322_s1  ;;  %v9335_v26 = vstv %s9323_s9  ;;  %s9368_s1 = sld [smem:[#allocation137_spill]]  ;;  %s9371_s9 = sld [smem:[#allocation128_spill]] }
 0x27d   :  { %v3635_v10 = vmul.f32 %v6405_v3, %v9334_v5  ;;  %v3640_v1 = vmul.f32 %v6405_v3, %v9335_v26  ;;  %v9336_v39 = vstv %s9324_s4  ;;  %v9337_v56 = vstv %s9326_s29  ;;  %s9372_s4 = sld [smem:[#allocation138_spill]]  ;;  %s9374_s29 = sld [smem:[#allocation139_spill]] }
 0x27e   :  { %v3687_v61 = vmul.f32 %v6280_v37, %v9336_v39  ;;  %v3688_v41 = vmul.f32 %v6280_v37, %v9337_v56  ;;  %v9338_v7 = vstv %s9327_s11  ;;  %v3561_v43 = vadd.f32 %v3560_v38, %v3559_v27  ;;  %s9376_s11 = sld [smem:[#allocation129_spill]] }
 0x27f   :  { %v3693_v12 = vmul.f32 %v6280_v37, %v9338_v7  ;;  %v3624_v6 = vadd.f32 %v3623_v48, %v3622_v14  ;;  %v3632_v45 = vrot.slane %v3630_v63, 2  ;;  %v9340_v23 = vstv %s9330_s28  ;;  %s9380_s28 = sld [smem:[#allocation140_spill]] }
 0x280   :  { %v3698_v20 = vmul.f32 %v6280_v37, %v9340_v23  ;;  %v9341_v30 = vstv %s9331_s14  ;;  %v3690_v35 = vrot.slane %v3688_v41, 1  ;;  %v9343_v0 = vstv %s9333_s0  ;;  %s9383_s14 = sld [smem:[#allocation131_spill]]  ;;  %s9384_s0 = sld [smem:[#allocation133_spill]] }
 0x281   :  { %v3645_v28 = vmul.f32 %v6405_v3, %v9341_v30  ;;  %v3695_v60 = vrot.slane %v3693_v12, 2  ;;  %v3703_v24 = vmul.f32 %v6280_v37, %v9343_v0  ;;  %v3566_v58 = vadd.f32 %v3564_v13, %v3561_v43 }
 0x282   :  { %v3584_v53 = vrot.slane %v3582_v51, 5  ;;  %v3629_v32 = vadd.f32 %v3627_v34, %v3624_v6  ;;  %v3637_v38 = vrot.slane %v3635_v10, 3  ;;  %v3589_v52 = vrot.slane %v3587_v59, 6 }
 0x283   :  { %v3692_v29 = vadd.f32 %v3690_v35, %v3687_v61  ;;  %v3700_v16 = vrot.slane %v3698_v20, 3  ;;  %v9349_v47 = vstv %s9339_s19  ;;  %v3571_v50 = vadd.f32 %v3569_v17, %v3566_v58  ;;  %s9386_s19 = sld [smem:[#allocation141_spill]] }
 0x284   :  { %v3708_v22 = vmul.f32 %v6280_v37, %v9349_v47  ;;  %v3634_v2 = vadd.f32 %v3632_v45, %v3629_v32  ;;  %v3642_v55 = vrot.slane %v3640_v1, 4  ;;  %v9350_v4 = vstv %s9342_s12  ;;  %s9388_s12 = sld [smem:[#allocation136_spill]] }
 0x285   :  { %v3650_v19 = vmul.f32 %v6405_v3, %v9350_v4  ;;  %v3647_v13 = vrot.slane %v3645_v28, 5  ;;  %v3697_v51 = vadd.f32 %v3695_v60, %v3692_v29  ;;  %v3705_v31 = vrot.slane %v3703_v24, 4 }
 0x286   :  { %v9353_v15 = vstv %s9344_s15  ;;  %v3576_v57 = vadd.f32 %v3574_v40, %v3571_v50  ;;  %v3639_v63 = vadd.f32 %v3637_v38, %v3634_v2  ;;  %v9355_v36 = vstv %s9345_s21  ;;  %s9389_s15 = sld [smem:[#allocation142_spill]]  ;;  %s9390_s21 = sld [smem:[#allocation132_spill]] }
 0x287   :  { %v3713_v48 = vmul.f32 %v6280_v37, %v9353_v15  ;;  %v3657_v59 = vmul.f32 %v6811_v21, %v9355_v36  ;;  %v9356_v17 = vstv %s9346_s23  ;;  %v9357_v14 = vstv %s9347_s16  ;;  %s9394_s23 = sld [smem:[#allocation143_spill]]  ;;  %s9396_s16 = sld [smem:[#allocation144_spill]] }
 0x288   :  { %v3662_v27 = vmul.f32 %v6811_v21, %v9356_v17  ;;  %v3655_v34 = vmul.f32 %v6811_v21, %v9357_v14  ;;  %v9358_v5 = vstv %s9348_s8  ;;  %v3702_v26 = vadd.f32 %v3700_v16, %v3697_v51  ;;  %s9399_s8 = sld [smem:[#allocation147_spill]] }
 0x289   :  { %v3667_v10 = vmul.f32 %v6811_v21, %v9358_v5  ;;  %v3710_v1 = vrot.slane %v3708_v22, 5  ;;  %v3581_v39 = vadd.f32 %v3579_v46, %v3576_v57  ;;  %v3644_v61 = vadd.f32 %v3642_v55, %v3639_v63 }
 0x28a   :  { %v3652_v40 = vrot.slane %v3650_v19, 6  ;;  %v9361_v56 = vstv %s9351_s30  ;;  %v9362_v7 = vstv %s9352_s26  ;;  %v3707_v43 = vadd.f32 %v3705_v31, %v3702_v26  ;;  %s9401_s30 = sld [smem:[#allocation145_spill]]  ;;  %s9402_s26 = sld [smem:[#allocation146_spill]] }
 0x28b   :  { %v3672_v41 = vmul.f32 %v6811_v21, %v9361_v56  ;;  %v3677_v12 = vmul.f32 %v6811_v21, %v9362_v7  ;;  %v3715_v6 = vrot.slane %v3713_v48, 6  ;;  %v9364_v45 = vstv %s9354_s20  ;;  %s9404_s20 = sld [smem:[#allocation148_spill]] }
 0x28c   :  { %v3720_v23 = vmul.f32 %v6405_v3, %v9364_v45  ;;  %v3586_v20 = vadd.f32 %v3584_v53, %v3581_v39  ;;  %v3649_v30 = vadd.f32 %v3647_v13, %v3644_v61  ;;  %v3659_v28 = vrot.slane %v3657_v59, 1 }
 0x28d   :  { %v3664_v46 = vrot.slane %v3662_v27, 2  ;;  %v3669_v35 = vrot.slane %v3667_v10, 3  ;;  %v3712_v60 = vadd.f32 %v3710_v1, %v3707_v43  ;;  %v9369_v0 = vstv %s9359_s17  ;;  %s9405_s17 = sld [smem:[#allocation149_spill]] }
 0x28e   :  { %v3718_v24 = vmul.f32 %v6405_v3, %v9369_v0  ;;  %v9370_v58 = vstv %s9360_s18  ;;  %v8174_v38 = vadd.f32 %v3589_v52, %v3586_v20  ;;  %v3654_v29 = vadd.f32 %v3652_v40, %v3649_v30  ;;  %s9407_s18 = sld [smem:[#allocation156_spill]] }
 0x28f   :  { %v3725_v32 = vmul.f32 %v6405_v3, %v9370_v58  ;;  %v3674_v53 = vrot.slane %v3672_v41, 4  ;;  %v9373_v16 = vstv %s9363_s7  ;;  %v3679_v22 = vrot.slane %v3677_v12, 5  ;;  %s9408_s7 = sld [smem:[#allocation157_spill]] }
 0x290   :  { %v3682_v47 = vmul.f32 %v6811_v21, %v9373_v16  ;;  %v3717_v50 = vadd.f32 %v3715_v6, %v3712_v60  ;;  %v3722_v2 = vrot.slane %v3720_v23, 1  ;;  %v9375_v55 = vstv %s9365_s10  ;;  %s9409_s10 = sld [smem:[#allocation150_spill]] }
 0x291   :  { %v3730_v4 = vmul.f32 %v6405_v3, %v9375_v55  ;;  %v3656_v19 = vadd.f32 %v3655_v34, %v3654_v29  ;;  %v9377_v13 = vstv %s9366_s5  ;;  %v9378_v31 = vstv %s9367_s22  ;;  %s9411_s5 = sld [smem:[#allocation158_spill]]  ;;  %s9412_s22 = sld [smem:[#allocation159_spill]] }
 0x292   :  { %v3782_v51 = vmul.f32 %v6280_v37, %v9377_v13  ;;  %v3783_v52 = vmul.f32 %v6280_v37, %v9378_v31  ;;  %v9379_v15 = vstv %s9368_s1  ;;  %v3719_v57 = vadd.f32 %v3718_v24, %v3717_v50  ;;  %s9415_s1 = sld [smem:[#allocation160_spill]] }
 0x293   :  { %v3788_v48 = vmul.f32 %v6280_v37, %v9379_v15  ;;  %v3727_v63 = vrot.slane %v3725_v32, 2  ;;  %v9381_v36 = vstv %s9371_s9  ;;  %v9382_v17 = vstv %s9372_s4  ;;  %s9418_s9 = sld [smem:[#allocation151_spill]]  ;;  %s9421_s4 = sld [smem:[#allocation162_spill]] }
 0x294   :  { %v3735_v59 = vmul.f32 %v6405_v3, %v9381_v36  ;;  %v3793_v27 = vmul.f32 %v6280_v37, %v9382_v17  ;;  %v3661_v14 = vadd.f32 %v3659_v28, %v3656_v19  ;;  %v3785_v34 = vrot.slane %v3783_v52, 1 }
 0x295   :  { %v3790_v5 = vrot.slane %v3788_v48, 2  ;;  %v9385_v10 = vstv %s9374_s29  ;;  %v3684_v1 = vrot.slane %v3682_v47, 6  ;;  %v3724_v39 = vadd.f32 %v3722_v2, %v3719_v57  ;;  %s9425_s29 = sld [smem:[#allocation152_spill]] }
 0x296   :  { %v3798_v26 = vmul.f32 %v6280_v37, %v9385_v10  ;;  %v3732_v61 = vrot.slane %v3730_v4, 3  ;;  %v9387_v40 = vstv %s9376_s11  ;;  %v3666_v41 = vadd.f32 %v3664_v46, %v3661_v14  ;;  %s9427_s11 = sld [smem:[#allocation163_spill]] }
 0x297   :  { %v3740_v56 = vmul.f32 %v6405_v3, %v9387_v40  ;;  %v3787_v7 = vadd.f32 %v3785_v34, %v3782_v51  ;;  %v3795_v12 = vrot.slane %v3793_v27, 3  ;;  %v9391_v43 = vstv %s9380_s28  ;;  %s9429_s28 = sld [smem:[#allocation153_spill]] }
 0x298   :  { %v3803_v6 = vmul.f32 %v6280_v37, %v9391_v43  ;;  %v3729_v45 = vadd.f32 %v3727_v63, %v3724_v39  ;;  %v3737_v23 = vrot.slane %v3735_v59, 4  ;;  %v9392_v20 = vstv %s9383_s14  ;;  %s9430_s14 = sld [smem:[#allocation155_spill]] }
 0x299   :  { %v3745_v30 = vmul.f32 %v6405_v3, %v9392_v20  ;;  %v9393_v28 = vstv %s9384_s0  ;;  %v3671_v0 = vadd.f32 %v3669_v35, %v3666_v41  ;;  %v3792_v24 = vadd.f32 %v3790_v5, %v3787_v7  ;;  %s9433_s0 = sld [smem:[#allocation161_spill]] }
 0x29a   :  { %v3752_v60 = vmul.f32 %v6811_v21, %v9393_v28  ;;  %v3800_v58 = vrot.slane %v3798_v26, 4  ;;  %v9395_v32 = vstv %s9386_s19  ;;  %v3734_v29 = vadd.f32 %v3732_v61, %v3729_v45  ;;  %s9434_s19 = sld [smem:[#allocation165_spill]] }
 0x29b   :  { %v3808_v46 = vmul.f32 %v6280_v37, %v9395_v32  ;;  %v3742_v16 = vrot.slane %v3740_v56, 5  ;;  %v9397_v47 = vstv %s9388_s12  ;;  %v9398_v2 = vstv %s9389_s15  ;;  %s9436_s12 = sld [smem:[#allocation164_spill]]  ;;  %s9437_s15 = sld [smem:[#allocation154_spill]] }
 0x29c   :  { %v3757_v50 = vmul.f32 %v6811_v21, %v9397_v47  ;;  %v3762_v55 = vmul.f32 %v6811_v21, %v9398_v2  ;;  %v3676_v4 = vadd.f32 %v3674_v53, %v3671_v0  ;;  %v9400_v19 = vstv %s9390_s21  ;;  %s9439_s21 = sld [smem:[#allocation169_spill]] }
 0x29d   :  { %v3750_v13 = vmul.f32 %v6811_v21, %v9400_v19  ;;  %v3797_v35 = vadd.f32 %v3795_v12, %v3792_v24  ;;  %v3805_v51 = vrot.slane %v3803_v6, 5  ;;  %v3739_v31 = vadd.f32 %v3737_v23, %v3734_v29 }
 0x29e   :  { %v3747_v52 = vrot.slane %v3745_v30, 6  ;;  %v3754_v15 = vrot.slane %v3752_v60, 1  ;;  %v9403_v48 = vstv %s9394_s23  ;;  %v3681_v63 = vadd.f32 %v3679_v22, %v3676_v4  ;;  %s9441_s23 = sld [smem:[#allocation168_spill]] }
 0x29f   :  { %v3767_v57 = vmul.f32 %v6811_v21, %v9403_v48  ;;  %v3802_v36 = vadd.f32 %v3800_v58, %v3797_v35  ;;  %v3810_v59 = vrot.slane %v3808_v46, 6  ;;  %v9406_v17 = vstv %s9396_s16  ;;  %s9445_s16 = sld [smem:[#allocation170_spill]] }
 0x2a0   :  { %v3815_v53 = vmul.f32 %v6405_v3, %v9406_v17  ;;  %v3744_v27 = vadd.f32 %v3742_v16, %v3739_v31  ;;  %v3759_v14 = vrot.slane %v3757_v50, 2  ;;  %v3764_v34 = vrot.slane %v3762_v55, 3 }
 0x2a1   :  { %v9410_v5 = vstv %s9399_s8  ;;  %v8233_v26 = vadd.f32 %v3684_v1, %v3681_v63  ;;  %v3807_v39 = vadd.f32 %v3805_v51, %v3802_v36  ;;  %v9413_v22 = vstv %s9401_s30  ;;  %s9447_s8 = sld [smem:[#allocation171_spill]]  ;;  %s9449_s30 = sld [smem:[#allocation176_spill]] }
 0x2a2   :  { %v3772_v10 = vmul.f32 %v6811_v21, %v9410_v5  ;;  %v3813_v61 = vmul.f32 %v6405_v3, %v9413_v22  ;;  %v9414_v40 = vstv %s9402_s26  ;;  %v3749_v41 = vadd.f32 %v3747_v52, %v3744_v27  ;;  %s9450_s26 = sld [smem:[#allocation177_spill]] }
 0x2a3   :  { %v3820_v56 = vmul.f32 %v6405_v3, %v9414_v40  ;;  %v3769_v7 = vrot.slane %v3767_v57, 4  ;;  %v9416_v12 = vstv %s9404_s20  ;;  %v9417_v6 = vstv %s9405_s17  ;;  %s9452_s20 = sld [smem:[#allocation179_spill]]  ;;  %s9453_s17 = sld [smem:[#allocation166_spill]] }
 0x2a4   :  { %v3777_v43 = vmul.f32 %v6811_v21, %v9416_v12  ;;  %v3825_v45 = vmul.f32 %v6405_v3, %v9417_v6  ;;  %v3812_v23 = vadd.f32 %v3810_v59, %v3807_v39  ;;  %v3817_v1 = vrot.slane %v3815_v53, 1 }
 0x2a5   :  { %v9419_v20 = vstv %s9407_s18  ;;  %v9420_v28 = vstv %s9408_s7  ;;  %v3751_v0 = vadd.f32 %v3750_v13, %v3749_v41  ;;  %v9422_v24 = vstv %s9409_s10  ;;  %s9454_s18 = sld [smem:[#allocation172_spill]]  ;;  %s9458_s10 = sld [smem:[#allocation167_spill]] }
 0x2a6   :  { %v3877_v30 = vmul.f32 %v6280_v37, %v9419_v20  ;;  %v3878_v60 = vmul.f32 %v6280_v37, %v9420_v28  ;;  %v3830_v58 = vmul.f32 %v6405_v3, %v9422_v24  ;;  %v9423_v32 = vstv %s9411_s5  ;;  %s9455_s7 = sld [smem:[#allocation180_spill]]  ;;  %s9464_s5 = sld [smem:[#allocation173_spill]] }
 0x2a7   :  { %v3883_v46 = vmul.f32 %v6280_v37, %v9423_v32  ;;  %v9424_v29 = vstv %s9412_s22  ;;  %v3814_v47 = vadd.f32 %v3813_v61, %v3812_v23  ;;  %v3822_v50 = vrot.slane %v3820_v56, 2  ;;  %s9471_s22 = sld [smem:[#allocation178_spill]] }
 0x2a8   :  { %v3888_v16 = vmul.f32 %v6280_v37, %v9424_v29  ;;  %v3880_v2 = vrot.slane %v3878_v60, 1  ;;  %v9426_v55 = vstv %s9415_s1  ;;  %v3756_v19 = vadd.f32 %v3754_v15, %v3751_v0  ;;  %s9472_s1 = sld [smem:[#allocation181_spill]] }
 0x2a9   :  { %v3893_v4 = vmul.f32 %v6280_v37, %v9426_v55  ;;  %v3827_v35 = vrot.slane %v3825_v45, 3  ;;  %v9428_v13 = vstv %s9418_s9  ;;  %v3885_v31 = vrot.slane %v3883_v46, 2  ;;  %s9476_s9 = sld [smem:[#allocation184_spill]] }
 0x2aa   :  { %v3835_v51 = vmul.f32 %v6405_v3, %v9428_v13  ;;  %v3819_v52 = vadd.f32 %v3817_v1, %v3814_v47  ;;  %v3882_v48 = vadd.f32 %v3880_v2, %v3877_v30  ;;  %v3890_v57 = vrot.slane %v3888_v16, 3 }
 0x2ab   :  { %v9431_v63 = vstv %s9421_s4  ;;  %v3761_v59 = vadd.f32 %v3759_v14, %v3756_v19  ;;  %v3774_v17 = vrot.slane %v3772_v10, 5  ;;  %v3832_v53 = vrot.slane %v3830_v58, 4  ;;  %s9477_s4 = sld [smem:[#allocation185_spill]] }
 0x2ac   :  { %v3898_v36 = vmul.f32 %v6280_v37, %v9431_v63  ;;  %v9432_v27 = vstv %s9425_s29  ;;  %v3824_v5 = vadd.f32 %v3822_v50, %v3819_v52  ;;  %v3887_v39 = vadd.f32 %v3885_v31, %v3882_v48  ;;  %s9481_s29 = sld [smem:[#allocation182_spill]] }
 0x2ad   :  { %v3840_v15 = vmul.f32 %v6405_v3, %v9432_v27  ;;  %v3895_v22 = vrot.slane %v3893_v4, 4  ;;  %v9435_v61 = vstv %s9427_s11  ;;  %v3766_v56 = vadd.f32 %v3764_v34, %v3761_v59  ;;  %s9484_s11 = sld [smem:[#allocation187_spill]] }
 0x2ae   :  { %v3903_v40 = vmul.f32 %v6280_v37, %v9435_v61  ;;  %v3779_v41 = vrot.slane %v3777_v43, 6  ;;  %v3837_v12 = vrot.slane %v3835_v51, 5  ;;  %v9438_v6 = vstv %s9429_s28  ;;  %s9493_s28 = sld [smem:[#allocation189_spill]] }
 0x2af   :  { %v3847_v14 = vmul.f32 %v6811_v21, %v9438_v6  ;;  %v3829_v10 = vadd.f32 %v3827_v35, %v3824_v5  ;;  %v9440_v45 = vstv %s9430_s14  ;;  %v3892_v1 = vadd.f32 %v3890_v57, %v3887_v39  ;;  %s9495_s14 = sld [smem:[#allocation190_spill]] }
 0x2b0   :  { %v3852_v23 = vmul.f32 %v6811_v21, %v9440_v45  ;;  %v3900_v20 = vrot.slane %v3898_v36, 5  ;;  %v3771_v30 = vadd.f32 %v3769_v7, %v3766_v56  ;;  %v3842_v28 = vrot.slane %v3840_v15, 6 }
 0x2b1   :  { %v9442_v60 = vstv %s9433_s0  ;;  %v9443_v34 = vstv %s9434_s19  ;;  %v3834_v24 = vadd.f32 %v3832_v53, %v3829_v10  ;;  %v3897_v58 = vadd.f32 %v3895_v22, %v3892_v1 }
 0x2b2   :  { %v3857_v0 = vmul.f32 %v6811_v21, %v9442_v60  ;;  %v3862_v43 = vmul.f32 %v6811_v21, %v9443_v34  ;;  %v3905_v32 = vrot.slane %v3903_v40, 6  ;;  %v9444_v46 = vstv %s9436_s12 }
 0x2b3   :  { %v3910_v29 = vmul.f32 %v6405_v3, %v9444_v46  ;;  %v3776_v16 = vadd.f32 %v3774_v17, %v3771_v30  ;;  %v9446_v47 = vstv %s9437_s15  ;;  %v9448_v7 = vstv %s9439_s21 }
 0x2b4   :  { %v3845_v50 = vmul.f32 %v6811_v21, %v9446_v47  ;;  %v3915_v2 = vmul.f32 %v6405_v3, %v9448_v7  ;;  %v3839_v55 = vadd.f32 %v3837_v12, %v3834_v24  ;;  %v3849_v4 = vrot.slane %v3847_v14, 1 }
 0x2b5   :  { %v3902_v19 = vadd.f32 %v3900_v20, %v3897_v58  ;;  %v9451_v35 = vstv %s9441_s23  ;;  %v8301_v51 = vadd.f32 %v3779_v41, %v3776_v16  ;;  %v3854_v31 = vrot.slane %v3852_v23, 2 }
 0x2b6   :  { %v3908_v13 = vmul.f32 %v6405_v3, %v9451_v35  ;;  %v3859_v52 = vrot.slane %v3857_v0, 3  ;;  %v3864_v48 = vrot.slane %v3862_v43, 4  ;;  %v3844_v57 = vadd.f32 %v3842_v28, %v3839_v55 }
 0x2b7   :  { %v3907_v63 = vadd.f32 %v3905_v32, %v3902_v19  ;;  %v3912_v36 = vrot.slane %v3910_v29, 1  ;;  %v9456_v59 = vstv %s9445_s16  ;;  %v3917_v53 = vrot.slane %v3915_v2, 2 }
 0x2b8   :  { %v3920_v17 = vmul.f32 %v6405_v3, %v9456_v59  ;;  %v9457_v27 = vstv %s9447_s8  ;;  %v9459_v5 = vstv %s9449_s30  ;;  %v9460_v22 = vstv %s9450_s26 }
 0x2b9   :  { %v3925_v15 = vmul.f32 %v6405_v3, %v9457_v27  ;;  %v3972_v39 = vmul.f32 %v6280_v37, %v9459_v5  ;;  %v3973_v61 = vmul.f32 %v6280_v37, %v9460_v22  ;;  %v3846_v40 = vadd.f32 %v3845_v50, %v3844_v57 }
 0x2ba   :  { %v3909_v56 = vadd.f32 %v3908_v13, %v3907_v63  ;;  %v9461_v41 = vstv %s9452_s20  ;;  %v9462_v6 = vstv %s7514_s6  ;;  %v9463_v10 = vstv %s9453_s17  ;;  %s9468_s6 = sld [smem:[#allocation175_spill]] }
 0x2bb   :  { %v3978_v12 = vmul.f32 %v6280_v37, %v9461_v41  ;;  %v3983_v14 = vmul.f32 %v6280_v37, %v9462_v6  ;;  %v3867_v45 = vmul.f32 %v6811_v21, %v9463_v10  ;;  %v9465_v23 = vstv %s9454_s18 }
 0x2bc   :  { %v3930_v1 = vmul.f32 %v6405_v3, %v9465_v23  ;;  %v3975_v20 = vrot.slane %v3973_v61, 1  ;;  %v9466_v30 = vstv %s9455_s7  ;;  %v3851_v60 = vadd.f32 %v3849_v4, %v3846_v40 }
 0x2bd   :  { %v3988_v28 = vmul.f32 %v6280_v37, %v9466_v30  ;;  %v3914_v0 = vadd.f32 %v3912_v36, %v3909_v56  ;;  %v3922_v34 = vrot.slane %v3920_v17, 3  ;;  %v3980_v43 = vrot.slane %v3978_v12, 2 }
 0x2be   :  { %v9467_v24 = vstv %s9458_s10  ;;  %v3977_v32 = vadd.f32 %v3975_v20, %v3972_v39  ;;  %v3985_v46 = vrot.slane %v3983_v14, 3  ;;  %v9469_v29 = vstv %s7535_s2  ;;  %s9474_s2 = sld [smem:[#allocation174_spill]] }
 0x2bf   :  { %v3872_v58 = vmul.f32 %v6811_v21, %v9467_v24  ;;  %v3993_v16 = vmul.f32 %v6280_v37, %v9469_v29  ;;  %v3856_v47 = vadd.f32 %v3854_v31, %v3851_v60  ;;  %v3919_v50 = vadd.f32 %v3917_v53, %v3914_v0 }
 0x2c0   :  { %v3927_v7 = vrot.slane %v3925_v15, 4  ;;  %v9470_v2 = vstv %s9464_s5  ;;  %v3982_v4 = vadd.f32 %v3980_v43, %v3977_v32  ;;  %v3990_v19 = vrot.slane %v3988_v28, 4 }
 0x2c1   :  { %v3935_v55 = vmul.f32 %v6405_v3, %v9470_v2  ;;  %v9473_v35 = vstv %s7541_s13  ;;  %v3861_v57 = vadd.f32 %v3859_v52, %v3856_v47  ;;  %v3869_v63 = vrot.slane %v3867_v45, 5  ;;  %s9480_s13 = sld [smem:[#allocation186_spill]] }
 0x2c2   :  { %v3998_v13 = vmul.f32 %v6280_v37, %v9473_v35  ;;  %v3924_v36 = vadd.f32 %v3922_v34, %v3919_v50  ;;  %v3932_v59 = vrot.slane %v3930_v1, 5  ;;  %v3874_v31 = vrot.slane %v3872_v58, 6 }
 0x2c3   :  { %v9475_v17 = vstv %s9468_s6  ;;  %v3987_v27 = vadd.f32 %v3985_v46, %v3982_v4  ;;  %v3995_v15 = vrot.slane %v3993_v16, 5  ;;  %v3866_v5 = vadd.f32 %v3864_v48, %v3861_v57 }
 0x2c4   :  { %v3942_v53 = vmul.f32 %v6811_v21, %v9475_v17  ;;  %v3929_v39 = vadd.f32 %v3927_v7, %v3924_v36  ;;  %v3937_v22 = vrot.slane %v3935_v55, 6  ;;  %v9478_v61 = vstv %s9471_s22 }
 0x2c5   :  { %v3947_v37 = vmul.f32 %v6811_v21, %v9478_v61  ;;  %v9479_v52 = vstv %s9472_s1  ;;  %v3992_v56 = vadd.f32 %v3990_v19, %v3987_v27  ;;  %v4000_v41 = vrot.slane %v3998_v13, 6 }
 0x2c6   :  { %v3952_v40 = vmul.f32 %v6811_v21, %v9479_v52  ;;  %v9482_v12 = vstv %s7564_s27  ;;  %v3871_v14 = vadd.f32 %v3869_v63, %v3866_v5  ;;  %v3934_v10 = vadd.f32 %v3932_v59, %v3929_v39 }
 0x2c7   :  { %v4005_v6 = vmul.f32 %v6405_v3, %v9482_v12  ;;  %v9483_v45 = vstv %s9474_s2  ;;  %v9485_v23 = vstv %s7551_s3  ;;  %v3944_v20 = vrot.slane %v3942_v53, 1  ;;  %s9491_s3 = sld [smem:[#allocation188_spill]] }
 0x2c8   :  { %v3940_v48 = vmul.f32 %v6811_v21, %v9483_v45  ;;  %v3957_v1 = vmul.f32 %v6811_v21, %v9485_v23  ;;  %v3997_v30 = vadd.f32 %v3995_v15, %v3992_v56  ;;  %v9486_v28 = vstv %s9476_s9 }
 0x2c9   :  { %v4003_v60 = vmul.f32 %v6405_v3, %v9486_v28  ;;  %v9487_v0 = vstv %s9477_s4  ;;  %v3876_v43 = vadd.f32 %v3874_v31, %v3871_v14  ;;  %v3939_v24 = vadd.f32 %v3937_v22, %v3934_v10 }
 0x2ca   :  { %v4010_v34 = vmul.f32 %v6405_v3, %v9487_v0  ;;  %v3949_v58 = vrot.slane %v3947_v37, 2  ;;  %v9489_v32 = vstv %s9480_s13  ;;  %v3954_v29 = vrot.slane %v3952_v40, 3 }
 0x2cb   :  { %v4015_v46 = vmul.f32 %v6405_v3, %v9489_v32  ;;  %v9490_v16 = vstv %s9481_s29  ;;  %v4002_v50 = vadd.f32 %v4000_v41, %v3997_v30  ;;  %v4007_v7 = vrot.slane %v4005_v6, 1  ;;  %v4939_v30 = vld [vmem:[%s9140_s25 + $0x30] sm:$0xff] }
 0x2cc   :  { %v3962_v47 = vmul.f32 %v6811_v21, %v9490_v16  ;;  %v3941_v2 = vadd.f32 %v3940_v48, %v3939_v24  ;;  %v9492_v55 = vstv %s9484_s11  ;;  %v4068_v19 = vrot.slane %v7979_v25, 7 }
 0x2cd   :  { %v4020_v4 = vmul.f32 %v6405_v3, %v9492_v55  ;;  %v4071_v35 = vrot.slane %v8038_v62, 6  ;;  %v3959_v13 = vrot.slane %v3957_v1, 4  ;;  %v4004_v57 = vadd.f32 %v4003_v60, %v4002_v50 }
 0x2ce   :  { %v4012_v63 = vrot.slane %v4010_v34, 2  ;;  %v4074_v36 = vrot.slane %v8109_v44, 5  ;;  %v3946_v59 = vadd.f32 %v3944_v20, %v3941_v2  ;;  %v3967_v31 = vmul.f32 %v6811_v21, %v2955_v33 }
 0x2cf   :  { %v4017_v17 = vrot.slane %v4015_v46, 3  ;;  %v4077_v53 = vrot.slane %v8174_v38, 4  ;;  %v4009_v27 = vadd.f32 %v4007_v7, %v4004_v57  ;;  %v9494_v15 = vstv %s9491_s3 }
 0x2d0   :  { %v4025_v5 = vmul.f32 %v6405_v3, %v9494_v15  ;;  %v4080_v25 = vrot.slane %v8233_v26, 3  ;;  %v4091_v62 = vsel %vm3101_vm3, %v7913_v18, %v4068_v19  ;;  %v3951_v39 = vadd.f32 %v3949_v58, %v3946_v59 }
 0x2d1   :  { %v4022_v22 = vrot.slane %v4020_v4, 4  ;;  %v4083_v44 = vrot.slane %v8301_v51, 2  ;;  %v4092_v61 = vsel %vm3103_vm4, %v4091_v62, %v4071_v35  ;;  %v4014_v33 = vadd.f32 %v4012_v63, %v4009_v27 }
 0x2d2   :  { %v9496_v37 = vstv %s9493_s28  ;;  %v4086_v52 = vrot.slane %v3876_v43, 1  ;;  %v4093_v40 = vsel %vm3105_vm5, %v4092_v61, %v4074_v36  ;;  %v3956_v56 = vadd.f32 %v3954_v29, %v3951_v39 }
 0x2d3   :  { %v4030_v38 = vmul.f32 %v6405_v3, %v9496_v37  ;;  %v3964_v41 = vrot.slane %v3962_v47, 5  ;;  %v4094_v26 = vsel %vm3107_vm6, %v4093_v40, %v4077_v53  ;;  %v4019_v18 = vadd.f32 %v4017_v17, %v4014_v33 }
 0x2d4   :  { %v4027_v12 = vrot.slane %v4025_v5, 5  ;;  %v4095_v51 = vsel %vm1415_vm2, %v4094_v26, %v4080_v25  ;;  %v3961_v6 = vadd.f32 %v3959_v13, %v3956_v56  ;;  %v3969_v14 = vrot.slane %v3967_v31, 6 }
 0x2d5   :  { %v4096_v10 = vsel %vm918_vm1, %v4095_v51, %v4083_v44  ;;  %v4024_v45 = vadd.f32 %v4022_v22, %v4019_v18  ;;  %v4032_v3 = vrot.slane %v4030_v38, 6  ;;  %v9500_v48 = vstv %s9495_s14 }
 0x2d6   :  { %v4037_v23 = vmul.f32 %v6811_v21, %v9500_v48  ;;  %v4097_v1 = vsel %vm158_vm0, %v4096_v10, %v4086_v52  ;;  %v3966_v20 = vadd.f32 %v3964_v41, %v3961_v6  ;;  %v4035_v0 = vmul.f32 %v6811_v21, %v3038_v11 }
 0x2d7   :  { %v4099_v28 = vadd.f32 %v4939_v30, %v4097_v1  ;;  %v4029_v60 = vadd.f32 %v4027_v12, %v4024_v45  ;;  %v4042_v34 = vmul.f32 %v6811_v21, %v3047_v9  ;;  %v4047_v32 = vmul.f32 %v6811_v21, %v3053_v54 }
 0x2d8   :  { %v3971_v43 = vadd.f32 %v3969_v14, %v3966_v20  ;;  %v4039_v58 = vrot.slane %v4037_v23, 1  ;;  %v4052_v16 = vmul.f32 %v6811_v21, %v3059_v42  ;;  %v4057_v9 = vmul.f32 %v6811_v21, %v3065_v8  ;;  %v4940_v42 = vld [vmem:[%s9140_s25 + $0x38] sm:$0x3] }
 0x2d9   :  { %4546 = vst [vmem:[%s9144_s24 + $0x10] sm:$0xff] %v4099_v28  ;;  %v4034_v24 = vadd.f32 %v4032_v3, %v4029_v60  ;;  %v4044_v29 = vrot.slane %v4042_v34, 2  ;;  %v4049_v11 = vrot.slane %v4047_v32, 3  ;;  %v4062_v2 = vmul.f32 %v6811_v21, %v3071_v49 }
 0x2da   :  { %v4054_v7 = vrot.slane %v4052_v16, 4  ;;  %v4059_v4 = vrot.slane %v4057_v9, 5 }
 0x2db   :  { %v4036_v46 = vadd.f32 %v4035_v0, %v4034_v24  ;;  %v4064_v35 = vrot.slane %v4062_v2, 6 }
 0x2dd   :  { %v4041_v47 = vadd.f32 %v4039_v58, %v4036_v46 }
 0x2df   :  { %v4046_v50 = vadd.f32 %v4044_v29, %v4041_v47 }
 0x2e1   :  { %v4051_v55 = vadd.f32 %v4049_v11, %v4046_v50 }
 0x2e3   :  { %v4056_v19 = vadd.f32 %v4054_v7, %v4051_v55 }
 0x2e5   :  { %v4061_v54 = vadd.f32 %v4059_v4, %v4056_v19 }
 0x2e7   :  { %v4066_v13 = vadd.f32 %v4064_v35, %v4061_v54 }
 0x2e9   :  { %v4089_v57 = vrot.slane %v4066_v13, 7 }
 0x2eb   :  { %v4098_v63 = vsel %vm3101_vm3, %v3971_v43, %v4089_v57 }
 0x2ec   :  { %v4100_v36 = vadd.f32 %v4940_v42, %v4098_v63 }
 0x2ee   :  { %4547 = vst [vmem:[%s9144_s24 + $0x18] sm:$0x3] %v4100_v36 }
 0x2ef   :  { %4108 = vsyncpa [#allocation3], 1 }

</bundles_post_ra>
